<compile_context>
chip_gen: v6e
topology: v6e:2x2x1
jax: 0.10.0
libtpu: 0.0.40
codegen_flags: <defaults>
</compile_context>

<pallas_src>
import math

import jax
import jax.numpy as jnp
from jax.experimental import pallas as pl
from jax.experimental.pallas import tpu as pltpu

IN_FEATURES = 3 * 32 * 32   # 3072
HIDDEN = 512
OUT_FEATURES = 10
OUT_PADDED = 128            # lane-dense padded output width
MAX_BATCH_TILE = 512        # x tile 512x3072 f32 (x2 bufs) + weights + f32 acts ~= 19 MiB

# Flipped off at runtime if this JAX build rejects single-buffered resident specs.
_SINGLE_BUFFER_OK = True


def _mlp_kernel(x_ref, w1_ref, b1_ref, w2_ref, b2_ref, w3_ref, b3_ref, out_ref):
    """Fused 3-layer MLP for one batch tile; weights stay resident across tiles.

    x arrives as f32 (cast to bf16 here, free on the VPU under the MXU) or already
    as bf16 (ragged/padded path).  Dots accumulate in f32 (preferred_element_type);
    bias-add / ReLU run in f32; activations re-cast to bf16 only at MXU inputs.
    """
    x = x_ref[...].astype(jnp.bfloat16)                                # (TM, 3072) bf16
    h1 = jnp.dot(x, w1_ref[...], preferred_element_type=jnp.float32)  # (TM, 512) f32
    h1 = jnp.maximum(h1 + b1_ref[...], 0.0)
    h2 = jnp.dot(h1.astype(jnp.bfloat16), w2_ref[...],
                 preferred_element_type=jnp.float32)                  # (TM, 512) f32
    h2 = jnp.maximum(h2 + b2_ref[...], 0.0)
    out = jnp.dot(h2.astype(jnp.bfloat16), w3_ref[...],
                  preferred_element_type=jnp.float32)                 # (TM, 128) f32
    out_ref[...] = out + b3_ref[...]


def prepare_params(params):
    """One-time parameter prep (do NOT call per forward): bf16 weights,
    W3/b3 zero-padded to 128 output lanes, biases shaped (1, H) in f32."""
    # TODO(synk): optional v7x-only path -- store W1 in fp8 (v7x MXU supports bf16+fp8)
    # to cut weight DMA ~45% for small-batch latency; needs accuracy validation first.
    w1, b1, w2, b2, w3, b3 = params
    w3_p = jnp.zeros((HIDDEN, OUT_PADDED), jnp.float32).at[:, :OUT_FEATURES].set(w3)
    b3_p = jnp.zeros((1, OUT_PADDED), jnp.float32).at[:, :OUT_FEATURES].set(b3)
    return (
        w1.astype(jnp.bfloat16),
        b1.reshape(1, HIDDEN).astype(jnp.float32),
        w2.astype(jnp.bfloat16),
        b2.reshape(1, HIDDEN).astype(jnp.float32),
        w3_p.astype(jnp.bfloat16),
        b3_p.astype(jnp.float32),
    )


def _select_batch_tile(b_rows):
    """Pick the batch-tile size; b_rows is already a multiple of 16."""
    if b_rows <= 256:
        return b_rows                               # single step: small-batch latency path
    # Largest 16-aligned tile <= MAX_BATCH_TILE that divides b_rows (no big pad).
    tm = 16
    for t in range(16, min(b_rows, MAX_BATCH_TILE) + 1, 16):
        if b_rows % t == 0:
            tm = t
    # v7x megacore: large batches get >= 2 grid steps so the "parallel" batch axis
    # can be sharded across the two TensorCores.
    if tm == b_rows and b_rows >= 512 and (b_rows // 2) % 16 == 0:
        tm = b_rows // 2
    return tm


def _resident_spec(shape, single_buffer):
    """Weights/biases: constant index_map -> DMA'd once, resident across grid steps.
    Single-buffering halves their VMEM footprint (~3.7 vs ~7.4 MiB)."""
    if single_buffer:
        return pl.BlockSpec(shape, lambda i: (0, 0), pipeline_mode=pl.Buffered(1))
    return pl.BlockSpec(shape, lambda i: (0, 0))


def _pallas_forward(x_in, prepared_params, tm, single_buffer):
    w1, b1, w2, b2, w3_p, b3_p = prepared_params
    b_rows = x_in.shape[0]
    grid = (b_rows // tm,)

    weight_bytes = 2 * (IN_FEATURES * HIDDEN + HIDDEN * HIDDEN + HIDDEN * OUT_PADDED)
    cost = pl.CostEstimate(
        flops=2 * b_rows * (IN_FEATURES * HIDDEN + HIDDEN * HIDDEN + HIDDEN * OUT_PADDED),
        transcendentals=0,
        bytes_accessed=int(x_in.size * x_in.dtype.itemsize + weight_bytes
                           + b_rows * OUT_PADDED * 4),
    )

    return pl.pallas_call(
        _mlp_kernel,
        out_shape=jax.ShapeDtypeStruct((b_rows, OUT_PADDED), jnp.float32),
        grid=grid,
        in_specs=[
            pl.BlockSpec((tm, IN_FEATURES), lambda i: (i, 0)),       # streamed x tile
            _resident_spec((IN_FEATURES, HIDDEN), single_buffer),
            _resident_spec((1, HIDDEN), single_buffer),
            _resident_spec((HIDDEN, HIDDEN), single_buffer),
            _resident_spec((1, HIDDEN), single_buffer),
            _resident_spec((HIDDEN, OUT_PADDED), single_buffer),
            _resident_spec((1, OUT_PADDED), single_buffer),
        ],
        out_specs=pl.BlockSpec((tm, OUT_PADDED), lambda i: (i, 0)),
        compiler_params=pltpu.CompilerParams(
            dimension_semantics=("parallel",),
            vmem_limit_bytes=32 << 20,   # safe on v5e/v6e (128 MiB) and v7x (64 MiB)
        ),
        cost_estimate=cost,
    )(x_in, w1, b1, w2, b2, w3_p, b3_p)


def neural_network_forward(x_nchw, prepared_params):
    """x_nchw: (B, 3, 32, 32) float32 -> logits (B, 10) float32."""
    global _SINGLE_BUFFER_OK
    B = x_nchw.shape[0]

    # nn.Flatten(): (B, C, H, W) -> (B, C*H*W), row-major — matches jnp.reshape.
    x_flat = x_nchw.reshape(B, IN_FEATURES)

    b_rows = max(16, pl.cdiv(B, 16) * 16)   # 16-row alignment (bf16 sublane packing)
    tm = _select_batch_tile(b_rows)

    if b_rows == B:
        # No padding pass needed: hand f32 straight to the kernel (in-kernel bf16 cast
        # = single HBM read of the activations).
        x_in = x_flat
    else:
        # Ragged batch: fused cast+pad in the wrapper (padding f32 would cost more).
        x_in = jnp.pad(x_flat.astype(jnp.bfloat16), ((0, b_rows - B), (0, 0)))

    try:
        logits_padded = _pallas_forward(x_in, prepared_params, tm, _SINGLE_BUFFER_OK)
    except Exception:
        if not _SINGLE_BUFFER_OK:
            raise
        _SINGLE_BUFFER_OK = False   # pl.Buffered(1) unsupported -> default double-buffering
        logits_padded = _pallas_forward(x_in, prepared_params, tm, False)

    return logits_padded[:B, :OUT_FEATURES]


def init_params(key):
    """Deterministic init mirroring torch.nn.Linear default (uniform ±1/sqrt(fan_in))."""
    keys = jax.random.split(key, 6)

    def linear(kw, kb, fan_in, fan_out):
        bound = 1.0 / math.sqrt(fan_in)
        w = jax.random.uniform(kw, (fan_in, fan_out), jnp.float32, -bound, bound)
        b = jax.random.uniform(kb, (fan_out,), jnp.float32, -bound, bound)
        return w, b

    w1, b1 = linear(keys[0], keys[1], IN_FEATURES, HIDDEN)
    w2, b2 = linear(keys[2], keys[3], HIDDEN, HIDDEN)
    w3, b3 = linear(keys[4], keys[5], HIDDEN, OUT_FEATURES)
    return (w1, b1, w2, b2, w3, b3)


def _reference_bf16(x_nchw, prepared_params):
    """Pure-JAX reference mirroring the kernel's bf16-input / f32-accumulate math."""
    w1, b1, w2, b2, w3_p, b3_p = prepared_params
    B = x_nchw.shape[0]
    xf = x_nchw.reshape(B, IN_FEATURES).astype(jnp.bfloat16)
    h1 = jnp.maximum(jnp.dot(xf, w1, preferred_element_type=jnp.float32) + b1, 0.0)
    h2 = jnp.maximum(
        jnp.dot(h1.astype(jnp.bfloat16), w2, preferred_element_type=jnp.float32) + b2, 0.0)
    out = jnp.dot(h2.astype(jnp.bfloat16), w3_p, preferred_element_type=jnp.float32) + b3_p
    return out[:, :OUT_FEATURES]


if __name__ == "__main__":
    key = jax.random.PRNGKey(0)
    k_params, k_x = jax.random.split(key)

    params = init_params(k_params)
    prepared = prepare_params(params)          # one-time pad / cast, out of the hot path

    # B=8 exercises the ragged (wrapper cast+pad, bf16-ingest) path;
    # B=16 exercises the aligned f32-ingest / in-kernel-cast path.
    for B in (8, 16):
        kx = jax.random.fold_in(k_x, B)
        x = jax.random.normal(kx, (B, 3, 32, 32), jnp.float32)

        logits = jax.block_until_ready(neural_network_forward(x, prepared))
        assert logits.shape == (B, OUT_FEATURES), logits.shape
        assert logits.dtype == jnp.float32

        # Tight check against a bf16-input reference (same numerics as the kernel).
        ref_bf16 = _reference_bf16(x, prepared)
        assert jnp.allclose(logits, ref_bf16, atol=1e-3, rtol=1e-3), (
            float(jnp.max(jnp.abs(logits - ref_bf16))))

        # Loose check against the full-f32 PyTorch-equivalent math (bf16 rounding).
        w1, b1, w2, b2, w3, b3 = params
        xf = x.reshape(B, -1)
        ref = jnp.maximum(xf @ w1 + b1, 0.0)
        ref = jnp.maximum(ref @ w2 + b2, 0.0)
        ref = ref @ w3 + b3
        assert jnp.allclose(logits, ref, atol=5e-2, rtol=5e-2), (
            float(jnp.max(jnp.abs(logits - ref))))

    print("KERNEL_OK")
</pallas_src>

<mosaic_0001>
module attributes {stable_mosaic.version = 11 : i64} {
  func.func @_mlp_kernel(%arg0: i32, %arg1: memref<16x3072xbf16, #tpu.memory_space<vmem>>, %arg2: memref<3072x512xbf16, #tpu.memory_space<vmem>>, %arg3: memref<1x512xf32, #tpu.memory_space<vmem>>, %arg4: memref<512x512xbf16, #tpu.memory_space<vmem>>, %arg5: memref<1x512xf32, #tpu.memory_space<vmem>>, %arg6: memref<512x128xbf16, #tpu.memory_space<vmem>>, %arg7: memref<1x128xf32, #tpu.memory_space<vmem>>, %arg8: memref<16x128xf32, #tpu.memory_space<vmem>>) attributes {dimension_semantics = [#tpu.dimension_semantics<parallel>], iteration_bounds = array<i64: 1>, scalar_prefetch = 0 : i64, scratch_operands = 0 : i64, tpu.core_type = #tpu.core_type<tc>, window_params = [{transform_indices = @transform_0, window_bounds = array<i64: 16, 3072>}, {pipeline_mode = #tpu.pipeline_mode<synchronous>, transform_indices = @transform_1, window_bounds = array<i64: 3072, 512>}, {pipeline_mode = #tpu.pipeline_mode<synchronous>, transform_indices = @transform_2, window_bounds = array<i64: 1, 512>}, {pipeline_mode = #tpu.pipeline_mode<synchronous>, transform_indices = @transform_3, window_bounds = array<i64: 512, 512>}, {pipeline_mode = #tpu.pipeline_mode<synchronous>, transform_indices = @transform_4, window_bounds = array<i64: 1, 512>}, {pipeline_mode = #tpu.pipeline_mode<synchronous>, transform_indices = @transform_5, window_bounds = array<i64: 512, 128>}, {pipeline_mode = #tpu.pipeline_mode<synchronous>, transform_indices = @transform_6, window_bounds = array<i64: 1, 128>}, {transform_indices = @transform_7, window_bounds = array<i64: 16, 128>}]} {
    %c0 = arith.constant 0 : index
    %c0_0 = arith.constant 0 : index
    %0 = vector.load %arg1[%c0, %c0_0] : memref<16x3072xbf16, #tpu.memory_space<vmem>>, vector<16x3072xbf16>
    %c0_1 = arith.constant 0 : index
    %c0_2 = arith.constant 0 : index
    %1 = vector.load %arg2[%c0_1, %c0_2] : memref<3072x512xbf16, #tpu.memory_space<vmem>>, vector<3072x512xbf16>
    %cst = arith.constant dense<0.000000e+00> : vector<16x512xf32>
    %2 = tpu.matmul %0, %1, %cst {dimension_numbers = #tpu.dot_dimension_numbers<[1], [0], [0], [1], [0, 0, 1, 1], [], []>} : vector<16x3072xbf16>, vector<3072x512xbf16>, vector<16x512xf32> -> vector<16x512xf32>
    %c0_3 = arith.constant 0 : index
    %c0_4 = arith.constant 0 : index
    %3 = vector.load %arg3[%c0_3, %c0_4] : memref<1x512xf32, #tpu.memory_space<vmem>>, vector<1x512xf32>
    %4 = vector.broadcast %3 : vector<1x512xf32> to vector<16x512xf32>
    %5 = arith.addf %2, %4 : vector<16x512xf32>
    %cst_5 = arith.constant 0.000000e+00 : f32
    %6 = vector.broadcast %cst_5 : f32 to vector<16x512xf32>
    %7 = arith.maximumf %5, %6 : vector<16x512xf32>
    %8 = arith.truncf %7 : vector<16x512xf32> to vector<16x512xbf16>
    %c0_6 = arith.constant 0 : index
    %c0_7 = arith.constant 0 : index
    %9 = vector.load %arg4[%c0_6, %c0_7] : memref<512x512xbf16, #tpu.memory_space<vmem>>, vector<512x512xbf16>
    %cst_8 = arith.constant dense<0.000000e+00> : vector<16x512xf32>
    %10 = tpu.matmul %8, %9, %cst_8 {dimension_numbers = #tpu.dot_dimension_numbers<[1], [0], [0], [1], [0, 0, 1, 1], [], []>} : vector<16x512xbf16>, vector<512x512xbf16>, vector<16x512xf32> -> vector<16x512xf32>
    %c0_9 = arith.constant 0 : index
    %c0_10 = arith.constant 0 : index
    %11 = vector.load %arg5[%c0_9, %c0_10] : memref<1x512xf32, #tpu.memory_space<vmem>>, vector<1x512xf32>
    %12 = vector.broadcast %11 : vector<1x512xf32> to vector<16x512xf32>
    %13 = arith.addf %10, %12 : vector<16x512xf32>
    %cst_11 = arith.constant 0.000000e+00 : f32
    %14 = vector.broadcast %cst_11 : f32 to vector<16x512xf32>
    %15 = arith.maximumf %13, %14 : vector<16x512xf32>
    %16 = arith.truncf %15 : vector<16x512xf32> to vector<16x512xbf16>
    %c0_12 = arith.constant 0 : index
    %c0_13 = arith.constant 0 : index
    %17 = vector.load %arg6[%c0_12, %c0_13] : memref<512x128xbf16, #tpu.memory_space<vmem>>, vector<512x128xbf16>
    %cst_14 = arith.constant dense<0.000000e+00> : vector<16x128xf32>
    %18 = tpu.matmul %16, %17, %cst_14 {dimension_numbers = #tpu.dot_dimension_numbers<[1], [0], [0], [1], [0, 0, 1, 1], [], []>} : vector<16x512xbf16>, vector<512x128xbf16>, vector<16x128xf32> -> vector<16x128xf32>
    %c0_15 = arith.constant 0 : index
    %c0_16 = arith.constant 0 : index
    %19 = vector.load %arg7[%c0_15, %c0_16] : memref<1x128xf32, #tpu.memory_space<vmem>>, vector<1x128xf32>
    %20 = vector.broadcast %19 : vector<1x128xf32> to vector<16x128xf32>
    %21 = arith.addf %18, %20 : vector<16x128xf32>
    %c0_17 = arith.constant 0 : index
    %c0_18 = arith.constant 0 : index
    %22 = vector.load %arg8[%c0_17, %c0_18] : memref<16x128xf32, #tpu.memory_space<vmem>>, vector<16x128xf32>
    tpu.vector_store %arg8[%c0_17, %c0_18], %21 {strides = array<i32>} : memref<16x128xf32, #tpu.memory_space<vmem>>, vector<16x128xf32>,
    return
  }
  func.func @transform_0(%arg0: i32) -> (i32, i32) {
    %c0_i32 = arith.constant 0 : i32
    %c0_i32_0 = arith.constant 0 : i32
    return %arg0, %c0_i32 : i32, i32
  }
  func.func @transform_1(%arg0: i32) -> (i32, i32) {
    %c0_i32 = arith.constant 0 : i32
    %c0_i32_0 = arith.constant 0 : i32
    %c0_i32_1 = arith.constant 0 : i32
    return %c0_i32, %c0_i32_0 : i32, i32
  }
  func.func @transform_2(%arg0: i32) -> (i32, i32) {
    %c0_i32 = arith.constant 0 : i32
    %c0_i32_0 = arith.constant 0 : i32
    %c0_i32_1 = arith.constant 0 : i32
    return %c0_i32, %c0_i32_0 : i32, i32
  }
  func.func @transform_3(%arg0: i32) -> (i32, i32) {
    %c0_i32 = arith.constant 0 : i32
    %c0_i32_0 = arith.constant 0 : i32
    %c0_i32_1 = arith.constant 0 : i32
    return %c0_i32, %c0_i32_0 : i32, i32
  }
  func.func @transform_4(%arg0: i32) -> (i32, i32) {
    %c0_i32 = arith.constant 0 : i32
    %c0_i32_0 = arith.constant 0 : i32
    %c0_i32_1 = arith.constant 0 : i32
    return %c0_i32, %c0_i32_0 : i32, i32
  }
  func.func @transform_5(%arg0: i32) -> (i32, i32) {
    %c0_i32 = arith.constant 0 : i32
    %c0_i32_0 = arith.constant 0 : i32
    %c0_i32_1 = arith.constant 0 : i32
    return %c0_i32, %c0_i32_0 : i32, i32
  }
  func.func @transform_6(%arg0: i32) -> (i32, i32) {
    %c0_i32 = arith.constant 0 : i32
    %c0_i32_0 = arith.constant 0 : i32
    %c0_i32_1 = arith.constant 0 : i32
    return %c0_i32, %c0_i32_0 : i32, i32
  }
  func.func @transform_7(%arg0: i32) -> (i32, i32) {
    %c0_i32 = arith.constant 0 : i32
    %c0_i32_0 = arith.constant 0 : i32
    return %arg0, %c0_i32 : i32, i32
  }
}

module attributes {stable_mosaic.version = 11 : i64} {
  func.func @_mlp_kernel(%arg0: i32, %arg1: memref<16x3072xbf16, #tpu.memory_space<vmem>>, %arg2: memref<3072x512xbf16, #tpu.memory_space<vmem>>, %arg3: memref<1x512xf32, #tpu.memory_space<vmem>>, %arg4: memref<512x512xbf16, #tpu.memory_space<vmem>>, %arg5: memref<1x512xf32, #tpu.memory_space<vmem>>, %arg6: memref<512x128xbf16, #tpu.memory_space<vmem>>, %arg7: memref<1x128xf32, #tpu.memory_space<vmem>>, %arg8: memref<16x128xf32, #tpu.memory_space<vmem>>) attributes {dimension_semantics = [#tpu.dimension_semantics<parallel>], iteration_bounds = array<i64: 1>, scalar_prefetch = 0 : i64, scratch_operands = 0 : i64, tpu.core_type = #tpu.core_type<tc>, window_params = [{transform_indices = @transform_0, window_bounds = array<i64: 16, 3072>}, {pipeline_mode = #tpu.pipeline_mode<synchronous>, transform_indices = @transform_1, window_bounds = array<i64: 3072, 512>}, {pipeline_mode = #tpu.pipeline_mode<synchronous>, transform_indices = @transform_2, window_bounds = array<i64: 1, 512>}, {pipeline_mode = #tpu.pipeline_mode<synchronous>, transform_indices = @transform_3, window_bounds = array<i64: 512, 512>}, {pipeline_mode = #tpu.pipeline_mode<synchronous>, transform_indices = @transform_4, window_bounds = array<i64: 1, 512>}, {pipeline_mode = #tpu.pipeline_mode<synchronous>, transform_indices = @transform_5, window_bounds = array<i64: 512, 128>}, {pipeline_mode = #tpu.pipeline_mode<synchronous>, transform_indices = @transform_6, window_bounds = array<i64: 1, 128>}, {transform_indices = @transform_7, window_bounds = array<i64: 16, 128>}]} {
    %c0 = arith.constant 0 : index
    %c0_0 = arith.constant 0 : index
    %0 = vector.load %arg1[%c0, %c0_0] : memref<16x3072xbf16, #tpu.memory_space<vmem>>, vector<16x3072xbf16>
    %c0_1 = arith.constant 0 : index
    %c0_2 = arith.constant 0 : index
    %1 = vector.load %arg2[%c0_1, %c0_2] : memref<3072x512xbf16, #tpu.memory_space<vmem>>, vector<3072x512xbf16>
    %cst = arith.constant dense<0.000000e+00> : vector<16x512xf32>
    %2 = tpu.matmul %0, %1, %cst {dimension_numbers = #tpu.dot_dimension_numbers<[1], [0], [0], [1], [0, 0, 1, 1], [], []>} : vector<16x3072xbf16>, vector<3072x512xbf16>, vector<16x512xf32> -> vector<16x512xf32>
    %c0_3 = arith.constant 0 : index
    %c0_4 = arith.constant 0 : index
    %3 = vector.load %arg3[%c0_3, %c0_4] : memref<1x512xf32, #tpu.memory_space<vmem>>, vector<1x512xf32>
    %4 = vector.broadcast %3 : vector<1x512xf32> to vector<16x512xf32>
    %5 = arith.addf %2, %4 : vector<16x512xf32>
    %cst_5 = arith.constant 0.000000e+00 : f32
    %6 = vector.broadcast %cst_5 : f32 to vector<16x512xf32>
    %7 = arith.maximumf %5, %6 : vector<16x512xf32>
    %8 = arith.truncf %7 : vector<16x512xf32> to vector<16x512xbf16>
    %c0_6 = arith.constant 0 : index
    %c0_7 = arith.constant 0 : index
    %9 = vector.load %arg4[%c0_6, %c0_7] : memref<512x512xbf16, #tpu.memory_space<vmem>>, vector<512x512xbf16>
    %cst_8 = arith.constant dense<0.000000e+00> : vector<16x512xf32>
    %10 = tpu.matmul %8, %9, %cst_8 {dimension_numbers = #tpu.dot_dimension_numbers<[1], [0], [0], [1], [0, 0, 1, 1], [], []>} : vector<16x512xbf16>, vector<512x512xbf16>, vector<16x512xf32> -> vector<16x512xf32>
    %c0_9 = arith.constant 0 : index
    %c0_10 = arith.constant 0 : index
    %11 = vector.load %arg5[%c0_9, %c0_10] : memref<1x512xf32, #tpu.memory_space<vmem>>, vector<1x512xf32>
    %12 = vector.broadcast %11 : vector<1x512xf32> to vector<16x512xf32>
    %13 = arith.addf %10, %12 : vector<16x512xf32>
    %cst_11 = arith.constant 0.000000e+00 : f32
    %14 = vector.broadcast %cst_11 : f32 to vector<16x512xf32>
    %15 = arith.maximumf %13, %14 : vector<16x512xf32>
    %16 = arith.truncf %15 : vector<16x512xf32> to vector<16x512xbf16>
    %c0_12 = arith.constant 0 : index
    %c0_13 = arith.constant 0 : index
    %17 = vector.load %arg6[%c0_12, %c0_13] : memref<512x128xbf16, #tpu.memory_space<vmem>>, vector<512x128xbf16>
    %cst_14 = arith.constant dense<0.000000e+00> : vector<16x128xf32>
    %18 = tpu.matmul %16, %17, %cst_14 {dimension_numbers = #tpu.dot_dimension_numbers<[1], [0], [0], [1], [0, 0, 1, 1], [], []>} : vector<16x512xbf16>, vector<512x128xbf16>, vector<16x128xf32> -> vector<16x128xf32>
    %c0_15 = arith.constant 0 : index
    %c0_16 = arith.constant 0 : index
    %19 = vector.load %arg7[%c0_15, %c0_16] : memref<1x128xf32, #tpu.memory_space<vmem>>, vector<1x128xf32>
    %20 = vector.broadcast %19 : vector<1x128xf32> to vector<16x128xf32>
    %21 = arith.addf %18, %20 : vector<16x128xf32>
    %c0_17 = arith.constant 0 : index
    %c0_18 = arith.constant 0 : index
    %22 = vector.load %arg8[%c0_17, %c0_18] : memref<16x128xf32, #tpu.memory_space<vmem>>, vector<16x128xf32>
    tpu.vector_store %arg8[%c0_17, %c0_18], %21 {strides = array<i32>} : memref<16x128xf32, #tpu.memory_space<vmem>>, vector<16x128xf32>,
    return
  }
  func.func @transform_0(%arg0: i32) -> (i32, i32) {
    %c0_i32 = arith.constant 0 : i32
    %c0_i32_0 = arith.constant 0 : i32
    return %arg0, %c0_i32 : i32, i32
  }
  func.func @transform_1(%arg0: i32) -> (i32, i32) {
    %c0_i32 = arith.constant 0 : i32
    %c0_i32_0 = arith.constant 0 : i32
    %c0_i32_1 = arith.constant 0 : i32
    return %c0_i32, %c0_i32_0 : i32, i32
  }
  func.func @transform_2(%arg0: i32) -> (i32, i32) {
    %c0_i32 = arith.constant 0 : i32
    %c0_i32_0 = arith.constant 0 : i32
    %c0_i32_1 = arith.constant 0 : i32
    return %c0_i32, %c0_i32_0 : i32, i32
  }
  func.func @transform_3(%arg0: i32) -> (i32, i32) {
    %c0_i32 = arith.constant 0 : i32
    %c0_i32_0 = arith.constant 0 : i32
    %c0_i32_1 = arith.constant 0 : i32
    return %c0_i32, %c0_i32_0 : i32, i32
  }
  func.func @transform_4(%arg0: i32) -> (i32, i32) {
    %c0_i32 = arith.constant 0 : i32
    %c0_i32_0 = arith.constant 0 : i32
    %c0_i32_1 = arith.constant 0 : i32
    return %c0_i32, %c0_i32_0 : i32, i32
  }
  func.func @transform_5(%arg0: i32) -> (i32, i32) {
    %c0_i32 = arith.constant 0 : i32
    %c0_i32_0 = arith.constant 0 : i32
    %c0_i32_1 = arith.constant 0 : i32
    return %c0_i32, %c0_i32_0 : i32, i32
  }
  func.func @transform_6(%arg0: i32) -> (i32, i32) {
    %c0_i32 = arith.constant 0 : i32
    %c0_i32_0 = arith.constant 0 : i32
    %c0_i32_1 = arith.constant 0 : i32
    return %c0_i32, %c0_i32_0 : i32, i32
  }
  func.func @transform_7(%arg0: i32) -> (i32, i32) {
    %c0_i32 = arith.constant 0 : i32
    %c0_i32_0 = arith.constant 0 : i32
    return %arg0, %c0_i32 : i32, i32
  }
}

</mosaic_0001>

<bundles_post_ra>
// kernel: tpu_custom_call.1
= control target key start
LH: loop header
LB: loop body
LE: loop exit
PB: predicated region body
PF: predicated region fallthrough
CT: control target
= control target key end

     0   :  { %12 = vsyncpa [#allocation3], 0  ;;  %s10227_s0 = inlined_call_operand.hbm [shape: bf16[16,3072], index: 0, kind: input, shape index: {}]   ;;  %s10228_s1 = inlined_call_operand.hbm [shape: bf16[3072,512], index: 1, kind: input, shape index: {}]   ;;  %s10229_s2 = inlined_call_operand.hbm [shape: f32[1,512], index: 2, kind: input, shape index: {}]   ;;  %s10230_s3 = inlined_call_operand.hbm [shape: bf16[512,512], index: 3, kind: input, shape index: {}]   ;;  %s10231_s4 = inlined_call_operand.hbm [shape: f32[1,512], index: 4, kind: input, shape index: {}]   ;;  %s10232_s5 = inlined_call_operand.hbm [shape: bf16[512,128], index: 5, kind: input, shape index: {}]   ;;  %s10233_s6 = inlined_call_operand.hbm [shape: f32[1,128], index: 6, kind: input, shape index: {}]   ;;  %s10234_s7 = inlined_call_operand.hbm [shape: f32[16,128], index: 7, kind: output, shape index: {}]  }
   0x1   :  { %13 = vsyncpa [#allocation6], 0 }
   0x2   :  { %14 = vsyncpa [#allocation9], 0 }
   0x3   :  { %15 = vsyncpa [#allocation12], 0 }
   0x4   :  { %16 = vsyncpa [#allocation4], 0  ;;  %s9836_s24 = smov [#allocation5]  }
   0x5   :  { %s34_s25 = sshll.u32 %s9836_s24, 4  ;;  %s35_s25 = int_to_ptr.vmem [resolvable:$true] %s34_s25 }
   0x6   :  { %s9674_s26 = scalar_lea.vmem %s35_s25, 98304  ;;  %p9679_p1 = scmp.lt.s32.totalorder %s35_s25, %s35_s25 }
   0x7   :  { %p9675_p0 = scmp.ne.s32.totalorder %s35_s25, %s9674_s26  ;;  %p9680_p2 = scmp.lt.s32.totalorder %s9674_s26, %s9674_s26 }
   0x9   :  { %p9681_p3 = por %p9680_p2, %p9679_p1 }
   0xb   :  { %p9682_p4 = pnand %p9681_p3, %p9675_p0 }
   0xd   :  { %9685 = shalt.err (!%p9682_p4)
}
   0xe   :  { %s9837_s27 = smov 256   ;;  %s9838_s28 = smov 16  }
   0xf   :  { %40 = dma.hbm_to_vmem [thread:$0]  %s10228_s1, 98304, %s35_s25, [#allocation6], %s9837_s27, %s9837_s27, %s9838_s28  }
  0x10   :  { %s9839_s8 = smov [#allocation8]   ;;  %s9840_s10 = smov [#allocation11]  }
  0x11   :  { %s56_s9 = sshll.u32 %s9839_s8, 4  ;;  %s78_s11 = sshll.u32 %s9840_s10, 4  ;;  %s57_s9 = int_to_ptr.vmem [resolvable:$true] %s56_s9  ;;  %s79_s11 = int_to_ptr.vmem [resolvable:$true] %s78_s11 }
  0x12   :  { %s9694_s12 = scalar_lea.vmem %s57_s9, 16384  ;;  %p9699_p6 = scmp.lt.s32.totalorder %s57_s9, %s57_s9 }
  0x13   :  { %p9695_p5 = scmp.ne.s32.totalorder %s57_s9, %s9694_s12  ;;  %p9700_p7 = scmp.lt.s32.totalorder %s9694_s12, %s9694_s12 }
  0x15   :  { %p9701_p8 = por %p9700_p7, %p9699_p6 }
  0x17   :  { %p9702_p9 = pnand %p9701_p8, %p9695_p5 }
  0x19   :  { %9705 = shalt.err (!%p9702_p9)
}
  0x1a   :  { %62 = dma.hbm_to_vmem [thread:$0]  %s10230_s3, 16384, %s57_s9, [#allocation9], %s9837_s27, %s9837_s27, %s9838_s28  }
  0x1b   :  { %s9714_s15 = scalar_lea.vmem %s79_s11, 4096  ;;  %p9719_p11 = scmp.lt.s32.totalorder %s79_s11, %s79_s11 }
  0x1c   :  { %p9715_p10 = scmp.ne.s32.totalorder %s79_s11, %s9714_s15  ;;  %p9720_p12 = scmp.lt.s32.totalorder %s9714_s15, %s9714_s15 }
  0x1e   :  { %p9721_p13 = por %p9720_p12, %p9719_p11 }
  0x20   :  { %p9722_p0 = pnand %p9721_p13, %p9715_p10 }
  0x22   :  { %9725 = shalt.err (!%p9722_p0)
}
  0x23   :  { %s9841_s1 = smov 64   ;;  %s9842_s16 = smov 4  }
  0x24   :  { %84 = dma.hbm_to_vmem [thread:$0]  %s10232_s5, 4096, %s79_s11, [#allocation12], %s9841_s1, %s9841_s1, %s9842_s16  }
  0x25   :  { %s9843_s19 = smov [#allocation2]  }
  0x26   :  { %s22_s20 = sshll.u32 %s9843_s19, 4  ;;  %s23_s20 = int_to_ptr.vmem [resolvable:$true] %s22_s20 }
  0x27   :  { %s9734_s21 = scalar_lea.vmem %s23_s20, 3072  ;;  %p9739_p2 = scmp.lt.s32.totalorder %s23_s20, %s23_s20 }
  0x28   :  { %p9735_p1 = scmp.ne.s32.totalorder %s23_s20, %s9734_s21  ;;  %p9740_p3 = scmp.lt.s32.totalorder %s9734_s21, %s9734_s21 }
  0x2a   :  { %p9741_p4 = por %p9740_p3, %p9739_p2 }
  0x2c   :  { %p9742_p5 = pnand %p9741_p4, %p9735_p1 }
  0x2e   :  { %9745 = shalt.err (!%p9742_p5)
}
  0x2f   :  { %s9844_s3 = smov 1536   ;;  %s9845_s22 = smov 96  }
  0x30   :  { %28 = dma.hbm_to_vmem [thread:$0]  %s10227_s0, 3072, %s23_s20, [#allocation3], %s9844_s3, %s9844_s3, %s9845_s22  }
  0x31   :  { %s9846_s25 = smov [#allocation7]   ;;  %s9847_s27 = smov [#allocation10]  }
  0x32   :  { %s47_s26 = sshll.u32 %s9846_s25, 4  ;;  %s69_s5 = sshll.u32 %s9847_s27, 4  ;;  %s48_s26 = int_to_ptr.vmem [resolvable:$true] %s47_s26  ;;  %s70_s5 = int_to_ptr.vmem [resolvable:$true] %s69_s5 }
  0x33   :  { %s9754_s28 = scalar_lea.vmem %s48_s26, 64  ;;  %p9759_p7 = scmp.lt.s32.totalorder %s48_s26, %s48_s26 }
  0x34   :  { %p9755_p6 = scmp.ne.s32.totalorder %s48_s26, %s9754_s28  ;;  %p9760_p8 = scmp.lt.s32.totalorder %s9754_s28, %s9754_s28 }
  0x36   :  { %p9761_p9 = por %p9760_p8, %p9759_p7 }
  0x38   :  { %p9762_p10 = pnand %p9761_p9, %p9755_p6 }
  0x3a   :  { %9765 = shalt.err (!%p9762_p10)
}
  0x3b   :  { %50 = dma.hbm_to_vmem [thread:$0]  %s10229_s2, 64, %s48_s26, [#allocation6]  }
  0x3c   :  { %s9774_s8 = scalar_lea.vmem %s70_s5, 64  ;;  %p9779_p12 = scmp.lt.s32.totalorder %s70_s5, %s70_s5 }
  0x3d   :  { %p9775_p11 = scmp.ne.s32.totalorder %s70_s5, %s9774_s8  ;;  %p9780_p13 = scmp.lt.s32.totalorder %s9774_s8, %s9774_s8 }
  0x3f   :  { %p9781_p0 = por %p9780_p13, %p9779_p12 }
  0x41   :  { %p9782_p1 = pnand %p9781_p0, %p9775_p11 }
  0x43   :  { %9785 = shalt.err (!%p9782_p1)
}
  0x44   :  { %72 = dma.hbm_to_vmem [thread:$0]  %s10231_s4, 64, %s70_s5, [#allocation9]  }
  0x45   :  { %s9848_s10 = smov [#allocation13]  }
  0x46   :  { %s91_s11 = sshll.u32 %s9848_s10, 4  ;;  %s92_s11 = int_to_ptr.vmem [resolvable:$true] %s91_s11 }
  0x47   :  { %s9794_s12 = scalar_lea.vmem %s92_s11, 16  ;;  %s9798_s13 = scalar_lea.vmem %s92_s11, 32 }
  0x48   :  { %p9795_p2 = scmp.ne.s32.totalorder %s92_s11, %s9794_s12  ;;  %p9799_p3 = scmp.lt.s32.totalorder %s92_s11, %s92_s11 }
  0x49   :  { %p9800_p4 = scmp.lt.s32.totalorder %s9798_s13, %s9794_s12 }
  0x4b   :  { %p9801_p5 = por %p9800_p4, %p9799_p3 }
  0x4d   :  { %p9802_p6 = pnand %p9801_p5, %p9795_p2 }
  0x4f   :  { %9805 = shalt.err (!%p9802_p6)
}
  0x50   :  { %94 = dma.hbm_to_vmem [thread:$0]  %s10233_s6, 16, %s92_s11, [#allocation12]  }
  0x51   :  { %9826 = dma.done.wait [#allocation3], 3072  }
  0x52   :  { %9827 = vsyncadd [#allocation3], 4294964224 }
  0x53   :  { %9828 = dma.done.wait [#allocation6], 98368  }
  0x54   :  { %9829 = vsyncadd [#allocation6], 4294868928 }
  0x55   :  { %9830 = dma.done.wait [#allocation9], 16448  }
  0x56   :  { %9831 = vsyncadd [#allocation9], 4294950848 }
  0x57   :  { %9832 = dma.done.wait [#allocation12], 4112  }
  0x58   :  { %9833 = vsyncadd [#allocation12], 4294963184  ;;  %v8289_v0 = vld [vmem:[#allocation5 + $0xe4] ss:$16 sps:$4 sm:$0xff]   ;;  %v8293_v2 = vld [vmem:[#allocation5 + $0xe0] ss:$16 sps:$4 sm:$0xff]  }
  0x59   :  { %v8291_v1 = vld [vmem:[#allocation5 + $0x2e4] ss:$16 sps:$4 sm:$0xff]   ;;  %4891 = vmatprep.subr.bf16.mxu0 %v8289_v0  ;;  %v8294_v3 = vld [vmem:[#allocation5 + $0x2e0] ss:$16 sps:$4 sm:$0xff]   ;;  %v118_v50 = vld [vmem:[#allocation2 + $0x8] sm:$0xff]  ;;  %s9849_s4 = smov [#allocation14]  }
  0x5a   :  { %4934 = vmatprep.subr.bf16.mxu1 %v8291_v1  ;;  %v8295_v4 = vld [vmem:[#allocation5 + $0xc4] ss:$16 sps:$4 sm:$0xff]   ;;  %4892 = vmatpush1.bf16.msra.mxu0 %v8293_v2  ;;  %v8299_v6 = vld [vmem:[#allocation5 + $0xc0] ss:$16 sps:$4 sm:$0xff]   ;;  %v130_v51 = vld [vmem:[#allocation2 + $0x68] sm:$0xff]  ;;  %s7261_s6 = sshll.u32 %s9849_s4, 4  ;;  %s7262_s6 = int_to_ptr.vmem [resolvable:$true] %s7261_s6 }
  0x5b   :  { %4935 = vmatpush1.bf16.msra.mxu1 %v8294_v3  ;;  %v8297_v5 = vld [vmem:[#allocation5 + $0x2c4] ss:$16 sps:$4 sm:$0xff]   ;;  %4893 = vmatprep.subr.bf16.mxu0 %v8295_v4  ;;  %v8300_v7 = vld [vmem:[#allocation5 + $0x2c0] ss:$16 sps:$4 sm:$0xff]   ;;  %v9915_v55 = vcombine.high %v118_v50, %v130_v51  ;;  %s9806_s15 = scalar_lea.vmem %s7262_s6, 256  ;;  %p9811_p8 = scmp.lt.s32.totalorder %s7262_s6, %s7262_s6 }
  0x5c   :  { %4936 = vmatprep.subr.bf16.mxu1 %v8297_v5  ;;  %v8301_v8 = vld [vmem:[#allocation5 + $0xa4] ss:$16 sps:$4 sm:$0xff]   ;;  %v8305_v10 = vld [vmem:[#allocation5 + $0xa0] ss:$16 sps:$4 sm:$0xff]   ;;  %p9807_p7 = scmp.ne.s32.totalorder %s7262_s6, %s9806_s15  ;;  %p9812_p9 = scmp.lt.s32.totalorder %s9806_s15, %s9806_s15 }
  0x5d   :  { %v8303_v9 = vld [vmem:[#allocation5 + $0x2a4] ss:$16 sps:$4 sm:$0xff]   ;;  %v8306_v11 = vld [vmem:[#allocation5 + $0x2a0] ss:$16 sps:$4 sm:$0xff]   ;;  %4966 = vmatprep.mubr.bf16.mxu1 %v9915_v55 }
  0x5e   :  { %4894 = vmatpush1.bf16.msra.mxu0 %v8299_v6  ;;  %v8307_v12 = vld [vmem:[#allocation5 + $0x84] ss:$16 sps:$4 sm:$0xff]   ;;  %v8311_v14 = vld [vmem:[#allocation5 + $0x80] ss:$16 sps:$4 sm:$0xff]   ;;  %p9813_p10 = por %p9812_p9, %p9811_p8 }
  0x5f   :  { %4937 = vmatpush1.bf16.msra.mxu1 %v8300_v7  ;;  %4895 = vmatprep.subr.bf16.mxu0 %v8301_v8  ;;  %v8309_v13 = vld [vmem:[#allocation5 + $0x284] ss:$16 sps:$4 sm:$0xff]   ;;  %v8312_v15 = vld [vmem:[#allocation5 + $0x280] ss:$16 sps:$4 sm:$0xff]  }
  0x60   :  { %4938 = vmatprep.subr.bf16.mxu1 %v8303_v9  ;;  %v8313_v16 = vld [vmem:[#allocation5 + $0x64] ss:$16 sps:$4 sm:$0xff]   ;;  %v8317_v18 = vld [vmem:[#allocation5 + $0x60] ss:$16 sps:$4 sm:$0xff]   ;;  %v9921_v9 = vcombine.low %v118_v50, %v130_v51  ;;  %p9814_p11 = pnand %p9813_p10, %p9807_p7 }
  0x61   :  { %v8315_v17 = vld [vmem:[#allocation5 + $0x264] ss:$16 sps:$4 sm:$0xff]   ;;  %v8318_v19 = vld [vmem:[#allocation5 + $0x260] ss:$16 sps:$4 sm:$0xff]  }
  0x62   :  { %4896 = vmatpush1.bf16.msra.mxu0 %v8305_v10  ;;  %v8319_v20 = vld [vmem:[#allocation5 + $0x44] ss:$16 sps:$4 sm:$0xff]   ;;  %v8323_v22 = vld [vmem:[#allocation5 + $0x40] ss:$16 sps:$4 sm:$0xff]  }
  0x63   :  { %4939 = vmatpush1.bf16.msra.mxu1 %v8306_v11  ;;  %4897 = vmatprep.subr.bf16.mxu0 %v8307_v12  ;;  %v8321_v21 = vld [vmem:[#allocation5 + $0x244] ss:$16 sps:$4 sm:$0xff]   ;;  %v8324_v23 = vld [vmem:[#allocation5 + $0x240] ss:$16 sps:$4 sm:$0xff]  }
  0x64   :  { %4940 = vmatprep.subr.bf16.mxu1 %v8309_v13  ;;  %v8325_v24 = vld [vmem:[#allocation5 + $0x24] ss:$16 sps:$4 sm:$0xff]   ;;  %v8329_v26 = vld [vmem:[#allocation5 + $0x20] ss:$16 sps:$4 sm:$0xff]  }
  0x65   :  { %v8327_v25 = vld [vmem:[#allocation5 + $0x224] ss:$16 sps:$4 sm:$0xff]   ;;  %v8330_v27 = vld [vmem:[#allocation5 + $0x220] ss:$16 sps:$4 sm:$0xff]  }
  0x66   :  { %4898 = vmatpush1.bf16.msra.mxu0 %v8311_v14  ;;  %v8331_v28 = vld [vmem:[#allocation5 + $0x4] ss:$16 sps:$4 sm:$0xff]   ;;  %v8335_v30 = vld [vmem:[#allocation5] ss:$16 sps:$4 sm:$0xff]  }
  0x67   :  { %4941 = vmatpush1.bf16.msra.mxu1 %v8312_v15  ;;  %4899 = vmatprep.subr.bf16.mxu0 %v8313_v16  ;;  %v8333_v29 = vld [vmem:[#allocation5 + $0x204] ss:$16 sps:$4 sm:$0xff]   ;;  %v8336_v31 = vld [vmem:[#allocation5 + $0x200] ss:$16 sps:$4 sm:$0xff]  }
  0x68   :  { %4942 = vmatprep.subr.bf16.mxu1 %v8315_v17  ;;  %v8337_v32 = vld [vmem:[#allocation5 + $0x1e4] ss:$16 sps:$4 sm:$0xff]   ;;  %v8341_v34 = vld [vmem:[#allocation5 + $0x1e0] ss:$16 sps:$4 sm:$0xff]  }
  0x69   :  { %v8339_v33 = vld [vmem:[#allocation5 + $0x3e4] ss:$16 sps:$4 sm:$0xff]   ;;  %v8342_v35 = vld [vmem:[#allocation5 + $0x3e0] ss:$16 sps:$4 sm:$0xff]  }
  0x6a   :  { %4900 = vmatpush1.bf16.msra.mxu0 %v8317_v18  ;;  %v8343_v36 = vld [vmem:[#allocation5 + $0x1c4] ss:$16 sps:$4 sm:$0xff]   ;;  %v8347_v38 = vld [vmem:[#allocation5 + $0x1c0] ss:$16 sps:$4 sm:$0xff]  }
  0x6b   :  { %4943 = vmatpush1.bf16.msra.mxu1 %v8318_v19  ;;  %4901 = vmatprep.subr.bf16.mxu0 %v8319_v20  ;;  %v8345_v37 = vld [vmem:[#allocation5 + $0x3c4] ss:$16 sps:$4 sm:$0xff]   ;;  %v8348_v39 = vld [vmem:[#allocation5 + $0x3c0] ss:$16 sps:$4 sm:$0xff]  }
  0x6c   :  { %4944 = vmatprep.subr.bf16.mxu1 %v8321_v21  ;;  %v8349_v40 = vld [vmem:[#allocation5 + $0x1a4] ss:$16 sps:$4 sm:$0xff]   ;;  %v8353_v42 = vld [vmem:[#allocation5 + $0x1a0] ss:$16 sps:$4 sm:$0xff]  }
  0x6d   :  { %v8351_v41 = vld [vmem:[#allocation5 + $0x3a4] ss:$16 sps:$4 sm:$0xff]   ;;  %v8354_v43 = vld [vmem:[#allocation5 + $0x3a0] ss:$16 sps:$4 sm:$0xff]  }
  0x6e   :  { %4902 = vmatpush1.bf16.msra.mxu0 %v8323_v22  ;;  %v8355_v44 = vld [vmem:[#allocation5 + $0x184] ss:$16 sps:$4 sm:$0xff]   ;;  %v8359_v46 = vld [vmem:[#allocation5 + $0x180] ss:$16 sps:$4 sm:$0xff]  }
  0x6f   :  { %4945 = vmatpush1.bf16.msra.mxu1 %v8324_v23  ;;  %4903 = vmatprep.subr.bf16.mxu0 %v8325_v24  ;;  %v8357_v45 = vld [vmem:[#allocation5 + $0x384] ss:$16 sps:$4 sm:$0xff]   ;;  %v8360_v47 = vld [vmem:[#allocation5 + $0x380] ss:$16 sps:$4 sm:$0xff]  }
  0x70   :  { %4946 = vmatprep.subr.bf16.mxu1 %v8327_v25  ;;  %v117_v48 = vld [vmem:[#allocation2] sm:$0xff] }
  0x71   :  { %v129_v49 = vld [vmem:[#allocation2 + $0x60] sm:$0xff] }
  0x72   :  { %4904 = vmatpush1.bf16.msra.mxu0 %v8329_v26  ;;  %v8361_v52 = vld [vmem:[#allocation5 + $0x164] ss:$16 sps:$4 sm:$0xff]   ;;  %v9913_v53 = vcombine.high %v117_v48, %v129_v49  ;;  %v8365_v56 = vld [vmem:[#allocation5 + $0x160] ss:$16 sps:$4 sm:$0xff]   ;;  %v9919_v8 = vcombine.low %v117_v48, %v129_v49 }
  0x73   :  { %4947 = vmatpush1.bf16.msra.mxu1 %v8330_v27  ;;  %4905 = vmatprep.subr.bf16.mxu0 %v8331_v28  ;;  %v8363_v54 = vld [vmem:[#allocation5 + $0x364] ss:$16 sps:$4 sm:$0xff]   ;;  %v8366_v57 = vld [vmem:[#allocation5 + $0x360] ss:$16 sps:$4 sm:$0xff]  }
  0x74   :  { %4948 = vmatprep.subr.bf16.mxu1 %v8333_v29  ;;  %4923 = vmatprep.mubr.bf16.mxu0 %v9913_v53  ;;  %v8367_v58 = vld [vmem:[#allocation5 + $0x144] ss:$16 sps:$4 sm:$0xff]   ;;  %v8371_v60 = vld [vmem:[#allocation5 + $0x140] ss:$16 sps:$4 sm:$0xff]  }
  0x75   :  { %v8369_v59 = vld [vmem:[#allocation5 + $0x344] ss:$16 sps:$4 sm:$0xff]   ;;  %v8372_v61 = vld [vmem:[#allocation5 + $0x340] ss:$16 sps:$4 sm:$0xff]  }
  0x76   :  { %4906 = vmatpush1.bf16.msra.mxu0 %v8335_v30  ;;  %v8373_v62 = vld [vmem:[#allocation5 + $0x124] ss:$16 sps:$4 sm:$0xff]   ;;  %v8377_v0 = vld [vmem:[#allocation5 + $0x120] ss:$16 sps:$4 sm:$0xff]  }
  0x77   :  { %4949 = vmatpush1.bf16.msra.mxu1 %v8336_v31  ;;  %4907 = vmatprep.subr.bf16.mxu0 %v8337_v32  ;;  %v8375_v63 = vld [vmem:[#allocation5 + $0x324] ss:$16 sps:$4 sm:$0xff]   ;;  %v8378_v1 = vld [vmem:[#allocation5 + $0x320] ss:$16 sps:$4 sm:$0xff]  }
  0x78   :  { %4950 = vmatprep.subr.bf16.mxu1 %v8339_v33  ;;  %v8379_v2 = vld [vmem:[#allocation5 + $0x104] ss:$16 sps:$4 sm:$0xff]   ;;  %v8383_v4 = vld [vmem:[#allocation5 + $0x100] ss:$16 sps:$4 sm:$0xff]  }
  0x79   :  { %v8381_v3 = vld [vmem:[#allocation5 + $0x304] ss:$16 sps:$4 sm:$0xff]   ;;  %v8384_v5 = vld [vmem:[#allocation5 + $0x300] ss:$16 sps:$4 sm:$0xff]  }
  0x7a   :  { %4908 = vmatpush2.bf16.msra.mxu0 %v8341_v34  ;;  %v8387_v6 = vld [vmem:[#allocation5 + $0x4e4] ss:$16 sps:$4 sm:$0xff]   ;;  %v8385_v10 = vld [vmem:[#allocation5 + $0x4e0] ss:$16 sps:$4 sm:$0xff]  }
  0x7b   :  { %4951 = vmatpush2.bf16.msra.mxu1 %v8342_v35  ;;  %4909 = vmatprep.subr.bf16.mxu0 %v8343_v36  ;;  %v8390_v7 = vld [vmem:[#allocation5 + $0x6e4] ss:$16 sps:$4 sm:$0xff]   ;;  %v8388_v11 = vld [vmem:[#allocation5 + $0x6e0] ss:$16 sps:$4 sm:$0xff]  }
  0x7c   :  { %4952 = vmatprep.subr.bf16.mxu1 %v8345_v37  ;;  %v8393_v12 = vld [vmem:[#allocation5 + $0x4c4] ss:$16 sps:$4 sm:$0xff]   ;;  %v8391_v14 = vld [vmem:[#allocation5 + $0x4c0] ss:$16 sps:$4 sm:$0xff]  }
  0x7d   :  { %v8396_v13 = vld [vmem:[#allocation5 + $0x6c4] ss:$16 sps:$4 sm:$0xff]   ;;  %v8394_v15 = vld [vmem:[#allocation5 + $0x6c0] ss:$16 sps:$4 sm:$0xff]  }
  0x7e   :  { %4910 = vmatpush2.bf16.msra.mxu0 %v8347_v38  ;;  %v8399_v16 = vld [vmem:[#allocation5 + $0x4a4] ss:$16 sps:$4 sm:$0xff]   ;;  %v8397_v18 = vld [vmem:[#allocation5 + $0x4a0] ss:$16 sps:$4 sm:$0xff]   ;;  %v9929_v38 = vld [vmem:[#allocation2 + $0x18] sm:$0xff] }
  0x7f   :  { %4953 = vmatpush2.bf16.msra.mxu1 %v8348_v39  ;;  %4911 = vmatprep.subr.bf16.mxu0 %v8349_v40  ;;  %v8402_v17 = vld [vmem:[#allocation5 + $0x6a4] ss:$16 sps:$4 sm:$0xff]   ;;  %v8400_v19 = vld [vmem:[#allocation5 + $0x6a0] ss:$16 sps:$4 sm:$0xff]   ;;  %v9931_v39 = vld [vmem:[#allocation2 + $0x78] sm:$0xff] }
  0x80   :  { %4954 = vmatprep.subr.bf16.mxu1 %v8351_v41  ;;  %v8405_v20 = vld [vmem:[#allocation5 + $0x484] ss:$16 sps:$4 sm:$0xff]   ;;  %v8403_v22 = vld [vmem:[#allocation5 + $0x480] ss:$16 sps:$4 sm:$0xff]  }
  0x81   :  { %v8408_v21 = vld [vmem:[#allocation5 + $0x684] ss:$16 sps:$4 sm:$0xff]   ;;  %v8406_v23 = vld [vmem:[#allocation5 + $0x680] ss:$16 sps:$4 sm:$0xff]  }
  0x82   :  { %4912 = vmatpush2.bf16.msra.mxu0 %v8353_v42  ;;  %v8411_v24 = vld [vmem:[#allocation5 + $0x464] ss:$16 sps:$4 sm:$0xff]   ;;  %v8409_v26 = vld [vmem:[#allocation5 + $0x460] ss:$16 sps:$4 sm:$0xff]  }
  0x83   :  { %4955 = vmatpush2.bf16.msra.mxu1 %v8354_v43  ;;  %4913 = vmatprep.subr.bf16.mxu0 %v8355_v44  ;;  %v8414_v25 = vld [vmem:[#allocation5 + $0x664] ss:$16 sps:$4 sm:$0xff]   ;;  %v8412_v27 = vld [vmem:[#allocation5 + $0x660] ss:$16 sps:$4 sm:$0xff]   ;;  %v9939_v43 = vcombine.high %v9929_v38, %v9931_v39 }
  0x84   :  { %4956 = vmatprep.subr.bf16.mxu1 %v8357_v45  ;;  %v8417_v28 = vld [vmem:[#allocation5 + $0x444] ss:$16 sps:$4 sm:$0xff]   ;;  %v8415_v30 = vld [vmem:[#allocation5 + $0x440] ss:$16 sps:$4 sm:$0xff]  }
  0x85   :  { %v8420_v29 = vld [vmem:[#allocation5 + $0x644] ss:$16 sps:$4 sm:$0xff]   ;;  %v8418_v31 = vld [vmem:[#allocation5 + $0x640] ss:$16 sps:$4 sm:$0xff]  }
  0x86   :  { %4914 = vmatpush2.bf16.msra.mxu0 %v8359_v46  ;;  %v8423_v32 = vld [vmem:[#allocation5 + $0x424] ss:$16 sps:$4 sm:$0xff]   ;;  %v8421_v34 = vld [vmem:[#allocation5 + $0x420] ss:$16 sps:$4 sm:$0xff]  }
  0x87   :  { %4957 = vmatpush2.bf16.msra.mxu1 %v8360_v47  ;;  %4915 = vmatprep.subr.bf16.mxu0 %v8361_v52  ;;  %v8426_v33 = vld [vmem:[#allocation5 + $0x624] ss:$16 sps:$4 sm:$0xff]   ;;  %v8424_v35 = vld [vmem:[#allocation5 + $0x620] ss:$16 sps:$4 sm:$0xff]  }
  0x88   :  { %4958 = vmatprep.subr.bf16.mxu1 %v8363_v54  ;;  %v9925_v36 = vld [vmem:[#allocation2 + $0x10] sm:$0xff] }
  0x89   :  { %v9927_v37 = vld [vmem:[#allocation2 + $0x70] sm:$0xff] }
  0x8a   :  { %4916 = vmatpush2.bf16.msra.mxu0 %v8365_v56  ;;  %v8429_v40 = vld [vmem:[#allocation5 + $0x404] ss:$16 sps:$4 sm:$0xff]   ;;  %v9935_v41 = vcombine.high %v9925_v36, %v9927_v37  ;;  %v8427_v44 = vld [vmem:[#allocation5 + $0x400] ss:$16 sps:$4 sm:$0xff]  }
  0x8b   :  { %4959 = vmatpush2.bf16.msra.mxu1 %v8366_v57  ;;  %4917 = vmatprep.subr.bf16.mxu0 %v8367_v58  ;;  %v8432_v42 = vld [vmem:[#allocation5 + $0x604] ss:$16 sps:$4 sm:$0xff]   ;;  %v8430_v45 = vld [vmem:[#allocation5 + $0x600] ss:$16 sps:$4 sm:$0xff]  }
  0x8c   :  { %4960 = vmatprep.subr.bf16.mxu1 %v8369_v59  ;;  %v8435_v46 = vld [vmem:[#allocation5 + $0x5e4] ss:$16 sps:$4 sm:$0xff]   ;;  %v8433_v48 = vld [vmem:[#allocation5 + $0x5e0] ss:$16 sps:$4 sm:$0xff]  }
  0x8d   :  { %v8438_v47 = vld [vmem:[#allocation5 + $0x7e4] ss:$16 sps:$4 sm:$0xff]   ;;  %v8436_v49 = vld [vmem:[#allocation5 + $0x7e0] ss:$16 sps:$4 sm:$0xff]  }
  0x8e   :  { %4918 = vmatpush2.bf16.msra.mxu0 %v8371_v60  ;;  %v8441_v50 = vld [vmem:[#allocation5 + $0x5c4] ss:$16 sps:$4 sm:$0xff]   ;;  %v8439_v52 = vld [vmem:[#allocation5 + $0x5c0] ss:$16 sps:$4 sm:$0xff]  }
  0x8f   :  { %4961 = vmatpush2.bf16.msra.mxu1 %v8372_v61  ;;  %4919 = vmatprep.subr.bf16.mxu0 %v8373_v62  ;;  %v8444_v51 = vld [vmem:[#allocation5 + $0x7c4] ss:$16 sps:$4 sm:$0xff]   ;;  %v8442_v54 = vld [vmem:[#allocation5 + $0x7c0] ss:$16 sps:$4 sm:$0xff]  }
  0x90   :  { %4962 = vmatprep.subr.bf16.mxu1 %v8375_v63  ;;  %v8447_v56 = vld [vmem:[#allocation5 + $0x5a4] ss:$16 sps:$4 sm:$0xff]   ;;  %v8445_v58 = vld [vmem:[#allocation5 + $0x5a0] ss:$16 sps:$4 sm:$0xff]  }
  0x91   :  { %v8450_v57 = vld [vmem:[#allocation5 + $0x7a4] ss:$16 sps:$4 sm:$0xff]   ;;  %v8448_v59 = vld [vmem:[#allocation5 + $0x7a0] ss:$16 sps:$4 sm:$0xff]  }
  0x92   :  { %4920 = vmatpush2.bf16.msra.mxu0 %v8377_v0  ;;  %v8453_v60 = vld [vmem:[#allocation5 + $0x584] ss:$16 sps:$4 sm:$0xff]   ;;  %v8451_v62 = vld [vmem:[#allocation5 + $0x580] ss:$16 sps:$4 sm:$0xff]  }
  0x93   :  { %4963 = vmatpush2.bf16.msra.mxu1 %v8378_v1  ;;  %4921 = vmatprep.subr.bf16.mxu0 %v8379_v2  ;;  %v8456_v61 = vld [vmem:[#allocation5 + $0x784] ss:$16 sps:$4 sm:$0xff]   ;;  %v8454_v63 = vld [vmem:[#allocation5 + $0x780] ss:$16 sps:$4 sm:$0xff]  }
  0x94   :  { %4964 = vmatprep.subr.bf16.mxu1 %v8381_v3  ;;  %v8459_v0 = vld [vmem:[#allocation5 + $0x564] ss:$16 sps:$4 sm:$0xff]   ;;  %v8457_v2 = vld [vmem:[#allocation5 + $0x560] ss:$16 sps:$4 sm:$0xff]  }
  0x95   :  { %v8462_v1 = vld [vmem:[#allocation5 + $0x764] ss:$16 sps:$4 sm:$0xff]   ;;  %v8460_v3 = vld [vmem:[#allocation5 + $0x760] ss:$16 sps:$4 sm:$0xff]  }
  0x96   :  { %4922 = vmatpush2.bf16.msra.mxu0 %v8383_v4  ;;  %v8465_v4 = vld [vmem:[#allocation5 + $0x544] ss:$16 sps:$4 sm:$0xff]  }
  0x97   :  { %4965 = vmatpush2.bf16.msra.mxu1 %v8384_v5  ;;  %4977 = vmatprep.subr.bf16.mxu0 %v8387_v6  ;;  %v8468_v5 = vld [vmem:[#allocation5 + $0x744] ss:$16 sps:$4 sm:$0xff]   ;;  %v8463_v6 = vld [vmem:[#allocation5 + $0x540] ss:$16 sps:$4 sm:$0xff]  }
  0x98   :  { %5020 = vmatprep.subr.bf16.mxu1 %v8390_v7  ;;  %v8466_v7 = vld [vmem:[#allocation5 + $0x740] ss:$16 sps:$4 sm:$0xff]  }
  0x99   :  { %4924 = vmatmul.mubr.bf16.vlgmr.msra.gmra.mxu0 %v9919_v8 }
  0x9a   :  { %4967 = vmatmul.mubr.bf16.vlgmr.msra.gmra.mxu1 %v9921_v9  ;;  %4978 = vmatpush1.bf16.msra.mxu0 %v8385_v10  ;;  %v8471_v10 = vld [vmem:[#allocation5 + $0x524] ss:$16 sps:$4 sm:$0xff]  }
  0x9b   :  { %5021 = vmatpush1.bf16.msra.mxu1 %v8388_v11  ;;  %4979 = vmatprep.subr.bf16.mxu0 %v8393_v12  ;;  %v8474_v11 = vld [vmem:[#allocation5 + $0x724] ss:$16 sps:$4 sm:$0xff]   ;;  %v8469_v12 = vld [vmem:[#allocation5 + $0x520] ss:$16 sps:$4 sm:$0xff]  }
  0x9c   :  { %5022 = vmatprep.subr.bf16.mxu1 %v8396_v13  ;;  %5009 = vmatprep.mubr.bf16.mxu0 %v9935_v41  ;;  %v8472_v13 = vld [vmem:[#allocation5 + $0x720] ss:$16 sps:$4 sm:$0xff]  }
  0x9d   :  { %5052 = vmatprep.mubr.bf16.mxu1 %v9939_v43 }
  0x9e   :  { %4980 = vmatpush1.bf16.msra.mxu0 %v8391_v14  ;;  %v8477_v14 = vld [vmem:[#allocation5 + $0x504] ss:$16 sps:$4 sm:$0xff]  }
  0x9f   :  { %5023 = vmatpush1.bf16.msra.mxu1 %v8394_v15  ;;  %4981 = vmatprep.subr.bf16.mxu0 %v8399_v16  ;;  %v8480_v15 = vld [vmem:[#allocation5 + $0x704] ss:$16 sps:$4 sm:$0xff]   ;;  %v8475_v16 = vld [vmem:[#allocation5 + $0x500] ss:$16 sps:$4 sm:$0xff]  }
  0xa0   :  { %5024 = vmatprep.subr.bf16.mxu1 %v8402_v17  ;;  %v8478_v17 = vld [vmem:[#allocation5 + $0x700] ss:$16 sps:$4 sm:$0xff]  }
  0xa2   :  { %4982 = vmatpush1.bf16.msra.mxu0 %v8397_v18  ;;  %v8483_v18 = vld [vmem:[#allocation5 + $0x8e4] ss:$16 sps:$4 sm:$0xff]  }
  0xa3   :  { %5025 = vmatpush1.bf16.msra.mxu1 %v8400_v19  ;;  %4983 = vmatprep.subr.bf16.mxu0 %v8405_v20  ;;  %v8486_v19 = vld [vmem:[#allocation5 + $0xae4] ss:$16 sps:$4 sm:$0xff]   ;;  %v9945_v20 = vcombine.low %v9925_v36, %v9927_v37  ;;  %v8493_v36 = vld [vmem:[#allocation5 + $0x8a0] ss:$16 sps:$4 sm:$0xff]  }
  0xa4   :  { %5026 = vmatprep.subr.bf16.mxu1 %v8408_v21  ;;  %v9949_v21 = vcombine.low %v9929_v38, %v9931_v39  ;;  %v8496_v37 = vld [vmem:[#allocation5 + $0xaa0] ss:$16 sps:$4 sm:$0xff]   ;;  %v8501_v38 = vld [vmem:[#allocation5 + $0x884] ss:$16 sps:$4 sm:$0xff]  }
  0xa5   :  { %v8504_v39 = vld [vmem:[#allocation5 + $0xa84] ss:$16 sps:$4 sm:$0xff]  }
  0xa6   :  { %4984 = vmatpush1.bf16.msra.mxu0 %v8403_v22  ;;  %v8481_v22 = vld [vmem:[#allocation5 + $0x8e0] ss:$16 sps:$4 sm:$0xff]  }
  0xa7   :  { %5027 = vmatpush1.bf16.msra.mxu1 %v8406_v23  ;;  %4985 = vmatprep.subr.bf16.mxu0 %v8411_v24  ;;  %v8484_v23 = vld [vmem:[#allocation5 + $0xae0] ss:$16 sps:$4 sm:$0xff]   ;;  %v8489_v24 = vld [vmem:[#allocation5 + $0x8c4] ss:$16 sps:$4 sm:$0xff]  }
  0xa8   :  { %5028 = vmatprep.subr.bf16.mxu1 %v8414_v25  ;;  %v8492_v25 = vld [vmem:[#allocation5 + $0xac4] ss:$16 sps:$4 sm:$0xff]  }
  0xaa   :  { %4986 = vmatpush1.bf16.msra.mxu0 %v8409_v26  ;;  %v8487_v26 = vld [vmem:[#allocation5 + $0x8c0] ss:$16 sps:$4 sm:$0xff]  }
  0xab   :  { %5029 = vmatpush1.bf16.msra.mxu1 %v8412_v27  ;;  %4987 = vmatprep.subr.bf16.mxu0 %v8417_v28  ;;  %v8490_v27 = vld [vmem:[#allocation5 + $0xac0] ss:$16 sps:$4 sm:$0xff]  }
  0xac   :  { %5030 = vmatprep.subr.bf16.mxu1 %v8420_v29  ;;  %v9951_v28 = vld [vmem:[#allocation2 + $0x20] sm:$0xff] }
  0xad   :  { %v9955_v29 = vld [vmem:[#allocation2 + $0x80] sm:$0xff] }
  0xae   :  { %4988 = vmatpush1.bf16.msra.mxu0 %v8415_v30  ;;  %v9957_v30 = vld [vmem:[#allocation2 + $0x28] sm:$0xff] }
  0xaf   :  { %5031 = vmatpush1.bf16.msra.mxu1 %v8418_v31  ;;  %4989 = vmatprep.subr.bf16.mxu0 %v8423_v32  ;;  %v9959_v31 = vld [vmem:[#allocation2 + $0x88] sm:$0xff]  ;;  %v8495_v32 = vld [vmem:[#allocation5 + $0x8a4] ss:$16 sps:$4 sm:$0xff]  }
  0xb0   :  { %5032 = vmatprep.subr.bf16.mxu1 %v8426_v33  ;;  %v9963_v33 = vcombine.high %v9951_v28, %v9955_v29 }
  0xb2   :  { %4990 = vmatpush1.bf16.msra.mxu0 %v8421_v34  ;;  %v8498_v34 = vld [vmem:[#allocation5 + $0xaa4] ss:$16 sps:$4 sm:$0xff]  }
  0xb3   :  { %5033 = vmatpush1.bf16.msra.mxu1 %v8424_v35  ;;  %4991 = vmatprep.subr.bf16.mxu0 %v8429_v40  ;;  %v9967_v35 = vcombine.high %v9957_v30, %v9959_v31  ;;  %v8499_v40 = vld [vmem:[#allocation5 + $0x880] ss:$16 sps:$4 sm:$0xff]  }
  0xb4   :  { %5034 = vmatprep.subr.bf16.mxu1 %v8432_v42  ;;  %v8502_v42 = vld [vmem:[#allocation5 + $0xa80] ss:$16 sps:$4 sm:$0xff]  }
  0xb6   :  { %4992 = vmatpush1.bf16.msra.mxu0 %v8427_v44  ;;  %v8507_v44 = vld [vmem:[#allocation5 + $0x864] ss:$16 sps:$4 sm:$0xff]  }
  0xb7   :  { %5035 = vmatpush1.bf16.msra.mxu1 %v8430_v45  ;;  %4993 = vmatprep.subr.bf16.mxu0 %v8435_v46  ;;  %v8510_v45 = vld [vmem:[#allocation5 + $0xa64] ss:$16 sps:$4 sm:$0xff]   ;;  %v8505_v46 = vld [vmem:[#allocation5 + $0x860] ss:$16 sps:$4 sm:$0xff]  }
  0xb8   :  { %5036 = vmatprep.subr.bf16.mxu1 %v8438_v47  ;;  %v8508_v47 = vld [vmem:[#allocation5 + $0xa60] ss:$16 sps:$4 sm:$0xff]  }
  0xba   :  { %4994 = vmatpush2.bf16.msra.mxu0 %v8433_v48  ;;  %v8513_v48 = vld [vmem:[#allocation5 + $0x844] ss:$16 sps:$4 sm:$0xff]  }
  0xbb   :  { %5037 = vmatpush2.bf16.msra.mxu1 %v8436_v49  ;;  %4995 = vmatprep.subr.bf16.mxu0 %v8441_v50  ;;  %v8516_v49 = vld [vmem:[#allocation5 + $0xa44] ss:$16 sps:$4 sm:$0xff]   ;;  %v8511_v50 = vld [vmem:[#allocation5 + $0x840] ss:$16 sps:$4 sm:$0xff]  }
  0xbc   :  { %5038 = vmatprep.subr.bf16.mxu1 %v8444_v51  ;;  %v8514_v51 = vld [vmem:[#allocation5 + $0xa40] ss:$16 sps:$4 sm:$0xff]  }
  0xbe   :  { %4996 = vmatpush2.bf16.msra.mxu0 %v8439_v52  ;;  %v8519_v52 = vld [vmem:[#allocation5 + $0x824] ss:$16 sps:$4 sm:$0xff]  }
  0xbf   :  { %5039 = vmatpush2.bf16.msra.mxu1 %v8442_v54  ;;  %4997 = vmatprep.subr.bf16.mxu0 %v8447_v56  ;;  %v8522_v54 = vld [vmem:[#allocation5 + $0xa24] ss:$16 sps:$4 sm:$0xff]   ;;  %v8517_v56 = vld [vmem:[#allocation5 + $0x820] ss:$16 sps:$4 sm:$0xff]  }
  0xc0   :  { %5040 = vmatprep.subr.bf16.mxu1 %v8450_v57  ;;  %v8520_v57 = vld [vmem:[#allocation5 + $0xa20] ss:$16 sps:$4 sm:$0xff]  }
  0xc2   :  { %4998 = vmatpush2.bf16.msra.mxu0 %v8445_v58  ;;  %v8525_v58 = vld [vmem:[#allocation5 + $0x804] ss:$16 sps:$4 sm:$0xff]  }
  0xc3   :  { %5041 = vmatpush2.bf16.msra.mxu1 %v8448_v59  ;;  %4999 = vmatprep.subr.bf16.mxu0 %v8453_v60  ;;  %v8528_v59 = vld [vmem:[#allocation5 + $0xa04] ss:$16 sps:$4 sm:$0xff]   ;;  %v8523_v60 = vld [vmem:[#allocation5 + $0x800] ss:$16 sps:$4 sm:$0xff]  }
  0xc4   :  { %5042 = vmatprep.subr.bf16.mxu1 %v8456_v61  ;;  %v8526_v61 = vld [vmem:[#allocation5 + $0xa00] ss:$16 sps:$4 sm:$0xff]  }
  0xc6   :  { %5000 = vmatpush2.bf16.msra.mxu0 %v8451_v62  ;;  %v8531_v62 = vld [vmem:[#allocation5 + $0x9e4] ss:$16 sps:$4 sm:$0xff]  }
  0xc7   :  { %5043 = vmatpush2.bf16.msra.mxu1 %v8454_v63  ;;  %5001 = vmatprep.subr.bf16.mxu0 %v8459_v0  ;;  %v8534_v63 = vld [vmem:[#allocation5 + $0xbe4] ss:$16 sps:$4 sm:$0xff]   ;;  %v8529_v0 = vld [vmem:[#allocation5 + $0x9e0] ss:$16 sps:$4 sm:$0xff]  }
  0xc8   :  { %5044 = vmatprep.subr.bf16.mxu1 %v8462_v1  ;;  %v8532_v1 = vld [vmem:[#allocation5 + $0xbe0] ss:$16 sps:$4 sm:$0xff]  }
  0xca   :  { %5002 = vmatpush2.bf16.msra.mxu0 %v8457_v2  ;;  %v8537_v2 = vld [vmem:[#allocation5 + $0x9c4] ss:$16 sps:$4 sm:$0xff]  }
  0xcb   :  { %5045 = vmatpush2.bf16.msra.mxu1 %v8460_v3  ;;  %5003 = vmatprep.subr.bf16.mxu0 %v8465_v4  ;;  %v8540_v3 = vld [vmem:[#allocation5 + $0xbc4] ss:$16 sps:$4 sm:$0xff]   ;;  %v8535_v4 = vld [vmem:[#allocation5 + $0x9c0] ss:$16 sps:$4 sm:$0xff]  }
  0xcc   :  { %5046 = vmatprep.subr.bf16.mxu1 %v8468_v5  ;;  %v8538_v5 = vld [vmem:[#allocation5 + $0xbc0] ss:$16 sps:$4 sm:$0xff]  }
  0xce   :  { %5004 = vmatpush2.bf16.msra.mxu0 %v8463_v6  ;;  %v8543_v6 = vld [vmem:[#allocation5 + $0x9a4] ss:$16 sps:$4 sm:$0xff]  }
  0xcf   :  { %5047 = vmatpush2.bf16.msra.mxu1 %v8466_v7  ;;  %5005 = vmatprep.subr.bf16.mxu0 %v8471_v10  ;;  %v8546_v7 = vld [vmem:[#allocation5 + $0xba4] ss:$16 sps:$4 sm:$0xff]   ;;  %v8541_v10 = vld [vmem:[#allocation5 + $0x9a0] ss:$16 sps:$4 sm:$0xff]  }
  0xd0   :  { %5048 = vmatprep.subr.bf16.mxu1 %v8474_v11  ;;  %v8544_v11 = vld [vmem:[#allocation5 + $0xba0] ss:$16 sps:$4 sm:$0xff]  }
  0xd2   :  { %5006 = vmatpush2.bf16.msra.mxu0 %v8469_v12  ;;  %v8549_v12 = vld [vmem:[#allocation5 + $0x984] ss:$16 sps:$4 sm:$0xff]  }
  0xd3   :  { %5049 = vmatpush2.bf16.msra.mxu1 %v8472_v13  ;;  %5007 = vmatprep.subr.bf16.mxu0 %v8477_v14  ;;  %v8552_v13 = vld [vmem:[#allocation5 + $0xb84] ss:$16 sps:$4 sm:$0xff]   ;;  %v8547_v14 = vld [vmem:[#allocation5 + $0x980] ss:$16 sps:$4 sm:$0xff]  }
  0xd4   :  { %5050 = vmatprep.subr.bf16.mxu1 %v8480_v15  ;;  %v8550_v15 = vld [vmem:[#allocation5 + $0xb80] ss:$16 sps:$4 sm:$0xff]  }
  0xd6   :  { %5008 = vmatpush2.bf16.msra.mxu0 %v8475_v16  ;;  %v8555_v16 = vld [vmem:[#allocation5 + $0x964] ss:$16 sps:$4 sm:$0xff]  }
  0xd7   :  { %5051 = vmatpush2.bf16.msra.mxu1 %v8478_v17  ;;  %5063 = vmatprep.subr.bf16.mxu0 %v8483_v18  ;;  %v8558_v17 = vld [vmem:[#allocation5 + $0xb64] ss:$16 sps:$4 sm:$0xff]   ;;  %v8553_v18 = vld [vmem:[#allocation5 + $0x960] ss:$16 sps:$4 sm:$0xff]  }
  0xd8   :  { %5106 = vmatprep.subr.bf16.mxu1 %v8486_v19  ;;  %v8556_v19 = vld [vmem:[#allocation5 + $0xb60] ss:$16 sps:$4 sm:$0xff]  }
  0xd9   :  { %5010 = vmatmul.mubr.bf16.vlgmr.msra.gmra.mxu0 %v9945_v20 }
  0xda   :  { %5053 = vmatmul.mubr.bf16.vlgmr.msra.gmra.mxu1 %v9949_v21  ;;  %5064 = vmatpush1.bf16.msra.mxu0 %v8481_v22  ;;  %v8561_v22 = vld [vmem:[#allocation5 + $0x944] ss:$16 sps:$4 sm:$0xff]  }
  0xdb   :  { %5107 = vmatpush1.bf16.msra.mxu1 %v8484_v23  ;;  %5065 = vmatprep.subr.bf16.mxu0 %v8489_v24  ;;  %v8564_v23 = vld [vmem:[#allocation5 + $0xb44] ss:$16 sps:$4 sm:$0xff]   ;;  %v8559_v24 = vld [vmem:[#allocation5 + $0x940] ss:$16 sps:$4 sm:$0xff]  }
  0xdc   :  { %5108 = vmatprep.subr.bf16.mxu1 %v8492_v25  ;;  %5095 = vmatprep.mubr.bf16.mxu0 %v9963_v33  ;;  %v8562_v25 = vld [vmem:[#allocation5 + $0xb40] ss:$16 sps:$4 sm:$0xff]  }
  0xdd   :  { %5138 = vmatprep.mubr.bf16.mxu1 %v9967_v35 }
  0xde   :  { %5066 = vmatpush1.bf16.msra.mxu0 %v8487_v26  ;;  %v8567_v26 = vld [vmem:[#allocation5 + $0x924] ss:$16 sps:$4 sm:$0xff]  }
  0xdf   :  { %5109 = vmatpush1.bf16.msra.mxu1 %v8490_v27  ;;  %5067 = vmatprep.subr.bf16.mxu0 %v8495_v32  ;;  %v8570_v27 = vld [vmem:[#allocation5 + $0xb24] ss:$16 sps:$4 sm:$0xff]   ;;  %v8565_v32 = vld [vmem:[#allocation5 + $0x920] ss:$16 sps:$4 sm:$0xff]  }
  0xe0   :  { %5110 = vmatprep.subr.bf16.mxu1 %v8498_v34  ;;  %v8568_v34 = vld [vmem:[#allocation5 + $0xb20] ss:$16 sps:$4 sm:$0xff]  }
  0xe2   :  { %5068 = vmatpush1.bf16.msra.mxu0 %v8493_v36  ;;  %v8573_v36 = vld [vmem:[#allocation5 + $0x904] ss:$16 sps:$4 sm:$0xff]  }
  0xe3   :  { %5111 = vmatpush1.bf16.msra.mxu1 %v8496_v37  ;;  %5069 = vmatprep.subr.bf16.mxu0 %v8501_v38  ;;  %v8576_v37 = vld [vmem:[#allocation5 + $0xb04] ss:$16 sps:$4 sm:$0xff]   ;;  %v8571_v38 = vld [vmem:[#allocation5 + $0x900] ss:$16 sps:$4 sm:$0xff]  }
  0xe4   :  { %5112 = vmatprep.subr.bf16.mxu1 %v8504_v39  ;;  %v8574_v39 = vld [vmem:[#allocation5 + $0xb00] ss:$16 sps:$4 sm:$0xff]  }
  0xe6   :  { %5070 = vmatpush1.bf16.msra.mxu0 %v8499_v40  ;;  %v8579_v40 = vld [vmem:[#allocation5 + $0xce4] ss:$16 sps:$4 sm:$0xff]  }
  0xe7   :  { %5113 = vmatpush1.bf16.msra.mxu1 %v8502_v42  ;;  %5071 = vmatprep.subr.bf16.mxu0 %v8507_v44  ;;  %v8582_v42 = vld [vmem:[#allocation5 + $0xee4] ss:$16 sps:$4 sm:$0xff]  }
  0xe8   :  { %5114 = vmatprep.subr.bf16.mxu1 %v8510_v45  ;;  %v9971_v44 = vld [vmem:[#allocation2 + $0x30] sm:$0xff] }
  0xe9   :  { %v8577_v45 = vld [vmem:[#allocation5 + $0xce0] ss:$16 sps:$4 sm:$0xff]  }
  0xea   :  { %5072 = vmatpush1.bf16.msra.mxu0 %v8505_v46  ;;  %v9973_v46 = vld [vmem:[#allocation2 + $0x90] sm:$0xff] }
  0xeb   :  { %5115 = vmatpush1.bf16.msra.mxu1 %v8508_v47  ;;  %5073 = vmatprep.subr.bf16.mxu0 %v8513_v48  ;;  %v9975_v47 = vld [vmem:[#allocation2 + $0x38] sm:$0xff]  ;;  %v9979_v48 = vcombine.low %v9951_v28, %v9955_v29  ;;  %v8583_v29 = vld [vmem:[#allocation5 + $0xcc0] ss:$16 sps:$4 sm:$0xff]  }
  0xec   :  { %5116 = vmatprep.subr.bf16.mxu1 %v8516_v49  ;;  %v9983_v49 = vcombine.low %v9957_v30, %v9959_v31  ;;  %v8586_v30 = vld [vmem:[#allocation5 + $0xec0] ss:$16 sps:$4 sm:$0xff]   ;;  %v8591_v31 = vld [vmem:[#allocation5 + $0xca4] ss:$16 sps:$4 sm:$0xff]  }
  0xee   :  { %5074 = vmatpush1.bf16.msra.mxu0 %v8511_v50  ;;  %v9985_v50 = vld [vmem:[#allocation2 + $0x98] sm:$0xff] }
  0xef   :  { %5117 = vmatpush1.bf16.msra.mxu1 %v8514_v51  ;;  %5075 = vmatprep.subr.bf16.mxu0 %v8519_v52  ;;  %v8580_v51 = vld [vmem:[#allocation5 + $0xee0] ss:$16 sps:$4 sm:$0xff]   ;;  %v8585_v52 = vld [vmem:[#allocation5 + $0xcc4] ss:$16 sps:$4 sm:$0xff]   ;;  %v9993_v28 = vcombine.high %v9975_v47, %v9985_v50 }
  0xf0   :  { %5118 = vmatprep.subr.bf16.mxu1 %v8522_v54  ;;  %v8588_v54 = vld [vmem:[#allocation5 + $0xec4] ss:$16 sps:$4 sm:$0xff]  }
  0xf2   :  { %5076 = vmatpush1.bf16.msra.mxu0 %v8517_v56  ;;  %v9989_v56 = vcombine.high %v9971_v44, %v9973_v46 }
  0xf3   :  { %5119 = vmatpush1.bf16.msra.mxu1 %v8520_v57  ;;  %5077 = vmatprep.subr.bf16.mxu0 %v8525_v58  ;;  %v8594_v57 = vld [vmem:[#allocation5 + $0xea4] ss:$16 sps:$4 sm:$0xff]   ;;  %v8589_v58 = vld [vmem:[#allocation5 + $0xca0] ss:$16 sps:$4 sm:$0xff]  }
  0xf4   :  { %5120 = vmatprep.subr.bf16.mxu1 %v8528_v59  ;;  %v8592_v59 = vld [vmem:[#allocation5 + $0xea0] ss:$16 sps:$4 sm:$0xff]  }
  0xf6   :  { %5078 = vmatpush1.bf16.msra.mxu0 %v8523_v60  ;;  %v8597_v60 = vld [vmem:[#allocation5 + $0xc84] ss:$16 sps:$4 sm:$0xff]  }
  0xf7   :  { %5121 = vmatpush1.bf16.msra.mxu1 %v8526_v61  ;;  %5079 = vmatprep.subr.bf16.mxu0 %v8531_v62  ;;  %v8600_v61 = vld [vmem:[#allocation5 + $0xe84] ss:$16 sps:$4 sm:$0xff]   ;;  %v8595_v62 = vld [vmem:[#allocation5 + $0xc80] ss:$16 sps:$4 sm:$0xff]  }
  0xf8   :  { %5122 = vmatprep.subr.bf16.mxu1 %v8534_v63  ;;  %v8598_v63 = vld [vmem:[#allocation5 + $0xe80] ss:$16 sps:$4 sm:$0xff]  }
  0xfa   :  { %5080 = vmatpush2.bf16.msra.mxu0 %v8529_v0  ;;  %v8603_v0 = vld [vmem:[#allocation5 + $0xc64] ss:$16 sps:$4 sm:$0xff]  }
  0xfb   :  { %5123 = vmatpush2.bf16.msra.mxu1 %v8532_v1  ;;  %5081 = vmatprep.subr.bf16.mxu0 %v8537_v2  ;;  %v8606_v1 = vld [vmem:[#allocation5 + $0xe64] ss:$16 sps:$4 sm:$0xff]   ;;  %v8601_v2 = vld [vmem:[#allocation5 + $0xc60] ss:$16 sps:$4 sm:$0xff]  }
  0xfc   :  { %5124 = vmatprep.subr.bf16.mxu1 %v8540_v3  ;;  %v8604_v3 = vld [vmem:[#allocation5 + $0xe60] ss:$16 sps:$4 sm:$0xff]  }
  0xfe   :  { %5082 = vmatpush2.bf16.msra.mxu0 %v8535_v4  ;;  %v8609_v4 = vld [vmem:[#allocation5 + $0xc44] ss:$16 sps:$4 sm:$0xff]  }
  0xff   :  { %5125 = vmatpush2.bf16.msra.mxu1 %v8538_v5  ;;  %5083 = vmatprep.subr.bf16.mxu0 %v8543_v6  ;;  %v8612_v5 = vld [vmem:[#allocation5 + $0xe44] ss:$16 sps:$4 sm:$0xff]   ;;  %v8607_v6 = vld [vmem:[#allocation5 + $0xc40] ss:$16 sps:$4 sm:$0xff]  }
 0x100   :  { %5126 = vmatprep.subr.bf16.mxu1 %v8546_v7  ;;  %v8610_v7 = vld [vmem:[#allocation5 + $0xe40] ss:$16 sps:$4 sm:$0xff]  }
 0x102   :  { %5084 = vmatpush2.bf16.msra.mxu0 %v8541_v10  ;;  %v8615_v10 = vld [vmem:[#allocation5 + $0xc24] ss:$16 sps:$4 sm:$0xff]  }
 0x103   :  { %5127 = vmatpush2.bf16.msra.mxu1 %v8544_v11  ;;  %5085 = vmatprep.subr.bf16.mxu0 %v8549_v12  ;;  %v8618_v11 = vld [vmem:[#allocation5 + $0xe24] ss:$16 sps:$4 sm:$0xff]   ;;  %v8613_v12 = vld [vmem:[#allocation5 + $0xc20] ss:$16 sps:$4 sm:$0xff]  }
 0x104   :  { %5128 = vmatprep.subr.bf16.mxu1 %v8552_v13  ;;  %v8616_v13 = vld [vmem:[#allocation5 + $0xe20] ss:$16 sps:$4 sm:$0xff]  }
 0x106   :  { %5086 = vmatpush2.bf16.msra.mxu0 %v8547_v14  ;;  %v8621_v14 = vld [vmem:[#allocation5 + $0xc04] ss:$16 sps:$4 sm:$0xff]  }
 0x107   :  { %5129 = vmatpush2.bf16.msra.mxu1 %v8550_v15  ;;  %5087 = vmatprep.subr.bf16.mxu0 %v8555_v16  ;;  %v8624_v15 = vld [vmem:[#allocation5 + $0xe04] ss:$16 sps:$4 sm:$0xff]   ;;  %v8619_v16 = vld [vmem:[#allocation5 + $0xc00] ss:$16 sps:$4 sm:$0xff]  }
 0x108   :  { %5130 = vmatprep.subr.bf16.mxu1 %v8558_v17  ;;  %v8622_v17 = vld [vmem:[#allocation5 + $0xe00] ss:$16 sps:$4 sm:$0xff]  }
 0x10a   :  { %5088 = vmatpush2.bf16.msra.mxu0 %v8553_v18  ;;  %v8627_v18 = vld [vmem:[#allocation5 + $0xde4] ss:$16 sps:$4 sm:$0xff]  }
 0x10b   :  { %5131 = vmatpush2.bf16.msra.mxu1 %v8556_v19  ;;  %5089 = vmatprep.subr.bf16.mxu0 %v8561_v22  ;;  %v8630_v19 = vld [vmem:[#allocation5 + $0xfe4] ss:$16 sps:$4 sm:$0xff]   ;;  %v8625_v22 = vld [vmem:[#allocation5 + $0xde0] ss:$16 sps:$4 sm:$0xff]  }
 0x10c   :  { %5132 = vmatprep.subr.bf16.mxu1 %v8564_v23  ;;  %v8628_v23 = vld [vmem:[#allocation5 + $0xfe0] ss:$16 sps:$4 sm:$0xff]  }
 0x10e   :  { %5090 = vmatpush2.bf16.msra.mxu0 %v8559_v24  ;;  %v8633_v24 = vld [vmem:[#allocation5 + $0xdc4] ss:$16 sps:$4 sm:$0xff]  }
 0x10f   :  { %5133 = vmatpush2.bf16.msra.mxu1 %v8562_v25  ;;  %5091 = vmatprep.subr.bf16.mxu0 %v8567_v26  ;;  %v8636_v25 = vld [vmem:[#allocation5 + $0xfc4] ss:$16 sps:$4 sm:$0xff]   ;;  %v8631_v26 = vld [vmem:[#allocation5 + $0xdc0] ss:$16 sps:$4 sm:$0xff]  }
 0x110   :  { %5134 = vmatprep.subr.bf16.mxu1 %v8570_v27  ;;  %v8634_v27 = vld [vmem:[#allocation5 + $0xfc0] ss:$16 sps:$4 sm:$0xff]  }
 0x112   :  { %5092 = vmatpush2.bf16.msra.mxu0 %v8565_v32  ;;  %v8639_v32 = vld [vmem:[#allocation5 + $0xda4] ss:$16 sps:$4 sm:$0xff]  }
 0x113   :  { %5135 = vmatpush2.bf16.msra.mxu1 %v8568_v34  ;;  %5093 = vmatprep.subr.bf16.mxu0 %v8573_v36  ;;  %v8642_v34 = vld [vmem:[#allocation5 + $0xfa4] ss:$16 sps:$4 sm:$0xff]   ;;  %v8637_v36 = vld [vmem:[#allocation5 + $0xda0] ss:$16 sps:$4 sm:$0xff]  }
 0x114   :  { %5136 = vmatprep.subr.bf16.mxu1 %v8576_v37  ;;  %v8640_v37 = vld [vmem:[#allocation5 + $0xfa0] ss:$16 sps:$4 sm:$0xff]  }
 0x116   :  { %5094 = vmatpush2.bf16.msra.mxu0 %v8571_v38  ;;  %v8645_v38 = vld [vmem:[#allocation5 + $0xd84] ss:$16 sps:$4 sm:$0xff]  }
 0x117   :  { %5137 = vmatpush2.bf16.msra.mxu1 %v8574_v39  ;;  %5149 = vmatprep.subr.bf16.mxu0 %v8579_v40  ;;  %v8648_v39 = vld [vmem:[#allocation5 + $0xf84] ss:$16 sps:$4 sm:$0xff]   ;;  %v8643_v40 = vld [vmem:[#allocation5 + $0xd80] ss:$16 sps:$4 sm:$0xff]  }
 0x118   :  { %5192 = vmatprep.subr.bf16.mxu1 %v8582_v42  ;;  %v8646_v42 = vld [vmem:[#allocation5 + $0xf80] ss:$16 sps:$4 sm:$0xff]  }
 0x119   :  { %5096 = vmatmul.mubr.bf16.vlgmr.msra.gmra.mxu0 %v9979_v48 }
 0x11a   :  { %5139 = vmatmul.mubr.bf16.vlgmr.msra.gmra.mxu1 %v9983_v49  ;;  %5150 = vmatpush1.bf16.msra.mxu0 %v8577_v45  ;;  %v8651_v45 = vld [vmem:[#allocation5 + $0xd64] ss:$16 sps:$4 sm:$0xff]  }
 0x11b   :  { %5193 = vmatpush1.bf16.msra.mxu1 %v8580_v51  ;;  %5151 = vmatprep.subr.bf16.mxu0 %v8585_v52  ;;  %v8654_v51 = vld [vmem:[#allocation5 + $0xf64] ss:$16 sps:$4 sm:$0xff]   ;;  %v8649_v52 = vld [vmem:[#allocation5 + $0xd60] ss:$16 sps:$4 sm:$0xff]  }
 0x11c   :  { %5194 = vmatprep.subr.bf16.mxu1 %v8588_v54  ;;  %5181 = vmatprep.mubr.bf16.mxu0 %v9989_v56  ;;  %v8652_v54 = vld [vmem:[#allocation5 + $0xf60] ss:$16 sps:$4 sm:$0xff]  }
 0x11d   :  { %5224 = vmatprep.mubr.bf16.mxu1 %v9993_v28 }
 0x11e   :  { %5152 = vmatpush1.bf16.msra.mxu0 %v8583_v29  ;;  %v8657_v29 = vld [vmem:[#allocation5 + $0xd44] ss:$16 sps:$4 sm:$0xff]  }
 0x11f   :  { %5195 = vmatpush1.bf16.msra.mxu1 %v8586_v30  ;;  %5153 = vmatprep.subr.bf16.mxu0 %v8591_v31  ;;  %v8660_v30 = vld [vmem:[#allocation5 + $0xf44] ss:$16 sps:$4 sm:$0xff]   ;;  %v8655_v31 = vld [vmem:[#allocation5 + $0xd40] ss:$16 sps:$4 sm:$0xff]  }
 0x120   :  { %5196 = vmatprep.subr.bf16.mxu1 %v8594_v57  ;;  %v8658_v57 = vld [vmem:[#allocation5 + $0xf40] ss:$16 sps:$4 sm:$0xff]  }
 0x122   :  { %5154 = vmatpush1.bf16.msra.mxu0 %v8589_v58  ;;  %v911_v58 = vlaneseq }
 0x123   :  { %5197 = vmatpush1.bf16.msra.mxu1 %v8592_v59  ;;  %5155 = vmatprep.subr.bf16.mxu0 %v8597_v60  ;;  %v8663_v59 = vld [vmem:[#allocation5 + $0xd24] ss:$16 sps:$4 sm:$0xff]  }
 0x124   :  { %5198 = vmatprep.subr.bf16.mxu1 %v8600_v61  ;;  %v8666_v60 = vld [vmem:[#allocation5 + $0xf24] ss:$16 sps:$4 sm:$0xff]   ;;  %v8661_v61 = vld [vmem:[#allocation5 + $0xd20] ss:$16 sps:$4 sm:$0xff]  }
 0x126   :  { %5156 = vmatpush1.bf16.msra.mxu0 %v8595_v62  ;;  %v8664_v62 = vld [vmem:[#allocation5 + $0xf20] ss:$16 sps:$4 sm:$0xff]  }
 0x127   :  { %5199 = vmatpush1.bf16.msra.mxu1 %v8598_v63  ;;  %5157 = vmatprep.subr.bf16.mxu0 %v8603_v0  ;;  %v9999_v63 = vshrl.u32 %v911_v58, 7  ;;  %v8669_v0 = vld [vmem:[#allocation5 + $0xd04] ss:$16 sps:$4 sm:$0xff]   ;;  %v8700_v58 = vld [vmem:[#allocation5 + $0x1260] ss:$16 sps:$4 sm:$0xff]  }
 0x128   :  { %5200 = vmatprep.subr.bf16.mxu1 %v8606_v1  ;;  %v8672_v1 = vld [vmem:[#allocation5 + $0xf04] ss:$16 sps:$4 sm:$0xff]  }
 0x12a   :  { %5158 = vmatpush1.bf16.msra.mxu0 %v8601_v2  ;;  %v8667_v2 = vld [vmem:[#allocation5 + $0xd00] ss:$16 sps:$4 sm:$0xff]  }
 0x12b   :  { %5201 = vmatpush1.bf16.msra.mxu1 %v8604_v3  ;;  %5159 = vmatprep.subr.bf16.mxu0 %v8609_v4  ;;  %v8670_v3 = vld [vmem:[#allocation5 + $0xf00] ss:$16 sps:$4 sm:$0xff]  }
 0x12c   :  { %5202 = vmatprep.subr.bf16.mxu1 %v8612_v5  ;;  %v909_v4 = vld [vmem:[#allocation7] sm:$0xf]  ;;  %v913_v5 = vsub.s32 0, %v9999_v63 }
 0x12e   :  { %5160 = vmatpush1.bf16.msra.mxu0 %v8607_v6  ;;  %v8675_v6 = vld [vmem:[#allocation5 + $0x10e4] ss:$16 sps:$4 sm:$0xff]  }
 0x12f   :  { %5203 = vmatpush1.bf16.msra.mxu1 %v8610_v7  ;;  %5161 = vmatprep.subr.bf16.mxu0 %v8615_v10  ;;  %v8678_v7 = vld [vmem:[#allocation5 + $0x12e4] ss:$16 sps:$4 sm:$0xff]  }
 0x130   :  { %5204 = vmatprep.subr.bf16.mxu1 %v8618_v11  ;;  %v10002_v10 = vld [vmem:[#allocation2 + $0x40] sm:$0xff] }
 0x131   :  { %v8673_v11 = vld [vmem:[#allocation5 + $0x10e0] ss:$16 sps:$4 sm:$0xff]  }
 0x132   :  { %5162 = vmatpush1.bf16.msra.mxu0 %v8613_v12  ;;  %v10004_v12 = vld [vmem:[#allocation2 + $0xa0] sm:$0xff] }
 0x133   :  { %5205 = vmatpush1.bf16.msra.mxu1 %v8616_v13  ;;  %5163 = vmatprep.subr.bf16.mxu0 %v8621_v14  ;;  %v10006_v13 = vld [vmem:[#allocation2 + $0x48] sm:$0xff]  ;;  %v10010_v14 = vcombine.low %v9971_v44, %v9973_v46  ;;  %v10022_v44 = vcombine.high %v10002_v10, %v10004_v12 }
 0x134   :  { %5206 = vmatprep.subr.bf16.mxu1 %v8624_v15  ;;  %v10014_v15 = vcombine.low %v9975_v47, %v9985_v50 }
 0x136   :  { %5164 = vmatpush1.bf16.msra.mxu0 %v8619_v16  ;;  %v10016_v16 = vld [vmem:[#allocation2 + $0xa8] sm:$0xff] }
 0x137   :  { %5207 = vmatpush1.bf16.msra.mxu1 %v8622_v17  ;;  %5165 = vmatprep.subr.bf16.mxu0 %v8627_v18  ;;  %v914_v17 = vrot.slane %v909_v4, %v913_v5  ;;  %v8676_v18 = vld [vmem:[#allocation5 + $0x12e0] ss:$16 sps:$4 sm:$0xff]   ;;  %v10026_v46 = vcombine.high %v10006_v13, %v10016_v16  ;;  %v8717_v4 = vld [vmem:[#allocation5 + $0x1004] ss:$16 sps:$4 sm:$0xff]  }
 0x138   :  { %5208 = vmatprep.subr.bf16.mxu1 %v8630_v19  ;;  %v8681_v19 = vld [vmem:[#allocation5 + $0x10c4] ss:$16 sps:$4 sm:$0xff]  }
 0x13a   :  { %5166 = vmatpush2.bf16.msra.mxu0 %v8625_v22  ;;  %v8684_v22 = vld [vmem:[#allocation5 + $0x12c4] ss:$16 sps:$4 sm:$0xff]  }
 0x13b   :  { %5209 = vmatpush2.bf16.msra.mxu1 %v8628_v23  ;;  %5167 = vmatprep.subr.bf16.mxu0 %v8633_v24  ;;  %v8679_v23 = vld [vmem:[#allocation5 + $0x10c0] ss:$16 sps:$4 sm:$0xff]  }
 0x13c   :  { %5210 = vmatprep.subr.bf16.mxu1 %v8636_v25  ;;  %v8682_v25 = vld [vmem:[#allocation5 + $0x12c0] ss:$16 sps:$4 sm:$0xff]  }
 0x13e   :  { %5168 = vmatpush2.bf16.msra.mxu0 %v8631_v26 }
 0x13f   :  { %5211 = vmatpush2.bf16.msra.mxu1 %v8634_v27  ;;  %5169 = vmatprep.subr.bf16.mxu0 %v8639_v32  ;;  %v8687_v32 = vld [vmem:[#allocation5 + $0x10a4] ss:$16 sps:$4 sm:$0xff]  }
 0x140   :  { %5212 = vmatprep.subr.bf16.mxu1 %v8642_v34  ;;  %v8690_v34 = vld [vmem:[#allocation5 + $0x12a4] ss:$16 sps:$4 sm:$0xff]  }
 0x142   :  { %5170 = vmatpush2.bf16.msra.mxu0 %v8637_v36 }
 0x143   :  { %5213 = vmatpush2.bf16.msra.mxu1 %v8640_v37  ;;  %5171 = vmatprep.subr.bf16.mxu0 %v8645_v38  ;;  %v8685_v38 = vld [vmem:[#allocation5 + $0x10a0] ss:$16 sps:$4 sm:$0xff]  }
 0x144   :  { %5214 = vmatprep.subr.bf16.mxu1 %v8648_v39 }
 0x146   :  { %5172 = vmatpush2.bf16.msra.mxu0 %v8643_v40  ;;  %v8688_v40 = vld [vmem:[#allocation5 + $0x12a0] ss:$16 sps:$4 sm:$0xff]  }
 0x147   :  { %5215 = vmatpush2.bf16.msra.mxu1 %v8646_v42  ;;  %5173 = vmatprep.subr.bf16.mxu0 %v8651_v45  ;;  %v8693_v45 = vld [vmem:[#allocation5 + $0x1084] ss:$16 sps:$4 sm:$0xff]  }
 0x148   :  { %5216 = vmatprep.subr.bf16.mxu1 %v8654_v51  ;;  %v8696_v51 = vld [vmem:[#allocation5 + $0x1284] ss:$16 sps:$4 sm:$0xff]  }
 0x14a   :  { %5174 = vmatpush2.bf16.msra.mxu0 %v8649_v52 }
 0x14b   :  { %5217 = vmatpush2.bf16.msra.mxu1 %v8652_v54  ;;  %5175 = vmatprep.subr.bf16.mxu0 %v8657_v29  ;;  %v8691_v54 = vld [vmem:[#allocation5 + $0x1080] ss:$16 sps:$4 sm:$0xff]  }
 0x14c   :  { %5218 = vmatprep.subr.bf16.mxu1 %v8660_v30  ;;  %v8694_v29 = vld [vmem:[#allocation5 + $0x1280] ss:$16 sps:$4 sm:$0xff]   ;;  %v8699_v30 = vld [vmem:[#allocation5 + $0x1064] ss:$16 sps:$4 sm:$0xff]  }
 0x14e   :  { %5176 = vmatpush2.bf16.msra.mxu0 %v8655_v31  ;;  %v8702_v31 = vld [vmem:[#allocation5 + $0x1264] ss:$16 sps:$4 sm:$0xff]  }
 0x14f   :  { %5219 = vmatpush2.bf16.msra.mxu1 %v8658_v57  ;;  %5177 = vmatprep.subr.bf16.mxu0 %v8663_v59  ;;  %v8697_v57 = vld [vmem:[#allocation5 + $0x1060] ss:$16 sps:$4 sm:$0xff]   ;;  %v8705_v59 = vld [vmem:[#allocation5 + $0x1044] ss:$16 sps:$4 sm:$0xff]  }
 0x150   :  { %5220 = vmatprep.subr.bf16.mxu1 %v8666_v60  ;;  %v8708_v60 = vld [vmem:[#allocation5 + $0x1244] ss:$16 sps:$4 sm:$0xff]  }
 0x152   :  { %5178 = vmatpush2.bf16.msra.mxu0 %v8661_v61  ;;  %v8703_v61 = vld [vmem:[#allocation5 + $0x1040] ss:$16 sps:$4 sm:$0xff]  }
 0x153   :  { %5221 = vmatpush2.bf16.msra.mxu1 %v8664_v62  ;;  %5179 = vmatprep.subr.bf16.mxu0 %v8669_v0  ;;  %v8706_v62 = vld [vmem:[#allocation5 + $0x1240] ss:$16 sps:$4 sm:$0xff]   ;;  %v8711_v0 = vld [vmem:[#allocation5 + $0x1024] ss:$16 sps:$4 sm:$0xff]  }
 0x154   :  { %5222 = vmatprep.subr.bf16.mxu1 %v8672_v1  ;;  %v8714_v1 = vld [vmem:[#allocation5 + $0x1224] ss:$16 sps:$4 sm:$0xff]  }
 0x156   :  { %5180 = vmatpush2.bf16.msra.mxu0 %v8667_v2  ;;  %v8709_v2 = vld [vmem:[#allocation5 + $0x1020] ss:$16 sps:$4 sm:$0xff]  }
 0x157   :  { %5223 = vmatpush2.bf16.msra.mxu1 %v8670_v3  ;;  %5235 = vmatprep.subr.bf16.mxu0 %v8675_v6  ;;  %v8712_v3 = vld [vmem:[#allocation5 + $0x1220] ss:$16 sps:$4 sm:$0xff]   ;;  %v8720_v6 = vld [vmem:[#allocation5 + $0x1204] ss:$16 sps:$4 sm:$0xff]  }
 0x158   :  { %5278 = vmatprep.subr.bf16.mxu1 %v8678_v7  ;;  %v8715_v7 = vld [vmem:[#allocation5 + $0x1000] ss:$16 sps:$4 sm:$0xff]  }
 0x159   :  { %v4925_v47 = vpop.f32.mrf.mxu0  ;;  %5182 = vmatmul.mubr.bf16.vlgmr.msra.gmra.mxu0 %v10010_v14 }
 0x15a   :  { %v4968_v50 = vpop.f32.mrf.mxu1  ;;  %5225 = vmatmul.mubr.bf16.vlgmr.msra.gmra.mxu1 %v10014_v15  ;;  %v4926_v24 = vadd.f32 %v4925_v47, %v914_v17  ;;  %5236 = vmatpush1.bf16.msra.mxu0 %v8673_v11  ;;  %v8718_v11 = vld [vmem:[#allocation5 + $0x1200] ss:$16 sps:$4 sm:$0xff]   ;;  %v8729_v47 = vld [vmem:[#allocation5 + $0x11c4] ss:$16 sps:$4 sm:$0xff]  }
 0x15b   :  { %5279 = vmatpush1.bf16.msra.mxu1 %v8676_v18  ;;  %v10030_v26 = vpop.f32.mrf.mxu0  ;;  %5237 = vmatprep.subr.bf16.mxu0 %v8681_v19  ;;  %v8726_v18 = vld [vmem:[#allocation5 + $0x13e4] ss:$16 sps:$4 sm:$0xff]   ;;  %v8721_v19 = vld [vmem:[#allocation5 + $0x11e0] ss:$16 sps:$4 sm:$0xff]  }
 0x15c   :  { %v10032_v27 = vpop.f32.mrf.mxu1  ;;  %5280 = vmatprep.subr.bf16.mxu1 %v8684_v22  ;;  %v10034_v36 = vadd.f32 %v4968_v50, %v4926_v24  ;;  %5267 = vmatprep.mubr.bf16.mxu0 %v10022_v44  ;;  %v8724_v22 = vld [vmem:[#allocation5 + $0x13e0] ss:$16 sps:$4 sm:$0xff]   ;;  %v8732_v50 = vld [vmem:[#allocation5 + $0x13c4] ss:$16 sps:$4 sm:$0xff]  }
 0x15d   :  { %5310 = vmatprep.mubr.bf16.mxu1 %v10026_v46  ;;  %v4929_v37 = vpop.f32.mrf.mxu0  ;;  %v8730_v24 = vld [vmem:[#allocation5 + $0x13c0] ss:$16 sps:$4 sm:$0xff]  }
 0x15e   :  { %v4930_v39 = vadd.f32 %v4929_v37, %v914_v17  ;;  %5238 = vmatpush1.bf16.msra.mxu0 %v8679_v23  ;;  %v4972_v42 = vpop.f32.mrf.mxu1  ;;  %v8723_v17 = vld [vmem:[#allocation5 + $0x11e4] ss:$16 sps:$4 sm:$0xff]   ;;  %v8727_v23 = vld [vmem:[#allocation5 + $0x11c0] ss:$16 sps:$4 sm:$0xff]  }
 0x15f   :  { %5281 = vmatpush1.bf16.msra.mxu1 %v8682_v25  ;;  %5239 = vmatprep.subr.bf16.mxu0 %v8687_v32  ;;  %v8735_v25 = vld [vmem:[#allocation5 + $0x11a4] ss:$16 sps:$4 sm:$0xff]   ;;  %v8736_v37 = vld [vmem:[#allocation5 + $0x13a0] ss:$16 sps:$4 sm:$0xff]  }
 0x160   :  { %5282 = vmatprep.subr.bf16.mxu1 %v8690_v34  ;;  %v10038_v52 = vadd.f32 %v4972_v42, %v4930_v39  ;;  %v8738_v32 = vld [vmem:[#allocation5 + $0x13a4] ss:$16 sps:$4 sm:$0xff]   ;;  %v8733_v34 = vld [vmem:[#allocation5 + $0x11a0] ss:$16 sps:$4 sm:$0xff]  }
 0x161   :  { %v8744_v39 = vld [vmem:[#allocation5 + $0x1384] ss:$16 sps:$4 sm:$0xff]   ;;  %v8742_v42 = vld [vmem:[#allocation5 + $0x1380] ss:$16 sps:$4 sm:$0xff]  }
 0x162   :  { %5240 = vmatpush1.bf16.msra.mxu0 %v8685_v38  ;;  %v8741_v38 = vld [vmem:[#allocation5 + $0x1184] ss:$16 sps:$4 sm:$0xff]  }
 0x163   :  { %5283 = vmatpush1.bf16.msra.mxu1 %v8688_v40  ;;  %5241 = vmatprep.subr.bf16.mxu0 %v8693_v45  ;;  %v8739_v40 = vld [vmem:[#allocation5 + $0x1180] ss:$16 sps:$4 sm:$0xff]   ;;  %v8747_v45 = vld [vmem:[#allocation5 + $0x1164] ss:$16 sps:$4 sm:$0xff]  }
 0x164   :  { %5284 = vmatprep.subr.bf16.mxu1 %v8696_v51  ;;  %v8750_v51 = vld [vmem:[#allocation5 + $0x1364] ss:$16 sps:$4 sm:$0xff]  }
 0x166   :  { %5242 = vmatpush1.bf16.msra.mxu0 %v8691_v54  ;;  %v8745_v54 = vld [vmem:[#allocation5 + $0x1160] ss:$16 sps:$4 sm:$0xff]  }
 0x167   :  { %5285 = vmatpush1.bf16.msra.mxu1 %v8694_v29  ;;  %5243 = vmatprep.subr.bf16.mxu0 %v8699_v30  ;;  %v8748_v29 = vld [vmem:[#allocation5 + $0x1360] ss:$16 sps:$4 sm:$0xff]   ;;  %v8753_v30 = vld [vmem:[#allocation5 + $0x1144] ss:$16 sps:$4 sm:$0xff]  }
 0x168   :  { %5286 = vmatprep.subr.bf16.mxu1 %v8702_v31  ;;  %v8756_v31 = vld [vmem:[#allocation5 + $0x1344] ss:$16 sps:$4 sm:$0xff]  }
 0x16a   :  { %5244 = vmatpush1.bf16.msra.mxu0 %v8697_v57  ;;  %v8751_v57 = vld [vmem:[#allocation5 + $0x1140] ss:$16 sps:$4 sm:$0xff]  }
 0x16b   :  { %5287 = vmatpush1.bf16.msra.mxu1 %v8700_v58  ;;  %5245 = vmatprep.subr.bf16.mxu0 %v8705_v59  ;;  %v8754_v58 = vld [vmem:[#allocation5 + $0x1340] ss:$16 sps:$4 sm:$0xff]   ;;  %v8759_v59 = vld [vmem:[#allocation5 + $0x1124] ss:$16 sps:$4 sm:$0xff]  }
 0x16c   :  { %5288 = vmatprep.subr.bf16.mxu1 %v8708_v60  ;;  %v8762_v60 = vld [vmem:[#allocation5 + $0x1324] ss:$16 sps:$4 sm:$0xff]  }
 0x16e   :  { %5246 = vmatpush1.bf16.msra.mxu0 %v8703_v61  ;;  %v8757_v61 = vld [vmem:[#allocation5 + $0x1120] ss:$16 sps:$4 sm:$0xff]  }
 0x16f   :  { %5289 = vmatpush1.bf16.msra.mxu1 %v8706_v62  ;;  %5247 = vmatprep.subr.bf16.mxu0 %v8711_v0  ;;  %v8760_v62 = vld [vmem:[#allocation5 + $0x1320] ss:$16 sps:$4 sm:$0xff]   ;;  %v8765_v0 = vld [vmem:[#allocation5 + $0x1104] ss:$16 sps:$4 sm:$0xff]  }
 0x170   :  { %5290 = vmatprep.subr.bf16.mxu1 %v8714_v1  ;;  %v8768_v1 = vld [vmem:[#allocation5 + $0x1304] ss:$16 sps:$4 sm:$0xff]  }
 0x172   :  { %5248 = vmatpush1.bf16.msra.mxu0 %v8709_v2  ;;  %v8763_v2 = vld [vmem:[#allocation5 + $0x1100] ss:$16 sps:$4 sm:$0xff]  }
 0x173   :  { %5291 = vmatpush1.bf16.msra.mxu1 %v8712_v3  ;;  %5249 = vmatprep.subr.bf16.mxu0 %v8717_v4  ;;  %v8766_v3 = vld [vmem:[#allocation5 + $0x1300] ss:$16 sps:$4 sm:$0xff]   ;;  %v8771_v4 = vld [vmem:[#allocation5 + $0x14e4] ss:$16 sps:$4 sm:$0xff]  }
 0x174   :  { %5292 = vmatprep.subr.bf16.mxu1 %v8720_v6  ;;  %v8774_v6 = vld [vmem:[#allocation5 + $0x16e4] ss:$16 sps:$4 sm:$0xff]  }
 0x176   :  { %5250 = vmatpush1.bf16.msra.mxu0 %v8715_v7  ;;  %v10040_v7 = vld [vmem:[#allocation2 + $0x50] sm:$0xff] }
 0x177   :  { %5293 = vmatpush1.bf16.msra.mxu1 %v8718_v11  ;;  %5251 = vmatprep.subr.bf16.mxu0 %v8723_v17  ;;  %v10042_v11 = vld [vmem:[#allocation2 + $0xb0] sm:$0xff]  ;;  %v10044_v17 = vld [vmem:[#allocation2 + $0x58] sm:$0xff] }
 0x178   :  { %5294 = vmatprep.subr.bf16.mxu1 %v8726_v18  ;;  %v10046_v18 = vld [vmem:[#allocation2 + $0xb8] sm:$0xff] }
 0x17a   :  { %5252 = vmatpush2.bf16.msra.mxu0 %v8721_v19  ;;  %v8769_v19 = vld [vmem:[#allocation5 + $0x14e0] ss:$16 sps:$4 sm:$0xff]  }
 0x17b   :  { %5295 = vmatpush2.bf16.msra.mxu1 %v8724_v22  ;;  %5253 = vmatprep.subr.bf16.mxu0 %v8729_v47  ;;  %v8772_v22 = vld [vmem:[#allocation5 + $0x16e0] ss:$16 sps:$4 sm:$0xff]   ;;  %v10050_v47 = vcombine.low %v10002_v10, %v10004_v12  ;;  %v10062_v10 = vcombine.high %v10040_v7, %v10042_v11  ;;  %v10066_v12 = vcombine.high %v10044_v17, %v10046_v18 }
 0x17c   :  { %5296 = vmatprep.subr.bf16.mxu1 %v8732_v50  ;;  %v10054_v50 = vcombine.low %v10006_v13, %v10016_v16 }
 0x17e   :  { %5254 = vmatpush2.bf16.msra.mxu0 %v8727_v23  ;;  %v10056_v23 = vpop.f32.mrf.mxu0 }
 0x17f   :  { %5297 = vmatpush2.bf16.msra.mxu1 %v8730_v24  ;;  %5255 = vmatprep.subr.bf16.mxu0 %v8735_v25  ;;  %v10058_v24 = vpop.f32.mrf.mxu1  ;;  %v8777_v25 = vld [vmem:[#allocation5 + $0x14c4] ss:$16 sps:$4 sm:$0xff]  }
 0x180   :  { %5298 = vmatprep.subr.bf16.mxu1 %v8738_v32  ;;  %v8780_v32 = vld [vmem:[#allocation5 + $0x16c4] ss:$16 sps:$4 sm:$0xff]  }
 0x182   :  { %5256 = vmatpush2.bf16.msra.mxu0 %v8733_v34  ;;  %v8775_v34 = vld [vmem:[#allocation5 + $0x14c0] ss:$16 sps:$4 sm:$0xff]  }
 0x183   :  { %5299 = vmatpush2.bf16.msra.mxu1 %v8736_v37  ;;  %5257 = vmatprep.subr.bf16.mxu0 %v8741_v38  ;;  %v8778_v37 = vld [vmem:[#allocation5 + $0x16c0] ss:$16 sps:$4 sm:$0xff]  }
 0x184   :  { %5300 = vmatprep.subr.bf16.mxu1 %v8744_v39 }
 0x186   :  { %5258 = vmatpush2.bf16.msra.mxu0 %v8739_v40 }
 0x187   :  { %5301 = vmatpush2.bf16.msra.mxu1 %v8742_v42  ;;  %5259 = vmatprep.subr.bf16.mxu0 %v8747_v45  ;;  %v8783_v42 = vld [vmem:[#allocation5 + $0x14a4] ss:$16 sps:$4 sm:$0xff]  }
 0x188   :  { %5302 = vmatprep.subr.bf16.mxu1 %v8750_v51  ;;  %v8786_v45 = vld [vmem:[#allocation5 + $0x16a4] ss:$16 sps:$4 sm:$0xff]  }
 0x18a   :  { %5260 = vmatpush2.bf16.msra.mxu0 %v8745_v54  ;;  %v8781_v54 = vld [vmem:[#allocation5 + $0x14a0] ss:$16 sps:$4 sm:$0xff]  }
 0x18b   :  { %5303 = vmatpush2.bf16.msra.mxu1 %v8748_v29  ;;  %5261 = vmatprep.subr.bf16.mxu0 %v8753_v30  ;;  %v8784_v29 = vld [vmem:[#allocation5 + $0x16a0] ss:$16 sps:$4 sm:$0xff]  }
 0x18c   :  { %5304 = vmatprep.subr.bf16.mxu1 %v8756_v31 }
 0x18e   :  { %5262 = vmatpush2.bf16.msra.mxu0 %v8751_v57  ;;  %v8789_v57 = vld [vmem:[#allocation5 + $0x1484] ss:$16 sps:$4 sm:$0xff]  }
 0x18f   :  { %5305 = vmatpush2.bf16.msra.mxu1 %v8754_v58  ;;  %5263 = vmatprep.subr.bf16.mxu0 %v8759_v59  ;;  %v8792_v58 = vld [vmem:[#allocation5 + $0x1684] ss:$16 sps:$4 sm:$0xff]  }
 0x190   :  { %5306 = vmatprep.subr.bf16.mxu1 %v8762_v60  ;;  %v8787_v60 = vld [vmem:[#allocation5 + $0x1480] ss:$16 sps:$4 sm:$0xff]  }
 0x192   :  { %5264 = vmatpush2.bf16.msra.mxu0 %v8757_v61  ;;  %v8790_v61 = vld [vmem:[#allocation5 + $0x1680] ss:$16 sps:$4 sm:$0xff]  }
 0x193   :  { %5307 = vmatpush2.bf16.msra.mxu1 %v8760_v62  ;;  %5265 = vmatprep.subr.bf16.mxu0 %v8765_v0  ;;  %v8795_v62 = vld [vmem:[#allocation5 + $0x1464] ss:$16 sps:$4 sm:$0xff]  }
 0x194   :  { %5308 = vmatprep.subr.bf16.mxu1 %v8768_v1  ;;  %v8798_v0 = vld [vmem:[#allocation5 + $0x1664] ss:$16 sps:$4 sm:$0xff]   ;;  %v8796_v1 = vld [vmem:[#allocation5 + $0x1660] ss:$16 sps:$4 sm:$0xff]  }
 0x196   :  { %5266 = vmatpush2.bf16.msra.mxu0 %v8763_v2  ;;  %v8801_v2 = vld [vmem:[#allocation5 + $0x1444] ss:$16 sps:$4 sm:$0xff]  }
 0x197   :  { %5309 = vmatpush2.bf16.msra.mxu1 %v8766_v3  ;;  %5321 = vmatprep.subr.bf16.mxu0 %v8771_v4  ;;  %v8804_v3 = vld [vmem:[#allocation5 + $0x1644] ss:$16 sps:$4 sm:$0xff]   ;;  %v8799_v4 = vld [vmem:[#allocation5 + $0x1440] ss:$16 sps:$4 sm:$0xff]  }
 0x198   :  { %5364 = vmatprep.subr.bf16.mxu1 %v8774_v6  ;;  %v8802_v6 = vld [vmem:[#allocation5 + $0x1640] ss:$16 sps:$4 sm:$0xff]  }
 0x199   :  { %v5011_v13 = vpop.f32.mrf.mxu0  ;;  %5268 = vmatmul.mubr.bf16.vlgmr.msra.gmra.mxu0 %v10050_v47 }
 0x19a   :  { %v5054_v16 = vpop.f32.mrf.mxu1  ;;  %5311 = vmatmul.mubr.bf16.vlgmr.msra.gmra.mxu1 %v10054_v50  ;;  %v5012_v38 = vadd.f32 %v5011_v13, %v10034_v36  ;;  %5322 = vmatpush1.bf16.msra.mxu0 %v8769_v19  ;;  %v8807_v19 = vld [vmem:[#allocation5 + $0x1424] ss:$16 sps:$4 sm:$0xff]   ;;  %v8811_v13 = vld [vmem:[#allocation5 + $0x1400] ss:$16 sps:$4 sm:$0xff]  }
 0x19b   :  { %5365 = vmatpush1.bf16.msra.mxu1 %v8772_v22  ;;  %v10071_v39 = vpop.f32.mrf.mxu0  ;;  %5323 = vmatprep.subr.bf16.mxu0 %v8777_v25  ;;  %v8810_v22 = vld [vmem:[#allocation5 + $0x1624] ss:$16 sps:$4 sm:$0xff]   ;;  %v8805_v25 = vld [vmem:[#allocation5 + $0x1420] ss:$16 sps:$4 sm:$0xff]  }
 0x19c   :  { %v10073_v40 = vpop.f32.mrf.mxu1  ;;  %5366 = vmatprep.subr.bf16.mxu1 %v8780_v32  ;;  %v10075_v51 = vadd.f32 %v5054_v16, %v5012_v38  ;;  %5353 = vmatprep.mubr.bf16.mxu0 %v10062_v10  ;;  %v8808_v32 = vld [vmem:[#allocation5 + $0x1620] ss:$16 sps:$4 sm:$0xff]   ;;  %v8819_v38 = vld [vmem:[#allocation5 + $0x15e4] ss:$16 sps:$4 sm:$0xff]  }
 0x19d   :  { %5396 = vmatprep.mubr.bf16.mxu1 %v10066_v12  ;;  %v5015_v30 = vpop.f32.mrf.mxu0  ;;  %v8814_v16 = vld [vmem:[#allocation5 + $0x1600] ss:$16 sps:$4 sm:$0xff]  }
 0x19e   :  { %v5016_v36 = vadd.f32 %v5015_v30, %v10038_v52  ;;  %5324 = vmatpush1.bf16.msra.mxu0 %v8775_v34  ;;  %v5058_v31 = vpop.f32.mrf.mxu1  ;;  %v8793_v52 = vld [vmem:[#allocation5 + $0x1460] ss:$16 sps:$4 sm:$0xff]   ;;  %v8813_v34 = vld [vmem:[#allocation5 + $0x1404] ss:$16 sps:$4 sm:$0xff]  }
 0x19f   :  { %5367 = vmatpush1.bf16.msra.mxu1 %v8778_v37  ;;  %5325 = vmatprep.subr.bf16.mxu0 %v8783_v42  ;;  %v8816_v37 = vld [vmem:[#allocation5 + $0x1604] ss:$16 sps:$4 sm:$0xff]  }
 0x1a0   :  { %5368 = vmatprep.subr.bf16.mxu1 %v8786_v45  ;;  %v10080_v59 = vadd.f32 %v5058_v31, %v5016_v36  ;;  %v8822_v42 = vld [vmem:[#allocation5 + $0x17e4] ss:$16 sps:$4 sm:$0xff]   ;;  %v8817_v45 = vld [vmem:[#allocation5 + $0x15e0] ss:$16 sps:$4 sm:$0xff]  }
 0x1a1   :  { %v8828_v30 = vld [vmem:[#allocation5 + $0x17c4] ss:$16 sps:$4 sm:$0xff]   ;;  %v8823_v36 = vld [vmem:[#allocation5 + $0x15c0] ss:$16 sps:$4 sm:$0xff]  }
 0x1a2   :  { %5326 = vmatpush1.bf16.msra.mxu0 %v8781_v54  ;;  %v8820_v54 = vld [vmem:[#allocation5 + $0x17e0] ss:$16 sps:$4 sm:$0xff]  }
 0x1a3   :  { %5369 = vmatpush1.bf16.msra.mxu1 %v8784_v29  ;;  %5327 = vmatprep.subr.bf16.mxu0 %v8789_v57  ;;  %v8825_v29 = vld [vmem:[#allocation5 + $0x15c4] ss:$16 sps:$4 sm:$0xff]   ;;  %v8826_v31 = vld [vmem:[#allocation5 + $0x17c0] ss:$16 sps:$4 sm:$0xff]  }
 0x1a4   :  { %5370 = vmatprep.subr.bf16.mxu1 %v8792_v58  ;;  %v8831_v57 = vld [vmem:[#allocation5 + $0x15a4] ss:$16 sps:$4 sm:$0xff]  }
 0x1a5   :  { %v8834_v58 = vld [vmem:[#allocation5 + $0x17a4] ss:$16 sps:$4 sm:$0xff]  }
 0x1a6   :  { %5328 = vmatpush1.bf16.msra.mxu0 %v8787_v60  ;;  %v8829_v60 = vld [vmem:[#allocation5 + $0x15a0] ss:$16 sps:$4 sm:$0xff]  }
 0x1a7   :  { %5371 = vmatpush1.bf16.msra.mxu1 %v8790_v61  ;;  %5329 = vmatprep.subr.bf16.mxu0 %v8795_v62  ;;  %v8832_v61 = vld [vmem:[#allocation5 + $0x17a0] ss:$16 sps:$4 sm:$0xff]   ;;  %v8837_v62 = vld [vmem:[#allocation5 + $0x1584] ss:$16 sps:$4 sm:$0xff]  }
 0x1a8   :  { %5372 = vmatprep.subr.bf16.mxu1 %v8798_v0  ;;  %v8840_v0 = vld [vmem:[#allocation5 + $0x1784] ss:$16 sps:$4 sm:$0xff]  }
 0x1aa   :  { %5330 = vmatpush1.bf16.msra.mxu0 %v8793_v52  ;;  %v8835_v52 = vld [vmem:[#allocation5 + $0x1580] ss:$16 sps:$4 sm:$0xff]  }
 0x1ab   :  { %5373 = vmatpush1.bf16.msra.mxu1 %v8796_v1  ;;  %5331 = vmatprep.subr.bf16.mxu0 %v8801_v2  ;;  %v8838_v1 = vld [vmem:[#allocation5 + $0x1780] ss:$16 sps:$4 sm:$0xff]   ;;  %v8843_v2 = vld [vmem:[#allocation5 + $0x1564] ss:$16 sps:$4 sm:$0xff]  }
 0x1ac   :  { %5374 = vmatprep.subr.bf16.mxu1 %v8804_v3  ;;  %v8846_v3 = vld [vmem:[#allocation5 + $0x1764] ss:$16 sps:$4 sm:$0xff]  }
 0x1ae   :  { %5332 = vmatpush1.bf16.msra.mxu0 %v8799_v4  ;;  %v8841_v4 = vld [vmem:[#allocation5 + $0x1560] ss:$16 sps:$4 sm:$0xff]  }
 0x1af   :  { %5375 = vmatpush1.bf16.msra.mxu1 %v8802_v6  ;;  %5333 = vmatprep.subr.bf16.mxu0 %v8807_v19  ;;  %v8844_v6 = vld [vmem:[#allocation5 + $0x1760] ss:$16 sps:$4 sm:$0xff]   ;;  %v8849_v19 = vld [vmem:[#allocation5 + $0x1544] ss:$16 sps:$4 sm:$0xff]  }
 0x1b0   :  { %5376 = vmatprep.subr.bf16.mxu1 %v8810_v22  ;;  %v8852_v22 = vld [vmem:[#allocation5 + $0x1744] ss:$16 sps:$4 sm:$0xff]  }
 0x1b2   :  { %5334 = vmatpush1.bf16.msra.mxu0 %v8805_v25  ;;  %v8847_v25 = vld [vmem:[#allocation5 + $0x1540] ss:$16 sps:$4 sm:$0xff]  }
 0x1b3   :  { %5377 = vmatpush1.bf16.msra.mxu1 %v8808_v32  ;;  %5335 = vmatprep.subr.bf16.mxu0 %v8813_v34  ;;  %v8850_v32 = vld [vmem:[#allocation5 + $0x1740] ss:$16 sps:$4 sm:$0xff]   ;;  %v8855_v34 = vld [vmem:[#allocation5 + $0x1524] ss:$16 sps:$4 sm:$0xff]  }
 0x1b4   :  { %5378 = vmatprep.subr.bf16.mxu1 %v8816_v37  ;;  %v8858_v37 = vld [vmem:[#allocation5 + $0x1724] ss:$16 sps:$4 sm:$0xff]  }
 0x1b6   :  { %5336 = vmatpush1.bf16.msra.mxu0 %v8811_v13  ;;  %v8853_v13 = vld [vmem:[#allocation5 + $0x1520] ss:$16 sps:$4 sm:$0xff]  }
 0x1b7   :  { %5379 = vmatpush1.bf16.msra.mxu1 %v8814_v16  ;;  %5337 = vmatprep.subr.bf16.mxu0 %v8819_v38  ;;  %v8856_v16 = vld [vmem:[#allocation5 + $0x1720] ss:$16 sps:$4 sm:$0xff]   ;;  %v8861_v38 = vld [vmem:[#allocation5 + $0x1504] ss:$16 sps:$4 sm:$0xff]  }
 0x1b8   :  { %5380 = vmatprep.subr.bf16.mxu1 %v8822_v42  ;;  %v8864_v42 = vld [vmem:[#allocation5 + $0x1704] ss:$16 sps:$4 sm:$0xff]  }
 0x1ba   :  { %5338 = vmatpush2.bf16.msra.mxu0 %v8817_v45  ;;  %v8859_v45 = vld [vmem:[#allocation5 + $0x1500] ss:$16 sps:$4 sm:$0xff]  }
 0x1bb   :  { %5381 = vmatpush2.bf16.msra.mxu1 %v8820_v54  ;;  %5339 = vmatprep.subr.bf16.mxu0 %v8825_v29  ;;  %v8862_v54 = vld [vmem:[#allocation5 + $0x1700] ss:$16 sps:$4 sm:$0xff]   ;;  %v8867_v29 = vld [vmem:[#allocation5 + $0xec] ss:$16 sps:$4 sm:$0xff]  }
 0x1bc   :  { %5382 = vmatprep.subr.bf16.mxu1 %v8828_v30  ;;  %v8870_v30 = vld [vmem:[#allocation5 + $0x2ec] ss:$16 sps:$4 sm:$0xff]  }
 0x1be   :  { %5340 = vmatpush2.bf16.msra.mxu0 %v8823_v36  ;;  %v8865_v36 = vld [vmem:[#allocation5 + $0xe8] ss:$16 sps:$4 sm:$0xff]  }
 0x1bf   :  { %5383 = vmatpush2.bf16.msra.mxu1 %v8826_v31  ;;  %5341 = vmatprep.subr.bf16.mxu0 %v8831_v57  ;;  %v8868_v31 = vld [vmem:[#allocation5 + $0x2e8] ss:$16 sps:$4 sm:$0xff]   ;;  %v10084_v57 = vcombine.low %v10040_v7, %v10042_v11 }
 0x1c0   :  { %5384 = vmatprep.subr.bf16.mxu1 %v8834_v58  ;;  %v10088_v58 = vcombine.low %v10044_v17, %v10046_v18  ;;  %v8879_v18 = vld [vmem:[#allocation5 + $0xac] ss:$16 sps:$4 sm:$0xff]  }
 0x1c2   :  { %5342 = vmatpush2.bf16.msra.mxu0 %v8829_v60  ;;  %v10090_v60 = vpop.f32.mrf.mxu0 }
 0x1c3   :  { %5385 = vmatpush2.bf16.msra.mxu1 %v8832_v61  ;;  %5343 = vmatprep.subr.bf16.mxu0 %v8837_v62  ;;  %v10092_v61 = vpop.f32.mrf.mxu1  ;;  %v8873_v62 = vld [vmem:[#allocation5 + $0xcc] ss:$16 sps:$4 sm:$0xff]  }
 0x1c4   :  { %5386 = vmatprep.subr.bf16.mxu1 %v8840_v0  ;;  %v8876_v0 = vld [vmem:[#allocation5 + $0x2cc] ss:$16 sps:$4 sm:$0xff]  }
 0x1c6   :  { %5344 = vmatpush2.bf16.msra.mxu0 %v8835_v52  ;;  %v8871_v52 = vld [vmem:[#allocation5 + $0xc8] ss:$16 sps:$4 sm:$0xff]  }
 0x1c7   :  { %5387 = vmatpush2.bf16.msra.mxu1 %v8838_v1  ;;  %5345 = vmatprep.subr.bf16.mxu0 %v8843_v2  ;;  %v8874_v1 = vld [vmem:[#allocation5 + $0x2c8] ss:$16 sps:$4 sm:$0xff]  }
 0x1c8   :  { %5388 = vmatprep.subr.bf16.mxu1 %v8846_v3 }
 0x1ca   :  { %5346 = vmatpush2.bf16.msra.mxu0 %v8841_v4  ;;  %v8882_v4 = vld [vmem:[#allocation5 + $0x2ac] ss:$16 sps:$4 sm:$0xff]  }
 0x1cb   :  { %5389 = vmatpush2.bf16.msra.mxu1 %v8844_v6  ;;  %5347 = vmatprep.subr.bf16.mxu0 %v8849_v19  ;;  %v8877_v19 = vld [vmem:[#allocation5 + $0xa8] ss:$16 sps:$4 sm:$0xff]  }
 0x1cc   :  { %5390 = vmatprep.subr.bf16.mxu1 %v8852_v22  ;;  %v8880_v22 = vld [vmem:[#allocation5 + $0x2a8] ss:$16 sps:$4 sm:$0xff]  }
 0x1ce   :  { %5348 = vmatpush2.bf16.msra.mxu0 %v8847_v25 }
 0x1cf   :  { %5391 = vmatpush2.bf16.msra.mxu1 %v8850_v32  ;;  %5349 = vmatprep.subr.bf16.mxu0 %v8855_v34  ;;  %v8885_v34 = vld [vmem:[#allocation5 + $0x8c] ss:$16 sps:$4 sm:$0xff]  }
 0x1d0   :  { %5392 = vmatprep.subr.bf16.mxu1 %v8858_v37  ;;  %v8888_v37 = vld [vmem:[#allocation5 + $0x28c] ss:$16 sps:$4 sm:$0xff]  }
 0x1d2   :  { %5350 = vmatpush2.bf16.msra.mxu0 %v8853_v13 }
 0x1d3   :  { %5393 = vmatpush2.bf16.msra.mxu1 %v8856_v16  ;;  %5351 = vmatprep.subr.bf16.mxu0 %v8861_v38  ;;  %v8883_v16 = vld [vmem:[#allocation5 + $0x88] ss:$16 sps:$4 sm:$0xff]  }
 0x1d4   :  { %5394 = vmatprep.subr.bf16.mxu1 %v8864_v42  ;;  %v8886_v38 = vld [vmem:[#allocation5 + $0x288] ss:$16 sps:$4 sm:$0xff]  }
 0x1d5   :  { %v8892_v42 = vld [vmem:[#allocation5 + $0x268] ss:$16 sps:$4 sm:$0xff]  }
 0x1d6   :  { %5352 = vmatpush2.bf16.msra.mxu0 %v8859_v45  ;;  %v8897_v45 = vld [vmem:[#allocation5 + $0x4c] ss:$16 sps:$4 sm:$0xff]  }
 0x1d7   :  { %5395 = vmatpush2.bf16.msra.mxu1 %v8862_v54  ;;  %5407 = vmatprep.subr.bf16.mxu0 %v8867_v29  ;;  %v8900_v54 = vld [vmem:[#allocation5 + $0x24c] ss:$16 sps:$4 sm:$0xff]   ;;  %v8895_v29 = vld [vmem:[#allocation5 + $0x48] ss:$16 sps:$4 sm:$0xff]  }
 0x1d8   :  { %5450 = vmatprep.subr.bf16.mxu1 %v8870_v30  ;;  %v8898_v30 = vld [vmem:[#allocation5 + $0x248] ss:$16 sps:$4 sm:$0xff]  }
 0x1d9   :  { %v5097_v2 = vpop.f32.mrf.mxu0  ;;  %5354 = vmatmul.mubr.bf16.vlgmr.msra.gmra.mxu0 %v10084_v57 }
 0x1da   :  { %v5140_v3 = vpop.f32.mrf.mxu1  ;;  %5397 = vmatmul.mubr.bf16.vlgmr.msra.gmra.mxu1 %v10088_v58  ;;  %v5098_v7 = vadd.f32 %v5097_v2, %v10075_v51  ;;  %5408 = vmatpush1.bf16.msra.mxu0 %v8865_v36  ;;  %v8903_v36 = vld [vmem:[#allocation5 + $0x2c] ss:$16 sps:$4 sm:$0xff]   ;;  %v8907_v2 = vld [vmem:[#allocation5 + $0x8] ss:$16 sps:$4 sm:$0xff]  }
 0x1db   :  { %5451 = vmatpush1.bf16.msra.mxu1 %v8868_v31  ;;  %v10097_v11 = vpop.f32.mrf.mxu0  ;;  %5409 = vmatprep.subr.bf16.mxu0 %v8873_v62  ;;  %v8906_v31 = vld [vmem:[#allocation5 + $0x22c] ss:$16 sps:$4 sm:$0xff]   ;;  %v8901_v62 = vld [vmem:[#allocation5 + $0x28] ss:$16 sps:$4 sm:$0xff]  }
 0x1dc   :  { %v10099_v17 = vpop.f32.mrf.mxu1  ;;  %5452 = vmatprep.subr.bf16.mxu1 %v8876_v0  ;;  %v10101_v6 = vadd.f32 %v5140_v3, %v5098_v7  ;;  %5439 = vmatprep.mubr.bf16.mxu0 %v9913_v53  ;;  %v8891_v53 = vld [vmem:[#allocation5 + $0x6c] ss:$16 sps:$4 sm:$0xff]   ;;  %v8904_v0 = vld [vmem:[#allocation5 + $0x228] ss:$16 sps:$4 sm:$0xff]  }
 0x1dd   :  { %5482 = vmatprep.mubr.bf16.mxu1 %v9915_v55  ;;  %v5101_v25 = vpop.f32.mrf.mxu0  ;;  %v8894_v55 = vld [vmem:[#allocation5 + $0x26c] ss:$16 sps:$4 sm:$0xff]   ;;  %v8910_v3 = vld [vmem:[#allocation5 + $0x208] ss:$16 sps:$4 sm:$0xff]  }
 0x1de   :  { %v5102_v51 = vadd.f32 %v5101_v25, %v10080_v59  ;;  %5410 = vmatpush1.bf16.msra.mxu0 %v8871_v52  ;;  %v5144_v32 = vpop.f32.mrf.mxu1  ;;  %v8889_v59 = vld [vmem:[#allocation5 + $0x68] ss:$16 sps:$4 sm:$0xff]   ;;  %v8909_v52 = vld [vmem:[#allocation5 + $0xc] ss:$16 sps:$4 sm:$0xff]  }
 0x1df   :  { %5453 = vmatpush1.bf16.msra.mxu1 %v8874_v1  ;;  %5411 = vmatprep.subr.bf16.mxu0 %v8879_v18  ;;  %v8912_v1 = vld [vmem:[#allocation5 + $0x20c] ss:$16 sps:$4 sm:$0xff]  }
 0x1e0   :  { %5454 = vmatprep.subr.bf16.mxu1 %v8882_v4  ;;  %v10106_v13 = vadd.f32 %v5144_v32, %v5102_v51  ;;  %v8915_v7 = vld [vmem:[#allocation5 + $0x1ec] ss:$16 sps:$4 sm:$0xff]   ;;  %v8913_v4 = vld [vmem:[#allocation5 + $0x1e8] ss:$16 sps:$4 sm:$0xff]  }
 0x1e1   :  { %v8918_v18 = vld [vmem:[#allocation5 + $0x3ec] ss:$16 sps:$4 sm:$0xff]   ;;  %v8919_v51 = vld [vmem:[#allocation5 + $0x1c8] ss:$16 sps:$4 sm:$0xff]  }
 0x1e2   :  { %5412 = vmatpush1.bf16.msra.mxu0 %v8877_v19  ;;  %v8916_v19 = vld [vmem:[#allocation5 + $0x3e8] ss:$16 sps:$4 sm:$0xff]   ;;  %v8924_v25 = vld [vmem:[#allocation5 + $0x3cc] ss:$16 sps:$4 sm:$0xff]  }
 0x1e3   :  { %5455 = vmatpush1.bf16.msra.mxu1 %v8880_v22  ;;  %5413 = vmatprep.subr.bf16.mxu0 %v8885_v34  ;;  %v8921_v22 = vld [vmem:[#allocation5 + $0x1cc] ss:$16 sps:$4 sm:$0xff]   ;;  %v8922_v32 = vld [vmem:[#allocation5 + $0x3c8] ss:$16 sps:$4 sm:$0xff]  }
 0x1e4   :  { %5456 = vmatprep.subr.bf16.mxu1 %v8888_v37  ;;  %v8927_v34 = vld [vmem:[#allocation5 + $0x1ac] ss:$16 sps:$4 sm:$0xff]  }
 0x1e5   :  { %v8930_v37 = vld [vmem:[#allocation5 + $0x3ac] ss:$16 sps:$4 sm:$0xff]  }
 0x1e6   :  { %5414 = vmatpush1.bf16.msra.mxu0 %v8883_v16  ;;  %v8925_v16 = vld [vmem:[#allocation5 + $0x1a8] ss:$16 sps:$4 sm:$0xff]  }
 0x1e7   :  { %5457 = vmatpush1.bf16.msra.mxu1 %v8886_v38  ;;  %5415 = vmatprep.subr.bf16.mxu0 %v8891_v53  ;;  %v8928_v38 = vld [vmem:[#allocation5 + $0x3a8] ss:$16 sps:$4 sm:$0xff]   ;;  %v8933_v53 = vld [vmem:[#allocation5 + $0x18c] ss:$16 sps:$4 sm:$0xff]  }
 0x1e8   :  { %5458 = vmatprep.subr.bf16.mxu1 %v8894_v55  ;;  %v8936_v55 = vld [vmem:[#allocation5 + $0x38c] ss:$16 sps:$4 sm:$0xff]  }
 0x1ea   :  { %5416 = vmatpush1.bf16.msra.mxu0 %v8889_v59  ;;  %v8931_v59 = vld [vmem:[#allocation5 + $0x188] ss:$16 sps:$4 sm:$0xff]  }
 0x1eb   :  { %5459 = vmatpush1.bf16.msra.mxu1 %v8892_v42  ;;  %5417 = vmatprep.subr.bf16.mxu0 %v8897_v45  ;;  %v8934_v42 = vld [vmem:[#allocation5 + $0x388] ss:$16 sps:$4 sm:$0xff]   ;;  %v8939_v45 = vld [vmem:[#allocation5 + $0x16c] ss:$16 sps:$4 sm:$0xff]  }
 0x1ec   :  { %5460 = vmatprep.subr.bf16.mxu1 %v8900_v54  ;;  %v8942_v54 = vld [vmem:[#allocation5 + $0x36c] ss:$16 sps:$4 sm:$0xff]  }
 0x1ee   :  { %5418 = vmatpush1.bf16.msra.mxu0 %v8895_v29  ;;  %v8937_v29 = vld [vmem:[#allocation5 + $0x168] ss:$16 sps:$4 sm:$0xff]  }
 0x1ef   :  { %5461 = vmatpush1.bf16.msra.mxu1 %v8898_v30  ;;  %5419 = vmatprep.subr.bf16.mxu0 %v8903_v36  ;;  %v8940_v30 = vld [vmem:[#allocation5 + $0x368] ss:$16 sps:$4 sm:$0xff]   ;;  %v8945_v36 = vld [vmem:[#allocation5 + $0x14c] ss:$16 sps:$4 sm:$0xff]  }
 0x1f0   :  { %5462 = vmatprep.subr.bf16.mxu1 %v8906_v31  ;;  %v8948_v31 = vld [vmem:[#allocation5 + $0x34c] ss:$16 sps:$4 sm:$0xff]  }
 0x1f2   :  { %5420 = vmatpush1.bf16.msra.mxu0 %v8901_v62  ;;  %v8943_v62 = vld [vmem:[#allocation5 + $0x148] ss:$16 sps:$4 sm:$0xff]  }
 0x1f3   :  { %5463 = vmatpush1.bf16.msra.mxu1 %v8904_v0  ;;  %5421 = vmatprep.subr.bf16.mxu0 %v8909_v52  ;;  %v8946_v0 = vld [vmem:[#allocation5 + $0x348] ss:$16 sps:$4 sm:$0xff]   ;;  %v8951_v52 = vld [vmem:[#allocation5 + $0x12c] ss:$16 sps:$4 sm:$0xff]  }
 0x1f4   :  { %5464 = vmatprep.subr.bf16.mxu1 %v8912_v1  ;;  %v8954_v1 = vld [vmem:[#allocation5 + $0x32c] ss:$16 sps:$4 sm:$0xff]  }
 0x1f6   :  { %5422 = vmatpush1.bf16.msra.mxu0 %v8907_v2  ;;  %v8949_v2 = vld [vmem:[#allocation5 + $0x128] ss:$16 sps:$4 sm:$0xff]  }
 0x1f7   :  { %5465 = vmatpush1.bf16.msra.mxu1 %v8910_v3  ;;  %5423 = vmatprep.subr.bf16.mxu0 %v8915_v7  ;;  %v8952_v3 = vld [vmem:[#allocation5 + $0x328] ss:$16 sps:$4 sm:$0xff]   ;;  %v8957_v7 = vld [vmem:[#allocation5 + $0x10c] ss:$16 sps:$4 sm:$0xff]  }
 0x1f8   :  { %5466 = vmatprep.subr.bf16.mxu1 %v8918_v18  ;;  %v8960_v18 = vld [vmem:[#allocation5 + $0x30c] ss:$16 sps:$4 sm:$0xff]  }
 0x1fa   :  { %5424 = vmatpush2.bf16.msra.mxu0 %v8913_v4  ;;  %v8955_v4 = vld [vmem:[#allocation5 + $0x108] ss:$16 sps:$4 sm:$0xff]  }
 0x1fb   :  { %5467 = vmatpush2.bf16.msra.mxu1 %v8916_v19  ;;  %5425 = vmatprep.subr.bf16.mxu0 %v8921_v22  ;;  %v8958_v19 = vld [vmem:[#allocation5 + $0x308] ss:$16 sps:$4 sm:$0xff]   ;;  %v8963_v22 = vld [vmem:[#allocation5 + $0x4ec] ss:$16 sps:$4 sm:$0xff]  }
 0x1fc   :  { %5468 = vmatprep.subr.bf16.mxu1 %v8924_v25  ;;  %v8966_v25 = vld [vmem:[#allocation5 + $0x6ec] ss:$16 sps:$4 sm:$0xff]  }
 0x1fe   :  { %5426 = vmatpush2.bf16.msra.mxu0 %v8919_v51  ;;  %v8961_v51 = vld [vmem:[#allocation5 + $0x4e8] ss:$16 sps:$4 sm:$0xff]  }
 0x1ff   :  { %5469 = vmatpush2.bf16.msra.mxu1 %v8922_v32  ;;  %5427 = vmatprep.subr.bf16.mxu0 %v8927_v34  ;;  %v8964_v32 = vld [vmem:[#allocation5 + $0x6e8] ss:$16 sps:$4 sm:$0xff]   ;;  %v10108_v34 = vpop.f32.mrf.mxu0 }
 0x200   :  { %5470 = vmatprep.subr.bf16.mxu1 %v8930_v37  ;;  %v10110_v37 = vpop.f32.mrf.mxu1 }
 0x202   :  { %5428 = vmatpush2.bf16.msra.mxu0 %v8925_v16  ;;  %v8969_v16 = vld [vmem:[#allocation5 + $0x4cc] ss:$16 sps:$4 sm:$0xff]  }
 0x203   :  { %5471 = vmatpush2.bf16.msra.mxu1 %v8928_v38  ;;  %5429 = vmatprep.subr.bf16.mxu0 %v8933_v53  ;;  %v8972_v38 = vld [vmem:[#allocation5 + $0x6cc] ss:$16 sps:$4 sm:$0xff]   ;;  %v8967_v53 = vld [vmem:[#allocation5 + $0x4c8] ss:$16 sps:$4 sm:$0xff]  }
 0x204   :  { %5472 = vmatprep.subr.bf16.mxu1 %v8936_v55  ;;  %v8970_v55 = vld [vmem:[#allocation5 + $0x6c8] ss:$16 sps:$4 sm:$0xff]  }
 0x206   :  { %5430 = vmatpush2.bf16.msra.mxu0 %v8931_v59 }
 0x207   :  { %5473 = vmatpush2.bf16.msra.mxu1 %v8934_v42  ;;  %5431 = vmatprep.subr.bf16.mxu0 %v8939_v45 }
 0x208   :  { %5474 = vmatprep.subr.bf16.mxu1 %v8942_v54 }
 0x20a   :  { %5432 = vmatpush2.bf16.msra.mxu0 %v8937_v29 }
 0x20b   :  { %5475 = vmatpush2.bf16.msra.mxu1 %v8940_v30  ;;  %5433 = vmatprep.subr.bf16.mxu0 %v8945_v36  ;;  %v8975_v30 = vld [vmem:[#allocation5 + $0x4ac] ss:$16 sps:$4 sm:$0xff]  }
 0x20c   :  { %5476 = vmatprep.subr.bf16.mxu1 %v8948_v31  ;;  %v8978_v36 = vld [vmem:[#allocation5 + $0x6ac] ss:$16 sps:$4 sm:$0xff]  }
 0x20e   :  { %5434 = vmatpush2.bf16.msra.mxu0 %v8943_v62  ;;  %v8973_v62 = vld [vmem:[#allocation5 + $0x4a8] ss:$16 sps:$4 sm:$0xff]  }
 0x20f   :  { %5477 = vmatpush2.bf16.msra.mxu1 %v8946_v0  ;;  %5435 = vmatprep.subr.bf16.mxu0 %v8951_v52  ;;  %v8976_v0 = vld [vmem:[#allocation5 + $0x6a8] ss:$16 sps:$4 sm:$0xff]   ;;  %v8981_v52 = vld [vmem:[#allocation5 + $0x48c] ss:$16 sps:$4 sm:$0xff]  }
 0x210   :  { %5478 = vmatprep.subr.bf16.mxu1 %v8954_v1  ;;  %v8984_v1 = vld [vmem:[#allocation5 + $0x68c] ss:$16 sps:$4 sm:$0xff]  }
 0x212   :  { %5436 = vmatpush2.bf16.msra.mxu0 %v8949_v2 }
 0x213   :  { %5479 = vmatpush2.bf16.msra.mxu1 %v8952_v3  ;;  %5437 = vmatprep.subr.bf16.mxu0 %v8957_v7  ;;  %v8979_v3 = vld [vmem:[#allocation5 + $0x488] ss:$16 sps:$4 sm:$0xff]  }
 0x214   :  { %5480 = vmatprep.subr.bf16.mxu1 %v8960_v18  ;;  %v8982_v7 = vld [vmem:[#allocation5 + $0x688] ss:$16 sps:$4 sm:$0xff]  }
 0x215   :  { %v8988_v18 = vld [vmem:[#allocation5 + $0x668] ss:$16 sps:$4 sm:$0xff]  }
 0x216   :  { %5438 = vmatpush2.bf16.msra.mxu0 %v8955_v4  ;;  %v8993_v4 = vld [vmem:[#allocation5 + $0x44c] ss:$16 sps:$4 sm:$0xff]  }
 0x217   :  { %5481 = vmatpush2.bf16.msra.mxu1 %v8958_v19  ;;  %5493 = vmatprep.subr.bf16.mxu0 %v8963_v22  ;;  %v8996_v19 = vld [vmem:[#allocation5 + $0x64c] ss:$16 sps:$4 sm:$0xff]   ;;  %v8991_v22 = vld [vmem:[#allocation5 + $0x448] ss:$16 sps:$4 sm:$0xff]  }
 0x218   :  { %5536 = vmatprep.subr.bf16.mxu1 %v8966_v25  ;;  %v8994_v25 = vld [vmem:[#allocation5 + $0x648] ss:$16 sps:$4 sm:$0xff]  }
 0x219   :  { %v5183_v59 = vpop.f32.mrf.mxu0  ;;  %5440 = vmatmul.mubr.bf16.vlgmr.msra.gmra.mxu0 %v9919_v8 }
 0x21a   :  { %v5226_v42 = vpop.f32.mrf.mxu1  ;;  %5483 = vmatmul.mubr.bf16.vlgmr.msra.gmra.mxu1 %v9921_v9  ;;  %v5184_v45 = vadd.f32 %v5183_v59, %v10101_v6  ;;  %5494 = vmatpush1.bf16.msra.mxu0 %v8961_v51  ;;  %v8999_v51 = vld [vmem:[#allocation5 + $0x42c] ss:$16 sps:$4 sm:$0xff]   ;;  %v9003_v59 = vld [vmem:[#allocation5 + $0x408] ss:$16 sps:$4 sm:$0xff]  }
 0x21b   :  { %5537 = vmatpush1.bf16.msra.mxu1 %v8964_v32  ;;  %v10115_v54 = vpop.f32.mrf.mxu0  ;;  %5495 = vmatprep.subr.bf16.mxu0 %v8969_v16  ;;  %v9002_v32 = vld [vmem:[#allocation5 + $0x62c] ss:$16 sps:$4 sm:$0xff]   ;;  %v8997_v16 = vld [vmem:[#allocation5 + $0x428] ss:$16 sps:$4 sm:$0xff]  }
 0x21c   :  { %v10117_v29 = vpop.f32.mrf.mxu1  ;;  %5538 = vmatprep.subr.bf16.mxu1 %v8972_v38  ;;  %v10119_v31 = vadd.f32 %v5226_v42, %v5184_v45  ;;  %5525 = vmatprep.mubr.bf16.mxu0 %v9935_v41  ;;  %v8987_v41 = vld [vmem:[#allocation5 + $0x46c] ss:$16 sps:$4 sm:$0xff]   ;;  %v9000_v38 = vld [vmem:[#allocation5 + $0x628] ss:$16 sps:$4 sm:$0xff]  }
 0x21d   :  { %5568 = vmatprep.mubr.bf16.mxu1 %v9939_v43  ;;  %v5187_v8 = vpop.f32.mrf.mxu0  ;;  %v8990_v43 = vld [vmem:[#allocation5 + $0x66c] ss:$16 sps:$4 sm:$0xff]   ;;  %v9006_v42 = vld [vmem:[#allocation5 + $0x608] ss:$16 sps:$4 sm:$0xff]  }
 0x21e   :  { %v5188_v9 = vadd.f32 %v5187_v8, %v10106_v13  ;;  %5496 = vmatpush1.bf16.msra.mxu0 %v8967_v53  ;;  %v5230_v6 = vpop.f32.mrf.mxu1  ;;  %v8985_v13 = vld [vmem:[#allocation5 + $0x468] ss:$16 sps:$4 sm:$0xff]   ;;  %v9005_v53 = vld [vmem:[#allocation5 + $0x40c] ss:$16 sps:$4 sm:$0xff]  }
 0x21f   :  { %5539 = vmatpush1.bf16.msra.mxu1 %v8970_v55  ;;  %5497 = vmatprep.subr.bf16.mxu0 %v8975_v30  ;;  %v9008_v55 = vld [vmem:[#allocation5 + $0x60c] ss:$16 sps:$4 sm:$0xff]  }
 0x220   :  { %5540 = vmatprep.subr.bf16.mxu1 %v8978_v36  ;;  %v10124_v2 = vadd.f32 %v5230_v6, %v5188_v9  ;;  %v9011_v45 = vld [vmem:[#allocation5 + $0x5ec] ss:$16 sps:$4 sm:$0xff]   ;;  %v9009_v36 = vld [vmem:[#allocation5 + $0x5e8] ss:$16 sps:$4 sm:$0xff]  }
 0x221   :  { %v9014_v30 = vld [vmem:[#allocation5 + $0x7ec] ss:$16 sps:$4 sm:$0xff]   ;;  %v9015_v9 = vld [vmem:[#allocation5 + $0x5c8] ss:$16 sps:$4 sm:$0xff]  }
 0x222   :  { %5498 = vmatpush1.bf16.msra.mxu0 %v8973_v62  ;;  %v9012_v62 = vld [vmem:[#allocation5 + $0x7e8] ss:$16 sps:$4 sm:$0xff]   ;;  %v9020_v8 = vld [vmem:[#allocation5 + $0x7cc] ss:$16 sps:$4 sm:$0xff]  }
 0x223   :  { %5541 = vmatpush1.bf16.msra.mxu1 %v8976_v0  ;;  %5499 = vmatprep.subr.bf16.mxu0 %v8981_v52  ;;  %v9017_v0 = vld [vmem:[#allocation5 + $0x5cc] ss:$16 sps:$4 sm:$0xff]   ;;  %v9018_v6 = vld [vmem:[#allocation5 + $0x7c8] ss:$16 sps:$4 sm:$0xff]  }
 0x224   :  { %5542 = vmatprep.subr.bf16.mxu1 %v8984_v1  ;;  %v9023_v52 = vld [vmem:[#allocation5 + $0x5ac] ss:$16 sps:$4 sm:$0xff]  }
 0x225   :  { %v9026_v1 = vld [vmem:[#allocation5 + $0x7ac] ss:$16 sps:$4 sm:$0xff]  }
 0x226   :  { %5500 = vmatpush1.bf16.msra.mxu0 %v8979_v3  ;;  %v9021_v3 = vld [vmem:[#allocation5 + $0x5a8] ss:$16 sps:$4 sm:$0xff]  }
 0x227   :  { %5543 = vmatpush1.bf16.msra.mxu1 %v8982_v7  ;;  %5501 = vmatprep.subr.bf16.mxu0 %v8987_v41  ;;  %v9024_v7 = vld [vmem:[#allocation5 + $0x7a8] ss:$16 sps:$4 sm:$0xff]   ;;  %v9029_v41 = vld [vmem:[#allocation5 + $0x58c] ss:$16 sps:$4 sm:$0xff]  }
 0x228   :  { %5544 = vmatprep.subr.bf16.mxu1 %v8990_v43  ;;  %v9032_v43 = vld [vmem:[#allocation5 + $0x78c] ss:$16 sps:$4 sm:$0xff]  }
 0x22a   :  { %5502 = vmatpush1.bf16.msra.mxu0 %v8985_v13  ;;  %v9027_v13 = vld [vmem:[#allocation5 + $0x588] ss:$16 sps:$4 sm:$0xff]  }
 0x22b   :  { %5545 = vmatpush1.bf16.msra.mxu1 %v8988_v18  ;;  %5503 = vmatprep.subr.bf16.mxu0 %v8993_v4  ;;  %v9030_v18 = vld [vmem:[#allocation5 + $0x788] ss:$16 sps:$4 sm:$0xff]   ;;  %v9035_v4 = vld [vmem:[#allocation5 + $0x56c] ss:$16 sps:$4 sm:$0xff]  }
 0x22c   :  { %5546 = vmatprep.subr.bf16.mxu1 %v8996_v19  ;;  %v9038_v19 = vld [vmem:[#allocation5 + $0x76c] ss:$16 sps:$4 sm:$0xff]  }
 0x22e   :  { %5504 = vmatpush1.bf16.msra.mxu0 %v8991_v22  ;;  %v9033_v22 = vld [vmem:[#allocation5 + $0x568] ss:$16 sps:$4 sm:$0xff]  }
 0x22f   :  { %5547 = vmatpush1.bf16.msra.mxu1 %v8994_v25  ;;  %5505 = vmatprep.subr.bf16.mxu0 %v8999_v51  ;;  %v9036_v25 = vld [vmem:[#allocation5 + $0x768] ss:$16 sps:$4 sm:$0xff]   ;;  %v9041_v51 = vld [vmem:[#allocation5 + $0x54c] ss:$16 sps:$4 sm:$0xff]  }
 0x230   :  { %5548 = vmatprep.subr.bf16.mxu1 %v9002_v32  ;;  %v9044_v32 = vld [vmem:[#allocation5 + $0x74c] ss:$16 sps:$4 sm:$0xff]  }
 0x232   :  { %5506 = vmatpush1.bf16.msra.mxu0 %v8997_v16  ;;  %v9039_v16 = vld [vmem:[#allocation5 + $0x548] ss:$16 sps:$4 sm:$0xff]  }
 0x233   :  { %5549 = vmatpush1.bf16.msra.mxu1 %v9000_v38  ;;  %5507 = vmatprep.subr.bf16.mxu0 %v9005_v53  ;;  %v9042_v38 = vld [vmem:[#allocation5 + $0x748] ss:$16 sps:$4 sm:$0xff]   ;;  %v9047_v53 = vld [vmem:[#allocation5 + $0x52c] ss:$16 sps:$4 sm:$0xff]  }
 0x234   :  { %5550 = vmatprep.subr.bf16.mxu1 %v9008_v55  ;;  %v9050_v55 = vld [vmem:[#allocation5 + $0x72c] ss:$16 sps:$4 sm:$0xff]  }
 0x236   :  { %5508 = vmatpush1.bf16.msra.mxu0 %v9003_v59  ;;  %v9045_v59 = vld [vmem:[#allocation5 + $0x528] ss:$16 sps:$4 sm:$0xff]  }
 0x237   :  { %5551 = vmatpush1.bf16.msra.mxu1 %v9006_v42  ;;  %5509 = vmatprep.subr.bf16.mxu0 %v9011_v45  ;;  %v9048_v42 = vld [vmem:[#allocation5 + $0x728] ss:$16 sps:$4 sm:$0xff]   ;;  %v9053_v45 = vld [vmem:[#allocation5 + $0x50c] ss:$16 sps:$4 sm:$0xff]  }
 0x238   :  { %5552 = vmatprep.subr.bf16.mxu1 %v9014_v30  ;;  %v9056_v30 = vld [vmem:[#allocation5 + $0x70c] ss:$16 sps:$4 sm:$0xff]  }
 0x23a   :  { %5510 = vmatpush2.bf16.msra.mxu0 %v9009_v36  ;;  %v9051_v36 = vld [vmem:[#allocation5 + $0x508] ss:$16 sps:$4 sm:$0xff]  }
 0x23b   :  { %5553 = vmatpush2.bf16.msra.mxu1 %v9012_v62  ;;  %5511 = vmatprep.subr.bf16.mxu0 %v9017_v0  ;;  %v9054_v62 = vld [vmem:[#allocation5 + $0x708] ss:$16 sps:$4 sm:$0xff]   ;;  %v9059_v0 = vld [vmem:[#allocation5 + $0x8ec] ss:$16 sps:$4 sm:$0xff]  }
 0x23c   :  { %5554 = vmatprep.subr.bf16.mxu1 %v9020_v8  ;;  %v9062_v8 = vld [vmem:[#allocation5 + $0xaec] ss:$16 sps:$4 sm:$0xff]  }
 0x23e   :  { %5512 = vmatpush2.bf16.msra.mxu0 %v9015_v9  ;;  %v9057_v9 = vld [vmem:[#allocation5 + $0x8e8] ss:$16 sps:$4 sm:$0xff]  }
 0x23f   :  { %5555 = vmatpush2.bf16.msra.mxu1 %v9018_v6  ;;  %5513 = vmatprep.subr.bf16.mxu0 %v9023_v52  ;;  %v9060_v6 = vld [vmem:[#allocation5 + $0xae8] ss:$16 sps:$4 sm:$0xff]   ;;  %v10126_v52 = vpop.f32.mrf.mxu0 }
 0x240   :  { %5556 = vmatprep.subr.bf16.mxu1 %v9026_v1  ;;  %v10128_v1 = vpop.f32.mrf.mxu1 }
 0x242   :  { %5514 = vmatpush2.bf16.msra.mxu0 %v9021_v3  ;;  %v9065_v3 = vld [vmem:[#allocation5 + $0x8cc] ss:$16 sps:$4 sm:$0xff]  }
 0x243   :  { %5557 = vmatpush2.bf16.msra.mxu1 %v9024_v7  ;;  %5515 = vmatprep.subr.bf16.mxu0 %v9029_v41  ;;  %v9068_v7 = vld [vmem:[#allocation5 + $0xacc] ss:$16 sps:$4 sm:$0xff]   ;;  %v9063_v41 = vld [vmem:[#allocation5 + $0x8c8] ss:$16 sps:$4 sm:$0xff]  }
 0x244   :  { %5558 = vmatprep.subr.bf16.mxu1 %v9032_v43  ;;  %v9066_v43 = vld [vmem:[#allocation5 + $0xac8] ss:$16 sps:$4 sm:$0xff]  }
 0x246   :  { %5516 = vmatpush2.bf16.msra.mxu0 %v9027_v13 }
 0x247   :  { %5559 = vmatpush2.bf16.msra.mxu1 %v9030_v18  ;;  %5517 = vmatprep.subr.bf16.mxu0 %v9035_v4 }
 0x248   :  { %5560 = vmatprep.subr.bf16.mxu1 %v9038_v19 }
 0x24a   :  { %5518 = vmatpush2.bf16.msra.mxu0 %v9033_v22 }
 0x24b   :  { %5561 = vmatpush2.bf16.msra.mxu1 %v9036_v25  ;;  %5519 = vmatprep.subr.bf16.mxu0 %v9041_v51  ;;  %v9071_v25 = vld [vmem:[#allocation5 + $0x8ac] ss:$16 sps:$4 sm:$0xff]  }
 0x24c   :  { %5562 = vmatprep.subr.bf16.mxu1 %v9044_v32  ;;  %v9074_v51 = vld [vmem:[#allocation5 + $0xaac] ss:$16 sps:$4 sm:$0xff]  }
 0x24e   :  { %5520 = vmatpush2.bf16.msra.mxu0 %v9039_v16  ;;  %v9069_v16 = vld [vmem:[#allocation5 + $0x8a8] ss:$16 sps:$4 sm:$0xff]  }
 0x24f   :  { %5563 = vmatpush2.bf16.msra.mxu1 %v9042_v38  ;;  %5521 = vmatprep.subr.bf16.mxu0 %v9047_v53  ;;  %v9072_v38 = vld [vmem:[#allocation5 + $0xaa8] ss:$16 sps:$4 sm:$0xff]   ;;  %v9077_v53 = vld [vmem:[#allocation5 + $0x88c] ss:$16 sps:$4 sm:$0xff]  }
 0x250   :  { %5564 = vmatprep.subr.bf16.mxu1 %v9050_v55  ;;  %v9080_v55 = vld [vmem:[#allocation5 + $0xa8c] ss:$16 sps:$4 sm:$0xff]  }
 0x252   :  { %5522 = vmatpush2.bf16.msra.mxu0 %v9045_v59 }
 0x253   :  { %5565 = vmatpush2.bf16.msra.mxu1 %v9048_v42  ;;  %5523 = vmatprep.subr.bf16.mxu0 %v9053_v45  ;;  %v9075_v42 = vld [vmem:[#allocation5 + $0x888] ss:$16 sps:$4 sm:$0xff]  }
 0x254   :  { %5566 = vmatprep.subr.bf16.mxu1 %v9056_v30  ;;  %v9078_v45 = vld [vmem:[#allocation5 + $0xa88] ss:$16 sps:$4 sm:$0xff]  }
 0x255   :  { %v9084_v30 = vld [vmem:[#allocation5 + $0xa68] ss:$16 sps:$4 sm:$0xff]  }
 0x256   :  { %5524 = vmatpush2.bf16.msra.mxu0 %v9051_v36  ;;  %v9089_v36 = vld [vmem:[#allocation5 + $0x84c] ss:$16 sps:$4 sm:$0xff]  }
 0x257   :  { %5567 = vmatpush2.bf16.msra.mxu1 %v9054_v62  ;;  %5579 = vmatprep.subr.bf16.mxu0 %v9059_v0  ;;  %v9092_v62 = vld [vmem:[#allocation5 + $0xa4c] ss:$16 sps:$4 sm:$0xff]   ;;  %v9087_v0 = vld [vmem:[#allocation5 + $0x848] ss:$16 sps:$4 sm:$0xff]  }
 0x258   :  { %5622 = vmatprep.subr.bf16.mxu1 %v9062_v8  ;;  %v9090_v8 = vld [vmem:[#allocation5 + $0xa48] ss:$16 sps:$4 sm:$0xff]  }
 0x259   :  { %v5269_v13 = vpop.f32.mrf.mxu0  ;;  %5526 = vmatmul.mubr.bf16.vlgmr.msra.gmra.mxu0 %v9945_v20 }
 0x25a   :  { %v5312_v18 = vpop.f32.mrf.mxu1  ;;  %5569 = vmatmul.mubr.bf16.vlgmr.msra.gmra.mxu1 %v9949_v21  ;;  %v5270_v4 = vadd.f32 %v5269_v13, %v10119_v31  ;;  %5580 = vmatpush1.bf16.msra.mxu0 %v9057_v9  ;;  %v9095_v9 = vld [vmem:[#allocation5 + $0x82c] ss:$16 sps:$4 sm:$0xff]   ;;  %v9099_v13 = vld [vmem:[#allocation5 + $0x808] ss:$16 sps:$4 sm:$0xff]  }
 0x25b   :  { %5623 = vmatpush1.bf16.msra.mxu1 %v9060_v6  ;;  %v10133_v19 = vpop.f32.mrf.mxu0  ;;  %5581 = vmatprep.subr.bf16.mxu0 %v9065_v3  ;;  %v9098_v6 = vld [vmem:[#allocation5 + $0xa2c] ss:$16 sps:$4 sm:$0xff]   ;;  %v9093_v3 = vld [vmem:[#allocation5 + $0x828] ss:$16 sps:$4 sm:$0xff]  }
 0x25c   :  { %v10135_v22 = vpop.f32.mrf.mxu1  ;;  %5624 = vmatprep.subr.bf16.mxu1 %v9068_v7  ;;  %v10137_v32 = vadd.f32 %v5312_v18, %v5270_v4  ;;  %5611 = vmatprep.mubr.bf16.mxu0 %v9963_v33  ;;  %v9083_v33 = vld [vmem:[#allocation5 + $0x86c] ss:$16 sps:$4 sm:$0xff]   ;;  %v9096_v7 = vld [vmem:[#allocation5 + $0xa28] ss:$16 sps:$4 sm:$0xff]  }
 0x25d   :  { %5654 = vmatprep.mubr.bf16.mxu1 %v9967_v35  ;;  %v5273_v20 = vpop.f32.mrf.mxu0  ;;  %v9086_v35 = vld [vmem:[#allocation5 + $0xa6c] ss:$16 sps:$4 sm:$0xff]   ;;  %v9102_v18 = vld [vmem:[#allocation5 + $0xa08] ss:$16 sps:$4 sm:$0xff]  }
 0x25e   :  { %v5274_v21 = vadd.f32 %v5273_v20, %v10124_v2  ;;  %5582 = vmatpush1.bf16.msra.mxu0 %v9063_v41  ;;  %v5316_v31 = vpop.f32.mrf.mxu1  ;;  %v9081_v2 = vld [vmem:[#allocation5 + $0x868] ss:$16 sps:$4 sm:$0xff]   ;;  %v9101_v41 = vld [vmem:[#allocation5 + $0x80c] ss:$16 sps:$4 sm:$0xff]  }
 0x25f   :  { %5625 = vmatpush1.bf16.msra.mxu1 %v9066_v43  ;;  %5583 = vmatprep.subr.bf16.mxu0 %v9071_v25  ;;  %v9104_v43 = vld [vmem:[#allocation5 + $0xa0c] ss:$16 sps:$4 sm:$0xff]  }
 0x260   :  { %5626 = vmatprep.subr.bf16.mxu1 %v9074_v51  ;;  %v10142_v59 = vadd.f32 %v5316_v31, %v5274_v21  ;;  %v9107_v4 = vld [vmem:[#allocation5 + $0x9ec] ss:$16 sps:$4 sm:$0xff]   ;;  %v9105_v51 = vld [vmem:[#allocation5 + $0x9e8] ss:$16 sps:$4 sm:$0xff]  }
 0x261   :  { %v9110_v25 = vld [vmem:[#allocation5 + $0xbec] ss:$16 sps:$4 sm:$0xff]   ;;  %v9111_v21 = vld [vmem:[#allocation5 + $0x9c8] ss:$16 sps:$4 sm:$0xff]  }
 0x262   :  { %5584 = vmatpush1.bf16.msra.mxu0 %v9069_v16  ;;  %v9108_v16 = vld [vmem:[#allocation5 + $0xbe8] ss:$16 sps:$4 sm:$0xff]   ;;  %v9116_v20 = vld [vmem:[#allocation5 + $0xbcc] ss:$16 sps:$4 sm:$0xff]  }
 0x263   :  { %5627 = vmatpush1.bf16.msra.mxu1 %v9072_v38  ;;  %5585 = vmatprep.subr.bf16.mxu0 %v9077_v53  ;;  %v9113_v38 = vld [vmem:[#allocation5 + $0x9cc] ss:$16 sps:$4 sm:$0xff]   ;;  %v9114_v31 = vld [vmem:[#allocation5 + $0xbc8] ss:$16 sps:$4 sm:$0xff]  }
 0x264   :  { %5628 = vmatprep.subr.bf16.mxu1 %v9080_v55  ;;  %v9119_v53 = vld [vmem:[#allocation5 + $0x9ac] ss:$16 sps:$4 sm:$0xff]  }
 0x265   :  { %v9122_v55 = vld [vmem:[#allocation5 + $0xbac] ss:$16 sps:$4 sm:$0xff]  }
 0x266   :  { %5586 = vmatpush1.bf16.msra.mxu0 %v9075_v42  ;;  %v9117_v42 = vld [vmem:[#allocation5 + $0x9a8] ss:$16 sps:$4 sm:$0xff]  }
 0x267   :  { %5629 = vmatpush1.bf16.msra.mxu1 %v9078_v45  ;;  %5587 = vmatprep.subr.bf16.mxu0 %v9083_v33  ;;  %v9120_v45 = vld [vmem:[#allocation5 + $0xba8] ss:$16 sps:$4 sm:$0xff]   ;;  %v9125_v33 = vld [vmem:[#allocation5 + $0x98c] ss:$16 sps:$4 sm:$0xff]  }
 0x268   :  { %5630 = vmatprep.subr.bf16.mxu1 %v9086_v35  ;;  %v9128_v35 = vld [vmem:[#allocation5 + $0xb8c] ss:$16 sps:$4 sm:$0xff]  }
 0x26a   :  { %5588 = vmatpush1.bf16.msra.mxu0 %v9081_v2  ;;  %v9123_v2 = vld [vmem:[#allocation5 + $0x988] ss:$16 sps:$4 sm:$0xff]  }
 0x26b   :  { %5631 = vmatpush1.bf16.msra.mxu1 %v9084_v30  ;;  %5589 = vmatprep.subr.bf16.mxu0 %v9089_v36  ;;  %v9126_v30 = vld [vmem:[#allocation5 + $0xb88] ss:$16 sps:$4 sm:$0xff]   ;;  %v9131_v36 = vld [vmem:[#allocation5 + $0x96c] ss:$16 sps:$4 sm:$0xff]  }
 0x26c   :  { %5632 = vmatprep.subr.bf16.mxu1 %v9092_v62  ;;  %v9134_v62 = vld [vmem:[#allocation5 + $0xb6c] ss:$16 sps:$4 sm:$0xff]  }
 0x26e   :  { %5590 = vmatpush1.bf16.msra.mxu0 %v9087_v0  ;;  %v9129_v0 = vld [vmem:[#allocation5 + $0x968] ss:$16 sps:$4 sm:$0xff]  }
 0x26f   :  { %5633 = vmatpush1.bf16.msra.mxu1 %v9090_v8  ;;  %5591 = vmatprep.subr.bf16.mxu0 %v9095_v9  ;;  %v9132_v8 = vld [vmem:[#allocation5 + $0xb68] ss:$16 sps:$4 sm:$0xff]   ;;  %v9137_v9 = vld [vmem:[#allocation5 + $0x94c] ss:$16 sps:$4 sm:$0xff]  }
 0x270   :  { %5634 = vmatprep.subr.bf16.mxu1 %v9098_v6  ;;  %v9140_v6 = vld [vmem:[#allocation5 + $0xb4c] ss:$16 sps:$4 sm:$0xff]  }
 0x272   :  { %5592 = vmatpush1.bf16.msra.mxu0 %v9093_v3  ;;  %v9135_v3 = vld [vmem:[#allocation5 + $0x948] ss:$16 sps:$4 sm:$0xff]  }
 0x273   :  { %5635 = vmatpush1.bf16.msra.mxu1 %v9096_v7  ;;  %5593 = vmatprep.subr.bf16.mxu0 %v9101_v41  ;;  %v9138_v7 = vld [vmem:[#allocation5 + $0xb48] ss:$16 sps:$4 sm:$0xff]   ;;  %v9143_v41 = vld [vmem:[#allocation5 + $0x92c] ss:$16 sps:$4 sm:$0xff]  }
 0x274   :  { %5636 = vmatprep.subr.bf16.mxu1 %v9104_v43  ;;  %v9146_v43 = vld [vmem:[#allocation5 + $0xb2c] ss:$16 sps:$4 sm:$0xff]  }
 0x276   :  { %5594 = vmatpush1.bf16.msra.mxu0 %v9099_v13  ;;  %v9141_v13 = vld [vmem:[#allocation5 + $0x928] ss:$16 sps:$4 sm:$0xff]  }
 0x277   :  { %5637 = vmatpush1.bf16.msra.mxu1 %v9102_v18  ;;  %5595 = vmatprep.subr.bf16.mxu0 %v9107_v4  ;;  %v9144_v18 = vld [vmem:[#allocation5 + $0xb28] ss:$16 sps:$4 sm:$0xff]   ;;  %v9149_v4 = vld [vmem:[#allocation5 + $0x90c] ss:$16 sps:$4 sm:$0xff]  }
 0x278   :  { %5638 = vmatprep.subr.bf16.mxu1 %v9110_v25  ;;  %v9152_v25 = vld [vmem:[#allocation5 + $0xb0c] ss:$16 sps:$4 sm:$0xff]  }
 0x27a   :  { %5596 = vmatpush2.bf16.msra.mxu0 %v9105_v51  ;;  %v9147_v51 = vld [vmem:[#allocation5 + $0x908] ss:$16 sps:$4 sm:$0xff]  }
 0x27b   :  { %5639 = vmatpush2.bf16.msra.mxu1 %v9108_v16  ;;  %5597 = vmatprep.subr.bf16.mxu0 %v9113_v38  ;;  %v9150_v16 = vld [vmem:[#allocation5 + $0xb08] ss:$16 sps:$4 sm:$0xff]   ;;  %v9155_v38 = vld [vmem:[#allocation5 + $0xcec] ss:$16 sps:$4 sm:$0xff]  }
 0x27c   :  { %5640 = vmatprep.subr.bf16.mxu1 %v9116_v20  ;;  %v9158_v20 = vld [vmem:[#allocation5 + $0xeec] ss:$16 sps:$4 sm:$0xff]  }
 0x27e   :  { %5598 = vmatpush2.bf16.msra.mxu0 %v9111_v21  ;;  %v9153_v21 = vld [vmem:[#allocation5 + $0xce8] ss:$16 sps:$4 sm:$0xff]  }
 0x27f   :  { %5641 = vmatpush2.bf16.msra.mxu1 %v9114_v31  ;;  %5599 = vmatprep.subr.bf16.mxu0 %v9119_v53  ;;  %v9156_v31 = vld [vmem:[#allocation5 + $0xee8] ss:$16 sps:$4 sm:$0xff]   ;;  %v10144_v53 = vpop.f32.mrf.mxu0 }
 0x280   :  { %5642 = vmatprep.subr.bf16.mxu1 %v9122_v55  ;;  %v10146_v55 = vpop.f32.mrf.mxu1 }
 0x282   :  { %5600 = vmatpush2.bf16.msra.mxu0 %v9117_v42  ;;  %v9161_v42 = vld [vmem:[#allocation5 + $0xccc] ss:$16 sps:$4 sm:$0xff]  }
 0x283   :  { %5643 = vmatpush2.bf16.msra.mxu1 %v9120_v45  ;;  %5601 = vmatprep.subr.bf16.mxu0 %v9125_v33  ;;  %v9164_v45 = vld [vmem:[#allocation5 + $0xecc] ss:$16 sps:$4 sm:$0xff]  }
 0x284   :  { %5644 = vmatprep.subr.bf16.mxu1 %v9128_v35 }
 0x286   :  { %5602 = vmatpush2.bf16.msra.mxu0 %v9123_v2 }
 0x287   :  { %5645 = vmatpush2.bf16.msra.mxu1 %v9126_v30  ;;  %5603 = vmatprep.subr.bf16.mxu0 %v9131_v36  ;;  %v9159_v30 = vld [vmem:[#allocation5 + $0xcc8] ss:$16 sps:$4 sm:$0xff]  }
 0x288   :  { %5646 = vmatprep.subr.bf16.mxu1 %v9134_v62  ;;  %v9162_v36 = vld [vmem:[#allocation5 + $0xec8] ss:$16 sps:$4 sm:$0xff]  }
 0x28a   :  { %5604 = vmatpush2.bf16.msra.mxu0 %v9129_v0 }
 0x28b   :  { %5647 = vmatpush2.bf16.msra.mxu1 %v9132_v8  ;;  %5605 = vmatprep.subr.bf16.mxu0 %v9137_v9  ;;  %v9167_v8 = vld [vmem:[#allocation5 + $0xcac] ss:$16 sps:$4 sm:$0xff]  }
 0x28c   :  { %5648 = vmatprep.subr.bf16.mxu1 %v9140_v6  ;;  %v9170_v9 = vld [vmem:[#allocation5 + $0xeac] ss:$16 sps:$4 sm:$0xff]  }
 0x28e   :  { %5606 = vmatpush2.bf16.msra.mxu0 %v9135_v3  ;;  %v9168_v3 = vld [vmem:[#allocation5 + $0xea8] ss:$16 sps:$4 sm:$0xff]  }
 0x28f   :  { %5649 = vmatpush2.bf16.msra.mxu1 %v9138_v7  ;;  %5607 = vmatprep.subr.bf16.mxu0 %v9143_v41  ;;  %v9173_v41 = vld [vmem:[#allocation5 + $0xc8c] ss:$16 sps:$4 sm:$0xff]  }
 0x290   :  { %5650 = vmatprep.subr.bf16.mxu1 %v9146_v43  ;;  %v9176_v43 = vld [vmem:[#allocation5 + $0xe8c] ss:$16 sps:$4 sm:$0xff]  }
 0x292   :  { %5608 = vmatpush2.bf16.msra.mxu0 %v9141_v13 }
 0x293   :  { %5651 = vmatpush2.bf16.msra.mxu1 %v9144_v18  ;;  %5609 = vmatprep.subr.bf16.mxu0 %v9149_v4 }
 0x294   :  { %5652 = vmatprep.subr.bf16.mxu1 %v9152_v25  ;;  %v9174_v25 = vld [vmem:[#allocation5 + $0xe88] ss:$16 sps:$4 sm:$0xff]  }
 0x296   :  { %5610 = vmatpush2.bf16.msra.mxu0 %v9147_v51 }
 0x297   :  { %5653 = vmatpush2.bf16.msra.mxu1 %v9150_v16  ;;  %5665 = vmatprep.subr.bf16.mxu0 %v9155_v38  ;;  %v9177_v16 = vld [vmem:[#allocation5 + $0xc68] ss:$16 sps:$4 sm:$0xff]  }
 0x298   :  { %5708 = vmatprep.subr.bf16.mxu1 %v9158_v20  ;;  %v9180_v38 = vld [vmem:[#allocation5 + $0xe68] ss:$16 sps:$4 sm:$0xff]   ;;  %v9185_v20 = vld [vmem:[#allocation5 + $0xc4c] ss:$16 sps:$4 sm:$0xff]  }
 0x299   :  { %v5355_v33 = vpop.f32.mrf.mxu0  ;;  %5612 = vmatmul.mubr.bf16.vlgmr.msra.gmra.mxu0 %v9979_v48 }
 0x29a   :  { %v5398_v35 = vpop.f32.mrf.mxu1  ;;  %5655 = vmatmul.mubr.bf16.vlgmr.msra.gmra.mxu1 %v9983_v49  ;;  %v5356_v2 = vadd.f32 %v5355_v33, %v10137_v32  ;;  %5666 = vmatpush1.bf16.msra.mxu0 %v9153_v21  ;;  %v9165_v32 = vld [vmem:[#allocation5 + $0xca8] ss:$16 sps:$4 sm:$0xff]   ;;  %v9188_v21 = vld [vmem:[#allocation5 + $0xe4c] ss:$16 sps:$4 sm:$0xff]  }
 0x29b   :  { %5709 = vmatpush1.bf16.msra.mxu1 %v9156_v31  ;;  %v10151_v62 = vpop.f32.mrf.mxu0  ;;  %5667 = vmatprep.subr.bf16.mxu0 %v9161_v42  ;;  %v9183_v31 = vld [vmem:[#allocation5 + $0xc48] ss:$16 sps:$4 sm:$0xff]   ;;  %v9194_v33 = vld [vmem:[#allocation5 + $0xe2c] ss:$16 sps:$4 sm:$0xff]  }
 0x29c   :  { %v10153_v0 = vpop.f32.mrf.mxu1  ;;  %5710 = vmatprep.subr.bf16.mxu1 %v9164_v45  ;;  %v5399_v6 = vadd.f32 %v5398_v35, %v5356_v2  ;;  %5697 = vmatprep.mubr.bf16.mxu0 %v9989_v56  ;;  %v9171_v56 = vld [vmem:[#allocation5 + $0xc88] ss:$16 sps:$4 sm:$0xff]   ;;  %v9191_v45 = vld [vmem:[#allocation5 + $0xc2c] ss:$16 sps:$4 sm:$0xff]  }
 0x29d   :  { %5740 = vmatprep.mubr.bf16.mxu1 %v9993_v28  ;;  %v5359_v48 = vpop.f32.mrf.mxu0  ;;  %v9179_v28 = vld [vmem:[#allocation5 + $0xc6c] ss:$16 sps:$4 sm:$0xff]   ;;  %v9186_v42 = vld [vmem:[#allocation5 + $0xe48] ss:$16 sps:$4 sm:$0xff]  }
 0x29e   :  { %v5360_v49 = vadd.f32 %v5359_v48, %v10142_v59  ;;  %5668 = vmatpush1.bf16.msra.mxu0 %v9159_v30  ;;  %v5402_v7 = vpop.f32.mrf.mxu1  ;;  %v5923_v18 = vmax.f32 %v5399_v6, 0.0  ;;  %v9182_v59 = vld [vmem:[#allocation5 + $0xe6c] ss:$16 sps:$4 sm:$0xff]   ;;  %v9189_v35 = vld [vmem:[#allocation5 + $0xc28] ss:$16 sps:$4 sm:$0xff]  }
 0x29f   :  { %5711 = vmatpush1.bf16.msra.mxu1 %v9162_v36  ;;  %5669 = vmatprep.subr.bf16.mxu0 %v9167_v8  ;;  %v9192_v2 = vld [vmem:[#allocation5 + $0xe28] ss:$16 sps:$4 sm:$0xff]   ;;  %v9197_v30 = vld [vmem:[#allocation5 + $0xc0c] ss:$16 sps:$4 sm:$0xff]  }
 0x2a0   :  { %5712 = vmatprep.subr.bf16.mxu1 %v9170_v9  ;;  %v5403_v13 = vadd.f32 %v5402_v7, %v5360_v49  ;;  %v9200_v36 = vld [vmem:[#allocation5 + $0xe0c] ss:$16 sps:$4 sm:$0xff]   ;;  %v9195_v8 = vld [vmem:[#allocation5 + $0xc08] ss:$16 sps:$4 sm:$0xff]  }
 0x2a1   :  { %v9198_v9 = vld [vmem:[#allocation5 + $0xe08] ss:$16 sps:$4 sm:$0xff]   ;;  %v9203_v6 = vld [vmem:[#allocation5 + $0xdec] ss:$16 sps:$4 sm:$0xff]  }
 0x2a2   :  { %v5927_v4 = vmax.f32 %v5403_v13, 0.0  ;;  %5670 = vmatpush1.bf16.msra.mxu0 %v9165_v32  ;;  %v9206_v48 = vld [vmem:[#allocation5 + $0xfec] ss:$16 sps:$4 sm:$0xff]   ;;  %v9201_v49 = vld [vmem:[#allocation5 + $0xde8] ss:$16 sps:$4 sm:$0xff]  }
 0x2a3   :  { %5713 = vmatpush1.bf16.msra.mxu1 %v9168_v3  ;;  %5671 = vmatprep.subr.bf16.mxu0 %v9173_v41  ;;  %v9204_v32 = vld [vmem:[#allocation5 + $0xfe8] ss:$16 sps:$4 sm:$0xff]   ;;  %v9209_v3 = vld [vmem:[#allocation5 + $0xdcc] ss:$16 sps:$4 sm:$0xff]  }
 0x2a4   :  { %5714 = vmatprep.subr.bf16.mxu1 %v9176_v43  ;;  %v10158_v51 = vpack.c.bf16 %v5927_v4, %v5923_v18  ;;  %v9212_v7 = vld [vmem:[#allocation5 + $0xfcc] ss:$16 sps:$4 sm:$0xff]   ;;  %v9207_v41 = vld [vmem:[#allocation5 + $0xdc8] ss:$16 sps:$4 sm:$0xff]  }
 0x2a5   :  { %v9210_v43 = vld [vmem:[#allocation5 + $0xfc8] ss:$16 sps:$4 sm:$0xff]   ;;  %v9215_v13 = vld [vmem:[#allocation5 + $0xdac] ss:$16 sps:$4 sm:$0xff]  }
 0x2a6   :  { %5672 = vmatpush1.bf16.msra.mxu0 %v9171_v56  ;;  %v9218_v18 = vld [vmem:[#allocation5 + $0xfac] ss:$16 sps:$4 sm:$0xff]   ;;  %v9213_v4 = vld [vmem:[#allocation5 + $0xda8] ss:$16 sps:$4 sm:$0xff]  }
 0x2a7   :  { %5715 = vmatpush1.bf16.msra.mxu1 %v9174_v25  ;;  %5673 = vmatprep.subr.bf16.mxu0 %v9179_v28  ;;  %v9216_v56 = vld [vmem:[#allocation5 + $0xfa8] ss:$16 sps:$4 sm:$0xff]   ;;  %v9221_v25 = vld [vmem:[#allocation5 + $0xd8c] ss:$16 sps:$4 sm:$0xff]  }
 0x2a8   :  { %5716 = vmatprep.subr.bf16.mxu1 %v9182_v59  ;;  %v9224_v28 = vld [vmem:[#allocation5 + $0xf8c] ss:$16 sps:$4 sm:$0xff]   ;;  %v9219_v59 = vld [vmem:[#allocation5 + $0xd88] ss:$16 sps:$4 sm:$0xff]  }
 0x2aa   :  { %5674 = vmatpush1.bf16.msra.mxu0 %v9177_v16  ;;  %v9222_v16 = vld [vmem:[#allocation5 + $0xf88] ss:$16 sps:$4 sm:$0xff]  }
 0x2ab   :  { %5717 = vmatpush1.bf16.msra.mxu1 %v9180_v38  ;;  %5675 = vmatprep.subr.bf16.mxu0 %v9185_v20  ;;  %v9227_v38 = vld [vmem:[#allocation5 + $0xd6c] ss:$16 sps:$4 sm:$0xff]  }
 0x2ac   :  { %5718 = vmatprep.subr.bf16.mxu1 %v9188_v21  ;;  %v9230_v20 = vld [vmem:[#allocation5 + $0xf6c] ss:$16 sps:$4 sm:$0xff]   ;;  %v9225_v21 = vld [vmem:[#allocation5 + $0xd68] ss:$16 sps:$4 sm:$0xff]  }
 0x2ae   :  { %5676 = vmatpush1.bf16.msra.mxu0 %v9183_v31  ;;  %v9228_v31 = vld [vmem:[#allocation5 + $0xf68] ss:$16 sps:$4 sm:$0xff]  }
 0x2af   :  { %5719 = vmatpush1.bf16.msra.mxu1 %v9186_v42  ;;  %5677 = vmatprep.subr.bf16.mxu0 %v9191_v45  ;;  %v9233_v42 = vld [vmem:[#allocation5 + $0xd4c] ss:$16 sps:$4 sm:$0xff]  }
 0x2b0   :  { %5720 = vmatprep.subr.bf16.mxu1 %v9194_v33  ;;  %v9236_v45 = vld [vmem:[#allocation5 + $0xf4c] ss:$16 sps:$4 sm:$0xff]   ;;  %v9231_v33 = vld [vmem:[#allocation5 + $0xd48] ss:$16 sps:$4 sm:$0xff]  }
 0x2b2   :  { %5678 = vmatpush1.bf16.msra.mxu0 %v9189_v35  ;;  %v9234_v35 = vld [vmem:[#allocation5 + $0xf48] ss:$16 sps:$4 sm:$0xff]  }
 0x2b3   :  { %5721 = vmatpush1.bf16.msra.mxu1 %v9192_v2  ;;  %5679 = vmatprep.subr.bf16.mxu0 %v9197_v30  ;;  %v9239_v2 = vld [vmem:[#allocation5 + $0xd2c] ss:$16 sps:$4 sm:$0xff]  }
 0x2b4   :  { %5722 = vmatprep.subr.bf16.mxu1 %v9200_v36  ;;  %v9242_v30 = vld [vmem:[#allocation5 + $0xf2c] ss:$16 sps:$4 sm:$0xff]   ;;  %v9237_v36 = vld [vmem:[#allocation5 + $0xd28] ss:$16 sps:$4 sm:$0xff]  }
 0x2b6   :  { %5680 = vmatpush1.bf16.msra.mxu0 %v9195_v8  ;;  %v9240_v8 = vld [vmem:[#allocation5 + $0xf28] ss:$16 sps:$4 sm:$0xff]  }
 0x2b7   :  { %5723 = vmatpush1.bf16.msra.mxu1 %v9198_v9  ;;  %5681 = vmatprep.subr.bf16.mxu0 %v9203_v6  ;;  %v9245_v9 = vld [vmem:[#allocation5 + $0xd0c] ss:$16 sps:$4 sm:$0xff]  }
 0x2b8   :  { %5724 = vmatprep.subr.bf16.mxu1 %v9206_v48  ;;  %v9248_v6 = vld [vmem:[#allocation5 + $0xf0c] ss:$16 sps:$4 sm:$0xff]   ;;  %v9243_v48 = vld [vmem:[#allocation5 + $0xd08] ss:$16 sps:$4 sm:$0xff]  }
 0x2ba   :  { %5682 = vmatpush2.bf16.msra.mxu0 %v9201_v49  ;;  %v9246_v49 = vld [vmem:[#allocation5 + $0xf08] ss:$16 sps:$4 sm:$0xff]  }
 0x2bb   :  { %5725 = vmatpush2.bf16.msra.mxu1 %v9204_v32  ;;  %5683 = vmatprep.subr.bf16.mxu0 %v9209_v3  ;;  %v9251_v32 = vld [vmem:[#allocation5 + $0x10ec] ss:$16 sps:$4 sm:$0xff]  }
 0x2bc   :  { %5726 = vmatprep.subr.bf16.mxu1 %v9212_v7  ;;  %v9254_v3 = vld [vmem:[#allocation5 + $0x12ec] ss:$16 sps:$4 sm:$0xff]   ;;  %v9249_v7 = vld [vmem:[#allocation5 + $0x10e8] ss:$16 sps:$4 sm:$0xff]  }
 0x2be   :  { %5684 = vmatpush2.bf16.msra.mxu0 %v9207_v41  ;;  %v9252_v41 = vld [vmem:[#allocation5 + $0x12e8] ss:$16 sps:$4 sm:$0xff]  }
 0x2bf   :  { %5727 = vmatpush2.bf16.msra.mxu1 %v9210_v43  ;;  %5685 = vmatprep.subr.bf16.mxu0 %v9215_v13  ;;  %v9257_v43 = vld [vmem:[#allocation5 + $0x10cc] ss:$16 sps:$4 sm:$0xff]  }
 0x2c0   :  { %5728 = vmatprep.subr.bf16.mxu1 %v9218_v18  ;;  %v9260_v13 = vld [vmem:[#allocation5 + $0x12cc] ss:$16 sps:$4 sm:$0xff]   ;;  %v9255_v18 = vld [vmem:[#allocation5 + $0x10c8] ss:$16 sps:$4 sm:$0xff]  }
 0x2c2   :  { %5686 = vmatpush2.bf16.msra.mxu0 %v9213_v4  ;;  %v9258_v4 = vld [vmem:[#allocation5 + $0x12c8] ss:$16 sps:$4 sm:$0xff]  }
 0x2c3   :  { %5729 = vmatpush2.bf16.msra.mxu1 %v9216_v56  ;;  %5687 = vmatprep.subr.bf16.mxu0 %v9221_v25  ;;  %v9263_v56 = vld [vmem:[#allocation5 + $0x10ac] ss:$16 sps:$4 sm:$0xff]  }
 0x2c4   :  { %5730 = vmatprep.subr.bf16.mxu1 %v9224_v28  ;;  %v9266_v25 = vld [vmem:[#allocation5 + $0x12ac] ss:$16 sps:$4 sm:$0xff]   ;;  %v9261_v28 = vld [vmem:[#allocation5 + $0x10a8] ss:$16 sps:$4 sm:$0xff]  }
 0x2c6   :  { %5688 = vmatpush2.bf16.msra.mxu0 %v9219_v59  ;;  %v9264_v59 = vld [vmem:[#allocation5 + $0x12a8] ss:$16 sps:$4 sm:$0xff]  }
 0x2c7   :  { %5731 = vmatpush2.bf16.msra.mxu1 %v9222_v16  ;;  %5689 = vmatprep.subr.bf16.mxu0 %v9227_v38  ;;  %v9267_v16 = vld [vmem:[#allocation5 + $0x1088] ss:$16 sps:$4 sm:$0xff]  }
 0x2c8   :  { %5732 = vmatprep.subr.bf16.mxu1 %v9230_v20  ;;  %v9270_v38 = vld [vmem:[#allocation5 + $0x1288] ss:$16 sps:$4 sm:$0xff]   ;;  %v9275_v20 = vld [vmem:[#allocation5 + $0x106c] ss:$16 sps:$4 sm:$0xff]  }
 0x2ca   :  { %5690 = vmatpush2.bf16.msra.mxu0 %v9225_v21  ;;  %v9278_v21 = vld [vmem:[#allocation5 + $0x126c] ss:$16 sps:$4 sm:$0xff]  }
 0x2cb   :  { %5733 = vmatpush2.bf16.msra.mxu1 %v9228_v31  ;;  %5691 = vmatprep.subr.bf16.mxu0 %v9233_v42  ;;  %v9281_v31 = vld [vmem:[#allocation5 + $0x104c] ss:$16 sps:$4 sm:$0xff]  }
 0x2cc   :  { %5734 = vmatprep.subr.bf16.mxu1 %v9236_v45  ;;  %v9284_v42 = vld [vmem:[#allocation5 + $0x124c] ss:$16 sps:$4 sm:$0xff]   ;;  %v9279_v45 = vld [vmem:[#allocation5 + $0x1048] ss:$16 sps:$4 sm:$0xff]  }
 0x2ce   :  { %5692 = vmatpush2.bf16.msra.mxu0 %v9231_v33  ;;  %v9282_v33 = vld [vmem:[#allocation5 + $0x1248] ss:$16 sps:$4 sm:$0xff]  }
 0x2cf   :  { %5735 = vmatpush2.bf16.msra.mxu1 %v9234_v35  ;;  %5693 = vmatprep.subr.bf16.mxu0 %v9239_v2  ;;  %v9287_v35 = vld [vmem:[#allocation5 + $0x102c] ss:$16 sps:$4 sm:$0xff]  }
 0x2d0   :  { %5736 = vmatprep.subr.bf16.mxu1 %v9242_v30  ;;  %v9290_v2 = vld [vmem:[#allocation5 + $0x122c] ss:$16 sps:$4 sm:$0xff]   ;;  %v9285_v30 = vld [vmem:[#allocation5 + $0x1028] ss:$16 sps:$4 sm:$0xff]  }
 0x2d2   :  { %5694 = vmatpush2.bf16.msra.mxu0 %v9237_v36  ;;  %v9288_v36 = vld [vmem:[#allocation5 + $0x1228] ss:$16 sps:$4 sm:$0xff]  }
 0x2d3   :  { %5737 = vmatpush2.bf16.msra.mxu1 %v9240_v8  ;;  %5695 = vmatprep.subr.bf16.mxu0 %v9245_v9  ;;  %v9293_v8 = vld [vmem:[#allocation5 + $0x100c] ss:$16 sps:$4 sm:$0xff]  }
 0x2d4   :  { %5738 = vmatprep.subr.bf16.mxu1 %v9248_v6  ;;  %v9296_v9 = vld [vmem:[#allocation5 + $0x120c] ss:$16 sps:$4 sm:$0xff]   ;;  %v9291_v6 = vld [vmem:[#allocation5 + $0x1008] ss:$16 sps:$4 sm:$0xff]  }
 0x2d6   :  { %5696 = vmatpush2.bf16.msra.mxu0 %v9243_v48  ;;  %v9294_v48 = vld [vmem:[#allocation5 + $0x1208] ss:$16 sps:$4 sm:$0xff]  }
 0x2d7   :  { %5739 = vmatpush2.bf16.msra.mxu1 %v9246_v49  ;;  %5751 = vmatprep.subr.bf16.mxu0 %v9251_v32  ;;  %v9299_v49 = vld [vmem:[#allocation5 + $0x11ec] ss:$16 sps:$4 sm:$0xff]  }
 0x2d8   :  { %5794 = vmatprep.subr.bf16.mxu1 %v9254_v3  ;;  %v9302_v32 = vld [vmem:[#allocation5 + $0x13ec] ss:$16 sps:$4 sm:$0xff]   ;;  %v9297_v3 = vld [vmem:[#allocation5 + $0x11e8] ss:$16 sps:$4 sm:$0xff]  }
 0x2d9   :  { %5698 = vmatmul.mubr.bf16.vlgmr.msra.gmra.mxu0 %v10010_v14  ;;  %v9269_v14 = vld [vmem:[#allocation5 + $0x108c] ss:$16 sps:$4 sm:$0xff]  }
 0x2da   :  { %5741 = vmatmul.mubr.bf16.vlgmr.msra.gmra.mxu1 %v10014_v15  ;;  %5752 = vmatpush1.bf16.msra.mxu0 %v9249_v7  ;;  %v9272_v15 = vld [vmem:[#allocation5 + $0x128c] ss:$16 sps:$4 sm:$0xff]   ;;  %v9300_v7 = vld [vmem:[#allocation5 + $0x13e8] ss:$16 sps:$4 sm:$0xff]  }
 0x2db   :  { %5795 = vmatpush1.bf16.msra.mxu1 %v9252_v41  ;;  %5753 = vmatprep.subr.bf16.mxu0 %v9257_v43  ;;  %v9305_v41 = vld [vmem:[#allocation5 + $0x11cc] ss:$16 sps:$4 sm:$0xff]  }
 0x2dc   :  { %5796 = vmatprep.subr.bf16.mxu1 %v9260_v13  ;;  %5783 = vmatprep.mubr.bf16.mxu0 %v10022_v44  ;;  %v9273_v44 = vld [vmem:[#allocation5 + $0x1068] ss:$16 sps:$4 sm:$0xff]   ;;  %v9308_v43 = vld [vmem:[#allocation5 + $0x13cc] ss:$16 sps:$4 sm:$0xff]  }
 0x2dd   :  { %5826 = vmatprep.mubr.bf16.mxu1 %v10026_v46  ;;  %v9276_v46 = vld [vmem:[#allocation5 + $0x1268] ss:$16 sps:$4 sm:$0xff]  }
 0x2de   :  { %5754 = vmatpush1.bf16.msra.mxu0 %v9255_v18  ;;  %v9303_v13 = vld [vmem:[#allocation5 + $0x11c8] ss:$16 sps:$4 sm:$0xff]  }
 0x2df   :  { %5797 = vmatpush1.bf16.msra.mxu1 %v9258_v4  ;;  %5755 = vmatprep.subr.bf16.mxu0 %v9263_v56  ;;  %v9306_v18 = vld [vmem:[#allocation5 + $0x13c8] ss:$16 sps:$4 sm:$0xff]   ;;  %v9311_v4 = vld [vmem:[#allocation5 + $0x11ac] ss:$16 sps:$4 sm:$0xff]  }
 0x2e0   :  { %5798 = vmatprep.subr.bf16.mxu1 %v9266_v25  ;;  %v9314_v56 = vld [vmem:[#allocation5 + $0x13ac] ss:$16 sps:$4 sm:$0xff]   ;;  %v9309_v25 = vld [vmem:[#allocation5 + $0x11a8] ss:$16 sps:$4 sm:$0xff]  }
 0x2e2   :  { %5756 = vmatpush1.bf16.msra.mxu0 %v9261_v28  ;;  %v9312_v28 = vld [vmem:[#allocation5 + $0x13a8] ss:$16 sps:$4 sm:$0xff]  }
 0x2e3   :  { %5799 = vmatpush1.bf16.msra.mxu1 %v9264_v59  ;;  %5757 = vmatprep.subr.bf16.mxu0 %v9269_v14  ;;  %v9317_v59 = vld [vmem:[#allocation5 + $0x118c] ss:$16 sps:$4 sm:$0xff]  }
 0x2e4   :  { %5800 = vmatprep.subr.bf16.mxu1 %v9272_v15  ;;  %v9320_v14 = vld [vmem:[#allocation5 + $0x138c] ss:$16 sps:$4 sm:$0xff]   ;;  %v9315_v15 = vld [vmem:[#allocation5 + $0x1188] ss:$16 sps:$4 sm:$0xff]  }
 0x2e6   :  { %5758 = vmatpush1.bf16.msra.mxu0 %v9267_v16  ;;  %v9318_v16 = vld [vmem:[#allocation5 + $0x1388] ss:$16 sps:$4 sm:$0xff]  }
 0x2e7   :  { %5801 = vmatpush1.bf16.msra.mxu1 %v9270_v38  ;;  %5759 = vmatprep.subr.bf16.mxu0 %v9275_v20  ;;  %v9323_v38 = vld [vmem:[#allocation5 + $0x116c] ss:$16 sps:$4 sm:$0xff]  }
 0x2e8   :  { %5802 = vmatprep.subr.bf16.mxu1 %v9278_v21  ;;  %v9326_v20 = vld [vmem:[#allocation5 + $0x136c] ss:$16 sps:$4 sm:$0xff]   ;;  %v9321_v21 = vld [vmem:[#allocation5 + $0x1168] ss:$16 sps:$4 sm:$0xff]  }
 0x2ea   :  { %5760 = vmatpush1.bf16.msra.mxu0 %v9273_v44  ;;  %v9324_v44 = vld [vmem:[#allocation5 + $0x1368] ss:$16 sps:$4 sm:$0xff]  }
 0x2eb   :  { %5803 = vmatpush1.bf16.msra.mxu1 %v9276_v46  ;;  %5761 = vmatprep.subr.bf16.mxu0 %v9281_v31  ;;  %v9329_v46 = vld [vmem:[#allocation5 + $0x114c] ss:$16 sps:$4 sm:$0xff]  }
 0x2ec   :  { %5804 = vmatprep.subr.bf16.mxu1 %v9284_v42  ;;  %v9332_v31 = vld [vmem:[#allocation5 + $0x134c] ss:$16 sps:$4 sm:$0xff]   ;;  %v9327_v42 = vld [vmem:[#allocation5 + $0x1148] ss:$16 sps:$4 sm:$0xff]  }
 0x2ee   :  { %5762 = vmatpush1.bf16.msra.mxu0 %v9279_v45  ;;  %v9330_v45 = vld [vmem:[#allocation5 + $0x1348] ss:$16 sps:$4 sm:$0xff]  }
 0x2ef   :  { %5805 = vmatpush1.bf16.msra.mxu1 %v9282_v33  ;;  %5763 = vmatprep.subr.bf16.mxu0 %v9287_v35  ;;  %v9335_v33 = vld [vmem:[#allocation5 + $0x112c] ss:$16 sps:$4 sm:$0xff]  }
 0x2f0   :  { %5806 = vmatprep.subr.bf16.mxu1 %v9290_v2  ;;  %v9338_v35 = vld [vmem:[#allocation5 + $0x132c] ss:$16 sps:$4 sm:$0xff]   ;;  %v9333_v2 = vld [vmem:[#allocation5 + $0x1128] ss:$16 sps:$4 sm:$0xff]  }
 0x2f2   :  { %5764 = vmatpush1.bf16.msra.mxu0 %v9285_v30  ;;  %v9336_v30 = vld [vmem:[#allocation5 + $0x1328] ss:$16 sps:$4 sm:$0xff]  }
 0x2f3   :  { %5807 = vmatpush1.bf16.msra.mxu1 %v9288_v36  ;;  %5765 = vmatprep.subr.bf16.mxu0 %v9293_v8  ;;  %v9341_v36 = vld [vmem:[#allocation5 + $0x110c] ss:$16 sps:$4 sm:$0xff]  }
 0x2f4   :  { %5808 = vmatprep.subr.bf16.mxu1 %v9296_v9  ;;  %v9344_v8 = vld [vmem:[#allocation5 + $0x130c] ss:$16 sps:$4 sm:$0xff]   ;;  %v9339_v9 = vld [vmem:[#allocation5 + $0x1108] ss:$16 sps:$4 sm:$0xff]  }
 0x2f6   :  { %5766 = vmatpush1.bf16.msra.mxu0 %v9291_v6  ;;  %v9342_v6 = vld [vmem:[#allocation5 + $0x1308] ss:$16 sps:$4 sm:$0xff]  }
 0x2f7   :  { %5809 = vmatpush1.bf16.msra.mxu1 %v9294_v48  ;;  %5767 = vmatprep.subr.bf16.mxu0 %v9299_v49  ;;  %v9347_v48 = vld [vmem:[#allocation5 + $0x14ec] ss:$16 sps:$4 sm:$0xff]  }
 0x2f8   :  { %5810 = vmatprep.subr.bf16.mxu1 %v9302_v32  ;;  %v9350_v49 = vld [vmem:[#allocation5 + $0x16ec] ss:$16 sps:$4 sm:$0xff]   ;;  %v9345_v32 = vld [vmem:[#allocation5 + $0x14e8] ss:$16 sps:$4 sm:$0xff]  }
 0x2fa   :  { %5768 = vmatpush2.bf16.msra.mxu0 %v9297_v3  ;;  %v9348_v3 = vld [vmem:[#allocation5 + $0x16e8] ss:$16 sps:$4 sm:$0xff]  }
 0x2fb   :  { %5811 = vmatpush2.bf16.msra.mxu1 %v9300_v7  ;;  %5769 = vmatprep.subr.bf16.mxu0 %v9305_v41  ;;  %v9353_v7 = vld [vmem:[#allocation5 + $0x14cc] ss:$16 sps:$4 sm:$0xff]  }
 0x2fc   :  { %5812 = vmatprep.subr.bf16.mxu1 %v9308_v43  ;;  %v9356_v41 = vld [vmem:[#allocation5 + $0x16cc] ss:$16 sps:$4 sm:$0xff]   ;;  %v9351_v43 = vld [vmem:[#allocation5 + $0x14c8] ss:$16 sps:$4 sm:$0xff]  }
 0x2fe   :  { %5770 = vmatpush2.bf16.msra.mxu0 %v9303_v13  ;;  %v9354_v13 = vld [vmem:[#allocation5 + $0x16c8] ss:$16 sps:$4 sm:$0xff]  }
 0x2ff   :  { %5813 = vmatpush2.bf16.msra.mxu1 %v9306_v18  ;;  %5771 = vmatprep.subr.bf16.mxu0 %v9311_v4  ;;  %v9359_v18 = vld [vmem:[#allocation5 + $0x14ac] ss:$16 sps:$4 sm:$0xff]  }
 0x300   :  { %5814 = vmatprep.subr.bf16.mxu1 %v9314_v56  ;;  %v9362_v4 = vld [vmem:[#allocation5 + $0x16ac] ss:$16 sps:$4 sm:$0xff]   ;;  %v9357_v56 = vld [vmem:[#allocation5 + $0x14a8] ss:$16 sps:$4 sm:$0xff]  }
 0x302   :  { %5772 = vmatpush2.bf16.msra.mxu0 %v9309_v25  ;;  %v9360_v25 = vld [vmem:[#allocation5 + $0x16a8] ss:$16 sps:$4 sm:$0xff]  }
 0x303   :  { %5815 = vmatpush2.bf16.msra.mxu1 %v9312_v28  ;;  %5773 = vmatprep.subr.bf16.mxu0 %v9317_v59  ;;  %v9363_v28 = vld [vmem:[#allocation5 + $0x1488] ss:$16 sps:$4 sm:$0xff]  }
 0x304   :  { %5816 = vmatprep.subr.bf16.mxu1 %v9320_v14  ;;  %v9366_v59 = vld [vmem:[#allocation5 + $0x1688] ss:$16 sps:$4 sm:$0xff]   ;;  %v9371_v14 = vld [vmem:[#allocation5 + $0x146c] ss:$16 sps:$4 sm:$0xff]  }
 0x306   :  { %5774 = vmatpush2.bf16.msra.mxu0 %v9315_v15  ;;  %v9374_v15 = vld [vmem:[#allocation5 + $0x166c] ss:$16 sps:$4 sm:$0xff]  }
 0x307   :  { %5817 = vmatpush2.bf16.msra.mxu1 %v9318_v16  ;;  %5775 = vmatprep.subr.bf16.mxu0 %v9323_v38  ;;  %v9377_v16 = vld [vmem:[#allocation5 + $0x144c] ss:$16 sps:$4 sm:$0xff]  }
 0x308   :  { %5818 = vmatprep.subr.bf16.mxu1 %v9326_v20  ;;  %v9380_v38 = vld [vmem:[#allocation5 + $0x164c] ss:$16 sps:$4 sm:$0xff]   ;;  %v917_v20 = vsub.s32 1, %v9999_v63 }
 0x30a   :  { %5776 = vmatpush2.bf16.msra.mxu0 %v9321_v21  ;;  %v9375_v21 = vld [vmem:[#allocation5 + $0x1448] ss:$16 sps:$4 sm:$0xff]  }
 0x30b   :  { %5819 = vmatpush2.bf16.msra.mxu1 %v9324_v44  ;;  %5777 = vmatprep.subr.bf16.mxu0 %v9329_v46  ;;  %v9378_v44 = vld [vmem:[#allocation5 + $0x1648] ss:$16 sps:$4 sm:$0xff]   ;;  %v9383_v46 = vld [vmem:[#allocation5 + $0x142c] ss:$16 sps:$4 sm:$0xff]  }
 0x30c   :  { %5820 = vmatprep.subr.bf16.mxu1 %v9332_v31  ;;  %v9386_v31 = vld [vmem:[#allocation5 + $0x162c] ss:$16 sps:$4 sm:$0xff]  }
 0x30e   :  { %5778 = vmatpush2.bf16.msra.mxu0 %v9327_v42  ;;  %v10169_v42 = vld [vmem:[#allocation7] sm:$0xf] }
 0x30f   :  { %5821 = vmatpush2.bf16.msra.mxu1 %v9330_v45  ;;  %5779 = vmatprep.subr.bf16.mxu0 %v9335_v33  ;;  %v918_v45 = vrot.slane %v10169_v42, %v917_v20 }
 0x310   :  { %5822 = vmatprep.subr.bf16.mxu1 %v9338_v35  ;;  %v9381_v35 = vld [vmem:[#allocation5 + $0x1428] ss:$16 sps:$4 sm:$0xff]  }
 0x311   :  { %v4932_v33 = vadd.f32 %v10056_v23, %v918_v45  ;;  %v9398_v23 = vld [vmem:[#allocation5 + $0x17ec] ss:$16 sps:$4 sm:$0xff]  }
 0x312   :  { %5780 = vmatpush2.bf16.msra.mxu0 %v9333_v2  ;;  %v9384_v2 = vld [vmem:[#allocation5 + $0x1628] ss:$16 sps:$4 sm:$0xff]  }
 0x313   :  { %5823 = vmatpush2.bf16.msra.mxu1 %v9336_v30  ;;  %5781 = vmatprep.subr.bf16.mxu0 %v9341_v36  ;;  %v9389_v30 = vld [vmem:[#allocation5 + $0x140c] ss:$16 sps:$4 sm:$0xff]  }
 0x314   :  { %5824 = vmatprep.subr.bf16.mxu1 %v9344_v8  ;;  %v9392_v36 = vld [vmem:[#allocation5 + $0x160c] ss:$16 sps:$4 sm:$0xff]   ;;  %v4928_v8 = vadd.f32 %v10030_v26, %v918_v45  ;;  %v9396_v26 = vld [vmem:[#allocation5 + $0x17e8] ss:$16 sps:$4 sm:$0xff]  }
 0x315   :  { %v9426_v45 = vld [vmem:[#allocation5 + $0x1748] ss:$16 sps:$4 sm:$0xff]  }
 0x316   :  { %5782 = vmatpush2.bf16.msra.mxu0 %v9339_v9  ;;  %v4975_v9 = vadd.f32 %v10058_v24, %v4932_v33  ;;  %v9401_v24 = vld [vmem:[#allocation5 + $0x15cc] ss:$16 sps:$4 sm:$0xff]  }
 0x317   :  { %5825 = vmatpush2.bf16.msra.mxu1 %v9342_v6  ;;  %5837 = vmatprep.subr.bf16.mxu0 %v9347_v48  ;;  %v9387_v6 = vld [vmem:[#allocation5 + $0x1408] ss:$16 sps:$4 sm:$0xff]  }
 0x318   :  { %5880 = vmatprep.subr.bf16.mxu1 %v9350_v49  ;;  %v9390_v48 = vld [vmem:[#allocation5 + $0x1608] ss:$16 sps:$4 sm:$0xff]   ;;  %v9395_v49 = vld [vmem:[#allocation5 + $0x15ec] ss:$16 sps:$4 sm:$0xff]  }
 0x319   :  { %5784 = vmatmul.mubr.bf16.vlgmr.msra.gmra.mxu0 %v10050_v47  ;;  %v9365_v47 = vld [vmem:[#allocation5 + $0x148c] ss:$16 sps:$4 sm:$0xff]  }
 0x31a   :  { %5827 = vmatmul.mubr.bf16.vlgmr.msra.gmra.mxu1 %v10054_v50  ;;  %5838 = vmatpush1.bf16.msra.mxu0 %v9345_v32  ;;  %v9368_v50 = vld [vmem:[#allocation5 + $0x168c] ss:$16 sps:$4 sm:$0xff]   ;;  %v4971_v32 = vadd.f32 %v10032_v27, %v4928_v8  ;;  %v9399_v27 = vld [vmem:[#allocation5 + $0x15c8] ss:$16 sps:$4 sm:$0xff]  }
 0x31b   :  { %5881 = vmatpush1.bf16.msra.mxu1 %v9348_v3  ;;  %5839 = vmatprep.subr.bf16.mxu0 %v9353_v7  ;;  %v5018_v3 = vadd.f32 %v10090_v60, %v4975_v9  ;;  %v9402_v60 = vld [vmem:[#allocation5 + $0x17c8] ss:$16 sps:$4 sm:$0xff]   ;;  %v9440_v8 = vld [vmem:[#allocation5 + $0x170c] ss:$16 sps:$4 sm:$0xff]  }
 0x31c   :  { %5882 = vmatprep.subr.bf16.mxu1 %v9356_v41  ;;  %5869 = vmatprep.mubr.bf16.mxu0 %v10062_v10  ;;  %v9369_v10 = vld [vmem:[#allocation5 + $0x1468] ss:$16 sps:$4 sm:$0xff]   ;;  %v5014_v7 = vadd.f32 %v10071_v39, %v4971_v32  ;;  %v9407_v39 = vld [vmem:[#allocation5 + $0x15ac] ss:$16 sps:$4 sm:$0xff]   ;;  %v9441_v32 = vld [vmem:[#allocation8 + $0xe0] ss:$16 sps:$4 sm:$0xff]  }
 0x31d   :  { %5912 = vmatprep.mubr.bf16.mxu1 %v10066_v12  ;;  %v9372_v12 = vld [vmem:[#allocation5 + $0x1668] ss:$16 sps:$4 sm:$0xff]  }
 0x31e   :  { %5840 = vmatpush1.bf16.msra.mxu0 %v9351_v43  ;;  %v9393_v41 = vld [vmem:[#allocation5 + $0x15e8] ss:$16 sps:$4 sm:$0xff]   ;;  %v9404_v43 = vld [vmem:[#allocation5 + $0x17cc] ss:$16 sps:$4 sm:$0xff]  }
 0x31f   :  { %5883 = vmatpush1.bf16.msra.mxu1 %v9354_v13  ;;  %5841 = vmatprep.subr.bf16.mxu0 %v9359_v18  ;;  %v5061_v13 = vadd.f32 %v10092_v61, %v5018_v3  ;;  %v5057_v18 = vadd.f32 %v10073_v40, %v5014_v7  ;;  %v9408_v61 = vld [vmem:[#allocation5 + $0x17a8] ss:$16 sps:$4 sm:$0xff]   ;;  %v9413_v40 = vld [vmem:[#allocation5 + $0x158c] ss:$16 sps:$4 sm:$0xff]  }
 0x320   :  { %5884 = vmatprep.subr.bf16.mxu1 %v9362_v4  ;;  %v9446_v3 = vld [vmem:[#allocation8 + $0xc4] ss:$16 sps:$4 sm:$0xff]  }
 0x321   :  { %v5104_v4 = vadd.f32 %v10108_v34, %v5061_v13  ;;  %v9416_v34 = vld [vmem:[#allocation5 + $0x178c] ss:$16 sps:$4 sm:$0xff]   ;;  %v9537_v13 = vld [vmem:[#allocation8 + $0x2e0] ss:$16 sps:$4 sm:$0xff]  }
 0x322   :  { %5842 = vmatpush1.bf16.msra.mxu0 %v9357_v56  ;;  %v9410_v56 = vld [vmem:[#allocation5 + $0x17ac] ss:$16 sps:$4 sm:$0xff]  }
 0x323   :  { %5885 = vmatpush1.bf16.msra.mxu1 %v9360_v25  ;;  %5843 = vmatprep.subr.bf16.mxu0 %v9365_v47  ;;  %v5100_v25 = vadd.f32 %v10097_v11, %v5057_v18  ;;  %v5147_v47 = vadd.f32 %v10110_v37, %v5104_v4  ;;  %v9414_v11 = vld [vmem:[#allocation5 + $0x1788] ss:$16 sps:$4 sm:$0xff]   ;;  %v9419_v37 = vld [vmem:[#allocation5 + $0x156c] ss:$16 sps:$4 sm:$0xff]  }
 0x324   :  { %5886 = vmatprep.subr.bf16.mxu1 %v9368_v50  ;;  %v9405_v50 = vld [vmem:[#allocation5 + $0x15a8] ss:$16 sps:$4 sm:$0xff]  }
 0x325   :  { %v9539_v18 = vld [vmem:[#allocation8 + $0x2e4] ss:$16 sps:$4 sm:$0xff]  }
 0x326   :  { %5844 = vmatpush1.bf16.msra.mxu0 %v9363_v28  ;;  %v5143_v28 = vadd.f32 %v10099_v17, %v5100_v25  ;;  %v9417_v17 = vld [vmem:[#allocation5 + $0x1568] ss:$16 sps:$4 sm:$0xff]   ;;  %v9456_v25 = vld [vmem:[#allocation8 + $0x40] ss:$16 sps:$4 sm:$0xff]  }
 0x327   :  { %5887 = vmatpush1.bf16.msra.mxu1 %v9366_v59  ;;  %5845 = vmatprep.subr.bf16.mxu0 %v9371_v14  ;;  %v5190_v59 = vadd.f32 %v10126_v52, %v5147_v47  ;;  %v9420_v52 = vld [vmem:[#allocation5 + $0x1768] ss:$16 sps:$4 sm:$0xff]  }
 0x328   :  { %5888 = vmatprep.subr.bf16.mxu1 %v9374_v15  ;;  %v5186_v14 = vadd.f32 %v10115_v54, %v5143_v28  ;;  %v9411_v15 = vld [vmem:[#allocation5 + $0x1588] ss:$16 sps:$4 sm:$0xff]   ;;  %v9425_v54 = vld [vmem:[#allocation5 + $0x154c] ss:$16 sps:$4 sm:$0xff]  }
 0x329   :  { %v9455_v4 = vld [vmem:[#allocation8 + $0x64] ss:$16 sps:$4 sm:$0xff]  }
 0x32a   :  { %5846 = vmatpush1.bf16.msra.mxu0 %v9369_v10  ;;  %v9422_v10 = vld [vmem:[#allocation5 + $0x176c] ss:$16 sps:$4 sm:$0xff]   ;;  %v9548_v47 = vld [vmem:[#allocation8 + $0x284] ss:$16 sps:$4 sm:$0xff]  }
 0x32b   :  { %5889 = vmatpush1.bf16.msra.mxu1 %v9372_v12  ;;  %5847 = vmatprep.subr.bf16.mxu0 %v9377_v16  ;;  %v5233_v12 = vadd.f32 %v10128_v1, %v5190_v59  ;;  %v5229_v16 = vadd.f32 %v10117_v29, %v5186_v14  ;;  %v9423_v1 = vld [vmem:[#allocation5 + $0x1548] ss:$16 sps:$4 sm:$0xff]   ;;  %v9431_v29 = vld [vmem:[#allocation5 + $0x152c] ss:$16 sps:$4 sm:$0xff]   ;;  %v9549_v59 = vld [vmem:[#allocation8 + $0x260] ss:$16 sps:$4 sm:$0xff]  }
 0x32c   :  { %5890 = vmatprep.subr.bf16.mxu1 %v9380_v38  ;;  %v9464_v28 = vld [vmem:[#allocation8 + $0x4] ss:$16 sps:$4 sm:$0xff]   ;;  %v9462_v14 = vld [vmem:[#allocation8] ss:$16 sps:$4 sm:$0xff]  }
 0x32d   :  { %v5276_v38 = vadd.f32 %v10144_v53, %v5233_v12  ;;  %v9434_v53 = vld [vmem:[#allocation5 + $0x172c] ss:$16 sps:$4 sm:$0xff]   ;;  %v9557_v12 = vld [vmem:[#allocation8 + $0x224] ss:$16 sps:$4 sm:$0xff]  }
 0x32e   :  { %5848 = vmatpush1.bf16.msra.mxu0 %v9375_v21  ;;  %v9428_v21 = vld [vmem:[#allocation5 + $0x174c] ss:$16 sps:$4 sm:$0xff]  }
 0x32f   :  { %5891 = vmatpush1.bf16.msra.mxu1 %v9378_v44  ;;  %5849 = vmatprep.subr.bf16.mxu0 %v9383_v46  ;;  %v5272_v44 = vadd.f32 %v10133_v19, %v5229_v16  ;;  %v5361_v46 = vpop.f32.mrf.mxu0  ;;  %v9432_v19 = vld [vmem:[#allocation5 + $0x1728] ss:$16 sps:$4 sm:$0xff]  }
 0x330   :  { %5892 = vmatprep.subr.bf16.mxu1 %v9386_v31  ;;  %v5319_v31 = vadd.f32 %v10146_v55, %v5276_v38  ;;  %v9437_v55 = vld [vmem:[#allocation5 + $0x150c] ss:$16 sps:$4 sm:$0xff]   ;;  %v9470_v16 = vld [vmem:[#allocation8 + $0x1c4] ss:$16 sps:$4 sm:$0xff]   ;;  %v9555_v38 = vld [vmem:[#allocation8 + $0x220] ss:$16 sps:$4 sm:$0xff]  }
 0x331   :  { %v5315_v33 = vadd.f32 %v10135_v22, %v5272_v44  ;;  %v9443_v22 = vld [vmem:[#allocation8 + $0xe4] ss:$16 sps:$4 sm:$0xff]   ;;  %v9471_v44 = vld [vmem:[#allocation8 + $0x1a0] ss:$16 sps:$4 sm:$0xff]  }
 0x332   :  { %5850 = vmatpush1.bf16.msra.mxu0 %v9381_v35  ;;  %v5362_v35 = vadd.f32 %v5361_v46, %v5319_v31  ;;  %v9563_v46 = vld [vmem:[#allocation8 + $0x3e4] ss:$16 sps:$4 sm:$0xff]  }
 0x333   :  { %5893 = vmatpush1.bf16.msra.mxu1 %v9384_v2  ;;  %5851 = vmatprep.subr.bf16.mxu0 %v9389_v30  ;;  %v5358_v2 = vadd.f32 %v10151_v62, %v5315_v33  ;;  %v9429_v30 = vld [vmem:[#allocation5 + $0x1528] ss:$16 sps:$4 sm:$0xff]   ;;  %v9564_v33 = vld [vmem:[#allocation8 + $0x3c0] ss:$16 sps:$4 sm:$0xff]  }
 0x334   :  { %5894 = vmatprep.subr.bf16.mxu1 %v9392_v36  ;;  %v5404_v36 = vpop.f32.mrf.mxu1  ;;  %v9476_v31 = vld [vmem:[#allocation8 + $0x184] ss:$16 sps:$4 sm:$0xff]  }
 0x335   :  { %v5405_v9 = vadd.f32 %v5404_v36, %v5362_v35  ;;  %v9477_v35 = vld [vmem:[#allocation8 + $0x160] ss:$16 sps:$4 sm:$0xff]  }
 0x336   :  { %5852 = vmatpush1.bf16.msra.mxu0 %v9387_v6  ;;  %v5401_v6 = vadd.f32 %v10153_v0, %v5358_v2  ;;  %v9444_v0 = vld [vmem:[#allocation8 + $0xc0] ss:$16 sps:$4 sm:$0xff]   ;;  %v9569_v2 = vld [vmem:[#allocation8 + $0x3a4] ss:$16 sps:$4 sm:$0xff]  }
 0x337   :  { %5895 = vmatpush1.bf16.msra.mxu1 %v9390_v48  ;;  %5853 = vmatprep.subr.bf16.mxu0 %v9395_v49  ;;  %v9435_v48 = vld [vmem:[#allocation5 + $0x1508] ss:$16 sps:$4 sm:$0xff]   ;;  %v5928_v62 = vmax.f32 %v5405_v9, 0.0  ;;  %v9480_v36 = vld [vmem:[#allocation8 + $0x140] ss:$16 sps:$4 sm:$0xff]  }
 0x338   :  { %5896 = vmatprep.subr.bf16.mxu1 %v9398_v23  ;;  %v9438_v49 = vld [vmem:[#allocation5 + $0x1708] ss:$16 sps:$4 sm:$0xff]   ;;  %v5924_v23 = vmax.f32 %v5401_v6, 0.0  ;;  %v9570_v9 = vld [vmem:[#allocation8 + $0x380] ss:$16 sps:$4 sm:$0xff]  }
 0x339   :  { %v9483_v6 = vld [vmem:[#allocation8 + $0x120] ss:$16 sps:$4 sm:$0xff]  }
 0x33a   :  { %5854 = vmatpush2.bf16.msra.mxu0 %v9393_v41  ;;  %v10196_v7 = vpack.c.bf16 %v5928_v62, %v5924_v23  ;;  %v9449_v41 = vld [vmem:[#allocation8 + $0xa4] ss:$16 sps:$4 sm:$0xff]   ;;  %v9486_v62 = vld [vmem:[#allocation8 + $0x100] ss:$16 sps:$4 sm:$0xff]   ;;  %v9491_v23 = vld [vmem:[#allocation8 + $0xec] ss:$16 sps:$4 sm:$0xff]  }
 0x33b   :  { %5897 = vmatpush2.bf16.msra.mxu1 %v9396_v26  ;;  %5855 = vmatprep.subr.bf16.mxu0 %v9401_v24  ;;  %v9447_v26 = vld [vmem:[#allocation8 + $0xa0] ss:$16 sps:$4 sm:$0xff]   ;;  %v9452_v24 = vld [vmem:[#allocation8 + $0x84] ss:$16 sps:$4 sm:$0xff]  }
 0x33c   :  { %5898 = vmatprep.subr.bf16.mxu1 %v9404_v43  ;;  %v9450_v43 = vld [vmem:[#allocation8 + $0x80] ss:$16 sps:$4 sm:$0xff]  }
 0x33e   :  { %5856 = vmatpush2.bf16.msra.mxu0 %v9399_v27  ;;  %v9542_v27 = vld [vmem:[#allocation8 + $0x2c4] ss:$16 sps:$4 sm:$0xff]  }
 0x33f   :  { %5899 = vmatpush2.bf16.msra.mxu1 %v9402_v60  ;;  %5857 = vmatprep.subr.bf16.mxu0 %v9407_v39  ;;  %v9545_v60 = vld [vmem:[#allocation8 + $0x2a4] ss:$16 sps:$4 sm:$0xff]  }
 0x340   :  { %5900 = vmatprep.subr.bf16.mxu1 %v9410_v56  ;;  %v9458_v39 = vld [vmem:[#allocation8 + $0x44] ss:$16 sps:$4 sm:$0xff]   ;;  %v9543_v56 = vld [vmem:[#allocation8 + $0x2a0] ss:$16 sps:$4 sm:$0xff]  }
 0x342   :  { %5858 = vmatpush2.bf16.msra.mxu0 %v9405_v50  ;;  %v9461_v50 = vld [vmem:[#allocation8 + $0x24] ss:$16 sps:$4 sm:$0xff]  }
 0x343   :  { %5901 = vmatpush2.bf16.msra.mxu1 %v9408_v61  ;;  %5859 = vmatprep.subr.bf16.mxu0 %v9413_v40  ;;  %v9546_v61 = vld [vmem:[#allocation8 + $0x280] ss:$16 sps:$4 sm:$0xff]  }
 0x344   :  { %5902 = vmatprep.subr.bf16.mxu1 %v9416_v34  ;;  %v9459_v40 = vld [vmem:[#allocation8 + $0x20] ss:$16 sps:$4 sm:$0xff]   ;;  %v9551_v34 = vld [vmem:[#allocation8 + $0x264] ss:$16 sps:$4 sm:$0xff]  }
 0x346   :  { %5860 = vmatpush2.bf16.msra.mxu0 %v9411_v15  ;;  %v9554_v15 = vld [vmem:[#allocation8 + $0x244] ss:$16 sps:$4 sm:$0xff]  }
 0x347   :  { %5903 = vmatpush2.bf16.msra.mxu1 %v9414_v11  ;;  %5861 = vmatprep.subr.bf16.mxu0 %v9419_v37  ;;  %v9467_v11 = vld [vmem:[#allocation8 + $0x1e4] ss:$16 sps:$4 sm:$0xff]   ;;  %v9552_v37 = vld [vmem:[#allocation8 + $0x240] ss:$16 sps:$4 sm:$0xff]  }
 0x348   :  { %5904 = vmatprep.subr.bf16.mxu1 %v9422_v10  ;;  %v9465_v10 = vld [vmem:[#allocation8 + $0x1e0] ss:$16 sps:$4 sm:$0xff]  }
 0x34a   :  { %5862 = vmatpush2.bf16.msra.mxu0 %v9417_v17  ;;  %v9468_v17 = vld [vmem:[#allocation8 + $0x1c0] ss:$16 sps:$4 sm:$0xff]  }
 0x34b   :  { %5905 = vmatpush2.bf16.msra.mxu1 %v9420_v52  ;;  %5863 = vmatprep.subr.bf16.mxu0 %v9425_v54  ;;  %v9560_v52 = vld [vmem:[#allocation8 + $0x204] ss:$16 sps:$4 sm:$0xff]  }
 0x34c   :  { %5906 = vmatprep.subr.bf16.mxu1 %v9428_v21  ;;  %v9473_v54 = vld [vmem:[#allocation8 + $0x1a4] ss:$16 sps:$4 sm:$0xff]   ;;  %v9558_v21 = vld [vmem:[#allocation8 + $0x200] ss:$16 sps:$4 sm:$0xff]  }
 0x34e   :  { %5864 = vmatpush2.bf16.msra.mxu0 %v9423_v1  ;;  %v9561_v1 = vld [vmem:[#allocation8 + $0x3e0] ss:$16 sps:$4 sm:$0xff]  }
 0x34f   :  { %5907 = vmatpush2.bf16.msra.mxu1 %v9426_v45  ;;  %5865 = vmatprep.subr.bf16.mxu0 %v9431_v29  ;;  %v9474_v45 = vld [vmem:[#allocation8 + $0x180] ss:$16 sps:$4 sm:$0xff]   ;;  %v9566_v29 = vld [vmem:[#allocation8 + $0x3c4] ss:$16 sps:$4 sm:$0xff]  }
 0x350   :  { %5908 = vmatprep.subr.bf16.mxu1 %v9434_v53  ;;  %v9479_v53 = vld [vmem:[#allocation8 + $0x164] ss:$16 sps:$4 sm:$0xff]  }
 0x352   :  { %5866 = vmatpush2.bf16.msra.mxu0 %v9429_v30  ;;  %v9482_v30 = vld [vmem:[#allocation8 + $0x144] ss:$16 sps:$4 sm:$0xff]  }
 0x353   :  { %5909 = vmatpush2.bf16.msra.mxu1 %v9432_v19  ;;  %5867 = vmatprep.subr.bf16.mxu0 %v9437_v55  ;;  %v9567_v19 = vld [vmem:[#allocation8 + $0x3a0] ss:$16 sps:$4 sm:$0xff]   ;;  %v9572_v55 = vld [vmem:[#allocation8 + $0x384] ss:$16 sps:$4 sm:$0xff]  }
 0x354   :  { %5910 = vmatprep.subr.bf16.mxu1 %v9440_v8  ;;  %v9485_v8 = vld [vmem:[#allocation8 + $0x124] ss:$16 sps:$4 sm:$0xff]  }
 0x356   :  { %5868 = vmatpush2.bf16.msra.mxu0 %v9435_v48  ;;  %v9575_v48 = vld [vmem:[#allocation8 + $0x364] ss:$16 sps:$4 sm:$0xff]  }
 0x357   :  { %5911 = vmatpush2.bf16.msra.mxu1 %v9438_v49  ;;  %6725 = vmatprep.subr.bf16.mxu0 %v9443_v22  ;;  %v9488_v49 = vld [vmem:[#allocation8 + $0x104] ss:$16 sps:$4 sm:$0xff]   ;;  %v9573_v22 = vld [vmem:[#allocation8 + $0x360] ss:$16 sps:$4 sm:$0xff]  }
 0x358   :  { %6768 = vmatprep.subr.bf16.mxu1 %v9539_v18  ;;  %v9500_v18 = vld [vmem:[#allocation8 + $0x8c] ss:$16 sps:$4 sm:$0xff]  }
 0x359   :  { %5870 = vmatmul.mubr.bf16.vlgmr.msra.gmra.mxu0 %v10084_v57  ;;  %v9540_v57 = vld [vmem:[#allocation8 + $0x2c0] ss:$16 sps:$4 sm:$0xff]  }
 0x35a   :  { %5913 = vmatmul.mubr.bf16.vlgmr.msra.gmra.mxu1 %v10088_v58  ;;  %6726 = vmatpush1.bf16.msra.mxu0 %v9441_v32  ;;  %v9453_v58 = vld [vmem:[#allocation8 + $0x60] ss:$16 sps:$4 sm:$0xff]   ;;  %v9489_v32 = vld [vmem:[#allocation8 + $0xe8] ss:$16 sps:$4 sm:$0xff]  }
 0x35b   :  { %6757 = vmatprep.mubr.bf16.mxu0 %v10196_v7  ;;  %6727 = vmatprep.subr.bf16.mxu0 %v9446_v3  ;;  %v9494_v3 = vld [vmem:[#allocation8 + $0xcc] ss:$16 sps:$4 sm:$0xff]  }
 0x35c   :  { %6769 = vmatpush1.bf16.msra.mxu1 %v9537_v13  ;;  %v9581_v13 = vld [vmem:[#allocation8 + $0x324] ss:$16 sps:$4 sm:$0xff]  }
 0x35d   :  { %6770 = vmatprep.subr.bf16.mxu1 %v9542_v27  ;;  %v9498_v27 = vld [vmem:[#allocation8 + $0x88] ss:$16 sps:$4 sm:$0xff]  }
 0x35e   :  { %6728 = vmatpush1.bf16.msra.mxu0 %v9444_v0  ;;  %v9492_v0 = vld [vmem:[#allocation8 + $0xc8] ss:$16 sps:$4 sm:$0xff]  }
 0x35f   :  { %6729 = vmatprep.subr.bf16.mxu0 %v9449_v41  ;;  %v9578_v41 = vld [vmem:[#allocation8 + $0x344] ss:$16 sps:$4 sm:$0xff]  }
 0x360   :  { %6771 = vmatpush1.bf16.msra.mxu1 %v9540_v57  ;;  %v9584_v57 = vld [vmem:[#allocation8 + $0x304] ss:$16 sps:$4 sm:$0xff]  }
 0x361   :  { %6772 = vmatprep.subr.bf16.mxu1 %v9545_v60  ;;  %v9501_v60 = vld [vmem:[#allocation8 + $0x68] ss:$16 sps:$4 sm:$0xff]  }
 0x362   :  { %6730 = vmatpush1.bf16.msra.mxu0 %v9447_v26  ;;  %v9497_v26 = vld [vmem:[#allocation8 + $0xac] ss:$16 sps:$4 sm:$0xff]  }
 0x363   :  { %6731 = vmatprep.subr.bf16.mxu0 %v9452_v24  ;;  %v9576_v24 = vld [vmem:[#allocation8 + $0x340] ss:$16 sps:$4 sm:$0xff]  }
 0x364   :  { %6773 = vmatpush1.bf16.msra.mxu1 %v9543_v56  ;;  %v9506_v56 = vld [vmem:[#allocation8 + $0x4c] ss:$16 sps:$4 sm:$0xff]  }
 0x365   :  { %6774 = vmatprep.subr.bf16.mxu1 %v9548_v47  ;;  %v9509_v47 = vld [vmem:[#allocation8 + $0x2c] ss:$16 sps:$4 sm:$0xff]  }
 0x366   :  { %6732 = vmatpush1.bf16.msra.mxu0 %v9450_v43  ;;  %v9495_v43 = vld [vmem:[#allocation8 + $0xa8] ss:$16 sps:$4 sm:$0xff]  }
 0x367   :  { %6733 = vmatprep.subr.bf16.mxu0 %v9455_v4  ;;  %v9579_v4 = vld [vmem:[#allocation8 + $0x320] ss:$16 sps:$4 sm:$0xff]  }
 0x368   :  { %6775 = vmatpush1.bf16.msra.mxu1 %v9546_v61  ;;  %v9512_v61 = vld [vmem:[#allocation8 + $0xc] ss:$16 sps:$4 sm:$0xff]  }
 0x369   :  { %6776 = vmatprep.subr.bf16.mxu1 %v9551_v34  ;;  %v9515_v34 = vld [vmem:[#allocation8 + $0x1ec] ss:$16 sps:$4 sm:$0xff]  }
 0x36a   :  { %6734 = vmatpush1.bf16.msra.mxu0 %v9453_v58  ;;  %v9582_v58 = vld [vmem:[#allocation8 + $0x300] ss:$16 sps:$4 sm:$0xff]  }
 0x36b   :  { %6735 = vmatprep.subr.bf16.mxu0 %v9458_v39  ;;  %v9587_v39 = vld [vmem:[#allocation8 + $0x2ec] ss:$16 sps:$4 sm:$0xff]  }
 0x36c   :  { %6777 = vmatpush1.bf16.msra.mxu1 %v9549_v59  ;;  %v9518_v59 = vld [vmem:[#allocation8 + $0x1cc] ss:$16 sps:$4 sm:$0xff]  }
 0x36d   :  { %6778 = vmatprep.subr.bf16.mxu1 %v9554_v15  ;;  %v9521_v15 = vld [vmem:[#allocation8 + $0x1ac] ss:$16 sps:$4 sm:$0xff]  }
 0x36e   :  { %6736 = vmatpush1.bf16.msra.mxu0 %v9456_v25  ;;  %v9504_v25 = vld [vmem:[#allocation8 + $0x48] ss:$16 sps:$4 sm:$0xff]  }
 0x36f   :  { %6737 = vmatprep.subr.bf16.mxu0 %v9461_v50  ;;  %v9507_v50 = vld [vmem:[#allocation8 + $0x28] ss:$16 sps:$4 sm:$0xff]  }
 0x370   :  { %6779 = vmatpush1.bf16.msra.mxu1 %v9552_v37  ;;  %v9524_v37 = vld [vmem:[#allocation8 + $0x18c] ss:$16 sps:$4 sm:$0xff]  }
 0x371   :  { %6780 = vmatprep.subr.bf16.mxu1 %v9557_v12  ;;  %v9527_v12 = vld [vmem:[#allocation8 + $0x16c] ss:$16 sps:$4 sm:$0xff]  }
 0x372   :  { %6738 = vmatpush1.bf16.msra.mxu0 %v9459_v40  ;;  %v9510_v40 = vld [vmem:[#allocation8 + $0x8] ss:$16 sps:$4 sm:$0xff]  }
 0x373   :  { %6739 = vmatprep.subr.bf16.mxu0 %v9464_v28  ;;  %v9513_v28 = vld [vmem:[#allocation8 + $0x1e8] ss:$16 sps:$4 sm:$0xff]  }
 0x374   :  { %6781 = vmatpush1.bf16.msra.mxu1 %v9555_v38  ;;  %v9530_v38 = vld [vmem:[#allocation8 + $0x14c] ss:$16 sps:$4 sm:$0xff]  }
 0x375   :  { %6782 = vmatprep.subr.bf16.mxu1 %v9560_v52  ;;  %v9533_v52 = vld [vmem:[#allocation8 + $0x12c] ss:$16 sps:$4 sm:$0xff]  }
 0x376   :  { %6740 = vmatpush1.bf16.msra.mxu0 %v9462_v14  ;;  %v9516_v14 = vld [vmem:[#allocation8 + $0x1c8] ss:$16 sps:$4 sm:$0xff]  }
 0x377   :  { %6741 = vmatprep.subr.bf16.mxu0 %v9467_v11  ;;  %v9519_v11 = vld [vmem:[#allocation8 + $0x1a8] ss:$16 sps:$4 sm:$0xff]  }
 0x378   :  { %6783 = vmatpush1.bf16.msra.mxu1 %v9558_v21  ;;  %v9536_v21 = vld [vmem:[#allocation8 + $0x10c] ss:$16 sps:$4 sm:$0xff]  }
 0x379   :  { %6784 = vmatprep.subr.bf16.mxu1 %v9563_v46  ;;  %v5441_v46 = vpop.f32.mrf.mxu0 }
 0x37a   :  { %6742 = vmatpush2.bf16.msra.mxu0 %v9465_v10  ;;  %v9522_v10 = vld [vmem:[#allocation8 + $0x188] ss:$16 sps:$4 sm:$0xff]  }
 0x37b   :  { %6743 = vmatprep.subr.bf16.mxu0 %v9470_v16  ;;  %v9525_v16 = vld [vmem:[#allocation8 + $0x168] ss:$16 sps:$4 sm:$0xff]  }
 0x37c   :  { %6785 = vmatpush2.bf16.msra.mxu1 %v9561_v1  ;;  %v5443_v1 = vpop.f32.mrf.mxu0 }
 0x37d   :  { %6786 = vmatprep.subr.bf16.mxu1 %v9566_v29 }
 0x37e   :  { %6744 = vmatpush2.bf16.msra.mxu0 %v9468_v17  ;;  %v9528_v17 = vld [vmem:[#allocation8 + $0x148] ss:$16 sps:$4 sm:$0xff]   ;;  %v5445_v29 = vpop.f32.mrf.mxu0 }
 0x37f   :  { %6745 = vmatprep.subr.bf16.mxu0 %v9473_v54  ;;  %v9531_v54 = vld [vmem:[#allocation8 + $0x128] ss:$16 sps:$4 sm:$0xff]  }
 0x380   :  { %6787 = vmatpush2.bf16.msra.mxu1 %v9564_v33  ;;  %v5447_v33 = vpop.f32.mrf.mxu0 }
 0x381   :  { %6788 = vmatprep.subr.bf16.mxu1 %v9569_v2 }
 0x382   :  { %6746 = vmatpush2.bf16.msra.mxu0 %v9471_v44  ;;  %v9534_v44 = vld [vmem:[#allocation8 + $0x108] ss:$16 sps:$4 sm:$0xff]   ;;  %v5527_v2 = vpop.f32.mrf.mxu0 }
 0x383   :  { %6747 = vmatprep.subr.bf16.mxu0 %v9476_v31  ;;  %v5484_v31 = vpop.f32.mrf.mxu1 }
 0x384   :  { %6789 = vmatpush2.bf16.msra.mxu1 %v9567_v19  ;;  %v5529_v19 = vpop.f32.mrf.mxu0 }
 0x385   :  { %6790 = vmatprep.subr.bf16.mxu1 %v9572_v55 }
 0x386   :  { %6748 = vmatpush2.bf16.msra.mxu0 %v9474_v45  ;;  %v5486_v45 = vpop.f32.mrf.mxu1  ;;  %v5531_v55 = vpop.f32.mrf.mxu0 }
 0x387   :  { %6749 = vmatprep.subr.bf16.mxu0 %v9479_v53 }
 0x388   :  { %6791 = vmatpush2.bf16.msra.mxu1 %v9570_v9  ;;  %v5488_v53 = vpop.f32.mrf.mxu1  ;;  %v5533_v9 = vpop.f32.mrf.mxu0 }
 0x389   :  { %6792 = vmatprep.subr.bf16.mxu1 %v9575_v48 }
 0x38a   :  { %6750 = vmatpush2.bf16.msra.mxu0 %v9477_v35  ;;  %v5490_v35 = vpop.f32.mrf.mxu1  ;;  %v5613_v48 = vpop.f32.mrf.mxu0 }
 0x38b   :  { %6751 = vmatprep.subr.bf16.mxu0 %v9482_v30 }
 0x38c   :  { %6793 = vmatpush2.bf16.msra.mxu1 %v9573_v22  ;;  %v5570_v30 = vpop.f32.mrf.mxu1  ;;  %v5615_v22 = vpop.f32.mrf.mxu0 }
 0x38d   :  { %6794 = vmatprep.subr.bf16.mxu1 %v9578_v41 }
 0x38e   :  { %6752 = vmatpush2.bf16.msra.mxu0 %v9480_v36  ;;  %v5572_v36 = vpop.f32.mrf.mxu1 }
 0x38f   :  { %6753 = vmatprep.subr.bf16.mxu0 %v9485_v8 }
 0x390   :  { %6795 = vmatpush2.bf16.msra.mxu1 %v9576_v24  ;;  %v5574_v8 = vpop.f32.mrf.mxu1 }
 0x391   :  { %6796 = vmatprep.subr.bf16.mxu1 %v9581_v13 }
 0x392   :  { %6754 = vmatpush2.bf16.msra.mxu0 %v9483_v6  ;;  %v5576_v6 = vpop.f32.mrf.mxu1 }
 0x393   :  { %6755 = vmatprep.subr.bf16.mxu0 %v9488_v49 }
 0x394   :  { %6797 = vmatpush2.bf16.msra.mxu1 %v9579_v4  ;;  %v5656_v49 = vpop.f32.mrf.mxu1 }
 0x395   :  { %6798 = vmatprep.subr.bf16.mxu1 %v9584_v57 }
 0x396   :  { %6756 = vmatpush2.bf16.msra.mxu0 %v9486_v62  ;;  %v5658_v62 = vpop.f32.mrf.mxu1 }
 0x397   :  { %6811 = vmatprep.subr.bf16.mxu0 %v9491_v23  ;;  %v925_v23 = vsub.s32 3, %v9999_v63 }
 0x398   :  { %6799 = vmatpush2.bf16.msra.mxu1 %v9582_v58 }
 0x399   :  { %6758 = vmatmul.mubr.bf16.vlgmr.msra.gmra.mxu0 %v10158_v51  ;;  %6854 = vmatprep.subr.bf16.mxu1 %v9587_v39 }
 0x39a   :  { %6812 = vmatpush1.bf16.msra.mxu0 %v9489_v32  ;;  %6843 = vmatprep.mubr.bf16.mxu0 %v10196_v7  ;;  %v9503_v7 = vld [vmem:[#allocation8 + $0x6c] ss:$16 sps:$4 sm:$0xff]   ;;  %v5617_v32 = vpop.f32.mrf.mxu0 }
 0x39b   :  { %6813 = vmatprep.subr.bf16.mxu0 %v9494_v3  ;;  %v5660_v3 = vpop.f32.mrf.mxu1 }
 0x39d   :  { %v5662_v24 = vpop.f32.mrf.mxu1 }
 0x39e   :  { %6814 = vmatpush1.bf16.msra.mxu0 %v9492_v0  ;;  %v926_v0 = vrot.slane %v10169_v42, %v925_v23 }
 0x39f   :  { %6815 = vmatprep.subr.bf16.mxu0 %v9497_v26  ;;  %v5619_v26 = vpop.f32.mrf.mxu0  ;;  %v5742_v13 = vpop.f32.mrf.mxu1 }
 0x3a2   :  { %6816 = vmatpush1.bf16.msra.mxu0 %v9495_v43  ;;  %v5699_v43 = vpop.f32.mrf.mxu0 }
 0x3a3   :  { %6817 = vmatprep.subr.bf16.mxu0 %v9500_v18  ;;  %v5444_v18 = vadd.f32 %v5443_v1, %v926_v0 }
 0x3a4   :  { %v5701_v57 = vpop.f32.mrf.mxu0 }
 0x3a5   :  { %v5487_v58 = vadd.f32 %v5486_v45, %v5444_v18 }
 0x3a6   :  { %6818 = vmatpush1.bf16.msra.mxu0 %v9498_v27 }
 0x3a7   :  { %6819 = vmatprep.subr.bf16.mxu0 %v9503_v7  ;;  %v5744_v7 = vpop.f32.mrf.mxu1 }
 0x3aa   :  { %6820 = vmatpush1.bf16.msra.mxu0 %v9501_v60  ;;  %v5448_v60 = vadd.f32 %v5447_v33, %v926_v0 }
 0x3ab   :  { %6821 = vmatprep.subr.bf16.mxu0 %v9506_v56 }
 0x3ae   :  { %6822 = vmatpush1.bf16.msra.mxu0 %v9504_v25  ;;  %v5530_v25 = vadd.f32 %v5529_v19, %v5487_v58 }
 0x3af   :  { %6823 = vmatprep.subr.bf16.mxu0 %v9509_v47 }
 0x3b2   :  { %6824 = vmatpush1.bf16.msra.mxu0 %v9507_v50  ;;  %v5703_v50 = vpop.f32.mrf.mxu0 }
 0x3b3   :  { %6825 = vmatprep.subr.bf16.mxu0 %v9512_v61  ;;  %v5746_v61 = vpop.f32.mrf.mxu1 }
 0x3b6   :  { %6826 = vmatpush1.bf16.msra.mxu0 %v9510_v40  ;;  %v5491_v40 = vadd.f32 %v5490_v35, %v5448_v60 }
 0x3b7   :  { %6827 = vmatprep.subr.bf16.mxu0 %v9515_v34 }
 0x3ba   :  { %6828 = vmatpush2.bf16.msra.mxu0 %v9513_v28  ;;  %v5534_v28 = vadd.f32 %v5533_v9, %v5491_v40 }
 0x3bb   :  { %6829 = vmatprep.subr.bf16.mxu0 %v9518_v59 }
 0x3be   :  { %6830 = vmatpush2.bf16.msra.mxu0 %v9516_v14  ;;  %v5705_v14 = vpop.f32.mrf.mxu0 }
 0x3bf   :  { %6831 = vmatprep.subr.bf16.mxu0 %v9521_v15  ;;  %v5748_v15 = vpop.f32.mrf.mxu1 }
 0x3c2   :  { %6832 = vmatpush2.bf16.msra.mxu0 %v9519_v11 }
 0x3c3   :  { %6833 = vmatprep.subr.bf16.mxu0 %v9524_v37 }
 0x3c6   :  { %6834 = vmatpush2.bf16.msra.mxu0 %v9522_v10 }
 0x3c7   :  { %6835 = vmatprep.subr.bf16.mxu0 %v9527_v12 }
 0x3ca   :  { %6836 = vmatpush2.bf16.msra.mxu0 %v9525_v16 }
 0x3cb   :  { %6837 = vmatprep.subr.bf16.mxu0 %v9530_v38  ;;  %v5577_v38 = vadd.f32 %v5576_v6, %v5534_v28 }
 0x3ce   :  { %6838 = vmatpush2.bf16.msra.mxu0 %v9528_v17 }
 0x3cf   :  { %6839 = vmatprep.subr.bf16.mxu0 %v9533_v52 }
 0x3d2   :  { %6840 = vmatpush2.bf16.msra.mxu0 %v9531_v54  ;;  %v5620_v54 = vadd.f32 %v5619_v26, %v5577_v38  ;;  %v9639_v38 = vld [vmem:[#allocation11 + $0x60] sm:$0xff]  }
 0x3d3   :  { %6841 = vmatprep.subr.bf16.mxu0 %v9536_v21 }
 0x3d6   :  { %6842 = vmatpush2.bf16.msra.mxu0 %v9534_v44 }
 0x3d9   :  { %6844 = vmatmul.mubr.bf16.vlgmr.msra.gmra.mxu0 %v10158_v51  ;;  %v921_v51 = vsub.s32 2, %v9999_v63  ;;  %v5785_v12 = vpop.f32.mrf.mxu0 }
 0x3da   :  { %v5828_v16 = vpop.f32.mrf.mxu1 }
 0x3db   :  { %v922_v41 = vrot.slane %v10169_v42, %v921_v51  ;;  %v5573_v42 = vadd.f32 %v5572_v36, %v5530_v25  ;;  %v5787_v44 = vpop.f32.mrf.mxu0  ;;  %v9634_v25 = vld [vmem:[#allocation11 + $0x38] sm:$0xff]  }
 0x3dd   :  { %v5442_v4 = vadd.f32 %v5441_v46, %v922_v41  ;;  %v5446_v27 = vadd.f32 %v5445_v29, %v922_v41  ;;  %v5616_v37 = vadd.f32 %v5615_v22, %v5573_v42  ;;  %v5830_v46 = vpop.f32.mrf.mxu1  ;;  %v5663_v29 = vadd.f32 %v5662_v24, %v5620_v54  ;;  %v5789_v33 = vpop.f32.mrf.mxu0  ;;  %v9636_v42 = vld [vmem:[#allocation11 + $0x30] sm:$0xff]   ;;  %v9640_v54 = vld [vmem:[#allocation11 + $0x20] sm:$0xff]  }
 0x3df   :  { %v5485_v39 = vadd.f32 %v5484_v31, %v5442_v4  ;;  %v5489_v56 = vadd.f32 %v5488_v53, %v5446_v27  ;;  %v5659_v52 = vadd.f32 %v5658_v62, %v5616_v37  ;;  %v5832_v35 = vpop.f32.mrf.mxu1  ;;  %v5791_v9 = vpop.f32.mrf.mxu0  ;;  %v9585_v37 = vld [vmem:[#allocation8 + $0x2e8] ss:$16 sps:$4 sm:$0xff]  }
 0x3e1   :  { %v5528_v47 = vadd.f32 %v5527_v2, %v5485_v39  ;;  %v5532_v34 = vadd.f32 %v5531_v55, %v5489_v56  ;;  %v5702_v1 = vadd.f32 %v5701_v57, %v5659_v52  ;;  %v5834_v6 = vpop.f32.mrf.mxu1  ;;  %v9633_v56 = vld [vmem:[#allocation11 + $0x78] sm:$0xff]  }
 0x3e2   :  { %8229 = vmatprep.subr.bf16.mxu0 %v9633_v56  ;;  %v9593_v52 = vld [vmem:[#allocation8 + $0x2ac] ss:$16 sps:$4 sm:$0xff]   ;;  %v9652_v56 = vld [vmem:[#allocation11 + $0xb0] sm:$0xff]  }
 0x3e3   :  { %v5571_v59 = vadd.f32 %v5570_v30, %v5528_v47  ;;  %v5575_v11 = vadd.f32 %v5574_v8, %v5532_v34  ;;  %v5745_v2 = vadd.f32 %v5744_v7, %v5702_v1  ;;  %v5706_v30 = vadd.f32 %v5705_v14, %v5663_v29  ;;  %v9635_v47 = vld [vmem:[#allocation11 + $0x70] sm:$0xff]   ;;  %8230 = vmatpush3.bf16.msra.mxu0 %v9634_v25  ;;  %v9637_v14 = vld [vmem:[#allocation11 + $0x68] sm:$0xff]  }
 0x3e4   :  { %8231 = vmatprep.subr.bf16.mxu0 %v9635_v47  ;;  %v9594_v1 = vld [vmem:[#allocation8 + $0x288] ss:$16 sps:$4 sm:$0xff]   ;;  %v9653_v25 = vld [vmem:[#allocation11 + $0xe8] sm:$0xff]  }
 0x3e5   :  { %v5614_v10 = vadd.f32 %v5613_v48, %v5571_v59  ;;  %v5618_v17 = vadd.f32 %v5617_v32, %v5575_v11  ;;  %v5788_v55 = vadd.f32 %v5787_v44, %v5745_v2  ;;  %v5749_v48 = vadd.f32 %v5748_v15, %v5706_v30  ;;  %v9591_v44 = vld [vmem:[#allocation8 + $0x2a8] ss:$16 sps:$4 sm:$0xff]   ;;  %v9608_v30 = vld [vmem:[#allocation8 + $0x20c] ss:$16 sps:$4 sm:$0xff]  }
 0x3e6   :  { %v9597_v29 = vld [vmem:[#allocation8 + $0x268] ss:$16 sps:$4 sm:$0xff]   ;;  %v9654_v47 = vld [vmem:[#allocation11 + $0xa8] sm:$0xff]  }
 0x3e7   :  { %v5657_v21 = vadd.f32 %v5656_v49, %v5614_v10  ;;  %v5661_v31 = vadd.f32 %v5660_v3, %v5618_v17  ;;  %v5831_v32 = vadd.f32 %v5830_v46, %v5788_v55  ;;  %v5792_v3 = vadd.f32 %v5791_v9, %v5749_v48  ;;  %8232 = vmatpush3.bf16.msra.mxu0 %v9636_v42  ;;  %v9588_v17 = vld [vmem:[#allocation8 + $0x2c8] ss:$16 sps:$4 sm:$0xff]   ;;  %v9596_v46 = vld [vmem:[#allocation8 + $0x28c] ss:$16 sps:$4 sm:$0xff]  }
 0x3e8   :  { %8233 = vmatprep.subr.bf16.mxu0 %v9637_v14  ;;  %v9603_v2 = vld [vmem:[#allocation8 + $0x228] ss:$16 sps:$4 sm:$0xff]   ;;  %v9662_v14 = vld [vmem:[#allocation11 + $0x88] sm:$0xff]  }
 0x3e9   :  { %v5700_v45 = vadd.f32 %v5699_v43, %v5657_v21  ;;  %v5704_v53 = vadd.f32 %v5703_v50, %v5661_v31  ;;  %v9641_v21 = vld [vmem:[#allocation11 + $0x58] sm:$0xff]   ;;  %v9609_v55 = vld [vmem:[#allocation8 + $0x3e8] ss:$16 sps:$4 sm:$0xff]  }
 0x3ea   :  { %v9642_v31 = vld [vmem:[#allocation11 + $0x18] sm:$0xff]   ;;  %v9612_v9 = vld [vmem:[#allocation8 + $0x3c8] ss:$16 sps:$4 sm:$0xff]  }
 0x3eb   :  { %v5743_v19 = vadd.f32 %v5742_v13, %v5700_v45  ;;  %v5747_v36 = vadd.f32 %v5746_v61, %v5704_v53  ;;  %v5835_v13 = vadd.f32 %v5834_v6, %v5792_v3  ;;  %v9599_v45 = vld [vmem:[#allocation8 + $0x26c] ss:$16 sps:$4 sm:$0xff]   ;;  %v9615_v48 = vld [vmem:[#allocation8 + $0x3a8] ss:$16 sps:$4 sm:$0xff]  }
 0x3ec   :  { %v9602_v53 = vld [vmem:[#allocation8 + $0x24c] ss:$16 sps:$4 sm:$0xff]   ;;  %v9659_v42 = vld [vmem:[#allocation11 + $0xd0] sm:$0xff]  }
 0x3ed   :  { %v5786_v8 = vadd.f32 %v5785_v12, %v5743_v19  ;;  %v5790_v22 = vadd.f32 %v5789_v33, %v5747_v36  ;;  %v9590_v12 = vld [vmem:[#allocation8 + $0x2cc] ss:$16 sps:$4 sm:$0xff]   ;;  %v9600_v33 = vld [vmem:[#allocation8 + $0x248] ss:$16 sps:$4 sm:$0xff]  }
 0x3ee   :  { %v9606_v19 = vld [vmem:[#allocation8 + $0x208] ss:$16 sps:$4 sm:$0xff]   ;;  %v9611_v36 = vld [vmem:[#allocation8 + $0x3ec] ss:$16 sps:$4 sm:$0xff]  }
 0x3ef   :  { %v5829_v0 = vadd.f32 %v5828_v16, %v5786_v8  ;;  %v5833_v24 = vadd.f32 %v5832_v35, %v5790_v22  ;;  %v9638_v16 = vld [vmem:[#allocation11 + $0x28] sm:$0xff]  }
 0x3f0   :  { %8234 = vmatpush3.bf16.msra.mxu0 %v9638_v16  ;;  %v9605_v35 = vld [vmem:[#allocation8 + $0x22c] ss:$16 sps:$4 sm:$0xff]  }
 0x3f1   :  { %8235 = vmatprep.subr.bf16.mxu0 %v9639_v38  ;;  %v9614_v8 = vld [vmem:[#allocation8 + $0x3cc] ss:$16 sps:$4 sm:$0xff]  }
 0x3f2   :  { %v9617_v6 = vld [vmem:[#allocation8 + $0x3ac] ss:$16 sps:$4 sm:$0xff]  }
 0x3f3   :  { %v9620_v22 = vld [vmem:[#allocation8 + $0x38c] ss:$16 sps:$4 sm:$0xff]  }
 0x3f4   :  { %8236 = vmatpush3.bf16.msra.mxu0 %v9640_v54  ;;  %v9626_v3 = vld [vmem:[#allocation8 + $0x34c] ss:$16 sps:$4 sm:$0xff]  }
 0x3f5   :  { %8237 = vmatprep.subr.bf16.mxu0 %v9641_v21 }
 0x3f8   :  { %8238 = vmatpush3.bf16.msra.mxu0 %v9642_v31 }
 0x419   :  { %v5871_v49 = vpop.f32.mrf.mxu0 }
 0x41a   :  { %v5914_v62 = vpop.f32.mrf.mxu1  ;;  %v5872_v18 = vadd.f32 %v5871_v49, %v5829_v0  ;;  %v9618_v49 = vld [vmem:[#allocation8 + $0x388] ss:$16 sps:$4 sm:$0xff]  }
 0x41b   :  { %v5873_v41 = vpop.f32.mrf.mxu0  ;;  %v9624_v0 = vld [vmem:[#allocation8 + $0x348] ss:$16 sps:$4 sm:$0xff]  }
 0x41c   :  { %v5916_v26 = vpop.f32.mrf.mxu1  ;;  %v5874_v43 = vadd.f32 %v5873_v41, %v5831_v32  ;;  %v5915_v50 = vadd.f32 %v5914_v62, %v5872_v18  ;;  %v9623_v62 = vld [vmem:[#allocation8 + $0x36c] ss:$16 sps:$4 sm:$0xff]   ;;  %v9621_v32 = vld [vmem:[#allocation8 + $0x368] ss:$16 sps:$4 sm:$0xff]  }
 0x41d   :  { %v5875_v4 = vpop.f32.mrf.mxu0  ;;  %v9629_v41 = vld [vmem:[#allocation8 + $0x32c] ss:$16 sps:$4 sm:$0xff]   ;;  %v9643_v18 = vld [vmem:[#allocation11 + $0x50] sm:$0xff]  }
 0x41e   :  { %v5918_v27 = vpop.f32.mrf.mxu1  ;;  %v5876_v57 = vadd.f32 %v5875_v4, %v5833_v24  ;;  %v5917_v58 = vadd.f32 %v5916_v26, %v5874_v43  ;;  %v5925_v15 = vmax.f32 %v5915_v50, 0.0  ;;  %v9627_v26 = vld [vmem:[#allocation8 + $0x328] ss:$16 sps:$4 sm:$0xff]   ;;  %v9632_v24 = vld [vmem:[#allocation8 + $0x30c] ss:$16 sps:$4 sm:$0xff]   ;;  %8239 = vmatprep.subr.bf16.mxu0 %v9643_v18 }
 0x41f   :  { %v5877_v7 = vpop.f32.mrf.mxu0  ;;  %v9630_v43 = vld [vmem:[#allocation8 + $0x308] ss:$16 sps:$4 sm:$0xff]  }
 0x420   :  { %v5919_v60 = vadd.f32 %v5918_v27, %v5876_v57  ;;  %v5878_v39 = vadd.f32 %v5877_v7, %v5835_v13  ;;  %v5920_v61 = vpop.f32.mrf.mxu1  ;;  %v5926_v28 = vmax.f32 %v5917_v58, 0.0  ;;  %v9644_v4 = vld [vmem:[#allocation11 + $0x10] sm:$0xff]   ;;  %v9645_v27 = vld [vmem:[#allocation11 + $0x48] sm:$0xff]   ;;  %v9647_v57 = vld [vmem:[#allocation11 + $0x40] sm:$0xff]  }
 0x421   :  { %8240 = vmatpush3.bf16.msra.mxu0 %v9644_v4  ;;  %v9646_v13 = vld [vmem:[#allocation11 + $0x8] sm:$0xff]   ;;  %v9648_v7 = vld [vmem:[#allocation11] sm:$0xff]   ;;  %v9649_v58 = vld [vmem:[#allocation11 + $0xf8] sm:$0xff]  }
 0x422   :  { %v5921_v40 = vadd.f32 %v5920_v61, %v5878_v39  ;;  %v5929_v34 = vmax.f32 %v5919_v60, 0.0  ;;  %8241 = vmatprep.subr.bf16.mxu0 %v9645_v27  ;;  %v9650_v60 = vld [vmem:[#allocation11 + $0xb8] sm:$0xff]   ;;  %v9651_v39 = vld [vmem:[#allocation11 + $0xf0] sm:$0xff]   ;;  %v9655_v50 = vld [vmem:[#allocation11 + $0xe0] sm:$0xff]  }
 0x423   :  { %v9656_v61 = vld [vmem:[#allocation11 + $0xa0] sm:$0xff]  }
 0x424   :  { %v5930_v59 = vmax.f32 %v5921_v40, 0.0  ;;  %v10212_v10 = vpack.c.bf16 %v5929_v34, %v5925_v15  ;;  %v9657_v40 = vld [vmem:[#allocation11 + $0xd8] sm:$0xff]   ;;  %v9663_v15 = vld [vmem:[#allocation11 + $0xc0] sm:$0xff]  }
 0x425   :  { %8242 = vmatpush3.bf16.msra.mxu0 %v9646_v13  ;;  %v9658_v34 = vld [vmem:[#allocation11 + $0x98] sm:$0xff]  }
 0x426   :  { %v5934_v11 = vpack.c.bf16 %v5930_v59, %v5926_v28  ;;  %8243 = vmatprep.subr.bf16.mxu0 %v9647_v57  ;;  %v9660_v28 = vld [vmem:[#allocation11 + $0x90] sm:$0xff]   ;;  %v9661_v59 = vld [vmem:[#allocation11 + $0xc8] sm:$0xff]  }
 0x428   :  { %6800 = vmatprep.mubr.bf16.mxu1 %v5934_v11 }
 0x429   :  { %6801 = vmatmul.mubr.bf16.vlgmr.msra.gmra.mxu1 %v10212_v10  ;;  %8244 = vmatpush3.bf16.msra.mxu0 %v9648_v7 }
 0x42a   :  { %6855 = vmatpush1.bf16.msra.mxu1 %v9585_v37  ;;  %6886 = vmatprep.mubr.bf16.mxu1 %v5934_v11  ;;  %v9664_v11 = vld [vmem:[#allocation11 + $0x80] sm:$0xff]  }
 0x42b   :  { %6856 = vmatprep.subr.bf16.mxu1 %v9590_v12  ;;  %v6063_v12 = vld [vmem:[#allocation10] sm:$0xf] }
 0x42c   :  { %v6072_v38 = vrot.slane %v6063_v12, %v917_v20 }
 0x42e   :  { %6857 = vmatpush1.bf16.msra.mxu1 %v9588_v17  ;;  %v6068_v17 = vrot.slane %v6063_v12, %v913_v5 }
 0x42f   :  { %6858 = vmatprep.subr.bf16.mxu1 %v9593_v52 }
 0x432   :  { %6859 = vmatpush1.bf16.msra.mxu1 %v9591_v44 }
 0x433   :  { %6860 = vmatprep.subr.bf16.mxu1 %v9596_v46 }
 0x436   :  { %6861 = vmatpush1.bf16.msra.mxu1 %v9594_v1 }
 0x437   :  { %6862 = vmatprep.subr.bf16.mxu1 %v9599_v45 }
 0x43a   :  { %6863 = vmatpush1.bf16.msra.mxu1 %v9597_v29 }
 0x43b   :  { %6864 = vmatprep.subr.bf16.mxu1 %v9602_v53 }
 0x43e   :  { %6865 = vmatpush1.bf16.msra.mxu1 %v9600_v33 }
 0x43f   :  { %6866 = vmatprep.subr.bf16.mxu1 %v9605_v35 }
 0x442   :  { %6867 = vmatpush1.bf16.msra.mxu1 %v9603_v2 }
 0x443   :  { %6868 = vmatprep.subr.bf16.mxu1 %v9608_v30 }
 0x446   :  { %6869 = vmatpush1.bf16.msra.mxu1 %v9606_v19 }
 0x447   :  { %6870 = vmatprep.subr.bf16.mxu1 %v9611_v36 }
 0x44a   :  { %6871 = vmatpush2.bf16.msra.mxu1 %v9609_v55 }
 0x44b   :  { %6872 = vmatprep.subr.bf16.mxu1 %v9614_v8 }
 0x44e   :  { %6873 = vmatpush2.bf16.msra.mxu1 %v9612_v9 }
 0x44f   :  { %6874 = vmatprep.subr.bf16.mxu1 %v9617_v6 }
 0x452   :  { %6875 = vmatpush2.bf16.msra.mxu1 %v9615_v48  ;;  %v6080_v48 = vrot.slane %v6063_v12, %v925_v23 }
 0x453   :  { %6876 = vmatprep.subr.bf16.mxu1 %v9620_v22  ;;  %v6076_v22 = vrot.slane %v6063_v12, %v921_v51 }
 0x456   :  { %6877 = vmatpush2.bf16.msra.mxu1 %v9618_v49 }
 0x457   :  { %6878 = vmatprep.subr.bf16.mxu1 %v9623_v62 }
 0x459   :  { %v6759_v37 = vpop.f32.mrf.mxu0 }
 0x45a   :  { %6879 = vmatpush2.bf16.msra.mxu1 %v9621_v32  ;;  %v6760_v31 = vadd.f32 %v6759_v37, %v6068_v17 }
 0x45b   :  { %6880 = vmatprep.subr.bf16.mxu1 %v9626_v3 }
 0x45e   :  { %6881 = vmatpush2.bf16.msra.mxu1 %v9624_v0 }
 0x45f   :  { %6882 = vmatprep.subr.bf16.mxu1 %v9629_v41 }
 0x462   :  { %6883 = vmatpush2.bf16.msra.mxu1 %v9627_v26 }
 0x463   :  { %6884 = vmatprep.subr.bf16.mxu1 %v9632_v24 }
 0x466   :  { %6885 = vmatpush2.bf16.msra.mxu1 %v9630_v43 }
 0x467   :  { %8251 = vmatprep.subr.bf16.mxu1 %v9649_v58 }
 0x469   :  { %6887 = vmatmul.mubr.bf16.vlgmr.msra.gmra.mxu1 %v10212_v10  ;;  %v6761_v10 = vpop.f32.mrf.mxu0 }
 0x46a   :  { %8252 = vmatpush3.bf16.msra.mxu1 %v9650_v60  ;;  %v6762_v44 = vadd.f32 %v6761_v10, %v6072_v38 }
 0x46b   :  { %8253 = vmatprep.subr.bf16.mxu1 %v9651_v39  ;;  %v6763_v16 = vpop.f32.mrf.mxu0 }
 0x46c   :  { %v6764_v46 = vadd.f32 %v6763_v16, %v6068_v17 }
 0x46d   :  { %v6765_v54 = vpop.f32.mrf.mxu0 }
 0x46e   :  { %8254 = vmatpush3.bf16.msra.mxu1 %v9652_v56  ;;  %v6766_v45 = vadd.f32 %v6765_v54, %v6072_v38 }
 0x46f   :  { %8255 = vmatprep.subr.bf16.mxu1 %v9653_v25 }
 0x472   :  { %8256 = vmatpush3.bf16.msra.mxu1 %v9654_v47  ;;  %v8196_v47 = vld [vmem:[#allocation13] ss:$0 sm:$0xff] }
 0x473   :  { %8257 = vmatprep.subr.bf16.mxu1 %v9655_v50 }
 0x476   :  { %8258 = vmatpush3.bf16.msra.mxu1 %v9656_v61 }
 0x477   :  { %8259 = vmatprep.subr.bf16.mxu1 %v9657_v40 }
 0x47a   :  { %8260 = vmatpush3.bf16.msra.mxu1 %v9658_v34 }
 0x47b   :  { %8261 = vmatprep.subr.bf16.mxu1 %v9659_v42 }
 0x47e   :  { %8262 = vmatpush3.bf16.msra.mxu1 %v9660_v28 }
 0x47f   :  { %8263 = vmatprep.subr.bf16.mxu1 %v9661_v59 }
 0x482   :  { %8264 = vmatpush3.bf16.msra.mxu1 %v9662_v14 }
 0x483   :  { %8265 = vmatprep.subr.bf16.mxu1 %v9663_v15 }
 0x486   :  { %8266 = vmatpush3.bf16.msra.mxu1 %v9664_v11 }
 0x499   :  { %v6845_v5 = vpop.f32.mrf.mxu0 }
 0x49a   :  { %v6846_v41 = vadd.f32 %v6845_v5, %v6076_v22 }
 0x49b   :  { %v6847_v9 = vpop.f32.mrf.mxu0 }
 0x49c   :  { %v6848_v3 = vadd.f32 %v6847_v9, %v6080_v48 }
 0x49d   :  { %v6849_v6 = vpop.f32.mrf.mxu0 }
 0x49e   :  { %v6850_v0 = vadd.f32 %v6849_v6, %v6076_v22 }
 0x49f   :  { %v6851_v62 = vpop.f32.mrf.mxu0 }
 0x4a0   :  { %v6852_v24 = vadd.f32 %v6851_v62, %v6080_v48 }
 0x4e9   :  { %v6802_v52 = vpop.f32.mrf.mxu1 }
 0x4ea   :  { %v6803_v33 = vadd.f32 %v6802_v52, %v6760_v31 }
 0x4eb   :  { %v6804_v21 = vpop.f32.mrf.mxu1 }
 0x4ec   :  { %v6805_v29 = vadd.f32 %v6804_v21, %v6762_v44  ;;  %v6897_v20 = vmax.f32 %v6803_v33, 0.0 }
 0x4ed   :  { %v6806_v1 = vpop.f32.mrf.mxu1 }
 0x4ee   :  { %v6807_v53 = vadd.f32 %v6806_v1, %v6764_v46  ;;  %v6898_v19 = vmax.f32 %v6805_v29, 0.0 }
 0x4ef   :  { %v6808_v35 = vpop.f32.mrf.mxu1 }
 0x4f0   :  { %v6809_v2 = vadd.f32 %v6808_v35, %v6766_v45  ;;  %v6901_v30 = vmax.f32 %v6807_v53, 0.0 }
 0x4f2   :  { %v6902_v36 = vmax.f32 %v6809_v2, 0.0  ;;  %v6905_v8 = vpack.c.bf16 %v6901_v30, %v6897_v20 }
 0x4f4   :  { %v6906_v55 = vpack.c.bf16 %v6902_v36, %v6898_v19 }
 0x4f6   :  { %7204 = vmatprep.mubr.bf16.mxu0 %v6906_v55 }
 0x4f7   :  { %7205 = vmatmul.mubr.bf16.vlgmr.msra.gmra.mxu0 %v6905_v8 }
 0x529   :  { %v6888_v49 = vpop.f32.mrf.mxu1 }
 0x52a   :  { %v6889_v4 = vadd.f32 %v6888_v49, %v6846_v41 }
 0x52b   :  { %v6890_v32 = vpop.f32.mrf.mxu1 }
 0x52c   :  { %v6891_v43 = vadd.f32 %v6890_v32, %v6848_v3  ;;  %v6899_v23 = vmax.f32 %v6889_v4, 0.0 }
 0x52d   :  { %v6892_v26 = vpop.f32.mrf.mxu1 }
 0x52e   :  { %v6893_v18 = vadd.f32 %v6892_v26, %v6850_v0  ;;  %v6900_v7 = vmax.f32 %v6891_v43, 0.0 }
 0x52f   :  { %v6894_v27 = vpop.f32.mrf.mxu1 }
 0x530   :  { %v6895_v13 = vadd.f32 %v6894_v27, %v6852_v24  ;;  %v6903_v57 = vmax.f32 %v6893_v18, 0.0 }
 0x532   :  { %v6904_v58 = vmax.f32 %v6895_v13, 0.0  ;;  %v6907_v63 = vpack.c.bf16 %v6903_v57, %v6899_v23 }
 0x534   :  { %v6908_v60 = vpack.c.bf16 %v6904_v58, %v6900_v7 }
 0x536   :  { %7245 = vmatprep.mubr.bf16.mxu1 %v6908_v60 }
 0x537   :  { %7246 = vmatmul.mubr.bf16.vlgmr.msra.gmra.mxu1 %v6907_v63 }
 0x5b7   :  { %v8245_v51 = vpop.f32.mrf.mxu0 }
 0x5b9   :  { %v8246_v39 = vpop.f32.mrf.mxu0 }
 0x5ba   :  { %v8247_v25 = vadd.f32 %v8246_v39, %v8245_v51 }
 0x5bb   :  { %v8248_v56 = vpop.f32.mrf.mxu0 }
 0x5bc   :  { %v7207_v34 = vadd.f32 %v8247_v25, %v8196_v47 }
 0x5bd   :  { %v8249_v50 = vpop.f32.mrf.mxu0 }
 0x5be   :  { %v8250_v42 = vadd.f32 %v8249_v50, %v8248_v56 }
 0x5c0   :  { %v7210_v11 = vadd.f32 %v8250_v42, %v8196_v47 }
 0x5f7   :  { %v8267_v61 = vpop.f32.mrf.mxu1 }
 0x5f9   :  { %v8268_v40 = vpop.f32.mrf.mxu1 }
 0x5fa   :  { %v8269_v28 = vadd.f32 %v8268_v40, %v8267_v61 }
 0x5fb   :  { %v8270_v59 = vpop.f32.mrf.mxu1 }
 0x5fc   :  { %v7248_v14 = vadd.f32 %v8269_v28, %v7207_v34 }
 0x5fd   :  { %v8271_v15 = vpop.f32.mrf.mxu1 }
 0x5fe   :  { %7254 = vst [vmem:[#allocation14] sm:$0xff] %v7248_v14  ;;  %v8272_v37 = vadd.f32 %v8271_v15, %v8270_v59 }
 0x600   :  { %v7251_v10 = vadd.f32 %v8272_v37, %v7210_v11 }
 0x602   :  { %7255 = vst [vmem:[#allocation14 + $0x8] sm:$0xff] %v7251_v10 }
 0x603   :  { %9817 = shalt.err (!%p9814_p11)
}
 0x604   :  { %s9850_s1 = smov 128   ;;  %s9851_s16 = smov 8  }
 0x605   :  { %7267 = dma.vmem_to_hbm [thread:$0]  %s7262_s6, 256, %s10234_s7, [#allocation4], %s9850_s1, %s9850_s1, %s9851_s16  }
 0x606   :  { %9834 = dma.done.wait [#allocation4], 256  }
 0x607   :  { %9835 = vsyncadd [#allocation4], 4294967040 }
 0x608   :  { %7271 = vsyncpa [#allocation3], 1 }
 0x609   :  { %7272 = vsyncpa [#allocation6], 1 }
 0x60a   :  { %7273 = vsyncpa [#allocation9], 1 }
 0x60b   :  { %7274 = vsyncpa [#allocation12], 1 }
 0x60c   :  { %7275 = vsyncpa [#allocation4], 1 }

// kernel: tpu_custom_call.1
= control target key start
LH: loop header
LB: loop body
LE: loop exit
PB: predicated region body
PF: predicated region fallthrough
CT: control target
= control target key end

     0   :  { %12 = vsyncpa [#allocation3], 0  ;;  %s10227_s0 = inlined_call_operand.hbm [shape: bf16[16,3072], index: 0, kind: input, shape index: {}]   ;;  %s10228_s1 = inlined_call_operand.hbm [shape: bf16[3072,512], index: 1, kind: input, shape index: {}]   ;;  %s10229_s2 = inlined_call_operand.hbm [shape: f32[1,512], index: 2, kind: input, shape index: {}]   ;;  %s10230_s3 = inlined_call_operand.hbm [shape: bf16[512,512], index: 3, kind: input, shape index: {}]   ;;  %s10231_s4 = inlined_call_operand.hbm [shape: f32[1,512], index: 4, kind: input, shape index: {}]   ;;  %s10232_s5 = inlined_call_operand.hbm [shape: bf16[512,128], index: 5, kind: input, shape index: {}]   ;;  %s10233_s6 = inlined_call_operand.hbm [shape: f32[1,128], index: 6, kind: input, shape index: {}]   ;;  %s10234_s7 = inlined_call_operand.hbm [shape: f32[16,128], index: 7, kind: output, shape index: {}]  }
   0x1   :  { %13 = vsyncpa [#allocation6], 0 }
   0x2   :  { %14 = vsyncpa [#allocation9], 0 }
   0x3   :  { %15 = vsyncpa [#allocation12], 0 }
   0x4   :  { %16 = vsyncpa [#allocation4], 0  ;;  %s9836_s24 = smov [#allocation5]  }
   0x5   :  { %s34_s25 = sshll.u32 %s9836_s24, 4  ;;  %s35_s25 = int_to_ptr.vmem [resolvable:$true] %s34_s25 }
   0x6   :  { %s9674_s26 = scalar_lea.vmem %s35_s25, 98304  ;;  %p9679_p1 = scmp.lt.s32.totalorder %s35_s25, %s35_s25 }
   0x7   :  { %p9675_p0 = scmp.ne.s32.totalorder %s35_s25, %s9674_s26  ;;  %p9680_p2 = scmp.lt.s32.totalorder %s9674_s26, %s9674_s26 }
   0x9   :  { %p9681_p3 = por %p9680_p2, %p9679_p1 }
   0xb   :  { %p9682_p4 = pnand %p9681_p3, %p9675_p0 }
   0xd   :  { %9685 = shalt.err (!%p9682_p4)
}
   0xe   :  { %s9837_s27 = smov 256   ;;  %s9838_s28 = smov 16  }
   0xf   :  { %40 = dma.hbm_to_vmem [thread:$0]  %s10228_s1, 98304, %s35_s25, [#allocation6], %s9837_s27, %s9837_s27, %s9838_s28  }
  0x10   :  { %s9839_s8 = smov [#allocation8]   ;;  %s9840_s10 = smov [#allocation11]  }
  0x11   :  { %s56_s9 = sshll.u32 %s9839_s8, 4  ;;  %s78_s11 = sshll.u32 %s9840_s10, 4  ;;  %s57_s9 = int_to_ptr.vmem [resolvable:$true] %s56_s9  ;;  %s79_s11 = int_to_ptr.vmem [resolvable:$true] %s78_s11 }
  0x12   :  { %s9694_s12 = scalar_lea.vmem %s57_s9, 16384  ;;  %p9699_p6 = scmp.lt.s32.totalorder %s57_s9, %s57_s9 }
  0x13   :  { %p9695_p5 = scmp.ne.s32.totalorder %s57_s9, %s9694_s12  ;;  %p9700_p7 = scmp.lt.s32.totalorder %s9694_s12, %s9694_s12 }
  0x15   :  { %p9701_p8 = por %p9700_p7, %p9699_p6 }
  0x17   :  { %p9702_p9 = pnand %p9701_p8, %p9695_p5 }
  0x19   :  { %9705 = shalt.err (!%p9702_p9)
}
  0x1a   :  { %62 = dma.hbm_to_vmem [thread:$0]  %s10230_s3, 16384, %s57_s9, [#allocation9], %s9837_s27, %s9837_s27, %s9838_s28  }
  0x1b   :  { %s9714_s15 = scalar_lea.vmem %s79_s11, 4096  ;;  %p9719_p11 = scmp.lt.s32.totalorder %s79_s11, %s79_s11 }
  0x1c   :  { %p9715_p10 = scmp.ne.s32.totalorder %s79_s11, %s9714_s15  ;;  %p9720_p12 = scmp.lt.s32.totalorder %s9714_s15, %s9714_s15 }
  0x1e   :  { %p9721_p13 = por %p9720_p12, %p9719_p11 }
  0x20   :  { %p9722_p0 = pnand %p9721_p13, %p9715_p10 }
  0x22   :  { %9725 = shalt.err (!%p9722_p0)
}
  0x23   :  { %s9841_s1 = smov 64   ;;  %s9842_s16 = smov 4  }
  0x24   :  { %84 = dma.hbm_to_vmem [thread:$0]  %s10232_s5, 4096, %s79_s11, [#allocation12], %s9841_s1, %s9841_s1, %s9842_s16  }
  0x25   :  { %s9843_s19 = smov [#allocation2]  }
  0x26   :  { %s22_s20 = sshll.u32 %s9843_s19, 4  ;;  %s23_s20 = int_to_ptr.vmem [resolvable:$true] %s22_s20 }
  0x27   :  { %s9734_s21 = scalar_lea.vmem %s23_s20, 3072  ;;  %p9739_p2 = scmp.lt.s32.totalorder %s23_s20, %s23_s20 }
  0x28   :  { %p9735_p1 = scmp.ne.s32.totalorder %s23_s20, %s9734_s21  ;;  %p9740_p3 = scmp.lt.s32.totalorder %s9734_s21, %s9734_s21 }
  0x2a   :  { %p9741_p4 = por %p9740_p3, %p9739_p2 }
  0x2c   :  { %p9742_p5 = pnand %p9741_p4, %p9735_p1 }
  0x2e   :  { %9745 = shalt.err (!%p9742_p5)
}
  0x2f   :  { %s9844_s3 = smov 1536   ;;  %s9845_s22 = smov 96  }
  0x30   :  { %28 = dma.hbm_to_vmem [thread:$0]  %s10227_s0, 3072, %s23_s20, [#allocation3], %s9844_s3, %s9844_s3, %s9845_s22  }
  0x31   :  { %s9846_s25 = smov [#allocation7]   ;;  %s9847_s27 = smov [#allocation10]  }
  0x32   :  { %s47_s26 = sshll.u32 %s9846_s25, 4  ;;  %s69_s5 = sshll.u32 %s9847_s27, 4  ;;  %s48_s26 = int_to_ptr.vmem [resolvable:$true] %s47_s26  ;;  %s70_s5 = int_to_ptr.vmem [resolvable:$true] %s69_s5 }
  0x33   :  { %s9754_s28 = scalar_lea.vmem %s48_s26, 64  ;;  %p9759_p7 = scmp.lt.s32.totalorder %s48_s26, %s48_s26 }
  0x34   :  { %p9755_p6 = scmp.ne.s32.totalorder %s48_s26, %s9754_s28  ;;  %p9760_p8 = scmp.lt.s32.totalorder %s9754_s28, %s9754_s28 }
  0x36   :  { %p9761_p9 = por %p9760_p8, %p9759_p7 }
  0x38   :  { %p9762_p10 = pnand %p9761_p9, %p9755_p6 }
  0x3a   :  { %9765 = shalt.err (!%p9762_p10)
}
  0x3b   :  { %50 = dma.hbm_to_vmem [thread:$0]  %s10229_s2, 64, %s48_s26, [#allocation6]  }
  0x3c   :  { %s9774_s8 = scalar_lea.vmem %s70_s5, 64  ;;  %p9779_p12 = scmp.lt.s32.totalorder %s70_s5, %s70_s5 }
  0x3d   :  { %p9775_p11 = scmp.ne.s32.totalorder %s70_s5, %s9774_s8  ;;  %p9780_p13 = scmp.lt.s32.totalorder %s9774_s8, %s9774_s8 }
  0x3f   :  { %p9781_p0 = por %p9780_p13, %p9779_p12 }
  0x41   :  { %p9782_p1 = pnand %p9781_p0, %p9775_p11 }
  0x43   :  { %9785 = shalt.err (!%p9782_p1)
}
  0x44   :  { %72 = dma.hbm_to_vmem [thread:$0]  %s10231_s4, 64, %s70_s5, [#allocation9]  }
  0x45   :  { %s9848_s10 = smov [#allocation13]  }
  0x46   :  { %s91_s11 = sshll.u32 %s9848_s10, 4  ;;  %s92_s11 = int_to_ptr.vmem [resolvable:$true] %s91_s11 }
  0x47   :  { %s9794_s12 = scalar_lea.vmem %s92_s11, 16  ;;  %s9798_s13 = scalar_lea.vmem %s92_s11, 32 }
  0x48   :  { %p9795_p2 = scmp.ne.s32.totalorder %s92_s11, %s9794_s12  ;;  %p9799_p3 = scmp.lt.s32.totalorder %s92_s11, %s92_s11 }
  0x49   :  { %p9800_p4 = scmp.lt.s32.totalorder %s9798_s13, %s9794_s12 }
  0x4b   :  { %p9801_p5 = por %p9800_p4, %p9799_p3 }
  0x4d   :  { %p9802_p6 = pnand %p9801_p5, %p9795_p2 }
  0x4f   :  { %9805 = shalt.err (!%p9802_p6)
}
  0x50   :  { %94 = dma.hbm_to_vmem [thread:$0]  %s10233_s6, 16, %s92_s11, [#allocation12]  }
  0x51   :  { %9826 = dma.done.wait [#allocation3], 3072  }
  0x52   :  { %9827 = vsyncadd [#allocation3], 4294964224 }
  0x53   :  { %9828 = dma.done.wait [#allocation6], 98368  }
  0x54   :  { %9829 = vsyncadd [#allocation6], 4294868928 }
  0x55   :  { %9830 = dma.done.wait [#allocation9], 16448  }
  0x56   :  { %9831 = vsyncadd [#allocation9], 4294950848 }
  0x57   :  { %9832 = dma.done.wait [#allocation12], 4112  }
  0x58   :  { %9833 = vsyncadd [#allocation12], 4294963184  ;;  %v8289_v0 = vld [vmem:[#allocation5 + $0xe4] ss:$16 sps:$4 sm:$0xff]   ;;  %v8293_v2 = vld [vmem:[#allocation5 + $0xe0] ss:$16 sps:$4 sm:$0xff]  }
  0x59   :  { %v8291_v1 = vld [vmem:[#allocation5 + $0x2e4] ss:$16 sps:$4 sm:$0xff]   ;;  %4891 = vmatprep.subr.bf16.mxu0 %v8289_v0  ;;  %v8294_v3 = vld [vmem:[#allocation5 + $0x2e0] ss:$16 sps:$4 sm:$0xff]   ;;  %v118_v50 = vld [vmem:[#allocation2 + $0x8] sm:$0xff]  ;;  %s9849_s4 = smov [#allocation14]  }
  0x5a   :  { %4934 = vmatprep.subr.bf16.mxu1 %v8291_v1  ;;  %v8295_v4 = vld [vmem:[#allocation5 + $0xc4] ss:$16 sps:$4 sm:$0xff]   ;;  %4892 = vmatpush1.bf16.msra.mxu0 %v8293_v2  ;;  %v8299_v6 = vld [vmem:[#allocation5 + $0xc0] ss:$16 sps:$4 sm:$0xff]   ;;  %v130_v51 = vld [vmem:[#allocation2 + $0x68] sm:$0xff]  ;;  %s7261_s6 = sshll.u32 %s9849_s4, 4  ;;  %s7262_s6 = int_to_ptr.vmem [resolvable:$true] %s7261_s6 }
  0x5b   :  { %4935 = vmatpush1.bf16.msra.mxu1 %v8294_v3  ;;  %v8297_v5 = vld [vmem:[#allocation5 + $0x2c4] ss:$16 sps:$4 sm:$0xff]   ;;  %4893 = vmatprep.subr.bf16.mxu0 %v8295_v4  ;;  %v8300_v7 = vld [vmem:[#allocation5 + $0x2c0] ss:$16 sps:$4 sm:$0xff]   ;;  %v9915_v55 = vcombine.high %v118_v50, %v130_v51  ;;  %s9806_s15 = scalar_lea.vmem %s7262_s6, 256  ;;  %p9811_p8 = scmp.lt.s32.totalorder %s7262_s6, %s7262_s6 }
  0x5c   :  { %4936 = vmatprep.subr.bf16.mxu1 %v8297_v5  ;;  %v8301_v8 = vld [vmem:[#allocation5 + $0xa4] ss:$16 sps:$4 sm:$0xff]   ;;  %v8305_v10 = vld [vmem:[#allocation5 + $0xa0] ss:$16 sps:$4 sm:$0xff]   ;;  %p9807_p7 = scmp.ne.s32.totalorder %s7262_s6, %s9806_s15  ;;  %p9812_p9 = scmp.lt.s32.totalorder %s9806_s15, %s9806_s15 }
  0x5d   :  { %v8303_v9 = vld [vmem:[#allocation5 + $0x2a4] ss:$16 sps:$4 sm:$0xff]   ;;  %v8306_v11 = vld [vmem:[#allocation5 + $0x2a0] ss:$16 sps:$4 sm:$0xff]   ;;  %4966 = vmatprep.mubr.bf16.mxu1 %v9915_v55 }
  0x5e   :  { %4894 = vmatpush1.bf16.msra.mxu0 %v8299_v6  ;;  %v8307_v12 = vld [vmem:[#allocation5 + $0x84] ss:$16 sps:$4 sm:$0xff]   ;;  %v8311_v14 = vld [vmem:[#allocation5 + $0x80] ss:$16 sps:$4 sm:$0xff]   ;;  %p9813_p10 = por %p9812_p9, %p9811_p8 }
  0x5f   :  { %4937 = vmatpush1.bf16.msra.mxu1 %v8300_v7  ;;  %4895 = vmatprep.subr.bf16.mxu0 %v8301_v8  ;;  %v8309_v13 = vld [vmem:[#allocation5 + $0x284] ss:$16 sps:$4 sm:$0xff]   ;;  %v8312_v15 = vld [vmem:[#allocation5 + $0x280] ss:$16 sps:$4 sm:$0xff]  }
  0x60   :  { %4938 = vmatprep.subr.bf16.mxu1 %v8303_v9  ;;  %v8313_v16 = vld [vmem:[#allocation5 + $0x64] ss:$16 sps:$4 sm:$0xff]   ;;  %v8317_v18 = vld [vmem:[#allocation5 + $0x60] ss:$16 sps:$4 sm:$0xff]   ;;  %v9921_v9 = vcombine.low %v118_v50, %v130_v51  ;;  %p9814_p11 = pnand %p9813_p10, %p9807_p7 }
  0x61   :  { %v8315_v17 = vld [vmem:[#allocation5 + $0x264] ss:$16 sps:$4 sm:$0xff]   ;;  %v8318_v19 = vld [vmem:[#allocation5 + $0x260] ss:$16 sps:$4 sm:$0xff]  }
  0x62   :  { %4896 = vmatpush1.bf16.msra.mxu0 %v8305_v10  ;;  %v8319_v20 = vld [vmem:[#allocation5 + $0x44] ss:$16 sps:$4 sm:$0xff]   ;;  %v8323_v22 = vld [vmem:[#allocation5 + $0x40] ss:$16 sps:$4 sm:$0xff]  }
  0x63   :  { %4939 = vmatpush1.bf16.msra.mxu1 %v8306_v11  ;;  %4897 = vmatprep.subr.bf16.mxu0 %v8307_v12  ;;  %v8321_v21 = vld [vmem:[#allocation5 + $0x244] ss:$16 sps:$4 sm:$0xff]   ;;  %v8324_v23 = vld [vmem:[#allocation5 + $0x240] ss:$16 sps:$4 sm:$0xff]  }
  0x64   :  { %4940 = vmatprep.subr.bf16.mxu1 %v8309_v13  ;;  %v8325_v24 = vld [vmem:[#allocation5 + $0x24] ss:$16 sps:$4 sm:$0xff]   ;;  %v8329_v26 = vld [vmem:[#allocation5 + $0x20] ss:$16 sps:$4 sm:$0xff]  }
  0x65   :  { %v8327_v25 = vld [vmem:[#allocation5 + $0x224] ss:$16 sps:$4 sm:$0xff]   ;;  %v8330_v27 = vld [vmem:[#allocation5 + $0x220] ss:$16 sps:$4 sm:$0xff]  }
  0x66   :  { %4898 = vmatpush1.bf16.msra.mxu0 %v8311_v14  ;;  %v8331_v28 = vld [vmem:[#allocation5 + $0x4] ss:$16 sps:$4 sm:$0xff]   ;;  %v8335_v30 = vld [vmem:[#allocation5] ss:$16 sps:$4 sm:$0xff]  }
  0x67   :  { %4941 = vmatpush1.bf16.msra.mxu1 %v8312_v15  ;;  %4899 = vmatprep.subr.bf16.mxu0 %v8313_v16  ;;  %v8333_v29 = vld [vmem:[#allocation5 + $0x204] ss:$16 sps:$4 sm:$0xff]   ;;  %v8336_v31 = vld [vmem:[#allocation5 + $0x200] ss:$16 sps:$4 sm:$0xff]  }
  0x68   :  { %4942 = vmatprep.subr.bf16.mxu1 %v8315_v17  ;;  %v8337_v32 = vld [vmem:[#allocation5 + $0x1e4] ss:$16 sps:$4 sm:$0xff]   ;;  %v8341_v34 = vld [vmem:[#allocation5 + $0x1e0] ss:$16 sps:$4 sm:$0xff]  }
  0x69   :  { %v8339_v33 = vld [vmem:[#allocation5 + $0x3e4] ss:$16 sps:$4 sm:$0xff]   ;;  %v8342_v35 = vld [vmem:[#allocation5 + $0x3e0] ss:$16 sps:$4 sm:$0xff]  }
  0x6a   :  { %4900 = vmatpush1.bf16.msra.mxu0 %v8317_v18  ;;  %v8343_v36 = vld [vmem:[#allocation5 + $0x1c4] ss:$16 sps:$4 sm:$0xff]   ;;  %v8347_v38 = vld [vmem:[#allocation5 + $0x1c0] ss:$16 sps:$4 sm:$0xff]  }
  0x6b   :  { %4943 = vmatpush1.bf16.msra.mxu1 %v8318_v19  ;;  %4901 = vmatprep.subr.bf16.mxu0 %v8319_v20  ;;  %v8345_v37 = vld [vmem:[#allocation5 + $0x3c4] ss:$16 sps:$4 sm:$0xff]   ;;  %v8348_v39 = vld [vmem:[#allocation5 + $0x3c0] ss:$16 sps:$4 sm:$0xff]  }
  0x6c   :  { %4944 = vmatprep.subr.bf16.mxu1 %v8321_v21  ;;  %v8349_v40 = vld [vmem:[#allocation5 + $0x1a4] ss:$16 sps:$4 sm:$0xff]   ;;  %v8353_v42 = vld [vmem:[#allocation5 + $0x1a0] ss:$16 sps:$4 sm:$0xff]  }
  0x6d   :  { %v8351_v41 = vld [vmem:[#allocation5 + $0x3a4] ss:$16 sps:$4 sm:$0xff]   ;;  %v8354_v43 = vld [vmem:[#allocation5 + $0x3a0] ss:$16 sps:$4 sm:$0xff]  }
  0x6e   :  { %4902 = vmatpush1.bf16.msra.mxu0 %v8323_v22  ;;  %v8355_v44 = vld [vmem:[#allocation5 + $0x184] ss:$16 sps:$4 sm:$0xff]   ;;  %v8359_v46 = vld [vmem:[#allocation5 + $0x180] ss:$16 sps:$4 sm:$0xff]  }
  0x6f   :  { %4945 = vmatpush1.bf16.msra.mxu1 %v8324_v23  ;;  %4903 = vmatprep.subr.bf16.mxu0 %v8325_v24  ;;  %v8357_v45 = vld [vmem:[#allocation5 + $0x384] ss:$16 sps:$4 sm:$0xff]   ;;  %v8360_v47 = vld [vmem:[#allocation5 + $0x380] ss:$16 sps:$4 sm:$0xff]  }
  0x70   :  { %4946 = vmatprep.subr.bf16.mxu1 %v8327_v25  ;;  %v117_v48 = vld [vmem:[#allocation2] sm:$0xff] }
  0x71   :  { %v129_v49 = vld [vmem:[#allocation2 + $0x60] sm:$0xff] }
  0x72   :  { %4904 = vmatpush1.bf16.msra.mxu0 %v8329_v26  ;;  %v8361_v52 = vld [vmem:[#allocation5 + $0x164] ss:$16 sps:$4 sm:$0xff]   ;;  %v9913_v53 = vcombine.high %v117_v48, %v129_v49  ;;  %v8365_v56 = vld [vmem:[#allocation5 + $0x160] ss:$16 sps:$4 sm:$0xff]   ;;  %v9919_v8 = vcombine.low %v117_v48, %v129_v49 }
  0x73   :  { %4947 = vmatpush1.bf16.msra.mxu1 %v8330_v27  ;;  %4905 = vmatprep.subr.bf16.mxu0 %v8331_v28  ;;  %v8363_v54 = vld [vmem:[#allocation5 + $0x364] ss:$16 sps:$4 sm:$0xff]   ;;  %v8366_v57 = vld [vmem:[#allocation5 + $0x360] ss:$16 sps:$4 sm:$0xff]  }
  0x74   :  { %4948 = vmatprep.subr.bf16.mxu1 %v8333_v29  ;;  %4923 = vmatprep.mubr.bf16.mxu0 %v9913_v53  ;;  %v8367_v58 = vld [vmem:[#allocation5 + $0x144] ss:$16 sps:$4 sm:$0xff]   ;;  %v8371_v60 = vld [vmem:[#allocation5 + $0x140] ss:$16 sps:$4 sm:$0xff]  }
  0x75   :  { %v8369_v59 = vld [vmem:[#allocation5 + $0x344] ss:$16 sps:$4 sm:$0xff]   ;;  %v8372_v61 = vld [vmem:[#allocation5 + $0x340] ss:$16 sps:$4 sm:$0xff]  }
  0x76   :  { %4906 = vmatpush1.bf16.msra.mxu0 %v8335_v30  ;;  %v8373_v62 = vld [vmem:[#allocation5 + $0x124] ss:$16 sps:$4 sm:$0xff]   ;;  %v8377_v0 = vld [vmem:[#allocation5 + $0x120] ss:$16 sps:$4 sm:$0xff]  }
  0x77   :  { %4949 = vmatpush1.bf16.msra.mxu1 %v8336_v31  ;;  %4907 = vmatprep.subr.bf16.mxu0 %v8337_v32  ;;  %v8375_v63 = vld [vmem:[#allocation5 + $0x324] ss:$16 sps:$4 sm:$0xff]   ;;  %v8378_v1 = vld [vmem:[#allocation5 + $0x320] ss:$16 sps:$4 sm:$0xff]  }
  0x78   :  { %4950 = vmatprep.subr.bf16.mxu1 %v8339_v33  ;;  %v8379_v2 = vld [vmem:[#allocation5 + $0x104] ss:$16 sps:$4 sm:$0xff]   ;;  %v8383_v4 = vld [vmem:[#allocation5 + $0x100] ss:$16 sps:$4 sm:$0xff]  }
  0x79   :  { %v8381_v3 = vld [vmem:[#allocation5 + $0x304] ss:$16 sps:$4 sm:$0xff]   ;;  %v8384_v5 = vld [vmem:[#allocation5 + $0x300] ss:$16 sps:$4 sm:$0xff]  }
  0x7a   :  { %4908 = vmatpush2.bf16.msra.mxu0 %v8341_v34  ;;  %v8387_v6 = vld [vmem:[#allocation5 + $0x4e4] ss:$16 sps:$4 sm:$0xff]   ;;  %v8385_v10 = vld [vmem:[#allocation5 + $0x4e0] ss:$16 sps:$4 sm:$0xff]  }
  0x7b   :  { %4951 = vmatpush2.bf16.msra.mxu1 %v8342_v35  ;;  %4909 = vmatprep.subr.bf16.mxu0 %v8343_v36  ;;  %v8390_v7 = vld [vmem:[#allocation5 + $0x6e4] ss:$16 sps:$4 sm:$0xff]   ;;  %v8388_v11 = vld [vmem:[#allocation5 + $0x6e0] ss:$16 sps:$4 sm:$0xff]  }
  0x7c   :  { %4952 = vmatprep.subr.bf16.mxu1 %v8345_v37  ;;  %v8393_v12 = vld [vmem:[#allocation5 + $0x4c4] ss:$16 sps:$4 sm:$0xff]   ;;  %v8391_v14 = vld [vmem:[#allocation5 + $0x4c0] ss:$16 sps:$4 sm:$0xff]  }
  0x7d   :  { %v8396_v13 = vld [vmem:[#allocation5 + $0x6c4] ss:$16 sps:$4 sm:$0xff]   ;;  %v8394_v15 = vld [vmem:[#allocation5 + $0x6c0] ss:$16 sps:$4 sm:$0xff]  }
  0x7e   :  { %4910 = vmatpush2.bf16.msra.mxu0 %v8347_v38  ;;  %v8399_v16 = vld [vmem:[#allocation5 + $0x4a4] ss:$16 sps:$4 sm:$0xff]   ;;  %v8397_v18 = vld [vmem:[#allocation5 + $0x4a0] ss:$16 sps:$4 sm:$0xff]   ;;  %v9929_v38 = vld [vmem:[#allocation2 + $0x18] sm:$0xff] }
  0x7f   :  { %4953 = vmatpush2.bf16.msra.mxu1 %v8348_v39  ;;  %4911 = vmatprep.subr.bf16.mxu0 %v8349_v40  ;;  %v8402_v17 = vld [vmem:[#allocation5 + $0x6a4] ss:$16 sps:$4 sm:$0xff]   ;;  %v8400_v19 = vld [vmem:[#allocation5 + $0x6a0] ss:$16 sps:$4 sm:$0xff]   ;;  %v9931_v39 = vld [vmem:[#allocation2 + $0x78] sm:$0xff] }
  0x80   :  { %4954 = vmatprep.subr.bf16.mxu1 %v8351_v41  ;;  %v8405_v20 = vld [vmem:[#allocation5 + $0x484] ss:$16 sps:$4 sm:$0xff]   ;;  %v8403_v22 = vld [vmem:[#allocation5 + $0x480] ss:$16 sps:$4 sm:$0xff]  }
  0x81   :  { %v8408_v21 = vld [vmem:[#allocation5 + $0x684] ss:$16 sps:$4 sm:$0xff]   ;;  %v8406_v23 = vld [vmem:[#allocation5 + $0x680] ss:$16 sps:$4 sm:$0xff]  }
  0x82   :  { %4912 = vmatpush2.bf16.msra.mxu0 %v8353_v42  ;;  %v8411_v24 = vld [vmem:[#allocation5 + $0x464] ss:$16 sps:$4 sm:$0xff]   ;;  %v8409_v26 = vld [vmem:[#allocation5 + $0x460] ss:$16 sps:$4 sm:$0xff]  }
  0x83   :  { %4955 = vmatpush2.bf16.msra.mxu1 %v8354_v43  ;;  %4913 = vmatprep.subr.bf16.mxu0 %v8355_v44  ;;  %v8414_v25 = vld [vmem:[#allocation5 + $0x664] ss:$16 sps:$4 sm:$0xff]   ;;  %v8412_v27 = vld [vmem:[#allocation5 + $0x660] ss:$16 sps:$4 sm:$0xff]   ;;  %v9939_v43 = vcombine.high %v9929_v38, %v9931_v39 }
  0x84   :  { %4956 = vmatprep.subr.bf16.mxu1 %v8357_v45  ;;  %v8417_v28 = vld [vmem:[#allocation5 + $0x444] ss:$16 sps:$4 sm:$0xff]   ;;  %v8415_v30 = vld [vmem:[#allocation5 + $0x440] ss:$16 sps:$4 sm:$0xff]  }
  0x85   :  { %v8420_v29 = vld [vmem:[#allocation5 + $0x644] ss:$16 sps:$4 sm:$0xff]   ;;  %v8418_v31 = vld [vmem:[#allocation5 + $0x640] ss:$16 sps:$4 sm:$0xff]  }
  0x86   :  { %4914 = vmatpush2.bf16.msra.mxu0 %v8359_v46  ;;  %v8423_v32 = vld [vmem:[#allocation5 + $0x424] ss:$16 sps:$4 sm:$0xff]   ;;  %v8421_v34 = vld [vmem:[#allocation5 + $0x420] ss:$16 sps:$4 sm:$0xff]  }
  0x87   :  { %4957 = vmatpush2.bf16.msra.mxu1 %v8360_v47  ;;  %4915 = vmatprep.subr.bf16.mxu0 %v8361_v52  ;;  %v8426_v33 = vld [vmem:[#allocation5 + $0x624] ss:$16 sps:$4 sm:$0xff]   ;;  %v8424_v35 = vld [vmem:[#allocation5 + $0x620] ss:$16 sps:$4 sm:$0xff]  }
  0x88   :  { %4958 = vmatprep.subr.bf16.mxu1 %v8363_v54  ;;  %v9925_v36 = vld [vmem:[#allocation2 + $0x10] sm:$0xff] }
  0x89   :  { %v9927_v37 = vld [vmem:[#allocation2 + $0x70] sm:$0xff] }
  0x8a   :  { %4916 = vmatpush2.bf16.msra.mxu0 %v8365_v56  ;;  %v8429_v40 = vld [vmem:[#allocation5 + $0x404] ss:$16 sps:$4 sm:$0xff]   ;;  %v9935_v41 = vcombine.high %v9925_v36, %v9927_v37  ;;  %v8427_v44 = vld [vmem:[#allocation5 + $0x400] ss:$16 sps:$4 sm:$0xff]  }
  0x8b   :  { %4959 = vmatpush2.bf16.msra.mxu1 %v8366_v57  ;;  %4917 = vmatprep.subr.bf16.mxu0 %v8367_v58  ;;  %v8432_v42 = vld [vmem:[#allocation5 + $0x604] ss:$16 sps:$4 sm:$0xff]   ;;  %v8430_v45 = vld [vmem:[#allocation5 + $0x600] ss:$16 sps:$4 sm:$0xff]  }
  0x8c   :  { %4960 = vmatprep.subr.bf16.mxu1 %v8369_v59  ;;  %v8435_v46 = vld [vmem:[#allocation5 + $0x5e4] ss:$16 sps:$4 sm:$0xff]   ;;  %v8433_v48 = vld [vmem:[#allocation5 + $0x5e0] ss:$16 sps:$4 sm:$0xff]  }
  0x8d   :  { %v8438_v47 = vld [vmem:[#allocation5 + $0x7e4] ss:$16 sps:$4 sm:$0xff]   ;;  %v8436_v49 = vld [vmem:[#allocation5 + $0x7e0] ss:$16 sps:$4 sm:$0xff]  }
  0x8e   :  { %4918 = vmatpush2.bf16.msra.mxu0 %v8371_v60  ;;  %v8441_v50 = vld [vmem:[#allocation5 + $0x5c4] ss:$16 sps:$4 sm:$0xff]   ;;  %v8439_v52 = vld [vmem:[#allocation5 + $0x5c0] ss:$16 sps:$4 sm:$0xff]  }
  0x8f   :  { %4961 = vmatpush2.bf16.msra.mxu1 %v8372_v61  ;;  %4919 = vmatprep.subr.bf16.mxu0 %v8373_v62  ;;  %v8444_v51 = vld [vmem:[#allocation5 + $0x7c4] ss:$16 sps:$4 sm:$0xff]   ;;  %v8442_v54 = vld [vmem:[#allocation5 + $0x7c0] ss:$16 sps:$4 sm:$0xff]  }
  0x90   :  { %4962 = vmatprep.subr.bf16.mxu1 %v8375_v63  ;;  %v8447_v56 = vld [vmem:[#allocation5 + $0x5a4] ss:$16 sps:$4 sm:$0xff]   ;;  %v8445_v58 = vld [vmem:[#allocation5 + $0x5a0] ss:$16 sps:$4 sm:$0xff]  }
  0x91   :  { %v8450_v57 = vld [vmem:[#allocation5 + $0x7a4] ss:$16 sps:$4 sm:$0xff]   ;;  %v8448_v59 = vld [vmem:[#allocation5 + $0x7a0] ss:$16 sps:$4 sm:$0xff]  }
  0x92   :  { %4920 = vmatpush2.bf16.msra.mxu0 %v8377_v0  ;;  %v8453_v60 = vld [vmem:[#allocation5 + $0x584] ss:$16 sps:$4 sm:$0xff]   ;;  %v8451_v62 = vld [vmem:[#allocation5 + $0x580] ss:$16 sps:$4 sm:$0xff]  }
  0x93   :  { %4963 = vmatpush2.bf16.msra.mxu1 %v8378_v1  ;;  %4921 = vmatprep.subr.bf16.mxu0 %v8379_v2  ;;  %v8456_v61 = vld [vmem:[#allocation5 + $0x784] ss:$16 sps:$4 sm:$0xff]   ;;  %v8454_v63 = vld [vmem:[#allocation5 + $0x780] ss:$16 sps:$4 sm:$0xff]  }
  0x94   :  { %4964 = vmatprep.subr.bf16.mxu1 %v8381_v3  ;;  %v8459_v0 = vld [vmem:[#allocation5 + $0x564] ss:$16 sps:$4 sm:$0xff]   ;;  %v8457_v2 = vld [vmem:[#allocation5 + $0x560] ss:$16 sps:$4 sm:$0xff]  }
  0x95   :  { %v8462_v1 = vld [vmem:[#allocation5 + $0x764] ss:$16 sps:$4 sm:$0xff]   ;;  %v8460_v3 = vld [vmem:[#allocation5 + $0x760] ss:$16 sps:$4 sm:$0xff]  }
  0x96   :  { %4922 = vmatpush2.bf16.msra.mxu0 %v8383_v4  ;;  %v8465_v4 = vld [vmem:[#allocation5 + $0x544] ss:$16 sps:$4 sm:$0xff]  }
  0x97   :  { %4965 = vmatpush2.bf16.msra.mxu1 %v8384_v5  ;;  %4977 = vmatprep.subr.bf16.mxu0 %v8387_v6  ;;  %v8468_v5 = vld [vmem:[#allocation5 + $0x744] ss:$16 sps:$4 sm:$0xff]   ;;  %v8463_v6 = vld [vmem:[#allocation5 + $0x540] ss:$16 sps:$4 sm:$0xff]  }
  0x98   :  { %5020 = vmatprep.subr.bf16.mxu1 %v8390_v7  ;;  %v8466_v7 = vld [vmem:[#allocation5 + $0x740] ss:$16 sps:$4 sm:$0xff]  }
  0x99   :  { %4924 = vmatmul.mubr.bf16.vlgmr.msra.gmra.mxu0 %v9919_v8 }
  0x9a   :  { %4967 = vmatmul.mubr.bf16.vlgmr.msra.gmra.mxu1 %v9921_v9  ;;  %4978 = vmatpush1.bf16.msra.mxu0 %v8385_v10  ;;  %v8471_v10 = vld [vmem:[#allocation5 + $0x524] ss:$16 sps:$4 sm:$0xff]  }
  0x9b   :  { %5021 = vmatpush1.bf16.msra.mxu1 %v8388_v11  ;;  %4979 = vmatprep.subr.bf16.mxu0 %v8393_v12  ;;  %v8474_v11 = vld [vmem:[#allocation5 + $0x724] ss:$16 sps:$4 sm:$0xff]   ;;  %v8469_v12 = vld [vmem:[#allocation5 + $0x520] ss:$16 sps:$4 sm:$0xff]  }
  0x9c   :  { %5022 = vmatprep.subr.bf16.mxu1 %v8396_v13  ;;  %5009 = vmatprep.mubr.bf16.mxu0 %v9935_v41  ;;  %v8472_v13 = vld [vmem:[#allocation5 + $0x720] ss:$16 sps:$4 sm:$0xff]  }
  0x9d   :  { %5052 = vmatprep.mubr.bf16.mxu1 %v9939_v43 }
  0x9e   :  { %4980 = vmatpush1.bf16.msra.mxu0 %v8391_v14  ;;  %v8477_v14 = vld [vmem:[#allocation5 + $0x504] ss:$16 sps:$4 sm:$0xff]  }
  0x9f   :  { %5023 = vmatpush1.bf16.msra.mxu1 %v8394_v15  ;;  %4981 = vmatprep.subr.bf16.mxu0 %v8399_v16  ;;  %v8480_v15 = vld [vmem:[#allocation5 + $0x704] ss:$16 sps:$4 sm:$0xff]   ;;  %v8475_v16 = vld [vmem:[#allocation5 + $0x500] ss:$16 sps:$4 sm:$0xff]  }
  0xa0   :  { %5024 = vmatprep.subr.bf16.mxu1 %v8402_v17  ;;  %v8478_v17 = vld [vmem:[#allocation5 + $0x700] ss:$16 sps:$4 sm:$0xff]  }
  0xa2   :  { %4982 = vmatpush1.bf16.msra.mxu0 %v8397_v18  ;;  %v8483_v18 = vld [vmem:[#allocation5 + $0x8e4] ss:$16 sps:$4 sm:$0xff]  }
  0xa3   :  { %5025 = vmatpush1.bf16.msra.mxu1 %v8400_v19  ;;  %4983 = vmatprep.subr.bf16.mxu0 %v8405_v20  ;;  %v8486_v19 = vld [vmem:[#allocation5 + $0xae4] ss:$16 sps:$4 sm:$0xff]   ;;  %v9945_v20 = vcombine.low %v9925_v36, %v9927_v37  ;;  %v8493_v36 = vld [vmem:[#allocation5 + $0x8a0] ss:$16 sps:$4 sm:$0xff]  }
  0xa4   :  { %5026 = vmatprep.subr.bf16.mxu1 %v8408_v21  ;;  %v9949_v21 = vcombine.low %v9929_v38, %v9931_v39  ;;  %v8496_v37 = vld [vmem:[#allocation5 + $0xaa0] ss:$16 sps:$4 sm:$0xff]   ;;  %v8501_v38 = vld [vmem:[#allocation5 + $0x884] ss:$16 sps:$4 sm:$0xff]  }
  0xa5   :  { %v8504_v39 = vld [vmem:[#allocation5 + $0xa84] ss:$16 sps:$4 sm:$0xff]  }
  0xa6   :  { %4984 = vmatpush1.bf16.msra.mxu0 %v8403_v22  ;;  %v8481_v22 = vld [vmem:[#allocation5 + $0x8e0] ss:$16 sps:$4 sm:$0xff]  }
  0xa7   :  { %5027 = vmatpush1.bf16.msra.mxu1 %v8406_v23  ;;  %4985 = vmatprep.subr.bf16.mxu0 %v8411_v24  ;;  %v8484_v23 = vld [vmem:[#allocation5 + $0xae0] ss:$16 sps:$4 sm:$0xff]   ;;  %v8489_v24 = vld [vmem:[#allocation5 + $0x8c4] ss:$16 sps:$4 sm:$0xff]  }
  0xa8   :  { %5028 = vmatprep.subr.bf16.mxu1 %v8414_v25  ;;  %v8492_v25 = vld [vmem:[#allocation5 + $0xac4] ss:$16 sps:$4 sm:$0xff]  }
  0xaa   :  { %4986 = vmatpush1.bf16.msra.mxu0 %v8409_v26  ;;  %v8487_v26 = vld [vmem:[#allocation5 + $0x8c0] ss:$16 sps:$4 sm:$0xff]  }
  0xab   :  { %5029 = vmatpush1.bf16.msra.mxu1 %v8412_v27  ;;  %4987 = vmatprep.subr.bf16.mxu0 %v8417_v28  ;;  %v8490_v27 = vld [vmem:[#allocation5 + $0xac0] ss:$16 sps:$4 sm:$0xff]  }
  0xac   :  { %5030 = vmatprep.subr.bf16.mxu1 %v8420_v29  ;;  %v9951_v28 = vld [vmem:[#allocation2 + $0x20] sm:$0xff] }
  0xad   :  { %v9955_v29 = vld [vmem:[#allocation2 + $0x80] sm:$0xff] }
  0xae   :  { %4988 = vmatpush1.bf16.msra.mxu0 %v8415_v30  ;;  %v9957_v30 = vld [vmem:[#allocation2 + $0x28] sm:$0xff] }
  0xaf   :  { %5031 = vmatpush1.bf16.msra.mxu1 %v8418_v31  ;;  %4989 = vmatprep.subr.bf16.mxu0 %v8423_v32  ;;  %v9959_v31 = vld [vmem:[#allocation2 + $0x88] sm:$0xff]  ;;  %v8495_v32 = vld [vmem:[#allocation5 + $0x8a4] ss:$16 sps:$4 sm:$0xff]  }
  0xb0   :  { %5032 = vmatprep.subr.bf16.mxu1 %v8426_v33  ;;  %v9963_v33 = vcombine.high %v9951_v28, %v9955_v29 }
  0xb2   :  { %4990 = vmatpush1.bf16.msra.mxu0 %v8421_v34  ;;  %v8498_v34 = vld [vmem:[#allocation5 + $0xaa4] ss:$16 sps:$4 sm:$0xff]  }
  0xb3   :  { %5033 = vmatpush1.bf16.msra.mxu1 %v8424_v35  ;;  %4991 = vmatprep.subr.bf16.mxu0 %v8429_v40  ;;  %v9967_v35 = vcombine.high %v9957_v30, %v9959_v31  ;;  %v8499_v40 = vld [vmem:[#allocation5 + $0x880] ss:$16 sps:$4 sm:$0xff]  }
  0xb4   :  { %5034 = vmatprep.subr.bf16.mxu1 %v8432_v42  ;;  %v8502_v42 = vld [vmem:[#allocation5 + $0xa80] ss:$16 sps:$4 sm:$0xff]  }
  0xb6   :  { %4992 = vmatpush1.bf16.msra.mxu0 %v8427_v44  ;;  %v8507_v44 = vld [vmem:[#allocation5 + $0x864] ss:$16 sps:$4 sm:$0xff]  }
  0xb7   :  { %5035 = vmatpush1.bf16.msra.mxu1 %v8430_v45  ;;  %4993 = vmatprep.subr.bf16.mxu0 %v8435_v46  ;;  %v8510_v45 = vld [vmem:[#allocation5 + $0xa64] ss:$16 sps:$4 sm:$0xff]   ;;  %v8505_v46 = vld [vmem:[#allocation5 + $0x860] ss:$16 sps:$4 sm:$0xff]  }
  0xb8   :  { %5036 = vmatprep.subr.bf16.mxu1 %v8438_v47  ;;  %v8508_v47 = vld [vmem:[#allocation5 + $0xa60] ss:$16 sps:$4 sm:$0xff]  }
  0xba   :  { %4994 = vmatpush2.bf16.msra.mxu0 %v8433_v48  ;;  %v8513_v48 = vld [vmem:[#allocation5 + $0x844] ss:$16 sps:$4 sm:$0xff]  }
  0xbb   :  { %5037 = vmatpush2.bf16.msra.mxu1 %v8436_v49  ;;  %4995 = vmatprep.subr.bf16.mxu0 %v8441_v50  ;;  %v8516_v49 = vld [vmem:[#allocation5 + $0xa44] ss:$16 sps:$4 sm:$0xff]   ;;  %v8511_v50 = vld [vmem:[#allocation5 + $0x840] ss:$16 sps:$4 sm:$0xff]  }
  0xbc   :  { %5038 = vmatprep.subr.bf16.mxu1 %v8444_v51  ;;  %v8514_v51 = vld [vmem:[#allocation5 + $0xa40] ss:$16 sps:$4 sm:$0xff]  }
  0xbe   :  { %4996 = vmatpush2.bf16.msra.mxu0 %v8439_v52  ;;  %v8519_v52 = vld [vmem:[#allocation5 + $0x824] ss:$16 sps:$4 sm:$0xff]  }
  0xbf   :  { %5039 = vmatpush2.bf16.msra.mxu1 %v8442_v54  ;;  %4997 = vmatprep.subr.bf16.mxu0 %v8447_v56  ;;  %v8522_v54 = vld [vmem:[#allocation5 + $0xa24] ss:$16 sps:$4 sm:$0xff]   ;;  %v8517_v56 = vld [vmem:[#allocation5 + $0x820] ss:$16 sps:$4 sm:$0xff]  }
  0xc0   :  { %5040 = vmatprep.subr.bf16.mxu1 %v8450_v57  ;;  %v8520_v57 = vld [vmem:[#allocation5 + $0xa20] ss:$16 sps:$4 sm:$0xff]  }
  0xc2   :  { %4998 = vmatpush2.bf16.msra.mxu0 %v8445_v58  ;;  %v8525_v58 = vld [vmem:[#allocation5 + $0x804] ss:$16 sps:$4 sm:$0xff]  }
  0xc3   :  { %5041 = vmatpush2.bf16.msra.mxu1 %v8448_v59  ;;  %4999 = vmatprep.subr.bf16.mxu0 %v8453_v60  ;;  %v8528_v59 = vld [vmem:[#allocation5 + $0xa04] ss:$16 sps:$4 sm:$0xff]   ;;  %v8523_v60 = vld [vmem:[#allocation5 + $0x800] ss:$16 sps:$4 sm:$0xff]  }
  0xc4   :  { %5042 = vmatprep.subr.bf16.mxu1 %v8456_v61  ;;  %v8526_v61 = vld [vmem:[#allocation5 + $0xa00] ss:$16 sps:$4 sm:$0xff]  }
  0xc6   :  { %5000 = vmatpush2.bf16.msra.mxu0 %v8451_v62  ;;  %v8531_v62 = vld [vmem:[#allocation5 + $0x9e4] ss:$16 sps:$4 sm:$0xff]  }
  0xc7   :  { %5043 = vmatpush2.bf16.msra.mxu1 %v8454_v63  ;;  %5001 = vmatprep.subr.bf16.mxu0 %v8459_v0  ;;  %v8534_v63 = vld [vmem:[#allocation5 + $0xbe4] ss:$16 sps:$4 sm:$0xff]   ;;  %v8529_v0 = vld [vmem:[#allocation5 + $0x9e0] ss:$16 sps:$4 sm:$0xff]  }
  0xc8   :  { %5044 = vmatprep.subr.bf16.mxu1 %v8462_v1  ;;  %v8532_v1 = vld [vmem:[#allocation5 + $0xbe0] ss:$16 sps:$4 sm:$0xff]  }
  0xca   :  { %5002 = vmatpush2.bf16.msra.mxu0 %v8457_v2  ;;  %v8537_v2 = vld [vmem:[#allocation5 + $0x9c4] ss:$16 sps:$4 sm:$0xff]  }
  0xcb   :  { %5045 = vmatpush2.bf16.msra.mxu1 %v8460_v3  ;;  %5003 = vmatprep.subr.bf16.mxu0 %v8465_v4  ;;  %v8540_v3 = vld [vmem:[#allocation5 + $0xbc4] ss:$16 sps:$4 sm:$0xff]   ;;  %v8535_v4 = vld [vmem:[#allocation5 + $0x9c0] ss:$16 sps:$4 sm:$0xff]  }
  0xcc   :  { %5046 = vmatprep.subr.bf16.mxu1 %v8468_v5  ;;  %v8538_v5 = vld [vmem:[#allocation5 + $0xbc0] ss:$16 sps:$4 sm:$0xff]  }
  0xce   :  { %5004 = vmatpush2.bf16.msra.mxu0 %v8463_v6  ;;  %v8543_v6 = vld [vmem:[#allocation5 + $0x9a4] ss:$16 sps:$4 sm:$0xff]  }
  0xcf   :  { %5047 = vmatpush2.bf16.msra.mxu1 %v8466_v7  ;;  %5005 = vmatprep.subr.bf16.mxu0 %v8471_v10  ;;  %v8546_v7 = vld [vmem:[#allocation5 + $0xba4] ss:$16 sps:$4 sm:$0xff]   ;;  %v8541_v10 = vld [vmem:[#allocation5 + $0x9a0] ss:$16 sps:$4 sm:$0xff]  }
  0xd0   :  { %5048 = vmatprep.subr.bf16.mxu1 %v8474_v11  ;;  %v8544_v11 = vld [vmem:[#allocation5 + $0xba0] ss:$16 sps:$4 sm:$0xff]  }
  0xd2   :  { %5006 = vmatpush2.bf16.msra.mxu0 %v8469_v12  ;;  %v8549_v12 = vld [vmem:[#allocation5 + $0x984] ss:$16 sps:$4 sm:$0xff]  }
  0xd3   :  { %5049 = vmatpush2.bf16.msra.mxu1 %v8472_v13  ;;  %5007 = vmatprep.subr.bf16.mxu0 %v8477_v14  ;;  %v8552_v13 = vld [vmem:[#allocation5 + $0xb84] ss:$16 sps:$4 sm:$0xff]   ;;  %v8547_v14 = vld [vmem:[#allocation5 + $0x980] ss:$16 sps:$4 sm:$0xff]  }
  0xd4   :  { %5050 = vmatprep.subr.bf16.mxu1 %v8480_v15  ;;  %v8550_v15 = vld [vmem:[#allocation5 + $0xb80] ss:$16 sps:$4 sm:$0xff]  }
  0xd6   :  { %5008 = vmatpush2.bf16.msra.mxu0 %v8475_v16  ;;  %v8555_v16 = vld [vmem:[#allocation5 + $0x964] ss:$16 sps:$4 sm:$0xff]  }
  0xd7   :  { %5051 = vmatpush2.bf16.msra.mxu1 %v8478_v17  ;;  %5063 = vmatprep.subr.bf16.mxu0 %v8483_v18  ;;  %v8558_v17 = vld [vmem:[#allocation5 + $0xb64] ss:$16 sps:$4 sm:$0xff]   ;;  %v8553_v18 = vld [vmem:[#allocation5 + $0x960] ss:$16 sps:$4 sm:$0xff]  }
  0xd8   :  { %5106 = vmatprep.subr.bf16.mxu1 %v8486_v19  ;;  %v8556_v19 = vld [vmem:[#allocation5 + $0xb60] ss:$16 sps:$4 sm:$0xff]  }
  0xd9   :  { %5010 = vmatmul.mubr.bf16.vlgmr.msra.gmra.mxu0 %v9945_v20 }
  0xda   :  { %5053 = vmatmul.mubr.bf16.vlgmr.msra.gmra.mxu1 %v9949_v21  ;;  %5064 = vmatpush1.bf16.msra.mxu0 %v8481_v22  ;;  %v8561_v22 = vld [vmem:[#allocation5 + $0x944] ss:$16 sps:$4 sm:$0xff]  }
  0xdb   :  { %5107 = vmatpush1.bf16.msra.mxu1 %v8484_v23  ;;  %5065 = vmatprep.subr.bf16.mxu0 %v8489_v24  ;;  %v8564_v23 = vld [vmem:[#allocation5 + $0xb44] ss:$16 sps:$4 sm:$0xff]   ;;  %v8559_v24 = vld [vmem:[#allocation5 + $0x940] ss:$16 sps:$4 sm:$0xff]  }
  0xdc   :  { %5108 = vmatprep.subr.bf16.mxu1 %v8492_v25  ;;  %5095 = vmatprep.mubr.bf16.mxu0 %v9963_v33  ;;  %v8562_v25 = vld [vmem:[#allocation5 + $0xb40] ss:$16 sps:$4 sm:$0xff]  }
  0xdd   :  { %5138 = vmatprep.mubr.bf16.mxu1 %v9967_v35 }
  0xde   :  { %5066 = vmatpush1.bf16.msra.mxu0 %v8487_v26  ;;  %v8567_v26 = vld [vmem:[#allocation5 + $0x924] ss:$16 sps:$4 sm:$0xff]  }
  0xdf   :  { %5109 = vmatpush1.bf16.msra.mxu1 %v8490_v27  ;;  %5067 = vmatprep.subr.bf16.mxu0 %v8495_v32  ;;  %v8570_v27 = vld [vmem:[#allocation5 + $0xb24] ss:$16 sps:$4 sm:$0xff]   ;;  %v8565_v32 = vld [vmem:[#allocation5 + $0x920] ss:$16 sps:$4 sm:$0xff]  }
  0xe0   :  { %5110 = vmatprep.subr.bf16.mxu1 %v8498_v34  ;;  %v8568_v34 = vld [vmem:[#allocation5 + $0xb20] ss:$16 sps:$4 sm:$0xff]  }
  0xe2   :  { %5068 = vmatpush1.bf16.msra.mxu0 %v8493_v36  ;;  %v8573_v36 = vld [vmem:[#allocation5 + $0x904] ss:$16 sps:$4 sm:$0xff]  }
  0xe3   :  { %5111 = vmatpush1.bf16.msra.mxu1 %v8496_v37  ;;  %5069 = vmatprep.subr.bf16.mxu0 %v8501_v38  ;;  %v8576_v37 = vld [vmem:[#allocation5 + $0xb04] ss:$16 sps:$4 sm:$0xff]   ;;  %v8571_v38 = vld [vmem:[#allocation5 + $0x900] ss:$16 sps:$4 sm:$0xff]  }
  0xe4   :  { %5112 = vmatprep.subr.bf16.mxu1 %v8504_v39  ;;  %v8574_v39 = vld [vmem:[#allocation5 + $0xb00] ss:$16 sps:$4 sm:$0xff]  }
  0xe6   :  { %5070 = vmatpush1.bf16.msra.mxu0 %v8499_v40  ;;  %v8579_v40 = vld [vmem:[#allocation5 + $0xce4] ss:$16 sps:$4 sm:$0xff]  }
  0xe7   :  { %5113 = vmatpush1.bf16.msra.mxu1 %v8502_v42  ;;  %5071 = vmatprep.subr.bf16.mxu0 %v8507_v44  ;;  %v8582_v42 = vld [vmem:[#allocation5 + $0xee4] ss:$16 sps:$4 sm:$0xff]  }
  0xe8   :  { %5114 = vmatprep.subr.bf16.mxu1 %v8510_v45  ;;  %v9971_v44 = vld [vmem:[#allocation2 + $0x30] sm:$0xff] }
  0xe9   :  { %v8577_v45 = vld [vmem:[#allocation5 + $0xce0] ss:$16 sps:$4 sm:$0xff]  }
  0xea   :  { %5072 = vmatpush1.bf16.msra.mxu0 %v8505_v46  ;;  %v9973_v46 = vld [vmem:[#allocation2 + $0x90] sm:$0xff] }
  0xeb   :  { %5115 = vmatpush1.bf16.msra.mxu1 %v8508_v47  ;;  %5073 = vmatprep.subr.bf16.mxu0 %v8513_v48  ;;  %v9975_v47 = vld [vmem:[#allocation2 + $0x38] sm:$0xff]  ;;  %v9979_v48 = vcombine.low %v9951_v28, %v9955_v29  ;;  %v8583_v29 = vld [vmem:[#allocation5 + $0xcc0] ss:$16 sps:$4 sm:$0xff]  }
  0xec   :  { %5116 = vmatprep.subr.bf16.mxu1 %v8516_v49  ;;  %v9983_v49 = vcombine.low %v9957_v30, %v9959_v31  ;;  %v8586_v30 = vld [vmem:[#allocation5 + $0xec0] ss:$16 sps:$4 sm:$0xff]   ;;  %v8591_v31 = vld [vmem:[#allocation5 + $0xca4] ss:$16 sps:$4 sm:$0xff]  }
  0xee   :  { %5074 = vmatpush1.bf16.msra.mxu0 %v8511_v50  ;;  %v9985_v50 = vld [vmem:[#allocation2 + $0x98] sm:$0xff] }
  0xef   :  { %5117 = vmatpush1.bf16.msra.mxu1 %v8514_v51  ;;  %5075 = vmatprep.subr.bf16.mxu0 %v8519_v52  ;;  %v8580_v51 = vld [vmem:[#allocation5 + $0xee0] ss:$16 sps:$4 sm:$0xff]   ;;  %v8585_v52 = vld [vmem:[#allocation5 + $0xcc4] ss:$16 sps:$4 sm:$0xff]   ;;  %v9993_v28 = vcombine.high %v9975_v47, %v9985_v50 }
  0xf0   :  { %5118 = vmatprep.subr.bf16.mxu1 %v8522_v54  ;;  %v8588_v54 = vld [vmem:[#allocation5 + $0xec4] ss:$16 sps:$4 sm:$0xff]  }
  0xf2   :  { %5076 = vmatpush1.bf16.msra.mxu0 %v8517_v56  ;;  %v9989_v56 = vcombine.high %v9971_v44, %v9973_v46 }
  0xf3   :  { %5119 = vmatpush1.bf16.msra.mxu1 %v8520_v57  ;;  %5077 = vmatprep.subr.bf16.mxu0 %v8525_v58  ;;  %v8594_v57 = vld [vmem:[#allocation5 + $0xea4] ss:$16 sps:$4 sm:$0xff]   ;;  %v8589_v58 = vld [vmem:[#allocation5 + $0xca0] ss:$16 sps:$4 sm:$0xff]  }
  0xf4   :  { %5120 = vmatprep.subr.bf16.mxu1 %v8528_v59  ;;  %v8592_v59 = vld [vmem:[#allocation5 + $0xea0] ss:$16 sps:$4 sm:$0xff]  }
  0xf6   :  { %5078 = vmatpush1.bf16.msra.mxu0 %v8523_v60  ;;  %v8597_v60 = vld [vmem:[#allocation5 + $0xc84] ss:$16 sps:$4 sm:$0xff]  }
  0xf7   :  { %5121 = vmatpush1.bf16.msra.mxu1 %v8526_v61  ;;  %5079 = vmatprep.subr.bf16.mxu0 %v8531_v62  ;;  %v8600_v61 = vld [vmem:[#allocation5 + $0xe84] ss:$16 sps:$4 sm:$0xff]   ;;  %v8595_v62 = vld [vmem:[#allocation5 + $0xc80] ss:$16 sps:$4 sm:$0xff]  }
  0xf8   :  { %5122 = vmatprep.subr.bf16.mxu1 %v8534_v63  ;;  %v8598_v63 = vld [vmem:[#allocation5 + $0xe80] ss:$16 sps:$4 sm:$0xff]  }
  0xfa   :  { %5080 = vmatpush2.bf16.msra.mxu0 %v8529_v0  ;;  %v8603_v0 = vld [vmem:[#allocation5 + $0xc64] ss:$16 sps:$4 sm:$0xff]  }
  0xfb   :  { %5123 = vmatpush2.bf16.msra.mxu1 %v8532_v1  ;;  %5081 = vmatprep.subr.bf16.mxu0 %v8537_v2  ;;  %v8606_v1 = vld [vmem:[#allocation5 + $0xe64] ss:$16 sps:$4 sm:$0xff]   ;;  %v8601_v2 = vld [vmem:[#allocation5 + $0xc60] ss:$16 sps:$4 sm:$0xff]  }
  0xfc   :  { %5124 = vmatprep.subr.bf16.mxu1 %v8540_v3  ;;  %v8604_v3 = vld [vmem:[#allocation5 + $0xe60] ss:$16 sps:$4 sm:$0xff]  }
  0xfe   :  { %5082 = vmatpush2.bf16.msra.mxu0 %v8535_v4  ;;  %v8609_v4 = vld [vmem:[#allocation5 + $0xc44] ss:$16 sps:$4 sm:$0xff]  }
  0xff   :  { %5125 = vmatpush2.bf16.msra.mxu1 %v8538_v5  ;;  %5083 = vmatprep.subr.bf16.mxu0 %v8543_v6  ;;  %v8612_v5 = vld [vmem:[#allocation5 + $0xe44] ss:$16 sps:$4 sm:$0xff]   ;;  %v8607_v6 = vld [vmem:[#allocation5 + $0xc40] ss:$16 sps:$4 sm:$0xff]  }
 0x100   :  { %5126 = vmatprep.subr.bf16.mxu1 %v8546_v7  ;;  %v8610_v7 = vld [vmem:[#allocation5 + $0xe40] ss:$16 sps:$4 sm:$0xff]  }
 0x102   :  { %5084 = vmatpush2.bf16.msra.mxu0 %v8541_v10  ;;  %v8615_v10 = vld [vmem:[#allocation5 + $0xc24] ss:$16 sps:$4 sm:$0xff]  }
 0x103   :  { %5127 = vmatpush2.bf16.msra.mxu1 %v8544_v11  ;;  %5085 = vmatprep.subr.bf16.mxu0 %v8549_v12  ;;  %v8618_v11 = vld [vmem:[#allocation5 + $0xe24] ss:$16 sps:$4 sm:$0xff]   ;;  %v8613_v12 = vld [vmem:[#allocation5 + $0xc20] ss:$16 sps:$4 sm:$0xff]  }
 0x104   :  { %5128 = vmatprep.subr.bf16.mxu1 %v8552_v13  ;;  %v8616_v13 = vld [vmem:[#allocation5 + $0xe20] ss:$16 sps:$4 sm:$0xff]  }
 0x106   :  { %5086 = vmatpush2.bf16.msra.mxu0 %v8547_v14  ;;  %v8621_v14 = vld [vmem:[#allocation5 + $0xc04] ss:$16 sps:$4 sm:$0xff]  }
 0x107   :  { %5129 = vmatpush2.bf16.msra.mxu1 %v8550_v15  ;;  %5087 = vmatprep.subr.bf16.mxu0 %v8555_v16  ;;  %v8624_v15 = vld [vmem:[#allocation5 + $0xe04] ss:$16 sps:$4 sm:$0xff]   ;;  %v8619_v16 = vld [vmem:[#allocation5 + $0xc00] ss:$16 sps:$4 sm:$0xff]  }
 0x108   :  { %5130 = vmatprep.subr.bf16.mxu1 %v8558_v17  ;;  %v8622_v17 = vld [vmem:[#allocation5 + $0xe00] ss:$16 sps:$4 sm:$0xff]  }
 0x10a   :  { %5088 = vmatpush2.bf16.msra.mxu0 %v8553_v18  ;;  %v8627_v18 = vld [vmem:[#allocation5 + $0xde4] ss:$16 sps:$4 sm:$0xff]  }
 0x10b   :  { %5131 = vmatpush2.bf16.msra.mxu1 %v8556_v19  ;;  %5089 = vmatprep.subr.bf16.mxu0 %v8561_v22  ;;  %v8630_v19 = vld [vmem:[#allocation5 + $0xfe4] ss:$16 sps:$4 sm:$0xff]   ;;  %v8625_v22 = vld [vmem:[#allocation5 + $0xde0] ss:$16 sps:$4 sm:$0xff]  }
 0x10c   :  { %5132 = vmatprep.subr.bf16.mxu1 %v8564_v23  ;;  %v8628_v23 = vld [vmem:[#allocation5 + $0xfe0] ss:$16 sps:$4 sm:$0xff]  }
 0x10e   :  { %5090 = vmatpush2.bf16.msra.mxu0 %v8559_v24  ;;  %v8633_v24 = vld [vmem:[#allocation5 + $0xdc4] ss:$16 sps:$4 sm:$0xff]  }
 0x10f   :  { %5133 = vmatpush2.bf16.msra.mxu1 %v8562_v25  ;;  %5091 = vmatprep.subr.bf16.mxu0 %v8567_v26  ;;  %v8636_v25 = vld [vmem:[#allocation5 + $0xfc4] ss:$16 sps:$4 sm:$0xff]   ;;  %v8631_v26 = vld [vmem:[#allocation5 + $0xdc0] ss:$16 sps:$4 sm:$0xff]  }
 0x110   :  { %5134 = vmatprep.subr.bf16.mxu1 %v8570_v27  ;;  %v8634_v27 = vld [vmem:[#allocation5 + $0xfc0] ss:$16 sps:$4 sm:$0xff]  }
 0x112   :  { %5092 = vmatpush2.bf16.msra.mxu0 %v8565_v32  ;;  %v8639_v32 = vld [vmem:[#allocation5 + $0xda4] ss:$16 sps:$4 sm:$0xff]  }
 0x113   :  { %5135 = vmatpush2.bf16.msra.mxu1 %v8568_v34  ;;  %5093 = vmatprep.subr.bf16.mxu0 %v8573_v36  ;;  %v8642_v34 = vld [vmem:[#allocation5 + $0xfa4] ss:$16 sps:$4 sm:$0xff]   ;;  %v8637_v36 = vld [vmem:[#allocation5 + $0xda0] ss:$16 sps:$4 sm:$0xff]  }
 0x114   :  { %5136 = vmatprep.subr.bf16.mxu1 %v8576_v37  ;;  %v8640_v37 = vld [vmem:[#allocation5 + $0xfa0] ss:$16 sps:$4 sm:$0xff]  }
 0x116   :  { %5094 = vmatpush2.bf16.msra.mxu0 %v8571_v38  ;;  %v8645_v38 = vld [vmem:[#allocation5 + $0xd84] ss:$16 sps:$4 sm:$0xff]  }
 0x117   :  { %5137 = vmatpush2.bf16.msra.mxu1 %v8574_v39  ;;  %5149 = vmatprep.subr.bf16.mxu0 %v8579_v40  ;;  %v8648_v39 = vld [vmem:[#allocation5 + $0xf84] ss:$16 sps:$4 sm:$0xff]   ;;  %v8643_v40 = vld [vmem:[#allocation5 + $0xd80] ss:$16 sps:$4 sm:$0xff]  }
 0x118   :  { %5192 = vmatprep.subr.bf16.mxu1 %v8582_v42  ;;  %v8646_v42 = vld [vmem:[#allocation5 + $0xf80] ss:$16 sps:$4 sm:$0xff]  }
 0x119   :  { %5096 = vmatmul.mubr.bf16.vlgmr.msra.gmra.mxu0 %v9979_v48 }
 0x11a   :  { %5139 = vmatmul.mubr.bf16.vlgmr.msra.gmra.mxu1 %v9983_v49  ;;  %5150 = vmatpush1.bf16.msra.mxu0 %v8577_v45  ;;  %v8651_v45 = vld [vmem:[#allocation5 + $0xd64] ss:$16 sps:$4 sm:$0xff]  }
 0x11b   :  { %5193 = vmatpush1.bf16.msra.mxu1 %v8580_v51  ;;  %5151 = vmatprep.subr.bf16.mxu0 %v8585_v52  ;;  %v8654_v51 = vld [vmem:[#allocation5 + $0xf64] ss:$16 sps:$4 sm:$0xff]   ;;  %v8649_v52 = vld [vmem:[#allocation5 + $0xd60] ss:$16 sps:$4 sm:$0xff]  }
 0x11c   :  { %5194 = vmatprep.subr.bf16.mxu1 %v8588_v54  ;;  %5181 = vmatprep.mubr.bf16.mxu0 %v9989_v56  ;;  %v8652_v54 = vld [vmem:[#allocation5 + $0xf60] ss:$16 sps:$4 sm:$0xff]  }
 0x11d   :  { %5224 = vmatprep.mubr.bf16.mxu1 %v9993_v28 }
 0x11e   :  { %5152 = vmatpush1.bf16.msra.mxu0 %v8583_v29  ;;  %v8657_v29 = vld [vmem:[#allocation5 + $0xd44] ss:$16 sps:$4 sm:$0xff]  }
 0x11f   :  { %5195 = vmatpush1.bf16.msra.mxu1 %v8586_v30  ;;  %5153 = vmatprep.subr.bf16.mxu0 %v8591_v31  ;;  %v8660_v30 = vld [vmem:[#allocation5 + $0xf44] ss:$16 sps:$4 sm:$0xff]   ;;  %v8655_v31 = vld [vmem:[#allocation5 + $0xd40] ss:$16 sps:$4 sm:$0xff]  }
 0x120   :  { %5196 = vmatprep.subr.bf16.mxu1 %v8594_v57  ;;  %v8658_v57 = vld [vmem:[#allocation5 + $0xf40] ss:$16 sps:$4 sm:$0xff]  }
 0x122   :  { %5154 = vmatpush1.bf16.msra.mxu0 %v8589_v58  ;;  %v911_v58 = vlaneseq }
 0x123   :  { %5197 = vmatpush1.bf16.msra.mxu1 %v8592_v59  ;;  %5155 = vmatprep.subr.bf16.mxu0 %v8597_v60  ;;  %v8663_v59 = vld [vmem:[#allocation5 + $0xd24] ss:$16 sps:$4 sm:$0xff]  }
 0x124   :  { %5198 = vmatprep.subr.bf16.mxu1 %v8600_v61  ;;  %v8666_v60 = vld [vmem:[#allocation5 + $0xf24] ss:$16 sps:$4 sm:$0xff]   ;;  %v8661_v61 = vld [vmem:[#allocation5 + $0xd20] ss:$16 sps:$4 sm:$0xff]  }
 0x126   :  { %5156 = vmatpush1.bf16.msra.mxu0 %v8595_v62  ;;  %v8664_v62 = vld [vmem:[#allocation5 + $0xf20] ss:$16 sps:$4 sm:$0xff]  }
 0x127   :  { %5199 = vmatpush1.bf16.msra.mxu1 %v8598_v63  ;;  %5157 = vmatprep.subr.bf16.mxu0 %v8603_v0  ;;  %v9999_v63 = vshrl.u32 %v911_v58, 7  ;;  %v8669_v0 = vld [vmem:[#allocation5 + $0xd04] ss:$16 sps:$4 sm:$0xff]   ;;  %v8700_v58 = vld [vmem:[#allocation5 + $0x1260] ss:$16 sps:$4 sm:$0xff]  }
 0x128   :  { %5200 = vmatprep.subr.bf16.mxu1 %v8606_v1  ;;  %v8672_v1 = vld [vmem:[#allocation5 + $0xf04] ss:$16 sps:$4 sm:$0xff]  }
 0x12a   :  { %5158 = vmatpush1.bf16.msra.mxu0 %v8601_v2  ;;  %v8667_v2 = vld [vmem:[#allocation5 + $0xd00] ss:$16 sps:$4 sm:$0xff]  }
 0x12b   :  { %5201 = vmatpush1.bf16.msra.mxu1 %v8604_v3  ;;  %5159 = vmatprep.subr.bf16.mxu0 %v8609_v4  ;;  %v8670_v3 = vld [vmem:[#allocation5 + $0xf00] ss:$16 sps:$4 sm:$0xff]  }
 0x12c   :  { %5202 = vmatprep.subr.bf16.mxu1 %v8612_v5  ;;  %v909_v4 = vld [vmem:[#allocation7] sm:$0xf]  ;;  %v913_v5 = vsub.s32 0, %v9999_v63 }
 0x12e   :  { %5160 = vmatpush1.bf16.msra.mxu0 %v8607_v6  ;;  %v8675_v6 = vld [vmem:[#allocation5 + $0x10e4] ss:$16 sps:$4 sm:$0xff]  }
 0x12f   :  { %5203 = vmatpush1.bf16.msra.mxu1 %v8610_v7  ;;  %5161 = vmatprep.subr.bf16.mxu0 %v8615_v10  ;;  %v8678_v7 = vld [vmem:[#allocation5 + $0x12e4] ss:$16 sps:$4 sm:$0xff]  }
 0x130   :  { %5204 = vmatprep.subr.bf16.mxu1 %v8618_v11  ;;  %v10002_v10 = vld [vmem:[#allocation2 + $0x40] sm:$0xff] }
 0x131   :  { %v8673_v11 = vld [vmem:[#allocation5 + $0x10e0] ss:$16 sps:$4 sm:$0xff]  }
 0x132   :  { %5162 = vmatpush1.bf16.msra.mxu0 %v8613_v12  ;;  %v10004_v12 = vld [vmem:[#allocation2 + $0xa0] sm:$0xff] }
 0x133   :  { %5205 = vmatpush1.bf16.msra.mxu1 %v8616_v13  ;;  %5163 = vmatprep.subr.bf16.mxu0 %v8621_v14  ;;  %v10006_v13 = vld [vmem:[#allocation2 + $0x48] sm:$0xff]  ;;  %v10010_v14 = vcombine.low %v9971_v44, %v9973_v46  ;;  %v10022_v44 = vcombine.high %v10002_v10, %v10004_v12 }
 0x134   :  { %5206 = vmatprep.subr.bf16.mxu1 %v8624_v15  ;;  %v10014_v15 = vcombine.low %v9975_v47, %v9985_v50 }
 0x136   :  { %5164 = vmatpush1.bf16.msra.mxu0 %v8619_v16  ;;  %v10016_v16 = vld [vmem:[#allocation2 + $0xa8] sm:$0xff] }
 0x137   :  { %5207 = vmatpush1.bf16.msra.mxu1 %v8622_v17  ;;  %5165 = vmatprep.subr.bf16.mxu0 %v8627_v18  ;;  %v914_v17 = vrot.slane %v909_v4, %v913_v5  ;;  %v8676_v18 = vld [vmem:[#allocation5 + $0x12e0] ss:$16 sps:$4 sm:$0xff]   ;;  %v10026_v46 = vcombine.high %v10006_v13, %v10016_v16  ;;  %v8717_v4 = vld [vmem:[#allocation5 + $0x1004] ss:$16 sps:$4 sm:$0xff]  }
 0x138   :  { %5208 = vmatprep.subr.bf16.mxu1 %v8630_v19  ;;  %v8681_v19 = vld [vmem:[#allocation5 + $0x10c4] ss:$16 sps:$4 sm:$0xff]  }
 0x13a   :  { %5166 = vmatpush2.bf16.msra.mxu0 %v8625_v22  ;;  %v8684_v22 = vld [vmem:[#allocation5 + $0x12c4] ss:$16 sps:$4 sm:$0xff]  }
 0x13b   :  { %5209 = vmatpush2.bf16.msra.mxu1 %v8628_v23  ;;  %5167 = vmatprep.subr.bf16.mxu0 %v8633_v24  ;;  %v8679_v23 = vld [vmem:[#allocation5 + $0x10c0] ss:$16 sps:$4 sm:$0xff]  }
 0x13c   :  { %5210 = vmatprep.subr.bf16.mxu1 %v8636_v25  ;;  %v8682_v25 = vld [vmem:[#allocation5 + $0x12c0] ss:$16 sps:$4 sm:$0xff]  }
 0x13e   :  { %5168 = vmatpush2.bf16.msra.mxu0 %v8631_v26 }
 0x13f   :  { %5211 = vmatpush2.bf16.msra.mxu1 %v8634_v27  ;;  %5169 = vmatprep.subr.bf16.mxu0 %v8639_v32  ;;  %v8687_v32 = vld [vmem:[#allocation5 + $0x10a4] ss:$16 sps:$4 sm:$0xff]  }
 0x140   :  { %5212 = vmatprep.subr.bf16.mxu1 %v8642_v34  ;;  %v8690_v34 = vld [vmem:[#allocation5 + $0x12a4] ss:$16 sps:$4 sm:$0xff]  }
 0x142   :  { %5170 = vmatpush2.bf16.msra.mxu0 %v8637_v36 }
 0x143   :  { %5213 = vmatpush2.bf16.msra.mxu1 %v8640_v37  ;;  %5171 = vmatprep.subr.bf16.mxu0 %v8645_v38  ;;  %v8685_v38 = vld [vmem:[#allocation5 + $0x10a0] ss:$16 sps:$4 sm:$0xff]  }
 0x144   :  { %5214 = vmatprep.subr.bf16.mxu1 %v8648_v39 }
 0x146   :  { %5172 = vmatpush2.bf16.msra.mxu0 %v8643_v40  ;;  %v8688_v40 = vld [vmem:[#allocation5 + $0x12a0] ss:$16 sps:$4 sm:$0xff]  }
 0x147   :  { %5215 = vmatpush2.bf16.msra.mxu1 %v8646_v42  ;;  %5173 = vmatprep.subr.bf16.mxu0 %v8651_v45  ;;  %v8693_v45 = vld [vmem:[#allocation5 + $0x1084] ss:$16 sps:$4 sm:$0xff]  }
 0x148   :  { %5216 = vmatprep.subr.bf16.mxu1 %v8654_v51  ;;  %v8696_v51 = vld [vmem:[#allocation5 + $0x1284] ss:$16 sps:$4 sm:$0xff]  }
 0x14a   :  { %5174 = vmatpush2.bf16.msra.mxu0 %v8649_v52 }
 0x14b   :  { %5217 = vmatpush2.bf16.msra.mxu1 %v8652_v54  ;;  %5175 = vmatprep.subr.bf16.mxu0 %v8657_v29  ;;  %v8691_v54 = vld [vmem:[#allocation5 + $0x1080] ss:$16 sps:$4 sm:$0xff]  }
 0x14c   :  { %5218 = vmatprep.subr.bf16.mxu1 %v8660_v30  ;;  %v8694_v29 = vld [vmem:[#allocation5 + $0x1280] ss:$16 sps:$4 sm:$0xff]   ;;  %v8699_v30 = vld [vmem:[#allocation5 + $0x1064] ss:$16 sps:$4 sm:$0xff]  }
 0x14e   :  { %5176 = vmatpush2.bf16.msra.mxu0 %v8655_v31  ;;  %v8702_v31 = vld [vmem:[#allocation5 + $0x1264] ss:$16 sps:$4 sm:$0xff]  }
 0x14f   :  { %5219 = vmatpush2.bf16.msra.mxu1 %v8658_v57  ;;  %5177 = vmatprep.subr.bf16.mxu0 %v8663_v59  ;;  %v8697_v57 = vld [vmem:[#allocation5 + $0x1060] ss:$16 sps:$4 sm:$0xff]   ;;  %v8705_v59 = vld [vmem:[#allocation5 + $0x1044] ss:$16 sps:$4 sm:$0xff]  }
 0x150   :  { %5220 = vmatprep.subr.bf16.mxu1 %v8666_v60  ;;  %v8708_v60 = vld [vmem:[#allocation5 + $0x1244] ss:$16 sps:$4 sm:$0xff]  }
 0x152   :  { %5178 = vmatpush2.bf16.msra.mxu0 %v8661_v61  ;;  %v8703_v61 = vld [vmem:[#allocation5 + $0x1040] ss:$16 sps:$4 sm:$0xff]  }
 0x153   :  { %5221 = vmatpush2.bf16.msra.mxu1 %v8664_v62  ;;  %5179 = vmatprep.subr.bf16.mxu0 %v8669_v0  ;;  %v8706_v62 = vld [vmem:[#allocation5 + $0x1240] ss:$16 sps:$4 sm:$0xff]   ;;  %v8711_v0 = vld [vmem:[#allocation5 + $0x1024] ss:$16 sps:$4 sm:$0xff]  }
 0x154   :  { %5222 = vmatprep.subr.bf16.mxu1 %v8672_v1  ;;  %v8714_v1 = vld [vmem:[#allocation5 + $0x1224] ss:$16 sps:$4 sm:$0xff]  }
 0x156   :  { %5180 = vmatpush2.bf16.msra.mxu0 %v8667_v2  ;;  %v8709_v2 = vld [vmem:[#allocation5 + $0x1020] ss:$16 sps:$4 sm:$0xff]  }
 0x157   :  { %5223 = vmatpush2.bf16.msra.mxu1 %v8670_v3  ;;  %5235 = vmatprep.subr.bf16.mxu0 %v8675_v6  ;;  %v8712_v3 = vld [vmem:[#allocation5 + $0x1220] ss:$16 sps:$4 sm:$0xff]   ;;  %v8720_v6 = vld [vmem:[#allocation5 + $0x1204] ss:$16 sps:$4 sm:$0xff]  }
 0x158   :  { %5278 = vmatprep.subr.bf16.mxu1 %v8678_v7  ;;  %v8715_v7 = vld [vmem:[#allocation5 + $0x1000] ss:$16 sps:$4 sm:$0xff]  }
 0x159   :  { %v4925_v47 = vpop.f32.mrf.mxu0  ;;  %5182 = vmatmul.mubr.bf16.vlgmr.msra.gmra.mxu0 %v10010_v14 }
 0x15a   :  { %v4968_v50 = vpop.f32.mrf.mxu1  ;;  %5225 = vmatmul.mubr.bf16.vlgmr.msra.gmra.mxu1 %v10014_v15  ;;  %v4926_v24 = vadd.f32 %v4925_v47, %v914_v17  ;;  %5236 = vmatpush1.bf16.msra.mxu0 %v8673_v11  ;;  %v8718_v11 = vld [vmem:[#allocation5 + $0x1200] ss:$16 sps:$4 sm:$0xff]   ;;  %v8729_v47 = vld [vmem:[#allocation5 + $0x11c4] ss:$16 sps:$4 sm:$0xff]  }
 0x15b   :  { %5279 = vmatpush1.bf16.msra.mxu1 %v8676_v18  ;;  %v10030_v26 = vpop.f32.mrf.mxu0  ;;  %5237 = vmatprep.subr.bf16.mxu0 %v8681_v19  ;;  %v8726_v18 = vld [vmem:[#allocation5 + $0x13e4] ss:$16 sps:$4 sm:$0xff]   ;;  %v8721_v19 = vld [vmem:[#allocation5 + $0x11e0] ss:$16 sps:$4 sm:$0xff]  }
 0x15c   :  { %v10032_v27 = vpop.f32.mrf.mxu1  ;;  %5280 = vmatprep.subr.bf16.mxu1 %v8684_v22  ;;  %v10034_v36 = vadd.f32 %v4968_v50, %v4926_v24  ;;  %5267 = vmatprep.mubr.bf16.mxu0 %v10022_v44  ;;  %v8724_v22 = vld [vmem:[#allocation5 + $0x13e0] ss:$16 sps:$4 sm:$0xff]   ;;  %v8732_v50 = vld [vmem:[#allocation5 + $0x13c4] ss:$16 sps:$4 sm:$0xff]  }
 0x15d   :  { %5310 = vmatprep.mubr.bf16.mxu1 %v10026_v46  ;;  %v4929_v37 = vpop.f32.mrf.mxu0  ;;  %v8730_v24 = vld [vmem:[#allocation5 + $0x13c0] ss:$16 sps:$4 sm:$0xff]  }
 0x15e   :  { %v4930_v39 = vadd.f32 %v4929_v37, %v914_v17  ;;  %5238 = vmatpush1.bf16.msra.mxu0 %v8679_v23  ;;  %v4972_v42 = vpop.f32.mrf.mxu1  ;;  %v8723_v17 = vld [vmem:[#allocation5 + $0x11e4] ss:$16 sps:$4 sm:$0xff]   ;;  %v8727_v23 = vld [vmem:[#allocation5 + $0x11c0] ss:$16 sps:$4 sm:$0xff]  }
 0x15f   :  { %5281 = vmatpush1.bf16.msra.mxu1 %v8682_v25  ;;  %5239 = vmatprep.subr.bf16.mxu0 %v8687_v32  ;;  %v8735_v25 = vld [vmem:[#allocation5 + $0x11a4] ss:$16 sps:$4 sm:$0xff]   ;;  %v8736_v37 = vld [vmem:[#allocation5 + $0x13a0] ss:$16 sps:$4 sm:$0xff]  }
 0x160   :  { %5282 = vmatprep.subr.bf16.mxu1 %v8690_v34  ;;  %v10038_v52 = vadd.f32 %v4972_v42, %v4930_v39  ;;  %v8738_v32 = vld [vmem:[#allocation5 + $0x13a4] ss:$16 sps:$4 sm:$0xff]   ;;  %v8733_v34 = vld [vmem:[#allocation5 + $0x11a0] ss:$16 sps:$4 sm:$0xff]  }
 0x161   :  { %v8744_v39 = vld [vmem:[#allocation5 + $0x1384] ss:$16 sps:$4 sm:$0xff]   ;;  %v8742_v42 = vld [vmem:[#allocation5 + $0x1380] ss:$16 sps:$4 sm:$0xff]  }
 0x162   :  { %5240 = vmatpush1.bf16.msra.mxu0 %v8685_v38  ;;  %v8741_v38 = vld [vmem:[#allocation5 + $0x1184] ss:$16 sps:$4 sm:$0xff]  }
 0x163   :  { %5283 = vmatpush1.bf16.msra.mxu1 %v8688_v40  ;;  %5241 = vmatprep.subr.bf16.mxu0 %v8693_v45  ;;  %v8739_v40 = vld [vmem:[#allocation5 + $0x1180] ss:$16 sps:$4 sm:$0xff]   ;;  %v8747_v45 = vld [vmem:[#allocation5 + $0x1164] ss:$16 sps:$4 sm:$0xff]  }
 0x164   :  { %5284 = vmatprep.subr.bf16.mxu1 %v8696_v51  ;;  %v8750_v51 = vld [vmem:[#allocation5 + $0x1364] ss:$16 sps:$4 sm:$0xff]  }
 0x166   :  { %5242 = vmatpush1.bf16.msra.mxu0 %v8691_v54  ;;  %v8745_v54 = vld [vmem:[#allocation5 + $0x1160] ss:$16 sps:$4 sm:$0xff]  }
 0x167   :  { %5285 = vmatpush1.bf16.msra.mxu1 %v8694_v29  ;;  %5243 = vmatprep.subr.bf16.mxu0 %v8699_v30  ;;  %v8748_v29 = vld [vmem:[#allocation5 + $0x1360] ss:$16 sps:$4 sm:$0xff]   ;;  %v8753_v30 = vld [vmem:[#allocation5 + $0x1144] ss:$16 sps:$4 sm:$0xff]  }
 0x168   :  { %5286 = vmatprep.subr.bf16.mxu1 %v8702_v31  ;;  %v8756_v31 = vld [vmem:[#allocation5 + $0x1344] ss:$16 sps:$4 sm:$0xff]  }
 0x16a   :  { %5244 = vmatpush1.bf16.msra.mxu0 %v8697_v57  ;;  %v8751_v57 = vld [vmem:[#allocation5 + $0x1140] ss:$16 sps:$4 sm:$0xff]  }
 0x16b   :  { %5287 = vmatpush1.bf16.msra.mxu1 %v8700_v58  ;;  %5245 = vmatprep.subr.bf16.mxu0 %v8705_v59  ;;  %v8754_v58 = vld [vmem:[#allocation5 + $0x1340] ss:$16 sps:$4 sm:$0xff]   ;;  %v8759_v59 = vld [vmem:[#allocation5 + $0x1124] ss:$16 sps:$4 sm:$0xff]  }
 0x16c   :  { %5288 = vmatprep.subr.bf16.mxu1 %v8708_v60  ;;  %v8762_v60 = vld [vmem:[#allocation5 + $0x1324] ss:$16 sps:$4 sm:$0xff]  }
 0x16e   :  { %5246 = vmatpush1.bf16.msra.mxu0 %v8703_v61  ;;  %v8757_v61 = vld [vmem:[#allocation5 + $0x1120] ss:$16 sps:$4 sm:$0xff]  }
 0x16f   :  { %5289 = vmatpush1.bf16.msra.mxu1 %v8706_v62  ;;  %5247 = vmatprep.subr.bf16.mxu0 %v8711_v0  ;;  %v8760_v62 = vld [vmem:[#allocation5 + $0x1320] ss:$16 sps:$4 sm:$0xff]   ;;  %v8765_v0 = vld [vmem:[#allocation5 + $0x1104] ss:$16 sps:$4 sm:$0xff]  }
 0x170   :  { %5290 = vmatprep.subr.bf16.mxu1 %v8714_v1  ;;  %v8768_v1 = vld [vmem:[#allocation5 + $0x1304] ss:$16 sps:$4 sm:$0xff]  }
 0x172   :  { %5248 = vmatpush1.bf16.msra.mxu0 %v8709_v2  ;;  %v8763_v2 = vld [vmem:[#allocation5 + $0x1100] ss:$16 sps:$4 sm:$0xff]  }
 0x173   :  { %5291 = vmatpush1.bf16.msra.mxu1 %v8712_v3  ;;  %5249 = vmatprep.subr.bf16.mxu0 %v8717_v4  ;;  %v8766_v3 = vld [vmem:[#allocation5 + $0x1300] ss:$16 sps:$4 sm:$0xff]   ;;  %v8771_v4 = vld [vmem:[#allocation5 + $0x14e4] ss:$16 sps:$4 sm:$0xff]  }
 0x174   :  { %5292 = vmatprep.subr.bf16.mxu1 %v8720_v6  ;;  %v8774_v6 = vld [vmem:[#allocation5 + $0x16e4] ss:$16 sps:$4 sm:$0xff]  }
 0x176   :  { %5250 = vmatpush1.bf16.msra.mxu0 %v8715_v7  ;;  %v10040_v7 = vld [vmem:[#allocation2 + $0x50] sm:$0xff] }
 0x177   :  { %5293 = vmatpush1.bf16.msra.mxu1 %v8718_v11  ;;  %5251 = vmatprep.subr.bf16.mxu0 %v8723_v17  ;;  %v10042_v11 = vld [vmem:[#allocation2 + $0xb0] sm:$0xff]  ;;  %v10044_v17 = vld [vmem:[#allocation2 + $0x58] sm:$0xff] }
 0x178   :  { %5294 = vmatprep.subr.bf16.mxu1 %v8726_v18  ;;  %v10046_v18 = vld [vmem:[#allocation2 + $0xb8] sm:$0xff] }
 0x17a   :  { %5252 = vmatpush2.bf16.msra.mxu0 %v8721_v19  ;;  %v8769_v19 = vld [vmem:[#allocation5 + $0x14e0] ss:$16 sps:$4 sm:$0xff]  }
 0x17b   :  { %5295 = vmatpush2.bf16.msra.mxu1 %v8724_v22  ;;  %5253 = vmatprep.subr.bf16.mxu0 %v8729_v47  ;;  %v8772_v22 = vld [vmem:[#allocation5 + $0x16e0] ss:$16 sps:$4 sm:$0xff]   ;;  %v10050_v47 = vcombine.low %v10002_v10, %v10004_v12  ;;  %v10062_v10 = vcombine.high %v10040_v7, %v10042_v11  ;;  %v10066_v12 = vcombine.high %v10044_v17, %v10046_v18 }
 0x17c   :  { %5296 = vmatprep.subr.bf16.mxu1 %v8732_v50  ;;  %v10054_v50 = vcombine.low %v10006_v13, %v10016_v16 }
 0x17e   :  { %5254 = vmatpush2.bf16.msra.mxu0 %v8727_v23  ;;  %v10056_v23 = vpop.f32.mrf.mxu0 }
 0x17f   :  { %5297 = vmatpush2.bf16.msra.mxu1 %v8730_v24  ;;  %5255 = vmatprep.subr.bf16.mxu0 %v8735_v25  ;;  %v10058_v24 = vpop.f32.mrf.mxu1  ;;  %v8777_v25 = vld [vmem:[#allocation5 + $0x14c4] ss:$16 sps:$4 sm:$0xff]  }
 0x180   :  { %5298 = vmatprep.subr.bf16.mxu1 %v8738_v32  ;;  %v8780_v32 = vld [vmem:[#allocation5 + $0x16c4] ss:$16 sps:$4 sm:$0xff]  }
 0x182   :  { %5256 = vmatpush2.bf16.msra.mxu0 %v8733_v34  ;;  %v8775_v34 = vld [vmem:[#allocation5 + $0x14c0] ss:$16 sps:$4 sm:$0xff]  }
 0x183   :  { %5299 = vmatpush2.bf16.msra.mxu1 %v8736_v37  ;;  %5257 = vmatprep.subr.bf16.mxu0 %v8741_v38  ;;  %v8778_v37 = vld [vmem:[#allocation5 + $0x16c0] ss:$16 sps:$4 sm:$0xff]  }
 0x184   :  { %5300 = vmatprep.subr.bf16.mxu1 %v8744_v39 }
 0x186   :  { %5258 = vmatpush2.bf16.msra.mxu0 %v8739_v40 }
 0x187   :  { %5301 = vmatpush2.bf16.msra.mxu1 %v8742_v42  ;;  %5259 = vmatprep.subr.bf16.mxu0 %v8747_v45  ;;  %v8783_v42 = vld [vmem:[#allocation5 + $0x14a4] ss:$16 sps:$4 sm:$0xff]  }
 0x188   :  { %5302 = vmatprep.subr.bf16.mxu1 %v8750_v51  ;;  %v8786_v45 = vld [vmem:[#allocation5 + $0x16a4] ss:$16 sps:$4 sm:$0xff]  }
 0x18a   :  { %5260 = vmatpush2.bf16.msra.mxu0 %v8745_v54  ;;  %v8781_v54 = vld [vmem:[#allocation5 + $0x14a0] ss:$16 sps:$4 sm:$0xff]  }
 0x18b   :  { %5303 = vmatpush2.bf16.msra.mxu1 %v8748_v29  ;;  %5261 = vmatprep.subr.bf16.mxu0 %v8753_v30  ;;  %v8784_v29 = vld [vmem:[#allocation5 + $0x16a0] ss:$16 sps:$4 sm:$0xff]  }
 0x18c   :  { %5304 = vmatprep.subr.bf16.mxu1 %v8756_v31 }
 0x18e   :  { %5262 = vmatpush2.bf16.msra.mxu0 %v8751_v57  ;;  %v8789_v57 = vld [vmem:[#allocation5 + $0x1484] ss:$16 sps:$4 sm:$0xff]  }
 0x18f   :  { %5305 = vmatpush2.bf16.msra.mxu1 %v8754_v58  ;;  %5263 = vmatprep.subr.bf16.mxu0 %v8759_v59  ;;  %v8792_v58 = vld [vmem:[#allocation5 + $0x1684] ss:$16 sps:$4 sm:$0xff]  }
 0x190   :  { %5306 = vmatprep.subr.bf16.mxu1 %v8762_v60  ;;  %v8787_v60 = vld [vmem:[#allocation5 + $0x1480] ss:$16 sps:$4 sm:$0xff]  }
 0x192   :  { %5264 = vmatpush2.bf16.msra.mxu0 %v8757_v61  ;;  %v8790_v61 = vld [vmem:[#allocation5 + $0x1680] ss:$16 sps:$4 sm:$0xff]  }
 0x193   :  { %5307 = vmatpush2.bf16.msra.mxu1 %v8760_v62  ;;  %5265 = vmatprep.subr.bf16.mxu0 %v8765_v0  ;;  %v8795_v62 = vld [vmem:[#allocation5 + $0x1464] ss:$16 sps:$4 sm:$0xff]  }
 0x194   :  { %5308 = vmatprep.subr.bf16.mxu1 %v8768_v1  ;;  %v8798_v0 = vld [vmem:[#allocation5 + $0x1664] ss:$16 sps:$4 sm:$0xff]   ;;  %v8796_v1 = vld [vmem:[#allocation5 + $0x1660] ss:$16 sps:$4 sm:$0xff]  }
 0x196   :  { %5266 = vmatpush2.bf16.msra.mxu0 %v8763_v2  ;;  %v8801_v2 = vld [vmem:[#allocation5 + $0x1444] ss:$16 sps:$4 sm:$0xff]  }
 0x197   :  { %5309 = vmatpush2.bf16.msra.mxu1 %v8766_v3  ;;  %5321 = vmatprep.subr.bf16.mxu0 %v8771_v4  ;;  %v8804_v3 = vld [vmem:[#allocation5 + $0x1644] ss:$16 sps:$4 sm:$0xff]   ;;  %v8799_v4 = vld [vmem:[#allocation5 + $0x1440] ss:$16 sps:$4 sm:$0xff]  }
 0x198   :  { %5364 = vmatprep.subr.bf16.mxu1 %v8774_v6  ;;  %v8802_v6 = vld [vmem:[#allocation5 + $0x1640] ss:$16 sps:$4 sm:$0xff]  }
 0x199   :  { %v5011_v13 = vpop.f32.mrf.mxu0  ;;  %5268 = vmatmul.mubr.bf16.vlgmr.msra.gmra.mxu0 %v10050_v47 }
 0x19a   :  { %v5054_v16 = vpop.f32.mrf.mxu1  ;;  %5311 = vmatmul.mubr.bf16.vlgmr.msra.gmra.mxu1 %v10054_v50  ;;  %v5012_v38 = vadd.f32 %v5011_v13, %v10034_v36  ;;  %5322 = vmatpush1.bf16.msra.mxu0 %v8769_v19  ;;  %v8807_v19 = vld [vmem:[#allocation5 + $0x1424] ss:$16 sps:$4 sm:$0xff]   ;;  %v8811_v13 = vld [vmem:[#allocation5 + $0x1400] ss:$16 sps:$4 sm:$0xff]  }
 0x19b   :  { %5365 = vmatpush1.bf16.msra.mxu1 %v8772_v22  ;;  %v10071_v39 = vpop.f32.mrf.mxu0  ;;  %5323 = vmatprep.subr.bf16.mxu0 %v8777_v25  ;;  %v8810_v22 = vld [vmem:[#allocation5 + $0x1624] ss:$16 sps:$4 sm:$0xff]   ;;  %v8805_v25 = vld [vmem:[#allocation5 + $0x1420] ss:$16 sps:$4 sm:$0xff]  }
 0x19c   :  { %v10073_v40 = vpop.f32.mrf.mxu1  ;;  %5366 = vmatprep.subr.bf16.mxu1 %v8780_v32  ;;  %v10075_v51 = vadd.f32 %v5054_v16, %v5012_v38  ;;  %5353 = vmatprep.mubr.bf16.mxu0 %v10062_v10  ;;  %v8808_v32 = vld [vmem:[#allocation5 + $0x1620] ss:$16 sps:$4 sm:$0xff]   ;;  %v8819_v38 = vld [vmem:[#allocation5 + $0x15e4] ss:$16 sps:$4 sm:$0xff]  }
 0x19d   :  { %5396 = vmatprep.mubr.bf16.mxu1 %v10066_v12  ;;  %v5015_v30 = vpop.f32.mrf.mxu0  ;;  %v8814_v16 = vld [vmem:[#allocation5 + $0x1600] ss:$16 sps:$4 sm:$0xff]  }
 0x19e   :  { %v5016_v36 = vadd.f32 %v5015_v30, %v10038_v52  ;;  %5324 = vmatpush1.bf16.msra.mxu0 %v8775_v34  ;;  %v5058_v31 = vpop.f32.mrf.mxu1  ;;  %v8793_v52 = vld [vmem:[#allocation5 + $0x1460] ss:$16 sps:$4 sm:$0xff]   ;;  %v8813_v34 = vld [vmem:[#allocation5 + $0x1404] ss:$16 sps:$4 sm:$0xff]  }
 0x19f   :  { %5367 = vmatpush1.bf16.msra.mxu1 %v8778_v37  ;;  %5325 = vmatprep.subr.bf16.mxu0 %v8783_v42  ;;  %v8816_v37 = vld [vmem:[#allocation5 + $0x1604] ss:$16 sps:$4 sm:$0xff]  }
 0x1a0   :  { %5368 = vmatprep.subr.bf16.mxu1 %v8786_v45  ;;  %v10080_v59 = vadd.f32 %v5058_v31, %v5016_v36  ;;  %v8822_v42 = vld [vmem:[#allocation5 + $0x17e4] ss:$16 sps:$4 sm:$0xff]   ;;  %v8817_v45 = vld [vmem:[#allocation5 + $0x15e0] ss:$16 sps:$4 sm:$0xff]  }
 0x1a1   :  { %v8828_v30 = vld [vmem:[#allocation5 + $0x17c4] ss:$16 sps:$4 sm:$0xff]   ;;  %v8823_v36 = vld [vmem:[#allocation5 + $0x15c0] ss:$16 sps:$4 sm:$0xff]  }
 0x1a2   :  { %5326 = vmatpush1.bf16.msra.mxu0 %v8781_v54  ;;  %v8820_v54 = vld [vmem:[#allocation5 + $0x17e0] ss:$16 sps:$4 sm:$0xff]  }
 0x1a3   :  { %5369 = vmatpush1.bf16.msra.mxu1 %v8784_v29  ;;  %5327 = vmatprep.subr.bf16.mxu0 %v8789_v57  ;;  %v8825_v29 = vld [vmem:[#allocation5 + $0x15c4] ss:$16 sps:$4 sm:$0xff]   ;;  %v8826_v31 = vld [vmem:[#allocation5 + $0x17c0] ss:$16 sps:$4 sm:$0xff]  }
 0x1a4   :  { %5370 = vmatprep.subr.bf16.mxu1 %v8792_v58  ;;  %v8831_v57 = vld [vmem:[#allocation5 + $0x15a4] ss:$16 sps:$4 sm:$0xff]  }
 0x1a5   :  { %v8834_v58 = vld [vmem:[#allocation5 + $0x17a4] ss:$16 sps:$4 sm:$0xff]  }
 0x1a6   :  { %5328 = vmatpush1.bf16.msra.mxu0 %v8787_v60  ;;  %v8829_v60 = vld [vmem:[#allocation5 + $0x15a0] ss:$16 sps:$4 sm:$0xff]  }
 0x1a7   :  { %5371 = vmatpush1.bf16.msra.mxu1 %v8790_v61  ;;  %5329 = vmatprep.subr.bf16.mxu0 %v8795_v62  ;;  %v8832_v61 = vld [vmem:[#allocation5 + $0x17a0] ss:$16 sps:$4 sm:$0xff]   ;;  %v8837_v62 = vld [vmem:[#allocation5 + $0x1584] ss:$16 sps:$4 sm:$0xff]  }
 0x1a8   :  { %5372 = vmatprep.subr.bf16.mxu1 %v8798_v0  ;;  %v8840_v0 = vld [vmem:[#allocation5 + $0x1784] ss:$16 sps:$4 sm:$0xff]  }
 0x1aa   :  { %5330 = vmatpush1.bf16.msra.mxu0 %v8793_v52  ;;  %v8835_v52 = vld [vmem:[#allocation5 + $0x1580] ss:$16 sps:$4 sm:$0xff]  }
 0x1ab   :  { %5373 = vmatpush1.bf16.msra.mxu1 %v8796_v1  ;;  %5331 = vmatprep.subr.bf16.mxu0 %v8801_v2  ;;  %v8838_v1 = vld [vmem:[#allocation5 + $0x1780] ss:$16 sps:$4 sm:$0xff]   ;;  %v8843_v2 = vld [vmem:[#allocation5 + $0x1564] ss:$16 sps:$4 sm:$0xff]  }
 0x1ac   :  { %5374 = vmatprep.subr.bf16.mxu1 %v8804_v3  ;;  %v8846_v3 = vld [vmem:[#allocation5 + $0x1764] ss:$16 sps:$4 sm:$0xff]  }
 0x1ae   :  { %5332 = vmatpush1.bf16.msra.mxu0 %v8799_v4  ;;  %v8841_v4 = vld [vmem:[#allocation5 + $0x1560] ss:$16 sps:$4 sm:$0xff]  }
 0x1af   :  { %5375 = vmatpush1.bf16.msra.mxu1 %v8802_v6  ;;  %5333 = vmatprep.subr.bf16.mxu0 %v8807_v19  ;;  %v8844_v6 = vld [vmem:[#allocation5 + $0x1760] ss:$16 sps:$4 sm:$0xff]   ;;  %v8849_v19 = vld [vmem:[#allocation5 + $0x1544] ss:$16 sps:$4 sm:$0xff]  }
 0x1b0   :  { %5376 = vmatprep.subr.bf16.mxu1 %v8810_v22  ;;  %v8852_v22 = vld [vmem:[#allocation5 + $0x1744] ss:$16 sps:$4 sm:$0xff]  }
 0x1b2   :  { %5334 = vmatpush1.bf16.msra.mxu0 %v8805_v25  ;;  %v8847_v25 = vld [vmem:[#allocation5 + $0x1540] ss:$16 sps:$4 sm:$0xff]  }
 0x1b3   :  { %5377 = vmatpush1.bf16.msra.mxu1 %v8808_v32  ;;  %5335 = vmatprep.subr.bf16.mxu0 %v8813_v34  ;;  %v8850_v32 = vld [vmem:[#allocation5 + $0x1740] ss:$16 sps:$4 sm:$0xff]   ;;  %v8855_v34 = vld [vmem:[#allocation5 + $0x1524] ss:$16 sps:$4 sm:$0xff]  }
 0x1b4   :  { %5378 = vmatprep.subr.bf16.mxu1 %v8816_v37  ;;  %v8858_v37 = vld [vmem:[#allocation5 + $0x1724] ss:$16 sps:$4 sm:$0xff]  }
 0x1b6   :  { %5336 = vmatpush1.bf16.msra.mxu0 %v8811_v13  ;;  %v8853_v13 = vld [vmem:[#allocation5 + $0x1520] ss:$16 sps:$4 sm:$0xff]  }
 0x1b7   :  { %5379 = vmatpush1.bf16.msra.mxu1 %v8814_v16  ;;  %5337 = vmatprep.subr.bf16.mxu0 %v8819_v38  ;;  %v8856_v16 = vld [vmem:[#allocation5 + $0x1720] ss:$16 sps:$4 sm:$0xff]   ;;  %v8861_v38 = vld [vmem:[#allocation5 + $0x1504] ss:$16 sps:$4 sm:$0xff]  }
 0x1b8   :  { %5380 = vmatprep.subr.bf16.mxu1 %v8822_v42  ;;  %v8864_v42 = vld [vmem:[#allocation5 + $0x1704] ss:$16 sps:$4 sm:$0xff]  }
 0x1ba   :  { %5338 = vmatpush2.bf16.msra.mxu0 %v8817_v45  ;;  %v8859_v45 = vld [vmem:[#allocation5 + $0x1500] ss:$16 sps:$4 sm:$0xff]  }
 0x1bb   :  { %5381 = vmatpush2.bf16.msra.mxu1 %v8820_v54  ;;  %5339 = vmatprep.subr.bf16.mxu0 %v8825_v29  ;;  %v8862_v54 = vld [vmem:[#allocation5 + $0x1700] ss:$16 sps:$4 sm:$0xff]   ;;  %v8867_v29 = vld [vmem:[#allocation5 + $0xec] ss:$16 sps:$4 sm:$0xff]  }
 0x1bc   :  { %5382 = vmatprep.subr.bf16.mxu1 %v8828_v30  ;;  %v8870_v30 = vld [vmem:[#allocation5 + $0x2ec] ss:$16 sps:$4 sm:$0xff]  }
 0x1be   :  { %5340 = vmatpush2.bf16.msra.mxu0 %v8823_v36  ;;  %v8865_v36 = vld [vmem:[#allocation5 + $0xe8] ss:$16 sps:$4 sm:$0xff]  }
 0x1bf   :  { %5383 = vmatpush2.bf16.msra.mxu1 %v8826_v31  ;;  %5341 = vmatprep.subr.bf16.mxu0 %v8831_v57  ;;  %v8868_v31 = vld [vmem:[#allocation5 + $0x2e8] ss:$16 sps:$4 sm:$0xff]   ;;  %v10084_v57 = vcombine.low %v10040_v7, %v10042_v11 }
 0x1c0   :  { %5384 = vmatprep.subr.bf16.mxu1 %v8834_v58  ;;  %v10088_v58 = vcombine.low %v10044_v17, %v10046_v18  ;;  %v8879_v18 = vld [vmem:[#allocation5 + $0xac] ss:$16 sps:$4 sm:$0xff]  }
 0x1c2   :  { %5342 = vmatpush2.bf16.msra.mxu0 %v8829_v60  ;;  %v10090_v60 = vpop.f32.mrf.mxu0 }
 0x1c3   :  { %5385 = vmatpush2.bf16.msra.mxu1 %v8832_v61  ;;  %5343 = vmatprep.subr.bf16.mxu0 %v8837_v62  ;;  %v10092_v61 = vpop.f32.mrf.mxu1  ;;  %v8873_v62 = vld [vmem:[#allocation5 + $0xcc] ss:$16 sps:$4 sm:$0xff]  }
 0x1c4   :  { %5386 = vmatprep.subr.bf16.mxu1 %v8840_v0  ;;  %v8876_v0 = vld [vmem:[#allocation5 + $0x2cc] ss:$16 sps:$4 sm:$0xff]  }
 0x1c6   :  { %5344 = vmatpush2.bf16.msra.mxu0 %v8835_v52  ;;  %v8871_v52 = vld [vmem:[#allocation5 + $0xc8] ss:$16 sps:$4 sm:$0xff]  }
 0x1c7   :  { %5387 = vmatpush2.bf16.msra.mxu1 %v8838_v1  ;;  %5345 = vmatprep.subr.bf16.mxu0 %v8843_v2  ;;  %v8874_v1 = vld [vmem:[#allocation5 + $0x2c8] ss:$16 sps:$4 sm:$0xff]  }
 0x1c8   :  { %5388 = vmatprep.subr.bf16.mxu1 %v8846_v3 }
 0x1ca   :  { %5346 = vmatpush2.bf16.msra.mxu0 %v8841_v4  ;;  %v8882_v4 = vld [vmem:[#allocation5 + $0x2ac] ss:$16 sps:$4 sm:$0xff]  }
 0x1cb   :  { %5389 = vmatpush2.bf16.msra.mxu1 %v8844_v6  ;;  %5347 = vmatprep.subr.bf16.mxu0 %v8849_v19  ;;  %v8877_v19 = vld [vmem:[#allocation5 + $0xa8] ss:$16 sps:$4 sm:$0xff]  }
 0x1cc   :  { %5390 = vmatprep.subr.bf16.mxu1 %v8852_v22  ;;  %v8880_v22 = vld [vmem:[#allocation5 + $0x2a8] ss:$16 sps:$4 sm:$0xff]  }
 0x1ce   :  { %5348 = vmatpush2.bf16.msra.mxu0 %v8847_v25 }
 0x1cf   :  { %5391 = vmatpush2.bf16.msra.mxu1 %v8850_v32  ;;  %5349 = vmatprep.subr.bf16.mxu0 %v8855_v34  ;;  %v8885_v34 = vld [vmem:[#allocation5 + $0x8c] ss:$16 sps:$4 sm:$0xff]  }
 0x1d0   :  { %5392 = vmatprep.subr.bf16.mxu1 %v8858_v37  ;;  %v8888_v37 = vld [vmem:[#allocation5 + $0x28c] ss:$16 sps:$4 sm:$0xff]  }
 0x1d2   :  { %5350 = vmatpush2.bf16.msra.mxu0 %v8853_v13 }
 0x1d3   :  { %5393 = vmatpush2.bf16.msra.mxu1 %v8856_v16  ;;  %5351 = vmatprep.subr.bf16.mxu0 %v8861_v38  ;;  %v8883_v16 = vld [vmem:[#allocation5 + $0x88] ss:$16 sps:$4 sm:$0xff]  }
 0x1d4   :  { %5394 = vmatprep.subr.bf16.mxu1 %v8864_v42  ;;  %v8886_v38 = vld [vmem:[#allocation5 + $0x288] ss:$16 sps:$4 sm:$0xff]  }
 0x1d5   :  { %v8892_v42 = vld [vmem:[#allocation5 + $0x268] ss:$16 sps:$4 sm:$0xff]  }
 0x1d6   :  { %5352 = vmatpush2.bf16.msra.mxu0 %v8859_v45  ;;  %v8897_v45 = vld [vmem:[#allocation5 + $0x4c] ss:$16 sps:$4 sm:$0xff]  }
 0x1d7   :  { %5395 = vmatpush2.bf16.msra.mxu1 %v8862_v54  ;;  %5407 = vmatprep.subr.bf16.mxu0 %v8867_v29  ;;  %v8900_v54 = vld [vmem:[#allocation5 + $0x24c] ss:$16 sps:$4 sm:$0xff]   ;;  %v8895_v29 = vld [vmem:[#allocation5 + $0x48] ss:$16 sps:$4 sm:$0xff]  }
 0x1d8   :  { %5450 = vmatprep.subr.bf16.mxu1 %v8870_v30  ;;  %v8898_v30 = vld [vmem:[#allocation5 + $0x248] ss:$16 sps:$4 sm:$0xff]  }
 0x1d9   :  { %v5097_v2 = vpop.f32.mrf.mxu0  ;;  %5354 = vmatmul.mubr.bf16.vlgmr.msra.gmra.mxu0 %v10084_v57 }
 0x1da   :  { %v5140_v3 = vpop.f32.mrf.mxu1  ;;  %5397 = vmatmul.mubr.bf16.vlgmr.msra.gmra.mxu1 %v10088_v58  ;;  %v5098_v7 = vadd.f32 %v5097_v2, %v10075_v51  ;;  %5408 = vmatpush1.bf16.msra.mxu0 %v8865_v36  ;;  %v8903_v36 = vld [vmem:[#allocation5 + $0x2c] ss:$16 sps:$4 sm:$0xff]   ;;  %v8907_v2 = vld [vmem:[#allocation5 + $0x8] ss:$16 sps:$4 sm:$0xff]  }
 0x1db   :  { %5451 = vmatpush1.bf16.msra.mxu1 %v8868_v31  ;;  %v10097_v11 = vpop.f32.mrf.mxu0  ;;  %5409 = vmatprep.subr.bf16.mxu0 %v8873_v62  ;;  %v8906_v31 = vld [vmem:[#allocation5 + $0x22c] ss:$16 sps:$4 sm:$0xff]   ;;  %v8901_v62 = vld [vmem:[#allocation5 + $0x28] ss:$16 sps:$4 sm:$0xff]  }
 0x1dc   :  { %v10099_v17 = vpop.f32.mrf.mxu1  ;;  %5452 = vmatprep.subr.bf16.mxu1 %v8876_v0  ;;  %v10101_v6 = vadd.f32 %v5140_v3, %v5098_v7  ;;  %5439 = vmatprep.mubr.bf16.mxu0 %v9913_v53  ;;  %v8891_v53 = vld [vmem:[#allocation5 + $0x6c] ss:$16 sps:$4 sm:$0xff]   ;;  %v8904_v0 = vld [vmem:[#allocation5 + $0x228] ss:$16 sps:$4 sm:$0xff]  }
 0x1dd   :  { %5482 = vmatprep.mubr.bf16.mxu1 %v9915_v55  ;;  %v5101_v25 = vpop.f32.mrf.mxu0  ;;  %v8894_v55 = vld [vmem:[#allocation5 + $0x26c] ss:$16 sps:$4 sm:$0xff]   ;;  %v8910_v3 = vld [vmem:[#allocation5 + $0x208] ss:$16 sps:$4 sm:$0xff]  }
 0x1de   :  { %v5102_v51 = vadd.f32 %v5101_v25, %v10080_v59  ;;  %5410 = vmatpush1.bf16.msra.mxu0 %v8871_v52  ;;  %v5144_v32 = vpop.f32.mrf.mxu1  ;;  %v8889_v59 = vld [vmem:[#allocation5 + $0x68] ss:$16 sps:$4 sm:$0xff]   ;;  %v8909_v52 = vld [vmem:[#allocation5 + $0xc] ss:$16 sps:$4 sm:$0xff]  }
 0x1df   :  { %5453 = vmatpush1.bf16.msra.mxu1 %v8874_v1  ;;  %5411 = vmatprep.subr.bf16.mxu0 %v8879_v18  ;;  %v8912_v1 = vld [vmem:[#allocation5 + $0x20c] ss:$16 sps:$4 sm:$0xff]  }
 0x1e0   :  { %5454 = vmatprep.subr.bf16.mxu1 %v8882_v4  ;;  %v10106_v13 = vadd.f32 %v5144_v32, %v5102_v51  ;;  %v8915_v7 = vld [vmem:[#allocation5 + $0x1ec] ss:$16 sps:$4 sm:$0xff]   ;;  %v8913_v4 = vld [vmem:[#allocation5 + $0x1e8] ss:$16 sps:$4 sm:$0xff]  }
 0x1e1   :  { %v8918_v18 = vld [vmem:[#allocation5 + $0x3ec] ss:$16 sps:$4 sm:$0xff]   ;;  %v8919_v51 = vld [vmem:[#allocation5 + $0x1c8] ss:$16 sps:$4 sm:$0xff]  }
 0x1e2   :  { %5412 = vmatpush1.bf16.msra.mxu0 %v8877_v19  ;;  %v8916_v19 = vld [vmem:[#allocation5 + $0x3e8] ss:$16 sps:$4 sm:$0xff]   ;;  %v8924_v25 = vld [vmem:[#allocation5 + $0x3cc] ss:$16 sps:$4 sm:$0xff]  }
 0x1e3   :  { %5455 = vmatpush1.bf16.msra.mxu1 %v8880_v22  ;;  %5413 = vmatprep.subr.bf16.mxu0 %v8885_v34  ;;  %v8921_v22 = vld [vmem:[#allocation5 + $0x1cc] ss:$16 sps:$4 sm:$0xff]   ;;  %v8922_v32 = vld [vmem:[#allocation5 + $0x3c8] ss:$16 sps:$4 sm:$0xff]  }
 0x1e4   :  { %5456 = vmatprep.subr.bf16.mxu1 %v8888_v37  ;;  %v8927_v34 = vld [vmem:[#allocation5 + $0x1ac] ss:$16 sps:$4 sm:$0xff]  }
 0x1e5   :  { %v8930_v37 = vld [vmem:[#allocation5 + $0x3ac] ss:$16 sps:$4 sm:$0xff]  }
 0x1e6   :  { %5414 = vmatpush1.bf16.msra.mxu0 %v8883_v16  ;;  %v8925_v16 = vld [vmem:[#allocation5 + $0x1a8] ss:$16 sps:$4 sm:$0xff]  }
 0x1e7   :  { %5457 = vmatpush1.bf16.msra.mxu1 %v8886_v38  ;;  %5415 = vmatprep.subr.bf16.mxu0 %v8891_v53  ;;  %v8928_v38 = vld [vmem:[#allocation5 + $0x3a8] ss:$16 sps:$4 sm:$0xff]   ;;  %v8933_v53 = vld [vmem:[#allocation5 + $0x18c] ss:$16 sps:$4 sm:$0xff]  }
 0x1e8   :  { %5458 = vmatprep.subr.bf16.mxu1 %v8894_v55  ;;  %v8936_v55 = vld [vmem:[#allocation5 + $0x38c] ss:$16 sps:$4 sm:$0xff]  }
 0x1ea   :  { %5416 = vmatpush1.bf16.msra.mxu0 %v8889_v59  ;;  %v8931_v59 = vld [vmem:[#allocation5 + $0x188] ss:$16 sps:$4 sm:$0xff]  }
 0x1eb   :  { %5459 = vmatpush1.bf16.msra.mxu1 %v8892_v42  ;;  %5417 = vmatprep.subr.bf16.mxu0 %v8897_v45  ;;  %v8934_v42 = vld [vmem:[#allocation5 + $0x388] ss:$16 sps:$4 sm:$0xff]   ;;  %v8939_v45 = vld [vmem:[#allocation5 + $0x16c] ss:$16 sps:$4 sm:$0xff]  }
 0x1ec   :  { %5460 = vmatprep.subr.bf16.mxu1 %v8900_v54  ;;  %v8942_v54 = vld [vmem:[#allocation5 + $0x36c] ss:$16 sps:$4 sm:$0xff]  }
 0x1ee   :  { %5418 = vmatpush1.bf16.msra.mxu0 %v8895_v29  ;;  %v8937_v29 = vld [vmem:[#allocation5 + $0x168] ss:$16 sps:$4 sm:$0xff]  }
 0x1ef   :  { %5461 = vmatpush1.bf16.msra.mxu1 %v8898_v30  ;;  %5419 = vmatprep.subr.bf16.mxu0 %v8903_v36  ;;  %v8940_v30 = vld [vmem:[#allocation5 + $0x368] ss:$16 sps:$4 sm:$0xff]   ;;  %v8945_v36 = vld [vmem:[#allocation5 + $0x14c] ss:$16 sps:$4 sm:$0xff]  }
 0x1f0   :  { %5462 = vmatprep.subr.bf16.mxu1 %v8906_v31  ;;  %v8948_v31 = vld [vmem:[#allocation5 + $0x34c] ss:$16 sps:$4 sm:$0xff]  }
 0x1f2   :  { %5420 = vmatpush1.bf16.msra.mxu0 %v8901_v62  ;;  %v8943_v62 = vld [vmem:[#allocation5 + $0x148] ss:$16 sps:$4 sm:$0xff]  }
 0x1f3   :  { %5463 = vmatpush1.bf16.msra.mxu1 %v8904_v0  ;;  %5421 = vmatprep.subr.bf16.mxu0 %v8909_v52  ;;  %v8946_v0 = vld [vmem:[#allocation5 + $0x348] ss:$16 sps:$4 sm:$0xff]   ;;  %v8951_v52 = vld [vmem:[#allocation5 + $0x12c] ss:$16 sps:$4 sm:$0xff]  }
 0x1f4   :  { %5464 = vmatprep.subr.bf16.mxu1 %v8912_v1  ;;  %v8954_v1 = vld [vmem:[#allocation5 + $0x32c] ss:$16 sps:$4 sm:$0xff]  }
 0x1f6   :  { %5422 = vmatpush1.bf16.msra.mxu0 %v8907_v2  ;;  %v8949_v2 = vld [vmem:[#allocation5 + $0x128] ss:$16 sps:$4 sm:$0xff]  }
 0x1f7   :  { %5465 = vmatpush1.bf16.msra.mxu1 %v8910_v3  ;;  %5423 = vmatprep.subr.bf16.mxu0 %v8915_v7  ;;  %v8952_v3 = vld [vmem:[#allocation5 + $0x328] ss:$16 sps:$4 sm:$0xff]   ;;  %v8957_v7 = vld [vmem:[#allocation5 + $0x10c] ss:$16 sps:$4 sm:$0xff]  }
 0x1f8   :  { %5466 = vmatprep.subr.bf16.mxu1 %v8918_v18  ;;  %v8960_v18 = vld [vmem:[#allocation5 + $0x30c] ss:$16 sps:$4 sm:$0xff]  }
 0x1fa   :  { %5424 = vmatpush2.bf16.msra.mxu0 %v8913_v4  ;;  %v8955_v4 = vld [vmem:[#allocation5 + $0x108] ss:$16 sps:$4 sm:$0xff]  }
 0x1fb   :  { %5467 = vmatpush2.bf16.msra.mxu1 %v8916_v19  ;;  %5425 = vmatprep.subr.bf16.mxu0 %v8921_v22  ;;  %v8958_v19 = vld [vmem:[#allocation5 + $0x308] ss:$16 sps:$4 sm:$0xff]   ;;  %v8963_v22 = vld [vmem:[#allocation5 + $0x4ec] ss:$16 sps:$4 sm:$0xff]  }
 0x1fc   :  { %5468 = vmatprep.subr.bf16.mxu1 %v8924_v25  ;;  %v8966_v25 = vld [vmem:[#allocation5 + $0x6ec] ss:$16 sps:$4 sm:$0xff]  }
 0x1fe   :  { %5426 = vmatpush2.bf16.msra.mxu0 %v8919_v51  ;;  %v8961_v51 = vld [vmem:[#allocation5 + $0x4e8] ss:$16 sps:$4 sm:$0xff]  }
 0x1ff   :  { %5469 = vmatpush2.bf16.msra.mxu1 %v8922_v32  ;;  %5427 = vmatprep.subr.bf16.mxu0 %v8927_v34  ;;  %v8964_v32 = vld [vmem:[#allocation5 + $0x6e8] ss:$16 sps:$4 sm:$0xff]   ;;  %v10108_v34 = vpop.f32.mrf.mxu0 }
 0x200   :  { %5470 = vmatprep.subr.bf16.mxu1 %v8930_v37  ;;  %v10110_v37 = vpop.f32.mrf.mxu1 }
 0x202   :  { %5428 = vmatpush2.bf16.msra.mxu0 %v8925_v16  ;;  %v8969_v16 = vld [vmem:[#allocation5 + $0x4cc] ss:$16 sps:$4 sm:$0xff]  }
 0x203   :  { %5471 = vmatpush2.bf16.msra.mxu1 %v8928_v38  ;;  %5429 = vmatprep.subr.bf16.mxu0 %v8933_v53  ;;  %v8972_v38 = vld [vmem:[#allocation5 + $0x6cc] ss:$16 sps:$4 sm:$0xff]   ;;  %v8967_v53 = vld [vmem:[#allocation5 + $0x4c8] ss:$16 sps:$4 sm:$0xff]  }
 0x204   :  { %5472 = vmatprep.subr.bf16.mxu1 %v8936_v55  ;;  %v8970_v55 = vld [vmem:[#allocation5 + $0x6c8] ss:$16 sps:$4 sm:$0xff]  }
 0x206   :  { %5430 = vmatpush2.bf16.msra.mxu0 %v8931_v59 }
 0x207   :  { %5473 = vmatpush2.bf16.msra.mxu1 %v8934_v42  ;;  %5431 = vmatprep.subr.bf16.mxu0 %v8939_v45 }
 0x208   :  { %5474 = vmatprep.subr.bf16.mxu1 %v8942_v54 }
 0x20a   :  { %5432 = vmatpush2.bf16.msra.mxu0 %v8937_v29 }
 0x20b   :  { %5475 = vmatpush2.bf16.msra.mxu1 %v8940_v30  ;;  %5433 = vmatprep.subr.bf16.mxu0 %v8945_v36  ;;  %v8975_v30 = vld [vmem:[#allocation5 + $0x4ac] ss:$16 sps:$4 sm:$0xff]  }
 0x20c   :  { %5476 = vmatprep.subr.bf16.mxu1 %v8948_v31  ;;  %v8978_v36 = vld [vmem:[#allocation5 + $0x6ac] ss:$16 sps:$4 sm:$0xff]  }
 0x20e   :  { %5434 = vmatpush2.bf16.msra.mxu0 %v8943_v62  ;;  %v8973_v62 = vld [vmem:[#allocation5 + $0x4a8] ss:$16 sps:$4 sm:$0xff]  }
 0x20f   :  { %5477 = vmatpush2.bf16.msra.mxu1 %v8946_v0  ;;  %5435 = vmatprep.subr.bf16.mxu0 %v8951_v52  ;;  %v8976_v0 = vld [vmem:[#allocation5 + $0x6a8] ss:$16 sps:$4 sm:$0xff]   ;;  %v8981_v52 = vld [vmem:[#allocation5 + $0x48c] ss:$16 sps:$4 sm:$0xff]  }
 0x210   :  { %5478 = vmatprep.subr.bf16.mxu1 %v8954_v1  ;;  %v8984_v1 = vld [vmem:[#allocation5 + $0x68c] ss:$16 sps:$4 sm:$0xff]  }
 0x212   :  { %5436 = vmatpush2.bf16.msra.mxu0 %v8949_v2 }
 0x213   :  { %5479 = vmatpush2.bf16.msra.mxu1 %v8952_v3  ;;  %5437 = vmatprep.subr.bf16.mxu0 %v8957_v7  ;;  %v8979_v3 = vld [vmem:[#allocation5 + $0x488] ss:$16 sps:$4 sm:$0xff]  }
 0x214   :  { %5480 = vmatprep.subr.bf16.mxu1 %v8960_v18  ;;  %v8982_v7 = vld [vmem:[#allocation5 + $0x688] ss:$16 sps:$4 sm:$0xff]  }
 0x215   :  { %v8988_v18 = vld [vmem:[#allocation5 + $0x668] ss:$16 sps:$4 sm:$0xff]  }
 0x216   :  { %5438 = vmatpush2.bf16.msra.mxu0 %v8955_v4  ;;  %v8993_v4 = vld [vmem:[#allocation5 + $0x44c] ss:$16 sps:$4 sm:$0xff]  }
 0x217   :  { %5481 = vmatpush2.bf16.msra.mxu1 %v8958_v19  ;;  %5493 = vmatprep.subr.bf16.mxu0 %v8963_v22  ;;  %v8996_v19 = vld [vmem:[#allocation5 + $0x64c] ss:$16 sps:$4 sm:$0xff]   ;;  %v8991_v22 = vld [vmem:[#allocation5 + $0x448] ss:$16 sps:$4 sm:$0xff]  }
 0x218   :  { %5536 = vmatprep.subr.bf16.mxu1 %v8966_v25  ;;  %v8994_v25 = vld [vmem:[#allocation5 + $0x648] ss:$16 sps:$4 sm:$0xff]  }
 0x219   :  { %v5183_v59 = vpop.f32.mrf.mxu0  ;;  %5440 = vmatmul.mubr.bf16.vlgmr.msra.gmra.mxu0 %v9919_v8 }
 0x21a   :  { %v5226_v42 = vpop.f32.mrf.mxu1  ;;  %5483 = vmatmul.mubr.bf16.vlgmr.msra.gmra.mxu1 %v9921_v9  ;;  %v5184_v45 = vadd.f32 %v5183_v59, %v10101_v6  ;;  %5494 = vmatpush1.bf16.msra.mxu0 %v8961_v51  ;;  %v8999_v51 = vld [vmem:[#allocation5 + $0x42c] ss:$16 sps:$4 sm:$0xff]   ;;  %v9003_v59 = vld [vmem:[#allocation5 + $0x408] ss:$16 sps:$4 sm:$0xff]  }
 0x21b   :  { %5537 = vmatpush1.bf16.msra.mxu1 %v8964_v32  ;;  %v10115_v54 = vpop.f32.mrf.mxu0  ;;  %5495 = vmatprep.subr.bf16.mxu0 %v8969_v16  ;;  %v9002_v32 = vld [vmem:[#allocation5 + $0x62c] ss:$16 sps:$4 sm:$0xff]   ;;  %v8997_v16 = vld [vmem:[#allocation5 + $0x428] ss:$16 sps:$4 sm:$0xff]  }
 0x21c   :  { %v10117_v29 = vpop.f32.mrf.mxu1  ;;  %5538 = vmatprep.subr.bf16.mxu1 %v8972_v38  ;;  %v10119_v31 = vadd.f32 %v5226_v42, %v5184_v45  ;;  %5525 = vmatprep.mubr.bf16.mxu0 %v9935_v41  ;;  %v8987_v41 = vld [vmem:[#allocation5 + $0x46c] ss:$16 sps:$4 sm:$0xff]   ;;  %v9000_v38 = vld [vmem:[#allocation5 + $0x628] ss:$16 sps:$4 sm:$0xff]  }
 0x21d   :  { %5568 = vmatprep.mubr.bf16.mxu1 %v9939_v43  ;;  %v5187_v8 = vpop.f32.mrf.mxu0  ;;  %v8990_v43 = vld [vmem:[#allocation5 + $0x66c] ss:$16 sps:$4 sm:$0xff]   ;;  %v9006_v42 = vld [vmem:[#allocation5 + $0x608] ss:$16 sps:$4 sm:$0xff]  }
 0x21e   :  { %v5188_v9 = vadd.f32 %v5187_v8, %v10106_v13  ;;  %5496 = vmatpush1.bf16.msra.mxu0 %v8967_v53  ;;  %v5230_v6 = vpop.f32.mrf.mxu1  ;;  %v8985_v13 = vld [vmem:[#allocation5 + $0x468] ss:$16 sps:$4 sm:$0xff]   ;;  %v9005_v53 = vld [vmem:[#allocation5 + $0x40c] ss:$16 sps:$4 sm:$0xff]  }
 0x21f   :  { %5539 = vmatpush1.bf16.msra.mxu1 %v8970_v55  ;;  %5497 = vmatprep.subr.bf16.mxu0 %v8975_v30  ;;  %v9008_v55 = vld [vmem:[#allocation5 + $0x60c] ss:$16 sps:$4 sm:$0xff]  }
 0x220   :  { %5540 = vmatprep.subr.bf16.mxu1 %v8978_v36  ;;  %v10124_v2 = vadd.f32 %v5230_v6, %v5188_v9  ;;  %v9011_v45 = vld [vmem:[#allocation5 + $0x5ec] ss:$16 sps:$4 sm:$0xff]   ;;  %v9009_v36 = vld [vmem:[#allocation5 + $0x5e8] ss:$16 sps:$4 sm:$0xff]  }
 0x221   :  { %v9014_v30 = vld [vmem:[#allocation5 + $0x7ec] ss:$16 sps:$4 sm:$0xff]   ;;  %v9015_v9 = vld [vmem:[#allocation5 + $0x5c8] ss:$16 sps:$4 sm:$0xff]  }
 0x222   :  { %5498 = vmatpush1.bf16.msra.mxu0 %v8973_v62  ;;  %v9012_v62 = vld [vmem:[#allocation5 + $0x7e8] ss:$16 sps:$4 sm:$0xff]   ;;  %v9020_v8 = vld [vmem:[#allocation5 + $0x7cc] ss:$16 sps:$4 sm:$0xff]  }
 0x223   :  { %5541 = vmatpush1.bf16.msra.mxu1 %v8976_v0  ;;  %5499 = vmatprep.subr.bf16.mxu0 %v8981_v52  ;;  %v9017_v0 = vld [vmem:[#allocation5 + $0x5cc] ss:$16 sps:$4 sm:$0xff]   ;;  %v9018_v6 = vld [vmem:[#allocation5 + $0x7c8] ss:$16 sps:$4 sm:$0xff]  }
 0x224   :  { %5542 = vmatprep.subr.bf16.mxu1 %v8984_v1  ;;  %v9023_v52 = vld [vmem:[#allocation5 + $0x5ac] ss:$16 sps:$4 sm:$0xff]  }
 0x225   :  { %v9026_v1 = vld [vmem:[#allocation5 + $0x7ac] ss:$16 sps:$4 sm:$0xff]  }
 0x226   :  { %5500 = vmatpush1.bf16.msra.mxu0 %v8979_v3  ;;  %v9021_v3 = vld [vmem:[#allocation5 + $0x5a8] ss:$16 sps:$4 sm:$0xff]  }
 0x227   :  { %5543 = vmatpush1.bf16.msra.mxu1 %v8982_v7  ;;  %5501 = vmatprep.subr.bf16.mxu0 %v8987_v41  ;;  %v9024_v7 = vld [vmem:[#allocation5 + $0x7a8] ss:$16 sps:$4 sm:$0xff]   ;;  %v9029_v41 = vld [vmem:[#allocation5 + $0x58c] ss:$16 sps:$4 sm:$0xff]  }
 0x228   :  { %5544 = vmatprep.subr.bf16.mxu1 %v8990_v43  ;;  %v9032_v43 = vld [vmem:[#allocation5 + $0x78c] ss:$16 sps:$4 sm:$0xff]  }
 0x22a   :  { %5502 = vmatpush1.bf16.msra.mxu0 %v8985_v13  ;;  %v9027_v13 = vld [vmem:[#allocation5 + $0x588] ss:$16 sps:$4 sm:$0xff]  }
 0x22b   :  { %5545 = vmatpush1.bf16.msra.mxu1 %v8988_v18  ;;  %5503 = vmatprep.subr.bf16.mxu0 %v8993_v4  ;;  %v9030_v18 = vld [vmem:[#allocation5 + $0x788] ss:$16 sps:$4 sm:$0xff]   ;;  %v9035_v4 = vld [vmem:[#allocation5 + $0x56c] ss:$16 sps:$4 sm:$0xff]  }
 0x22c   :  { %5546 = vmatprep.subr.bf16.mxu1 %v8996_v19  ;;  %v9038_v19 = vld [vmem:[#allocation5 + $0x76c] ss:$16 sps:$4 sm:$0xff]  }
 0x22e   :  { %5504 = vmatpush1.bf16.msra.mxu0 %v8991_v22  ;;  %v9033_v22 = vld [vmem:[#allocation5 + $0x568] ss:$16 sps:$4 sm:$0xff]  }
 0x22f   :  { %5547 = vmatpush1.bf16.msra.mxu1 %v8994_v25  ;;  %5505 = vmatprep.subr.bf16.mxu0 %v8999_v51  ;;  %v9036_v25 = vld [vmem:[#allocation5 + $0x768] ss:$16 sps:$4 sm:$0xff]   ;;  %v9041_v51 = vld [vmem:[#allocation5 + $0x54c] ss:$16 sps:$4 sm:$0xff]  }
 0x230   :  { %5548 = vmatprep.subr.bf16.mxu1 %v9002_v32  ;;  %v9044_v32 = vld [vmem:[#allocation5 + $0x74c] ss:$16 sps:$4 sm:$0xff]  }
 0x232   :  { %5506 = vmatpush1.bf16.msra.mxu0 %v8997_v16  ;;  %v9039_v16 = vld [vmem:[#allocation5 + $0x548] ss:$16 sps:$4 sm:$0xff]  }
 0x233   :  { %5549 = vmatpush1.bf16.msra.mxu1 %v9000_v38  ;;  %5507 = vmatprep.subr.bf16.mxu0 %v9005_v53  ;;  %v9042_v38 = vld [vmem:[#allocation5 + $0x748] ss:$16 sps:$4 sm:$0xff]   ;;  %v9047_v53 = vld [vmem:[#allocation5 + $0x52c] ss:$16 sps:$4 sm:$0xff]  }
 0x234   :  { %5550 = vmatprep.subr.bf16.mxu1 %v9008_v55  ;;  %v9050_v55 = vld [vmem:[#allocation5 + $0x72c] ss:$16 sps:$4 sm:$0xff]  }
 0x236   :  { %5508 = vmatpush1.bf16.msra.mxu0 %v9003_v59  ;;  %v9045_v59 = vld [vmem:[#allocation5 + $0x528] ss:$16 sps:$4 sm:$0xff]  }
 0x237   :  { %5551 = vmatpush1.bf16.msra.mxu1 %v9006_v42  ;;  %5509 = vmatprep.subr.bf16.mxu0 %v9011_v45  ;;  %v9048_v42 = vld [vmem:[#allocation5 + $0x728] ss:$16 sps:$4 sm:$0xff]   ;;  %v9053_v45 = vld [vmem:[#allocation5 + $0x50c] ss:$16 sps:$4 sm:$0xff]  }
 0x238   :  { %5552 = vmatprep.subr.bf16.mxu1 %v9014_v30  ;;  %v9056_v30 = vld [vmem:[#allocation5 + $0x70c] ss:$16 sps:$4 sm:$0xff]  }
 0x23a   :  { %5510 = vmatpush2.bf16.msra.mxu0 %v9009_v36  ;;  %v9051_v36 = vld [vmem:[#allocation5 + $0x508] ss:$16 sps:$4 sm:$0xff]  }
 0x23b   :  { %5553 = vmatpush2.bf16.msra.mxu1 %v9012_v62  ;;  %5511 = vmatprep.subr.bf16.mxu0 %v9017_v0  ;;  %v9054_v62 = vld [vmem:[#allocation5 + $0x708] ss:$16 sps:$4 sm:$0xff]   ;;  %v9059_v0 = vld [vmem:[#allocation5 + $0x8ec] ss:$16 sps:$4 sm:$0xff]  }
 0x23c   :  { %5554 = vmatprep.subr.bf16.mxu1 %v9020_v8  ;;  %v9062_v8 = vld [vmem:[#allocation5 + $0xaec] ss:$16 sps:$4 sm:$0xff]  }
 0x23e   :  { %5512 = vmatpush2.bf16.msra.mxu0 %v9015_v9  ;;  %v9057_v9 = vld [vmem:[#allocation5 + $0x8e8] ss:$16 sps:$4 sm:$0xff]  }
 0x23f   :  { %5555 = vmatpush2.bf16.msra.mxu1 %v9018_v6  ;;  %5513 = vmatprep.subr.bf16.mxu0 %v9023_v52  ;;  %v9060_v6 = vld [vmem:[#allocation5 + $0xae8] ss:$16 sps:$4 sm:$0xff]   ;;  %v10126_v52 = vpop.f32.mrf.mxu0 }
 0x240   :  { %5556 = vmatprep.subr.bf16.mxu1 %v9026_v1  ;;  %v10128_v1 = vpop.f32.mrf.mxu1 }
 0x242   :  { %5514 = vmatpush2.bf16.msra.mxu0 %v9021_v3  ;;  %v9065_v3 = vld [vmem:[#allocation5 + $0x8cc] ss:$16 sps:$4 sm:$0xff]  }
 0x243   :  { %5557 = vmatpush2.bf16.msra.mxu1 %v9024_v7  ;;  %5515 = vmatprep.subr.bf16.mxu0 %v9029_v41  ;;  %v9068_v7 = vld [vmem:[#allocation5 + $0xacc] ss:$16 sps:$4 sm:$0xff]   ;;  %v9063_v41 = vld [vmem:[#allocation5 + $0x8c8] ss:$16 sps:$4 sm:$0xff]  }
 0x244   :  { %5558 = vmatprep.subr.bf16.mxu1 %v9032_v43  ;;  %v9066_v43 = vld [vmem:[#allocation5 + $0xac8] ss:$16 sps:$4 sm:$0xff]  }
 0x246   :  { %5516 = vmatpush2.bf16.msra.mxu0 %v9027_v13 }
 0x247   :  { %5559 = vmatpush2.bf16.msra.mxu1 %v9030_v18  ;;  %5517 = vmatprep.subr.bf16.mxu0 %v9035_v4 }
 0x248   :  { %5560 = vmatprep.subr.bf16.mxu1 %v9038_v19 }
 0x24a   :  { %5518 = vmatpush2.bf16.msra.mxu0 %v9033_v22 }
 0x24b   :  { %5561 = vmatpush2.bf16.msra.mxu1 %v9036_v25  ;;  %5519 = vmatprep.subr.bf16.mxu0 %v9041_v51  ;;  %v9071_v25 = vld [vmem:[#allocation5 + $0x8ac] ss:$16 sps:$4 sm:$0xff]  }
 0x24c   :  { %5562 = vmatprep.subr.bf16.mxu1 %v9044_v32  ;;  %v9074_v51 = vld [vmem:[#allocation5 + $0xaac] ss:$16 sps:$4 sm:$0xff]  }
 0x24e   :  { %5520 = vmatpush2.bf16.msra.mxu0 %v9039_v16  ;;  %v9069_v16 = vld [vmem:[#allocation5 + $0x8a8] ss:$16 sps:$4 sm:$0xff]  }
 0x24f   :  { %5563 = vmatpush2.bf16.msra.mxu1 %v9042_v38  ;;  %5521 = vmatprep.subr.bf16.mxu0 %v9047_v53  ;;  %v9072_v38 = vld [vmem:[#allocation5 + $0xaa8] ss:$16 sps:$4 sm:$0xff]   ;;  %v9077_v53 = vld [vmem:[#allocation5 + $0x88c] ss:$16 sps:$4 sm:$0xff]  }
 0x250   :  { %5564 = vmatprep.subr.bf16.mxu1 %v9050_v55  ;;  %v9080_v55 = vld [vmem:[#allocation5 + $0xa8c] ss:$16 sps:$4 sm:$0xff]  }
 0x252   :  { %5522 = vmatpush2.bf16.msra.mxu0 %v9045_v59 }
 0x253   :  { %5565 = vmatpush2.bf16.msra.mxu1 %v9048_v42  ;;  %5523 = vmatprep.subr.bf16.mxu0 %v9053_v45  ;;  %v9075_v42 = vld [vmem:[#allocation5 + $0x888] ss:$16 sps:$4 sm:$0xff]  }
 0x254   :  { %5566 = vmatprep.subr.bf16.mxu1 %v9056_v30  ;;  %v9078_v45 = vld [vmem:[#allocation5 + $0xa88] ss:$16 sps:$4 sm:$0xff]  }
 0x255   :  { %v9084_v30 = vld [vmem:[#allocation5 + $0xa68] ss:$16 sps:$4 sm:$0xff]  }
 0x256   :  { %5524 = vmatpush2.bf16.msra.mxu0 %v9051_v36  ;;  %v9089_v36 = vld [vmem:[#allocation5 + $0x84c] ss:$16 sps:$4 sm:$0xff]  }
 0x257   :  { %5567 = vmatpush2.bf16.msra.mxu1 %v9054_v62  ;;  %5579 = vmatprep.subr.bf16.mxu0 %v9059_v0  ;;  %v9092_v62 = vld [vmem:[#allocation5 + $0xa4c] ss:$16 sps:$4 sm:$0xff]   ;;  %v9087_v0 = vld [vmem:[#allocation5 + $0x848] ss:$16 sps:$4 sm:$0xff]  }
 0x258   :  { %5622 = vmatprep.subr.bf16.mxu1 %v9062_v8  ;;  %v9090_v8 = vld [vmem:[#allocation5 + $0xa48] ss:$16 sps:$4 sm:$0xff]  }
 0x259   :  { %v5269_v13 = vpop.f32.mrf.mxu0  ;;  %5526 = vmatmul.mubr.bf16.vlgmr.msra.gmra.mxu0 %v9945_v20 }
 0x25a   :  { %v5312_v18 = vpop.f32.mrf.mxu1  ;;  %5569 = vmatmul.mubr.bf16.vlgmr.msra.gmra.mxu1 %v9949_v21  ;;  %v5270_v4 = vadd.f32 %v5269_v13, %v10119_v31  ;;  %5580 = vmatpush1.bf16.msra.mxu0 %v9057_v9  ;;  %v9095_v9 = vld [vmem:[#allocation5 + $0x82c] ss:$16 sps:$4 sm:$0xff]   ;;  %v9099_v13 = vld [vmem:[#allocation5 + $0x808] ss:$16 sps:$4 sm:$0xff]  }
 0x25b   :  { %5623 = vmatpush1.bf16.msra.mxu1 %v9060_v6  ;;  %v10133_v19 = vpop.f32.mrf.mxu0  ;;  %5581 = vmatprep.subr.bf16.mxu0 %v9065_v3  ;;  %v9098_v6 = vld [vmem:[#allocation5 + $0xa2c] ss:$16 sps:$4 sm:$0xff]   ;;  %v9093_v3 = vld [vmem:[#allocation5 + $0x828] ss:$16 sps:$4 sm:$0xff]  }
 0x25c   :  { %v10135_v22 = vpop.f32.mrf.mxu1  ;;  %5624 = vmatprep.subr.bf16.mxu1 %v9068_v7  ;;  %v10137_v32 = vadd.f32 %v5312_v18, %v5270_v4  ;;  %5611 = vmatprep.mubr.bf16.mxu0 %v9963_v33  ;;  %v9083_v33 = vld [vmem:[#allocation5 + $0x86c] ss:$16 sps:$4 sm:$0xff]   ;;  %v9096_v7 = vld [vmem:[#allocation5 + $0xa28] ss:$16 sps:$4 sm:$0xff]  }
 0x25d   :  { %5654 = vmatprep.mubr.bf16.mxu1 %v9967_v35  ;;  %v5273_v20 = vpop.f32.mrf.mxu0  ;;  %v9086_v35 = vld [vmem:[#allocation5 + $0xa6c] ss:$16 sps:$4 sm:$0xff]   ;;  %v9102_v18 = vld [vmem:[#allocation5 + $0xa08] ss:$16 sps:$4 sm:$0xff]  }
 0x25e   :  { %v5274_v21 = vadd.f32 %v5273_v20, %v10124_v2  ;;  %5582 = vmatpush1.bf16.msra.mxu0 %v9063_v41  ;;  %v5316_v31 = vpop.f32.mrf.mxu1  ;;  %v9081_v2 = vld [vmem:[#allocation5 + $0x868] ss:$16 sps:$4 sm:$0xff]   ;;  %v9101_v41 = vld [vmem:[#allocation5 + $0x80c] ss:$16 sps:$4 sm:$0xff]  }
 0x25f   :  { %5625 = vmatpush1.bf16.msra.mxu1 %v9066_v43  ;;  %5583 = vmatprep.subr.bf16.mxu0 %v9071_v25  ;;  %v9104_v43 = vld [vmem:[#allocation5 + $0xa0c] ss:$16 sps:$4 sm:$0xff]  }
 0x260   :  { %5626 = vmatprep.subr.bf16.mxu1 %v9074_v51  ;;  %v10142_v59 = vadd.f32 %v5316_v31, %v5274_v21  ;;  %v9107_v4 = vld [vmem:[#allocation5 + $0x9ec] ss:$16 sps:$4 sm:$0xff]   ;;  %v9105_v51 = vld [vmem:[#allocation5 + $0x9e8] ss:$16 sps:$4 sm:$0xff]  }
 0x261   :  { %v9110_v25 = vld [vmem:[#allocation5 + $0xbec] ss:$16 sps:$4 sm:$0xff]   ;;  %v9111_v21 = vld [vmem:[#allocation5 + $0x9c8] ss:$16 sps:$4 sm:$0xff]  }
 0x262   :  { %5584 = vmatpush1.bf16.msra.mxu0 %v9069_v16  ;;  %v9108_v16 = vld [vmem:[#allocation5 + $0xbe8] ss:$16 sps:$4 sm:$0xff]   ;;  %v9116_v20 = vld [vmem:[#allocation5 + $0xbcc] ss:$16 sps:$4 sm:$0xff]  }
 0x263   :  { %5627 = vmatpush1.bf16.msra.mxu1 %v9072_v38  ;;  %5585 = vmatprep.subr.bf16.mxu0 %v9077_v53  ;;  %v9113_v38 = vld [vmem:[#allocation5 + $0x9cc] ss:$16 sps:$4 sm:$0xff]   ;;  %v9114_v31 = vld [vmem:[#allocation5 + $0xbc8] ss:$16 sps:$4 sm:$0xff]  }
 0x264   :  { %5628 = vmatprep.subr.bf16.mxu1 %v9080_v55  ;;  %v9119_v53 = vld [vmem:[#allocation5 + $0x9ac] ss:$16 sps:$4 sm:$0xff]  }
 0x265   :  { %v9122_v55 = vld [vmem:[#allocation5 + $0xbac] ss:$16 sps:$4 sm:$0xff]  }
 0x266   :  { %5586 = vmatpush1.bf16.msra.mxu0 %v9075_v42  ;;  %v9117_v42 = vld [vmem:[#allocation5 + $0x9a8] ss:$16 sps:$4 sm:$0xff]  }
 0x267   :  { %5629 = vmatpush1.bf16.msra.mxu1 %v9078_v45  ;;  %5587 = vmatprep.subr.bf16.mxu0 %v9083_v33  ;;  %v9120_v45 = vld [vmem:[#allocation5 + $0xba8] ss:$16 sps:$4 sm:$0xff]   ;;  %v9125_v33 = vld [vmem:[#allocation5 + $0x98c] ss:$16 sps:$4 sm:$0xff]  }
 0x268   :  { %5630 = vmatprep.subr.bf16.mxu1 %v9086_v35  ;;  %v9128_v35 = vld [vmem:[#allocation5 + $0xb8c] ss:$16 sps:$4 sm:$0xff]  }
 0x26a   :  { %5588 = vmatpush1.bf16.msra.mxu0 %v9081_v2  ;;  %v9123_v2 = vld [vmem:[#allocation5 + $0x988] ss:$16 sps:$4 sm:$0xff]  }
 0x26b   :  { %5631 = vmatpush1.bf16.msra.mxu1 %v9084_v30  ;;  %5589 = vmatprep.subr.bf16.mxu0 %v9089_v36  ;;  %v9126_v30 = vld [vmem:[#allocation5 + $0xb88] ss:$16 sps:$4 sm:$0xff]   ;;  %v9131_v36 = vld [vmem:[#allocation5 + $0x96c] ss:$16 sps:$4 sm:$0xff]  }
 0x26c   :  { %5632 = vmatprep.subr.bf16.mxu1 %v9092_v62  ;;  %v9134_v62 = vld [vmem:[#allocation5 + $0xb6c] ss:$16 sps:$4 sm:$0xff]  }
 0x26e   :  { %5590 = vmatpush1.bf16.msra.mxu0 %v9087_v0  ;;  %v9129_v0 = vld [vmem:[#allocation5 + $0x968] ss:$16 sps:$4 sm:$0xff]  }
 0x26f   :  { %5633 = vmatpush1.bf16.msra.mxu1 %v9090_v8  ;;  %5591 = vmatprep.subr.bf16.mxu0 %v9095_v9  ;;  %v9132_v8 = vld [vmem:[#allocation5 + $0xb68] ss:$16 sps:$4 sm:$0xff]   ;;  %v9137_v9 = vld [vmem:[#allocation5 + $0x94c] ss:$16 sps:$4 sm:$0xff]  }
 0x270   :  { %5634 = vmatprep.subr.bf16.mxu1 %v9098_v6  ;;  %v9140_v6 = vld [vmem:[#allocation5 + $0xb4c] ss:$16 sps:$4 sm:$0xff]  }
 0x272   :  { %5592 = vmatpush1.bf16.msra.mxu0 %v9093_v3  ;;  %v9135_v3 = vld [vmem:[#allocation5 + $0x948] ss:$16 sps:$4 sm:$0xff]  }
 0x273   :  { %5635 = vmatpush1.bf16.msra.mxu1 %v9096_v7  ;;  %5593 = vmatprep.subr.bf16.mxu0 %v9101_v41  ;;  %v9138_v7 = vld [vmem:[#allocation5 + $0xb48] ss:$16 sps:$4 sm:$0xff]   ;;  %v9143_v41 = vld [vmem:[#allocation5 + $0x92c] ss:$16 sps:$4 sm:$0xff]  }
 0x274   :  { %5636 = vmatprep.subr.bf16.mxu1 %v9104_v43  ;;  %v9146_v43 = vld [vmem:[#allocation5 + $0xb2c] ss:$16 sps:$4 sm:$0xff]  }
 0x276   :  { %5594 = vmatpush1.bf16.msra.mxu0 %v9099_v13  ;;  %v9141_v13 = vld [vmem:[#allocation5 + $0x928] ss:$16 sps:$4 sm:$0xff]  }
 0x277   :  { %5637 = vmatpush1.bf16.msra.mxu1 %v9102_v18  ;;  %5595 = vmatprep.subr.bf16.mxu0 %v9107_v4  ;;  %v9144_v18 = vld [vmem:[#allocation5 + $0xb28] ss:$16 sps:$4 sm:$0xff]   ;;  %v9149_v4 = vld [vmem:[#allocation5 + $0x90c] ss:$16 sps:$4 sm:$0xff]  }
 0x278   :  { %5638 = vmatprep.subr.bf16.mxu1 %v9110_v25  ;;  %v9152_v25 = vld [vmem:[#allocation5 + $0xb0c] ss:$16 sps:$4 sm:$0xff]  }
 0x27a   :  { %5596 = vmatpush2.bf16.msra.mxu0 %v9105_v51  ;;  %v9147_v51 = vld [vmem:[#allocation5 + $0x908] ss:$16 sps:$4 sm:$0xff]  }
 0x27b   :  { %5639 = vmatpush2.bf16.msra.mxu1 %v9108_v16  ;;  %5597 = vmatprep.subr.bf16.mxu0 %v9113_v38  ;;  %v9150_v16 = vld [vmem:[#allocation5 + $0xb08] ss:$16 sps:$4 sm:$0xff]   ;;  %v9155_v38 = vld [vmem:[#allocation5 + $0xcec] ss:$16 sps:$4 sm:$0xff]  }
 0x27c   :  { %5640 = vmatprep.subr.bf16.mxu1 %v9116_v20  ;;  %v9158_v20 = vld [vmem:[#allocation5 + $0xeec] ss:$16 sps:$4 sm:$0xff]  }
 0x27e   :  { %5598 = vmatpush2.bf16.msra.mxu0 %v9111_v21  ;;  %v9153_v21 = vld [vmem:[#allocation5 + $0xce8] ss:$16 sps:$4 sm:$0xff]  }
 0x27f   :  { %5641 = vmatpush2.bf16.msra.mxu1 %v9114_v31  ;;  %5599 = vmatprep.subr.bf16.mxu0 %v9119_v53  ;;  %v9156_v31 = vld [vmem:[#allocation5 + $0xee8] ss:$16 sps:$4 sm:$0xff]   ;;  %v10144_v53 = vpop.f32.mrf.mxu0 }
 0x280   :  { %5642 = vmatprep.subr.bf16.mxu1 %v9122_v55  ;;  %v10146_v55 = vpop.f32.mrf.mxu1 }
 0x282   :  { %5600 = vmatpush2.bf16.msra.mxu0 %v9117_v42  ;;  %v9161_v42 = vld [vmem:[#allocation5 + $0xccc] ss:$16 sps:$4 sm:$0xff]  }
 0x283   :  { %5643 = vmatpush2.bf16.msra.mxu1 %v9120_v45  ;;  %5601 = vmatprep.subr.bf16.mxu0 %v9125_v33  ;;  %v9164_v45 = vld [vmem:[#allocation5 + $0xecc] ss:$16 sps:$4 sm:$0xff]  }
 0x284   :  { %5644 = vmatprep.subr.bf16.mxu1 %v9128_v35 }
 0x286   :  { %5602 = vmatpush2.bf16.msra.mxu0 %v9123_v2 }
 0x287   :  { %5645 = vmatpush2.bf16.msra.mxu1 %v9126_v30  ;;  %5603 = vmatprep.subr.bf16.mxu0 %v9131_v36  ;;  %v9159_v30 = vld [vmem:[#allocation5 + $0xcc8] ss:$16 sps:$4 sm:$0xff]  }
 0x288   :  { %5646 = vmatprep.subr.bf16.mxu1 %v9134_v62  ;;  %v9162_v36 = vld [vmem:[#allocation5 + $0xec8] ss:$16 sps:$4 sm:$0xff]  }
 0x28a   :  { %5604 = vmatpush2.bf16.msra.mxu0 %v9129_v0 }
 0x28b   :  { %5647 = vmatpush2.bf16.msra.mxu1 %v9132_v8  ;;  %5605 = vmatprep.subr.bf16.mxu0 %v9137_v9  ;;  %v9167_v8 = vld [vmem:[#allocation5 + $0xcac] ss:$16 sps:$4 sm:$0xff]  }
 0x28c   :  { %5648 = vmatprep.subr.bf16.mxu1 %v9140_v6  ;;  %v9170_v9 = vld [vmem:[#allocation5 + $0xeac] ss:$16 sps:$4 sm:$0xff]  }
 0x28e   :  { %5606 = vmatpush2.bf16.msra.mxu0 %v9135_v3  ;;  %v9168_v3 = vld [vmem:[#allocation5 + $0xea8] ss:$16 sps:$4 sm:$0xff]  }
 0x28f   :  { %5649 = vmatpush2.bf16.msra.mxu1 %v9138_v7  ;;  %5607 = vmatprep.subr.bf16.mxu0 %v9143_v41  ;;  %v9173_v41 = vld [vmem:[#allocation5 + $0xc8c] ss:$16 sps:$4 sm:$0xff]  }
 0x290   :  { %5650 = vmatprep.subr.bf16.mxu1 %v9146_v43  ;;  %v9176_v43 = vld [vmem:[#allocation5 + $0xe8c] ss:$16 sps:$4 sm:$0xff]  }
 0x292   :  { %5608 = vmatpush2.bf16.msra.mxu0 %v9141_v13 }
 0x293   :  { %5651 = vmatpush2.bf16.msra.mxu1 %v9144_v18  ;;  %5609 = vmatprep.subr.bf16.mxu0 %v9149_v4 }
 0x294   :  { %5652 = vmatprep.subr.bf16.mxu1 %v9152_v25  ;;  %v9174_v25 = vld [vmem:[#allocation5 + $0xe88] ss:$16 sps:$4 sm:$0xff]  }
 0x296   :  { %5610 = vmatpush2.bf16.msra.mxu0 %v9147_v51 }
 0x297   :  { %5653 = vmatpush2.bf16.msra.mxu1 %v9150_v16  ;;  %5665 = vmatprep.subr.bf16.mxu0 %v9155_v38  ;;  %v9177_v16 = vld [vmem:[#allocation5 + $0xc68] ss:$16 sps:$4 sm:$0xff]  }
 0x298   :  { %5708 = vmatprep.subr.bf16.mxu1 %v9158_v20  ;;  %v9180_v38 = vld [vmem:[#allocation5 + $0xe68] ss:$16 sps:$4 sm:$0xff]   ;;  %v9185_v20 = vld [vmem:[#allocation5 + $0xc4c] ss:$16 sps:$4 sm:$0xff]  }
 0x299   :  { %v5355_v33 = vpop.f32.mrf.mxu0  ;;  %5612 = vmatmul.mubr.bf16.vlgmr.msra.gmra.mxu0 %v9979_v48 }
 0x29a   :  { %v5398_v35 = vpop.f32.mrf.mxu1  ;;  %5655 = vmatmul.mubr.bf16.vlgmr.msra.gmra.mxu1 %v9983_v49  ;;  %v5356_v2 = vadd.f32 %v5355_v33, %v10137_v32  ;;  %5666 = vmatpush1.bf16.msra.mxu0 %v9153_v21  ;;  %v9165_v32 = vld [vmem:[#allocation5 + $0xca8] ss:$16 sps:$4 sm:$0xff]   ;;  %v9188_v21 = vld [vmem:[#allocation5 + $0xe4c] ss:$16 sps:$4 sm:$0xff]  }
 0x29b   :  { %5709 = vmatpush1.bf16.msra.mxu1 %v9156_v31  ;;  %v10151_v62 = vpop.f32.mrf.mxu0  ;;  %5667 = vmatprep.subr.bf16.mxu0 %v9161_v42  ;;  %v9183_v31 = vld [vmem:[#allocation5 + $0xc48] ss:$16 sps:$4 sm:$0xff]   ;;  %v9194_v33 = vld [vmem:[#allocation5 + $0xe2c] ss:$16 sps:$4 sm:$0xff]  }
 0x29c   :  { %v10153_v0 = vpop.f32.mrf.mxu1  ;;  %5710 = vmatprep.subr.bf16.mxu1 %v9164_v45  ;;  %v5399_v6 = vadd.f32 %v5398_v35, %v5356_v2  ;;  %5697 = vmatprep.mubr.bf16.mxu0 %v9989_v56  ;;  %v9171_v56 = vld [vmem:[#allocation5 + $0xc88] ss:$16 sps:$4 sm:$0xff]   ;;  %v9191_v45 = vld [vmem:[#allocation5 + $0xc2c] ss:$16 sps:$4 sm:$0xff]  }
 0x29d   :  { %5740 = vmatprep.mubr.bf16.mxu1 %v9993_v28  ;;  %v5359_v48 = vpop.f32.mrf.mxu0  ;;  %v9179_v28 = vld [vmem:[#allocation5 + $0xc6c] ss:$16 sps:$4 sm:$0xff]   ;;  %v9186_v42 = vld [vmem:[#allocation5 + $0xe48] ss:$16 sps:$4 sm:$0xff]  }
 0x29e   :  { %v5360_v49 = vadd.f32 %v5359_v48, %v10142_v59  ;;  %5668 = vmatpush1.bf16.msra.mxu0 %v9159_v30  ;;  %v5402_v7 = vpop.f32.mrf.mxu1  ;;  %v5923_v18 = vmax.f32 %v5399_v6, 0.0  ;;  %v9182_v59 = vld [vmem:[#allocation5 + $0xe6c] ss:$16 sps:$4 sm:$0xff]   ;;  %v9189_v35 = vld [vmem:[#allocation5 + $0xc28] ss:$16 sps:$4 sm:$0xff]  }
 0x29f   :  { %5711 = vmatpush1.bf16.msra.mxu1 %v9162_v36  ;;  %5669 = vmatprep.subr.bf16.mxu0 %v9167_v8  ;;  %v9192_v2 = vld [vmem:[#allocation5 + $0xe28] ss:$16 sps:$4 sm:$0xff]   ;;  %v9197_v30 = vld [vmem:[#allocation5 + $0xc0c] ss:$16 sps:$4 sm:$0xff]  }
 0x2a0   :  { %5712 = vmatprep.subr.bf16.mxu1 %v9170_v9  ;;  %v5403_v13 = vadd.f32 %v5402_v7, %v5360_v49  ;;  %v9200_v36 = vld [vmem:[#allocation5 + $0xe0c] ss:$16 sps:$4 sm:$0xff]   ;;  %v9195_v8 = vld [vmem:[#allocation5 + $0xc08] ss:$16 sps:$4 sm:$0xff]  }
 0x2a1   :  { %v9198_v9 = vld [vmem:[#allocation5 + $0xe08] ss:$16 sps:$4 sm:$0xff]   ;;  %v9203_v6 = vld [vmem:[#allocation5 + $0xdec] ss:$16 sps:$4 sm:$0xff]  }
 0x2a2   :  { %v5927_v4 = vmax.f32 %v5403_v13, 0.0  ;;  %5670 = vmatpush1.bf16.msra.mxu0 %v9165_v32  ;;  %v9206_v48 = vld [vmem:[#allocation5 + $0xfec] ss:$16 sps:$4 sm:$0xff]   ;;  %v9201_v49 = vld [vmem:[#allocation5 + $0xde8] ss:$16 sps:$4 sm:$0xff]  }
 0x2a3   :  { %5713 = vmatpush1.bf16.msra.mxu1 %v9168_v3  ;;  %5671 = vmatprep.subr.bf16.mxu0 %v9173_v41  ;;  %v9204_v32 = vld [vmem:[#allocation5 + $0xfe8] ss:$16 sps:$4 sm:$0xff]   ;;  %v9209_v3 = vld [vmem:[#allocation5 + $0xdcc] ss:$16 sps:$4 sm:$0xff]  }
 0x2a4   :  { %5714 = vmatprep.subr.bf16.mxu1 %v9176_v43  ;;  %v10158_v51 = vpack.c.bf16 %v5927_v4, %v5923_v18  ;;  %v9212_v7 = vld [vmem:[#allocation5 + $0xfcc] ss:$16 sps:$4 sm:$0xff]   ;;  %v9207_v41 = vld [vmem:[#allocation5 + $0xdc8] ss:$16 sps:$4 sm:$0xff]  }
 0x2a5   :  { %v9210_v43 = vld [vmem:[#allocation5 + $0xfc8] ss:$16 sps:$4 sm:$0xff]   ;;  %v9215_v13 = vld [vmem:[#allocation5 + $0xdac] ss:$16 sps:$4 sm:$0xff]  }
 0x2a6   :  { %5672 = vmatpush1.bf16.msra.mxu0 %v9171_v56  ;;  %v9218_v18 = vld [vmem:[#allocation5 + $0xfac] ss:$16 sps:$4 sm:$0xff]   ;;  %v9213_v4 = vld [vmem:[#allocation5 + $0xda8] ss:$16 sps:$4 sm:$0xff]  }
 0x2a7   :  { %5715 = vmatpush1.bf16.msra.mxu1 %v9174_v25  ;;  %5673 = vmatprep.subr.bf16.mxu0 %v9179_v28  ;;  %v9216_v56 = vld [vmem:[#allocation5 + $0xfa8] ss:$16 sps:$4 sm:$0xff]   ;;  %v9221_v25 = vld [vmem:[#allocation5 + $0xd8c] ss:$16 sps:$4 sm:$0xff]  }
 0x2a8   :  { %5716 = vmatprep.subr.bf16.mxu1 %v9182_v59  ;;  %v9224_v28 = vld [vmem:[#allocation5 + $0xf8c] ss:$16 sps:$4 sm:$0xff]   ;;  %v9219_v59 = vld [vmem:[#allocation5 + $0xd88] ss:$16 sps:$4 sm:$0xff]  }
 0x2aa   :  { %5674 = vmatpush1.bf16.msra.mxu0 %v9177_v16  ;;  %v9222_v16 = vld [vmem:[#allocation5 + $0xf88] ss:$16 sps:$4 sm:$0xff]  }
 0x2ab   :  { %5717 = vmatpush1.bf16.msra.mxu1 %v9180_v38  ;;  %5675 = vmatprep.subr.bf16.mxu0 %v9185_v20  ;;  %v9227_v38 = vld [vmem:[#allocation5 + $0xd6c] ss:$16 sps:$4 sm:$0xff]  }
 0x2ac   :  { %5718 = vmatprep.subr.bf16.mxu1 %v9188_v21  ;;  %v9230_v20 = vld [vmem:[#allocation5 + $0xf6c] ss:$16 sps:$4 sm:$0xff]   ;;  %v9225_v21 = vld [vmem:[#allocation5 + $0xd68] ss:$16 sps:$4 sm:$0xff]  }
 0x2ae   :  { %5676 = vmatpush1.bf16.msra.mxu0 %v9183_v31  ;;  %v9228_v31 = vld [vmem:[#allocation5 + $0xf68] ss:$16 sps:$4 sm:$0xff]  }
 0x2af   :  { %5719 = vmatpush1.bf16.msra.mxu1 %v9186_v42  ;;  %5677 = vmatprep.subr.bf16.mxu0 %v9191_v45  ;;  %v9233_v42 = vld [vmem:[#allocation5 + $0xd4c] ss:$16 sps:$4 sm:$0xff]  }
 0x2b0   :  { %5720 = vmatprep.subr.bf16.mxu1 %v9194_v33  ;;  %v9236_v45 = vld [vmem:[#allocation5 + $0xf4c] ss:$16 sps:$4 sm:$0xff]   ;;  %v9231_v33 = vld [vmem:[#allocation5 + $0xd48] ss:$16 sps:$4 sm:$0xff]  }
 0x2b2   :  { %5678 = vmatpush1.bf16.msra.mxu0 %v9189_v35  ;;  %v9234_v35 = vld [vmem:[#allocation5 + $0xf48] ss:$16 sps:$4 sm:$0xff]  }
 0x2b3   :  { %5721 = vmatpush1.bf16.msra.mxu1 %v9192_v2  ;;  %5679 = vmatprep.subr.bf16.mxu0 %v9197_v30  ;;  %v9239_v2 = vld [vmem:[#allocation5 + $0xd2c] ss:$16 sps:$4 sm:$0xff]  }
 0x2b4   :  { %5722 = vmatprep.subr.bf16.mxu1 %v9200_v36  ;;  %v9242_v30 = vld [vmem:[#allocation5 + $0xf2c] ss:$16 sps:$4 sm:$0xff]   ;;  %v9237_v36 = vld [vmem:[#allocation5 + $0xd28] ss:$16 sps:$4 sm:$0xff]  }
 0x2b6   :  { %5680 = vmatpush1.bf16.msra.mxu0 %v9195_v8  ;;  %v9240_v8 = vld [vmem:[#allocation5 + $0xf28] ss:$16 sps:$4 sm:$0xff]  }
 0x2b7   :  { %5723 = vmatpush1.bf16.msra.mxu1 %v9198_v9  ;;  %5681 = vmatprep.subr.bf16.mxu0 %v9203_v6  ;;  %v9245_v9 = vld [vmem:[#allocation5 + $0xd0c] ss:$16 sps:$4 sm:$0xff]  }
 0x2b8   :  { %5724 = vmatprep.subr.bf16.mxu1 %v9206_v48  ;;  %v9248_v6 = vld [vmem:[#allocation5 + $0xf0c] ss:$16 sps:$4 sm:$0xff]   ;;  %v9243_v48 = vld [vmem:[#allocation5 + $0xd08] ss:$16 sps:$4 sm:$0xff]  }
 0x2ba   :  { %5682 = vmatpush2.bf16.msra.mxu0 %v9201_v49  ;;  %v9246_v49 = vld [vmem:[#allocation5 + $0xf08] ss:$16 sps:$4 sm:$0xff]  }
 0x2bb   :  { %5725 = vmatpush2.bf16.msra.mxu1 %v9204_v32  ;;  %5683 = vmatprep.subr.bf16.mxu0 %v9209_v3  ;;  %v9251_v32 = vld [vmem:[#allocation5 + $0x10ec] ss:$16 sps:$4 sm:$0xff]  }
 0x2bc   :  { %5726 = vmatprep.subr.bf16.mxu1 %v9212_v7  ;;  %v9254_v3 = vld [vmem:[#allocation5 + $0x12ec] ss:$16 sps:$4 sm:$0xff]   ;;  %v9249_v7 = vld [vmem:[#allocation5 + $0x10e8] ss:$16 sps:$4 sm:$0xff]  }
 0x2be   :  { %5684 = vmatpush2.bf16.msra.mxu0 %v9207_v41  ;;  %v9252_v41 = vld [vmem:[#allocation5 + $0x12e8] ss:$16 sps:$4 sm:$0xff]  }
 0x2bf   :  { %5727 = vmatpush2.bf16.msra.mxu1 %v9210_v43  ;;  %5685 = vmatprep.subr.bf16.mxu0 %v9215_v13  ;;  %v9257_v43 = vld [vmem:[#allocation5 + $0x10cc] ss:$16 sps:$4 sm:$0xff]  }
 0x2c0   :  { %5728 = vmatprep.subr.bf16.mxu1 %v9218_v18  ;;  %v9260_v13 = vld [vmem:[#allocation5 + $0x12cc] ss:$16 sps:$4 sm:$0xff]   ;;  %v9255_v18 = vld [vmem:[#allocation5 + $0x10c8] ss:$16 sps:$4 sm:$0xff]  }
 0x2c2   :  { %5686 = vmatpush2.bf16.msra.mxu0 %v9213_v4  ;;  %v9258_v4 = vld [vmem:[#allocation5 + $0x12c8] ss:$16 sps:$4 sm:$0xff]  }
 0x2c3   :  { %5729 = vmatpush2.bf16.msra.mxu1 %v9216_v56  ;;  %5687 = vmatprep.subr.bf16.mxu0 %v9221_v25  ;;  %v9263_v56 = vld [vmem:[#allocation5 + $0x10ac] ss:$16 sps:$4 sm:$0xff]  }
 0x2c4   :  { %5730 = vmatprep.subr.bf16.mxu1 %v9224_v28  ;;  %v9266_v25 = vld [vmem:[#allocation5 + $0x12ac] ss:$16 sps:$4 sm:$0xff]   ;;  %v9261_v28 = vld [vmem:[#allocation5 + $0x10a8] ss:$16 sps:$4 sm:$0xff]  }
 0x2c6   :  { %5688 = vmatpush2.bf16.msra.mxu0 %v9219_v59  ;;  %v9264_v59 = vld [vmem:[#allocation5 + $0x12a8] ss:$16 sps:$4 sm:$0xff]  }
 0x2c7   :  { %5731 = vmatpush2.bf16.msra.mxu1 %v9222_v16  ;;  %5689 = vmatprep.subr.bf16.mxu0 %v9227_v38  ;;  %v9267_v16 = vld [vmem:[#allocation5 + $0x1088] ss:$16 sps:$4 sm:$0xff]  }
 0x2c8   :  { %5732 = vmatprep.subr.bf16.mxu1 %v9230_v20  ;;  %v9270_v38 = vld [vmem:[#allocation5 + $0x1288] ss:$16 sps:$4 sm:$0xff]   ;;  %v9275_v20 = vld [vmem:[#allocation5 + $0x106c] ss:$16 sps:$4 sm:$0xff]  }
 0x2ca   :  { %5690 = vmatpush2.bf16.msra.mxu0 %v9225_v21  ;;  %v9278_v21 = vld [vmem:[#allocation5 + $0x126c] ss:$16 sps:$4 sm:$0xff]  }
 0x2cb   :  { %5733 = vmatpush2.bf16.msra.mxu1 %v9228_v31  ;;  %5691 = vmatprep.subr.bf16.mxu0 %v9233_v42  ;;  %v9281_v31 = vld [vmem:[#allocation5 + $0x104c] ss:$16 sps:$4 sm:$0xff]  }
 0x2cc   :  { %5734 = vmatprep.subr.bf16.mxu1 %v9236_v45  ;;  %v9284_v42 = vld [vmem:[#allocation5 + $0x124c] ss:$16 sps:$4 sm:$0xff]   ;;  %v9279_v45 = vld [vmem:[#allocation5 + $0x1048] ss:$16 sps:$4 sm:$0xff]  }
 0x2ce   :  { %5692 = vmatpush2.bf16.msra.mxu0 %v9231_v33  ;;  %v9282_v33 = vld [vmem:[#allocation5 + $0x1248] ss:$16 sps:$4 sm:$0xff]  }
 0x2cf   :  { %5735 = vmatpush2.bf16.msra.mxu1 %v9234_v35  ;;  %5693 = vmatprep.subr.bf16.mxu0 %v9239_v2  ;;  %v9287_v35 = vld [vmem:[#allocation5 + $0x102c] ss:$16 sps:$4 sm:$0xff]  }
 0x2d0   :  { %5736 = vmatprep.subr.bf16.mxu1 %v9242_v30  ;;  %v9290_v2 = vld [vmem:[#allocation5 + $0x122c] ss:$16 sps:$4 sm:$0xff]   ;;  %v9285_v30 = vld [vmem:[#allocation5 + $0x1028] ss:$16 sps:$4 sm:$0xff]  }
 0x2d2   :  { %5694 = vmatpush2.bf16.msra.mxu0 %v9237_v36  ;;  %v9288_v36 = vld [vmem:[#allocation5 + $0x1228] ss:$16 sps:$4 sm:$0xff]  }
 0x2d3   :  { %5737 = vmatpush2.bf16.msra.mxu1 %v9240_v8  ;;  %5695 = vmatprep.subr.bf16.mxu0 %v9245_v9  ;;  %v9293_v8 = vld [vmem:[#allocation5 + $0x100c] ss:$16 sps:$4 sm:$0xff]  }
 0x2d4   :  { %5738 = vmatprep.subr.bf16.mxu1 %v9248_v6  ;;  %v9296_v9 = vld [vmem:[#allocation5 + $0x120c] ss:$16 sps:$4 sm:$0xff]   ;;  %v9291_v6 = vld [vmem:[#allocation5 + $0x1008] ss:$16 sps:$4 sm:$0xff]  }
 0x2d6   :  { %5696 = vmatpush2.bf16.msra.mxu0 %v9243_v48  ;;  %v9294_v48 = vld [vmem:[#allocation5 + $0x1208] ss:$16 sps:$4 sm:$0xff]  }
 0x2d7   :  { %5739 = vmatpush2.bf16.msra.mxu1 %v9246_v49  ;;  %5751 = vmatprep.subr.bf16.mxu0 %v9251_v32  ;;  %v9299_v49 = vld [vmem:[#allocation5 + $0x11ec] ss:$16 sps:$4 sm:$0xff]  }
 0x2d8   :  { %5794 = vmatprep.subr.bf16.mxu1 %v9254_v3  ;;  %v9302_v32 = vld [vmem:[#allocation5 + $0x13ec] ss:$16 sps:$4 sm:$0xff]   ;;  %v9297_v3 = vld [vmem:[#allocation5 + $0x11e8] ss:$16 sps:$4 sm:$0xff]  }
 0x2d9   :  { %5698 = vmatmul.mubr.bf16.vlgmr.msra.gmra.mxu0 %v10010_v14  ;;  %v9269_v14 = vld [vmem:[#allocation5 + $0x108c] ss:$16 sps:$4 sm:$0xff]  }
 0x2da   :  { %5741 = vmatmul.mubr.bf16.vlgmr.msra.gmra.mxu1 %v10014_v15  ;;  %5752 = vmatpush1.bf16.msra.mxu0 %v9249_v7  ;;  %v9272_v15 = vld [vmem:[#allocation5 + $0x128c] ss:$16 sps:$4 sm:$0xff]   ;;  %v9300_v7 = vld [vmem:[#allocation5 + $0x13e8] ss:$16 sps:$4 sm:$0xff]  }
 0x2db   :  { %5795 = vmatpush1.bf16.msra.mxu1 %v9252_v41  ;;  %5753 = vmatprep.subr.bf16.mxu0 %v9257_v43  ;;  %v9305_v41 = vld [vmem:[#allocation5 + $0x11cc] ss:$16 sps:$4 sm:$0xff]  }
 0x2dc   :  { %5796 = vmatprep.subr.bf16.mxu1 %v9260_v13  ;;  %5783 = vmatprep.mubr.bf16.mxu0 %v10022_v44  ;;  %v9273_v44 = vld [vmem:[#allocation5 + $0x1068] ss:$16 sps:$4 sm:$0xff]   ;;  %v9308_v43 = vld [vmem:[#allocation5 + $0x13cc] ss:$16 sps:$4 sm:$0xff]  }
 0x2dd   :  { %5826 = vmatprep.mubr.bf16.mxu1 %v10026_v46  ;;  %v9276_v46 = vld [vmem:[#allocation5 + $0x1268] ss:$16 sps:$4 sm:$0xff]  }
 0x2de   :  { %5754 = vmatpush1.bf16.msra.mxu0 %v9255_v18  ;;  %v9303_v13 = vld [vmem:[#allocation5 + $0x11c8] ss:$16 sps:$4 sm:$0xff]  }
 0x2df   :  { %5797 = vmatpush1.bf16.msra.mxu1 %v9258_v4  ;;  %5755 = vmatprep.subr.bf16.mxu0 %v9263_v56  ;;  %v9306_v18 = vld [vmem:[#allocation5 + $0x13c8] ss:$16 sps:$4 sm:$0xff]   ;;  %v9311_v4 = vld [vmem:[#allocation5 + $0x11ac] ss:$16 sps:$4 sm:$0xff]  }
 0x2e0   :  { %5798 = vmatprep.subr.bf16.mxu1 %v9266_v25  ;;  %v9314_v56 = vld [vmem:[#allocation5 + $0x13ac] ss:$16 sps:$4 sm:$0xff]   ;;  %v9309_v25 = vld [vmem:[#allocation5 + $0x11a8] ss:$16 sps:$4 sm:$0xff]  }
 0x2e2   :  { %5756 = vmatpush1.bf16.msra.mxu0 %v9261_v28  ;;  %v9312_v28 = vld [vmem:[#allocation5 + $0x13a8] ss:$16 sps:$4 sm:$0xff]  }
 0x2e3   :  { %5799 = vmatpush1.bf16.msra.mxu1 %v9264_v59  ;;  %5757 = vmatprep.subr.bf16.mxu0 %v9269_v14  ;;  %v9317_v59 = vld [vmem:[#allocation5 + $0x118c] ss:$16 sps:$4 sm:$0xff]  }
 0x2e4   :  { %5800 = vmatprep.subr.bf16.mxu1 %v9272_v15  ;;  %v9320_v14 = vld [vmem:[#allocation5 + $0x138c] ss:$16 sps:$4 sm:$0xff]   ;;  %v9315_v15 = vld [vmem:[#allocation5 + $0x1188] ss:$16 sps:$4 sm:$0xff]  }
 0x2e6   :  { %5758 = vmatpush1.bf16.msra.mxu0 %v9267_v16  ;;  %v9318_v16 = vld [vmem:[#allocation5 + $0x1388] ss:$16 sps:$4 sm:$0xff]  }
 0x2e7   :  { %5801 = vmatpush1.bf16.msra.mxu1 %v9270_v38  ;;  %5759 = vmatprep.subr.bf16.mxu0 %v9275_v20  ;;  %v9323_v38 = vld [vmem:[#allocation5 + $0x116c] ss:$16 sps:$4 sm:$0xff]  }
 0x2e8   :  { %5802 = vmatprep.subr.bf16.mxu1 %v9278_v21  ;;  %v9326_v20 = vld [vmem:[#allocation5 + $0x136c] ss:$16 sps:$4 sm:$0xff]   ;;  %v9321_v21 = vld [vmem:[#allocation5 + $0x1168] ss:$16 sps:$4 sm:$0xff]  }
 0x2ea   :  { %5760 = vmatpush1.bf16.msra.mxu0 %v9273_v44  ;;  %v9324_v44 = vld [vmem:[#allocation5 + $0x1368] ss:$16 sps:$4 sm:$0xff]  }
 0x2eb   :  { %5803 = vmatpush1.bf16.msra.mxu1 %v9276_v46  ;;  %5761 = vmatprep.subr.bf16.mxu0 %v9281_v31  ;;  %v9329_v46 = vld [vmem:[#allocation5 + $0x114c] ss:$16 sps:$4 sm:$0xff]  }
 0x2ec   :  { %5804 = vmatprep.subr.bf16.mxu1 %v9284_v42  ;;  %v9332_v31 = vld [vmem:[#allocation5 + $0x134c] ss:$16 sps:$4 sm:$0xff]   ;;  %v9327_v42 = vld [vmem:[#allocation5 + $0x1148] ss:$16 sps:$4 sm:$0xff]  }
 0x2ee   :  { %5762 = vmatpush1.bf16.msra.mxu0 %v9279_v45  ;;  %v9330_v45 = vld [vmem:[#allocation5 + $0x1348] ss:$16 sps:$4 sm:$0xff]  }
 0x2ef   :  { %5805 = vmatpush1.bf16.msra.mxu1 %v9282_v33  ;;  %5763 = vmatprep.subr.bf16.mxu0 %v9287_v35  ;;  %v9335_v33 = vld [vmem:[#allocation5 + $0x112c] ss:$16 sps:$4 sm:$0xff]  }
 0x2f0   :  { %5806 = vmatprep.subr.bf16.mxu1 %v9290_v2  ;;  %v9338_v35 = vld [vmem:[#allocation5 + $0x132c] ss:$16 sps:$4 sm:$0xff]   ;;  %v9333_v2 = vld [vmem:[#allocation5 + $0x1128] ss:$16 sps:$4 sm:$0xff]  }
 0x2f2   :  { %5764 = vmatpush1.bf16.msra.mxu0 %v9285_v30  ;;  %v9336_v30 = vld [vmem:[#allocation5 + $0x1328] ss:$16 sps:$4 sm:$0xff]  }
 0x2f3   :  { %5807 = vmatpush1.bf16.msra.mxu1 %v9288_v36  ;;  %5765 = vmatprep.subr.bf16.mxu0 %v9293_v8  ;;  %v9341_v36 = vld [vmem:[#allocation5 + $0x110c] ss:$16 sps:$4 sm:$0xff]  }
 0x2f4   :  { %5808 = vmatprep.subr.bf16.mxu1 %v9296_v9  ;;  %v9344_v8 = vld [vmem:[#allocation5 + $0x130c] ss:$16 sps:$4 sm:$0xff]   ;;  %v9339_v9 = vld [vmem:[#allocation5 + $0x1108] ss:$16 sps:$4 sm:$0xff]  }
 0x2f6   :  { %5766 = vmatpush1.bf16.msra.mxu0 %v9291_v6  ;;  %v9342_v6 = vld [vmem:[#allocation5 + $0x1308] ss:$16 sps:$4 sm:$0xff]  }
 0x2f7   :  { %5809 = vmatpush1.bf16.msra.mxu1 %v9294_v48  ;;  %5767 = vmatprep.subr.bf16.mxu0 %v9299_v49  ;;  %v9347_v48 = vld [vmem:[#allocation5 + $0x14ec] ss:$16 sps:$4 sm:$0xff]  }
 0x2f8   :  { %5810 = vmatprep.subr.bf16.mxu1 %v9302_v32  ;;  %v9350_v49 = vld [vmem:[#allocation5 + $0x16ec] ss:$16 sps:$4 sm:$0xff]   ;;  %v9345_v32 = vld [vmem:[#allocation5 + $0x14e8] ss:$16 sps:$4 sm:$0xff]  }
 0x2fa   :  { %5768 = vmatpush2.bf16.msra.mxu0 %v9297_v3  ;;  %v9348_v3 = vld [vmem:[#allocation5 + $0x16e8] ss:$16 sps:$4 sm:$0xff]  }
 0x2fb   :  { %5811 = vmatpush2.bf16.msra.mxu1 %v9300_v7  ;;  %5769 = vmatprep.subr.bf16.mxu0 %v9305_v41  ;;  %v9353_v7 = vld [vmem:[#allocation5 + $0x14cc] ss:$16 sps:$4 sm:$0xff]  }
 0x2fc   :  { %5812 = vmatprep.subr.bf16.mxu1 %v9308_v43  ;;  %v9356_v41 = vld [vmem:[#allocation5 + $0x16cc] ss:$16 sps:$4 sm:$0xff]   ;;  %v9351_v43 = vld [vmem:[#allocation5 + $0x14c8] ss:$16 sps:$4 sm:$0xff]  }
 0x2fe   :  { %5770 = vmatpush2.bf16.msra.mxu0 %v9303_v13  ;;  %v9354_v13 = vld [vmem:[#allocation5 + $0x16c8] ss:$16 sps:$4 sm:$0xff]  }
 0x2ff   :  { %5813 = vmatpush2.bf16.msra.mxu1 %v9306_v18  ;;  %5771 = vmatprep.subr.bf16.mxu0 %v9311_v4  ;;  %v9359_v18 = vld [vmem:[#allocation5 + $0x14ac] ss:$16 sps:$4 sm:$0xff]  }
 0x300   :  { %5814 = vmatprep.subr.bf16.mxu1 %v9314_v56  ;;  %v9362_v4 = vld [vmem:[#allocation5 + $0x16ac] ss:$16 sps:$4 sm:$0xff]   ;;  %v9357_v56 = vld [vmem:[#allocation5 + $0x14a8] ss:$16 sps:$4 sm:$0xff]  }
 0x302   :  { %5772 = vmatpush2.bf16.msra.mxu0 %v9309_v25  ;;  %v9360_v25 = vld [vmem:[#allocation5 + $0x16a8] ss:$16 sps:$4 sm:$0xff]  }
 0x303   :  { %5815 = vmatpush2.bf16.msra.mxu1 %v9312_v28  ;;  %5773 = vmatprep.subr.bf16.mxu0 %v9317_v59  ;;  %v9363_v28 = vld [vmem:[#allocation5 + $0x1488] ss:$16 sps:$4 sm:$0xff]  }
 0x304   :  { %5816 = vmatprep.subr.bf16.mxu1 %v9320_v14  ;;  %v9366_v59 = vld [vmem:[#allocation5 + $0x1688] ss:$16 sps:$4 sm:$0xff]   ;;  %v9371_v14 = vld [vmem:[#allocation5 + $0x146c] ss:$16 sps:$4 sm:$0xff]  }
 0x306   :  { %5774 = vmatpush2.bf16.msra.mxu0 %v9315_v15  ;;  %v9374_v15 = vld [vmem:[#allocation5 + $0x166c] ss:$16 sps:$4 sm:$0xff]  }
 0x307   :  { %5817 = vmatpush2.bf16.msra.mxu1 %v9318_v16  ;;  %5775 = vmatprep.subr.bf16.mxu0 %v9323_v38  ;;  %v9377_v16 = vld [vmem:[#allocation5 + $0x144c] ss:$16 sps:$4 sm:$0xff]  }
 0x308   :  { %5818 = vmatprep.subr.bf16.mxu1 %v9326_v20  ;;  %v9380_v38 = vld [vmem:[#allocation5 + $0x164c] ss:$16 sps:$4 sm:$0xff]   ;;  %v917_v20 = vsub.s32 1, %v9999_v63 }
 0x30a   :  { %5776 = vmatpush2.bf16.msra.mxu0 %v9321_v21  ;;  %v9375_v21 = vld [vmem:[#allocation5 + $0x1448] ss:$16 sps:$4 sm:$0xff]  }
 0x30b   :  { %5819 = vmatpush2.bf16.msra.mxu1 %v9324_v44  ;;  %5777 = vmatprep.subr.bf16.mxu0 %v9329_v46  ;;  %v9378_v44 = vld [vmem:[#allocation5 + $0x1648] ss:$16 sps:$4 sm:$0xff]   ;;  %v9383_v46 = vld [vmem:[#allocation5 + $0x142c] ss:$16 sps:$4 sm:$0xff]  }
 0x30c   :  { %5820 = vmatprep.subr.bf16.mxu1 %v9332_v31  ;;  %v9386_v31 = vld [vmem:[#allocation5 + $0x162c] ss:$16 sps:$4 sm:$0xff]  }
 0x30e   :  { %5778 = vmatpush2.bf16.msra.mxu0 %v9327_v42  ;;  %v10169_v42 = vld [vmem:[#allocation7] sm:$0xf] }
 0x30f   :  { %5821 = vmatpush2.bf16.msra.mxu1 %v9330_v45  ;;  %5779 = vmatprep.subr.bf16.mxu0 %v9335_v33  ;;  %v918_v45 = vrot.slane %v10169_v42, %v917_v20 }
 0x310   :  { %5822 = vmatprep.subr.bf16.mxu1 %v9338_v35  ;;  %v9381_v35 = vld [vmem:[#allocation5 + $0x1428] ss:$16 sps:$4 sm:$0xff]  }
 0x311   :  { %v4932_v33 = vadd.f32 %v10056_v23, %v918_v45  ;;  %v9398_v23 = vld [vmem:[#allocation5 + $0x17ec] ss:$16 sps:$4 sm:$0xff]  }
 0x312   :  { %5780 = vmatpush2.bf16.msra.mxu0 %v9333_v2  ;;  %v9384_v2 = vld [vmem:[#allocation5 + $0x1628] ss:$16 sps:$4 sm:$0xff]  }
 0x313   :  { %5823 = vmatpush2.bf16.msra.mxu1 %v9336_v30  ;;  %5781 = vmatprep.subr.bf16.mxu0 %v9341_v36  ;;  %v9389_v30 = vld [vmem:[#allocation5 + $0x140c] ss:$16 sps:$4 sm:$0xff]  }
 0x314   :  { %5824 = vmatprep.subr.bf16.mxu1 %v9344_v8  ;;  %v9392_v36 = vld [vmem:[#allocation5 + $0x160c] ss:$16 sps:$4 sm:$0xff]   ;;  %v4928_v8 = vadd.f32 %v10030_v26, %v918_v45  ;;  %v9396_v26 = vld [vmem:[#allocation5 + $0x17e8] ss:$16 sps:$4 sm:$0xff]  }
 0x315   :  { %v9426_v45 = vld [vmem:[#allocation5 + $0x1748] ss:$16 sps:$4 sm:$0xff]  }
 0x316   :  { %5782 = vmatpush2.bf16.msra.mxu0 %v9339_v9  ;;  %v4975_v9 = vadd.f32 %v10058_v24, %v4932_v33  ;;  %v9401_v24 = vld [vmem:[#allocation5 + $0x15cc] ss:$16 sps:$4 sm:$0xff]  }
 0x317   :  { %5825 = vmatpush2.bf16.msra.mxu1 %v9342_v6  ;;  %5837 = vmatprep.subr.bf16.mxu0 %v9347_v48  ;;  %v9387_v6 = vld [vmem:[#allocation5 + $0x1408] ss:$16 sps:$4 sm:$0xff]  }
 0x318   :  { %5880 = vmatprep.subr.bf16.mxu1 %v9350_v49  ;;  %v9390_v48 = vld [vmem:[#allocation5 + $0x1608] ss:$16 sps:$4 sm:$0xff]   ;;  %v9395_v49 = vld [vmem:[#allocation5 + $0x15ec] ss:$16 sps:$4 sm:$0xff]  }
 0x319   :  { %5784 = vmatmul.mubr.bf16.vlgmr.msra.gmra.mxu0 %v10050_v47  ;;  %v9365_v47 = vld [vmem:[#allocation5 + $0x148c] ss:$16 sps:$4 sm:$0xff]  }
 0x31a   :  { %5827 = vmatmul.mubr.bf16.vlgmr.msra.gmra.mxu1 %v10054_v50  ;;  %5838 = vmatpush1.bf16.msra.mxu0 %v9345_v32  ;;  %v9368_v50 = vld [vmem:[#allocation5 + $0x168c] ss:$16 sps:$4 sm:$0xff]   ;;  %v4971_v32 = vadd.f32 %v10032_v27, %v4928_v8  ;;  %v9399_v27 = vld [vmem:[#allocation5 + $0x15c8] ss:$16 sps:$4 sm:$0xff]  }
 0x31b   :  { %5881 = vmatpush1.bf16.msra.mxu1 %v9348_v3  ;;  %5839 = vmatprep.subr.bf16.mxu0 %v9353_v7  ;;  %v5018_v3 = vadd.f32 %v10090_v60, %v4975_v9  ;;  %v9402_v60 = vld [vmem:[#allocation5 + $0x17c8] ss:$16 sps:$4 sm:$0xff]   ;;  %v9440_v8 = vld [vmem:[#allocation5 + $0x170c] ss:$16 sps:$4 sm:$0xff]  }
 0x31c   :  { %5882 = vmatprep.subr.bf16.mxu1 %v9356_v41  ;;  %5869 = vmatprep.mubr.bf16.mxu0 %v10062_v10  ;;  %v9369_v10 = vld [vmem:[#allocation5 + $0x1468] ss:$16 sps:$4 sm:$0xff]   ;;  %v5014_v7 = vadd.f32 %v10071_v39, %v4971_v32  ;;  %v9407_v39 = vld [vmem:[#allocation5 + $0x15ac] ss:$16 sps:$4 sm:$0xff]   ;;  %v9441_v32 = vld [vmem:[#allocation8 + $0xe0] ss:$16 sps:$4 sm:$0xff]  }
 0x31d   :  { %5912 = vmatprep.mubr.bf16.mxu1 %v10066_v12  ;;  %v9372_v12 = vld [vmem:[#allocation5 + $0x1668] ss:$16 sps:$4 sm:$0xff]  }
 0x31e   :  { %5840 = vmatpush1.bf16.msra.mxu0 %v9351_v43  ;;  %v9393_v41 = vld [vmem:[#allocation5 + $0x15e8] ss:$16 sps:$4 sm:$0xff]   ;;  %v9404_v43 = vld [vmem:[#allocation5 + $0x17cc] ss:$16 sps:$4 sm:$0xff]  }
 0x31f   :  { %5883 = vmatpush1.bf16.msra.mxu1 %v9354_v13  ;;  %5841 = vmatprep.subr.bf16.mxu0 %v9359_v18  ;;  %v5061_v13 = vadd.f32 %v10092_v61, %v5018_v3  ;;  %v5057_v18 = vadd.f32 %v10073_v40, %v5014_v7  ;;  %v9408_v61 = vld [vmem:[#allocation5 + $0x17a8] ss:$16 sps:$4 sm:$0xff]   ;;  %v9413_v40 = vld [vmem:[#allocation5 + $0x158c] ss:$16 sps:$4 sm:$0xff]  }
 0x320   :  { %5884 = vmatprep.subr.bf16.mxu1 %v9362_v4  ;;  %v9446_v3 = vld [vmem:[#allocation8 + $0xc4] ss:$16 sps:$4 sm:$0xff]  }
 0x321   :  { %v5104_v4 = vadd.f32 %v10108_v34, %v5061_v13  ;;  %v9416_v34 = vld [vmem:[#allocation5 + $0x178c] ss:$16 sps:$4 sm:$0xff]   ;;  %v9537_v13 = vld [vmem:[#allocation8 + $0x2e0] ss:$16 sps:$4 sm:$0xff]  }
 0x322   :  { %5842 = vmatpush1.bf16.msra.mxu0 %v9357_v56  ;;  %v9410_v56 = vld [vmem:[#allocation5 + $0x17ac] ss:$16 sps:$4 sm:$0xff]  }
 0x323   :  { %5885 = vmatpush1.bf16.msra.mxu1 %v9360_v25  ;;  %5843 = vmatprep.subr.bf16.mxu0 %v9365_v47  ;;  %v5100_v25 = vadd.f32 %v10097_v11, %v5057_v18  ;;  %v5147_v47 = vadd.f32 %v10110_v37, %v5104_v4  ;;  %v9414_v11 = vld [vmem:[#allocation5 + $0x1788] ss:$16 sps:$4 sm:$0xff]   ;;  %v9419_v37 = vld [vmem:[#allocation5 + $0x156c] ss:$16 sps:$4 sm:$0xff]  }
 0x324   :  { %5886 = vmatprep.subr.bf16.mxu1 %v9368_v50  ;;  %v9405_v50 = vld [vmem:[#allocation5 + $0x15a8] ss:$16 sps:$4 sm:$0xff]  }
 0x325   :  { %v9539_v18 = vld [vmem:[#allocation8 + $0x2e4] ss:$16 sps:$4 sm:$0xff]  }
 0x326   :  { %5844 = vmatpush1.bf16.msra.mxu0 %v9363_v28  ;;  %v5143_v28 = vadd.f32 %v10099_v17, %v5100_v25  ;;  %v9417_v17 = vld [vmem:[#allocation5 + $0x1568] ss:$16 sps:$4 sm:$0xff]   ;;  %v9456_v25 = vld [vmem:[#allocation8 + $0x40] ss:$16 sps:$4 sm:$0xff]  }
 0x327   :  { %5887 = vmatpush1.bf16.msra.mxu1 %v9366_v59  ;;  %5845 = vmatprep.subr.bf16.mxu0 %v9371_v14  ;;  %v5190_v59 = vadd.f32 %v10126_v52, %v5147_v47  ;;  %v9420_v52 = vld [vmem:[#allocation5 + $0x1768] ss:$16 sps:$4 sm:$0xff]  }
 0x328   :  { %5888 = vmatprep.subr.bf16.mxu1 %v9374_v15  ;;  %v5186_v14 = vadd.f32 %v10115_v54, %v5143_v28  ;;  %v9411_v15 = vld [vmem:[#allocation5 + $0x1588] ss:$16 sps:$4 sm:$0xff]   ;;  %v9425_v54 = vld [vmem:[#allocation5 + $0x154c] ss:$16 sps:$4 sm:$0xff]  }
 0x329   :  { %v9455_v4 = vld [vmem:[#allocation8 + $0x64] ss:$16 sps:$4 sm:$0xff]  }
 0x32a   :  { %5846 = vmatpush1.bf16.msra.mxu0 %v9369_v10  ;;  %v9422_v10 = vld [vmem:[#allocation5 + $0x176c] ss:$16 sps:$4 sm:$0xff]   ;;  %v9548_v47 = vld [vmem:[#allocation8 + $0x284] ss:$16 sps:$4 sm:$0xff]  }
 0x32b   :  { %5889 = vmatpush1.bf16.msra.mxu1 %v9372_v12  ;;  %5847 = vmatprep.subr.bf16.mxu0 %v9377_v16  ;;  %v5233_v12 = vadd.f32 %v10128_v1, %v5190_v59  ;;  %v5229_v16 = vadd.f32 %v10117_v29, %v5186_v14  ;;  %v9423_v1 = vld [vmem:[#allocation5 + $0x1548] ss:$16 sps:$4 sm:$0xff]   ;;  %v9431_v29 = vld [vmem:[#allocation5 + $0x152c] ss:$16 sps:$4 sm:$0xff]   ;;  %v9549_v59 = vld [vmem:[#allocation8 + $0x260] ss:$16 sps:$4 sm:$0xff]  }
 0x32c   :  { %5890 = vmatprep.subr.bf16.mxu1 %v9380_v38  ;;  %v9464_v28 = vld [vmem:[#allocation8 + $0x4] ss:$16 sps:$4 sm:$0xff]   ;;  %v9462_v14 = vld [vmem:[#allocation8] ss:$16 sps:$4 sm:$0xff]  }
 0x32d   :  { %v5276_v38 = vadd.f32 %v10144_v53, %v5233_v12  ;;  %v9434_v53 = vld [vmem:[#allocation5 + $0x172c] ss:$16 sps:$4 sm:$0xff]   ;;  %v9557_v12 = vld [vmem:[#allocation8 + $0x224] ss:$16 sps:$4 sm:$0xff]  }
 0x32e   :  { %5848 = vmatpush1.bf16.msra.mxu0 %v9375_v21  ;;  %v9428_v21 = vld [vmem:[#allocation5 + $0x174c] ss:$16 sps:$4 sm:$0xff]  }
 0x32f   :  { %5891 = vmatpush1.bf16.msra.mxu1 %v9378_v44  ;;  %5849 = vmatprep.subr.bf16.mxu0 %v9383_v46  ;;  %v5272_v44 = vadd.f32 %v10133_v19, %v5229_v16  ;;  %v5361_v46 = vpop.f32.mrf.mxu0  ;;  %v9432_v19 = vld [vmem:[#allocation5 + $0x1728] ss:$16 sps:$4 sm:$0xff]  }
 0x330   :  { %5892 = vmatprep.subr.bf16.mxu1 %v9386_v31  ;;  %v5319_v31 = vadd.f32 %v10146_v55, %v5276_v38  ;;  %v9437_v55 = vld [vmem:[#allocation5 + $0x150c] ss:$16 sps:$4 sm:$0xff]   ;;  %v9470_v16 = vld [vmem:[#allocation8 + $0x1c4] ss:$16 sps:$4 sm:$0xff]   ;;  %v9555_v38 = vld [vmem:[#allocation8 + $0x220] ss:$16 sps:$4 sm:$0xff]  }
 0x331   :  { %v5315_v33 = vadd.f32 %v10135_v22, %v5272_v44  ;;  %v9443_v22 = vld [vmem:[#allocation8 + $0xe4] ss:$16 sps:$4 sm:$0xff]   ;;  %v9471_v44 = vld [vmem:[#allocation8 + $0x1a0] ss:$16 sps:$4 sm:$0xff]  }
 0x332   :  { %5850 = vmatpush1.bf16.msra.mxu0 %v9381_v35  ;;  %v5362_v35 = vadd.f32 %v5361_v46, %v5319_v31  ;;  %v9563_v46 = vld [vmem:[#allocation8 + $0x3e4] ss:$16 sps:$4 sm:$0xff]  }
 0x333   :  { %5893 = vmatpush1.bf16.msra.mxu1 %v9384_v2  ;;  %5851 = vmatprep.subr.bf16.mxu0 %v9389_v30  ;;  %v5358_v2 = vadd.f32 %v10151_v62, %v5315_v33  ;;  %v9429_v30 = vld [vmem:[#allocation5 + $0x1528] ss:$16 sps:$4 sm:$0xff]   ;;  %v9564_v33 = vld [vmem:[#allocation8 + $0x3c0] ss:$16 sps:$4 sm:$0xff]  }
 0x334   :  { %5894 = vmatprep.subr.bf16.mxu1 %v9392_v36  ;;  %v5404_v36 = vpop.f32.mrf.mxu1  ;;  %v9476_v31 = vld [vmem:[#allocation8 + $0x184] ss:$16 sps:$4 sm:$0xff]  }
 0x335   :  { %v5405_v9 = vadd.f32 %v5404_v36, %v5362_v35  ;;  %v9477_v35 = vld [vmem:[#allocation8 + $0x160] ss:$16 sps:$4 sm:$0xff]  }
 0x336   :  { %5852 = vmatpush1.bf16.msra.mxu0 %v9387_v6  ;;  %v5401_v6 = vadd.f32 %v10153_v0, %v5358_v2  ;;  %v9444_v0 = vld [vmem:[#allocation8 + $0xc0] ss:$16 sps:$4 sm:$0xff]   ;;  %v9569_v2 = vld [vmem:[#allocation8 + $0x3a4] ss:$16 sps:$4 sm:$0xff]  }
 0x337   :  { %5895 = vmatpush1.bf16.msra.mxu1 %v9390_v48  ;;  %5853 = vmatprep.subr.bf16.mxu0 %v9395_v49  ;;  %v9435_v48 = vld [vmem:[#allocation5 + $0x1508] ss:$16 sps:$4 sm:$0xff]   ;;  %v5928_v62 = vmax.f32 %v5405_v9, 0.0  ;;  %v9480_v36 = vld [vmem:[#allocation8 + $0x140] ss:$16 sps:$4 sm:$0xff]  }
 0x338   :  { %5896 = vmatprep.subr.bf16.mxu1 %v9398_v23  ;;  %v9438_v49 = vld [vmem:[#allocation5 + $0x1708] ss:$16 sps:$4 sm:$0xff]   ;;  %v5924_v23 = vmax.f32 %v5401_v6, 0.0  ;;  %v9570_v9 = vld [vmem:[#allocation8 + $0x380] ss:$16 sps:$4 sm:$0xff]  }
 0x339   :  { %v9483_v6 = vld [vmem:[#allocation8 + $0x120] ss:$16 sps:$4 sm:$0xff]  }
 0x33a   :  { %5854 = vmatpush2.bf16.msra.mxu0 %v9393_v41  ;;  %v10196_v7 = vpack.c.bf16 %v5928_v62, %v5924_v23  ;;  %v9449_v41 = vld [vmem:[#allocation8 + $0xa4] ss:$16 sps:$4 sm:$0xff]   ;;  %v9486_v62 = vld [vmem:[#allocation8 + $0x100] ss:$16 sps:$4 sm:$0xff]   ;;  %v9491_v23 = vld [vmem:[#allocation8 + $0xec] ss:$16 sps:$4 sm:$0xff]  }
 0x33b   :  { %5897 = vmatpush2.bf16.msra.mxu1 %v9396_v26  ;;  %5855 = vmatprep.subr.bf16.mxu0 %v9401_v24  ;;  %v9447_v26 = vld [vmem:[#allocation8 + $0xa0] ss:$16 sps:$4 sm:$0xff]   ;;  %v9452_v24 = vld [vmem:[#allocation8 + $0x84] ss:$16 sps:$4 sm:$0xff]  }
 0x33c   :  { %5898 = vmatprep.subr.bf16.mxu1 %v9404_v43  ;;  %v9450_v43 = vld [vmem:[#allocation8 + $0x80] ss:$16 sps:$4 sm:$0xff]  }
 0x33e   :  { %5856 = vmatpush2.bf16.msra.mxu0 %v9399_v27  ;;  %v9542_v27 = vld [vmem:[#allocation8 + $0x2c4] ss:$16 sps:$4 sm:$0xff]  }
 0x33f   :  { %5899 = vmatpush2.bf16.msra.mxu1 %v9402_v60  ;;  %5857 = vmatprep.subr.bf16.mxu0 %v9407_v39  ;;  %v9545_v60 = vld [vmem:[#allocation8 + $0x2a4] ss:$16 sps:$4 sm:$0xff]  }
 0x340   :  { %5900 = vmatprep.subr.bf16.mxu1 %v9410_v56  ;;  %v9458_v39 = vld [vmem:[#allocation8 + $0x44] ss:$16 sps:$4 sm:$0xff]   ;;  %v9543_v56 = vld [vmem:[#allocation8 + $0x2a0] ss:$16 sps:$4 sm:$0xff]  }
 0x342   :  { %5858 = vmatpush2.bf16.msra.mxu0 %v9405_v50  ;;  %v9461_v50 = vld [vmem:[#allocation8 + $0x24] ss:$16 sps:$4 sm:$0xff]  }
 0x343   :  { %5901 = vmatpush2.bf16.msra.mxu1 %v9408_v61  ;;  %5859 = vmatprep.subr.bf16.mxu0 %v9413_v40  ;;  %v9546_v61 = vld [vmem:[#allocation8 + $0x280] ss:$16 sps:$4 sm:$0xff]  }
 0x344   :  { %5902 = vmatprep.subr.bf16.mxu1 %v9416_v34  ;;  %v9459_v40 = vld [vmem:[#allocation8 + $0x20] ss:$16 sps:$4 sm:$0xff]   ;;  %v9551_v34 = vld [vmem:[#allocation8 + $0x264] ss:$16 sps:$4 sm:$0xff]  }
 0x346   :  { %5860 = vmatpush2.bf16.msra.mxu0 %v9411_v15  ;;  %v9554_v15 = vld [vmem:[#allocation8 + $0x244] ss:$16 sps:$4 sm:$0xff]  }
 0x347   :  { %5903 = vmatpush2.bf16.msra.mxu1 %v9414_v11  ;;  %5861 = vmatprep.subr.bf16.mxu0 %v9419_v37  ;;  %v9467_v11 = vld [vmem:[#allocation8 + $0x1e4] ss:$16 sps:$4 sm:$0xff]   ;;  %v9552_v37 = vld [vmem:[#allocation8 + $0x240] ss:$16 sps:$4 sm:$0xff]  }
 0x348   :  { %5904 = vmatprep.subr.bf16.mxu1 %v9422_v10  ;;  %v9465_v10 = vld [vmem:[#allocation8 + $0x1e0] ss:$16 sps:$4 sm:$0xff]  }
 0x34a   :  { %5862 = vmatpush2.bf16.msra.mxu0 %v9417_v17  ;;  %v9468_v17 = vld [vmem:[#allocation8 + $0x1c0] ss:$16 sps:$4 sm:$0xff]  }
 0x34b   :  { %5905 = vmatpush2.bf16.msra.mxu1 %v9420_v52  ;;  %5863 = vmatprep.subr.bf16.mxu0 %v9425_v54  ;;  %v9560_v52 = vld [vmem:[#allocation8 + $0x204] ss:$16 sps:$4 sm:$0xff]  }
 0x34c   :  { %5906 = vmatprep.subr.bf16.mxu1 %v9428_v21  ;;  %v9473_v54 = vld [vmem:[#allocation8 + $0x1a4] ss:$16 sps:$4 sm:$0xff]   ;;  %v9558_v21 = vld [vmem:[#allocation8 + $0x200] ss:$16 sps:$4 sm:$0xff]  }
 0x34e   :  { %5864 = vmatpush2.bf16.msra.mxu0 %v9423_v1  ;;  %v9561_v1 = vld [vmem:[#allocation8 + $0x3e0] ss:$16 sps:$4 sm:$0xff]  }
 0x34f   :  { %5907 = vmatpush2.bf16.msra.mxu1 %v9426_v45  ;;  %5865 = vmatprep.subr.bf16.mxu0 %v9431_v29  ;;  %v9474_v45 = vld [vmem:[#allocation8 + $0x180] ss:$16 sps:$4 sm:$0xff]   ;;  %v9566_v29 = vld [vmem:[#allocation8 + $0x3c4] ss:$16 sps:$4 sm:$0xff]  }
 0x350   :  { %5908 = vmatprep.subr.bf16.mxu1 %v9434_v53  ;;  %v9479_v53 = vld [vmem:[#allocation8 + $0x164] ss:$16 sps:$4 sm:$0xff]  }
 0x352   :  { %5866 = vmatpush2.bf16.msra.mxu0 %v9429_v30  ;;  %v9482_v30 = vld [vmem:[#allocation8 + $0x144] ss:$16 sps:$4 sm:$0xff]  }
 0x353   :  { %5909 = vmatpush2.bf16.msra.mxu1 %v9432_v19  ;;  %5867 = vmatprep.subr.bf16.mxu0 %v9437_v55  ;;  %v9567_v19 = vld [vmem:[#allocation8 + $0x3a0] ss:$16 sps:$4 sm:$0xff]   ;;  %v9572_v55 = vld [vmem:[#allocation8 + $0x384] ss:$16 sps:$4 sm:$0xff]  }
 0x354   :  { %5910 = vmatprep.subr.bf16.mxu1 %v9440_v8  ;;  %v9485_v8 = vld [vmem:[#allocation8 + $0x124] ss:$16 sps:$4 sm:$0xff]  }
 0x356   :  { %5868 = vmatpush2.bf16.msra.mxu0 %v9435_v48  ;;  %v9575_v48 = vld [vmem:[#allocation8 + $0x364] ss:$16 sps:$4 sm:$0xff]  }
 0x357   :  { %5911 = vmatpush2.bf16.msra.mxu1 %v9438_v49  ;;  %6725 = vmatprep.subr.bf16.mxu0 %v9443_v22  ;;  %v9488_v49 = vld [vmem:[#allocation8 + $0x104] ss:$16 sps:$4 sm:$0xff]   ;;  %v9573_v22 = vld [vmem:[#allocation8 + $0x360] ss:$16 sps:$4 sm:$0xff]  }
 0x358   :  { %6768 = vmatprep.subr.bf16.mxu1 %v9539_v18  ;;  %v9500_v18 = vld [vmem:[#allocation8 + $0x8c] ss:$16 sps:$4 sm:$0xff]  }
 0x359   :  { %5870 = vmatmul.mubr.bf16.vlgmr.msra.gmra.mxu0 %v10084_v57  ;;  %v9540_v57 = vld [vmem:[#allocation8 + $0x2c0] ss:$16 sps:$4 sm:$0xff]  }
 0x35a   :  { %5913 = vmatmul.mubr.bf16.vlgmr.msra.gmra.mxu1 %v10088_v58  ;;  %6726 = vmatpush1.bf16.msra.mxu0 %v9441_v32  ;;  %v9453_v58 = vld [vmem:[#allocation8 + $0x60] ss:$16 sps:$4 sm:$0xff]   ;;  %v9489_v32 = vld [vmem:[#allocation8 + $0xe8] ss:$16 sps:$4 sm:$0xff]  }
 0x35b   :  { %6757 = vmatprep.mubr.bf16.mxu0 %v10196_v7  ;;  %6727 = vmatprep.subr.bf16.mxu0 %v9446_v3  ;;  %v9494_v3 = vld [vmem:[#allocation8 + $0xcc] ss:$16 sps:$4 sm:$0xff]  }
 0x35c   :  { %6769 = vmatpush1.bf16.msra.mxu1 %v9537_v13  ;;  %v9581_v13 = vld [vmem:[#allocation8 + $0x324] ss:$16 sps:$4 sm:$0xff]  }
 0x35d   :  { %6770 = vmatprep.subr.bf16.mxu1 %v9542_v27  ;;  %v9498_v27 = vld [vmem:[#allocation8 + $0x88] ss:$16 sps:$4 sm:$0xff]  }
 0x35e   :  { %6728 = vmatpush1.bf16.msra.mxu0 %v9444_v0  ;;  %v9492_v0 = vld [vmem:[#allocation8 + $0xc8] ss:$16 sps:$4 sm:$0xff]  }
 0x35f   :  { %6729 = vmatprep.subr.bf16.mxu0 %v9449_v41  ;;  %v9578_v41 = vld [vmem:[#allocation8 + $0x344] ss:$16 sps:$4 sm:$0xff]  }
 0x360   :  { %6771 = vmatpush1.bf16.msra.mxu1 %v9540_v57  ;;  %v9584_v57 = vld [vmem:[#allocation8 + $0x304] ss:$16 sps:$4 sm:$0xff]  }
 0x361   :  { %6772 = vmatprep.subr.bf16.mxu1 %v9545_v60  ;;  %v9501_v60 = vld [vmem:[#allocation8 + $0x68] ss:$16 sps:$4 sm:$0xff]  }
 0x362   :  { %6730 = vmatpush1.bf16.msra.mxu0 %v9447_v26  ;;  %v9497_v26 = vld [vmem:[#allocation8 + $0xac] ss:$16 sps:$4 sm:$0xff]  }
 0x363   :  { %6731 = vmatprep.subr.bf16.mxu0 %v9452_v24  ;;  %v9576_v24 = vld [vmem:[#allocation8 + $0x340] ss:$16 sps:$4 sm:$0xff]  }
 0x364   :  { %6773 = vmatpush1.bf16.msra.mxu1 %v9543_v56  ;;  %v9506_v56 = vld [vmem:[#allocation8 + $0x4c] ss:$16 sps:$4 sm:$0xff]  }
 0x365   :  { %6774 = vmatprep.subr.bf16.mxu1 %v9548_v47  ;;  %v9509_v47 = vld [vmem:[#allocation8 + $0x2c] ss:$16 sps:$4 sm:$0xff]  }
 0x366   :  { %6732 = vmatpush1.bf16.msra.mxu0 %v9450_v43  ;;  %v9495_v43 = vld [vmem:[#allocation8 + $0xa8] ss:$16 sps:$4 sm:$0xff]  }
 0x367   :  { %6733 = vmatprep.subr.bf16.mxu0 %v9455_v4  ;;  %v9579_v4 = vld [vmem:[#allocation8 + $0x320] ss:$16 sps:$4 sm:$0xff]  }
 0x368   :  { %6775 = vmatpush1.bf16.msra.mxu1 %v9546_v61  ;;  %v9512_v61 = vld [vmem:[#allocation8 + $0xc] ss:$16 sps:$4 sm:$0xff]  }
 0x369   :  { %6776 = vmatprep.subr.bf16.mxu1 %v9551_v34  ;;  %v9515_v34 = vld [vmem:[#allocation8 + $0x1ec] ss:$16 sps:$4 sm:$0xff]  }
 0x36a   :  { %6734 = vmatpush1.bf16.msra.mxu0 %v9453_v58  ;;  %v9582_v58 = vld [vmem:[#allocation8 + $0x300] ss:$16 sps:$4 sm:$0xff]  }
 0x36b   :  { %6735 = vmatprep.subr.bf16.mxu0 %v9458_v39  ;;  %v9587_v39 = vld [vmem:[#allocation8 + $0x2ec] ss:$16 sps:$4 sm:$0xff]  }
 0x36c   :  { %6777 = vmatpush1.bf16.msra.mxu1 %v9549_v59  ;;  %v9518_v59 = vld [vmem:[#allocation8 + $0x1cc] ss:$16 sps:$4 sm:$0xff]  }
 0x36d   :  { %6778 = vmatprep.subr.bf16.mxu1 %v9554_v15  ;;  %v9521_v15 = vld [vmem:[#allocation8 + $0x1ac] ss:$16 sps:$4 sm:$0xff]  }
 0x36e   :  { %6736 = vmatpush1.bf16.msra.mxu0 %v9456_v25  ;;  %v9504_v25 = vld [vmem:[#allocation8 + $0x48] ss:$16 sps:$4 sm:$0xff]  }
 0x36f   :  { %6737 = vmatprep.subr.bf16.mxu0 %v9461_v50  ;;  %v9507_v50 = vld [vmem:[#allocation8 + $0x28] ss:$16 sps:$4 sm:$0xff]  }
 0x370   :  { %6779 = vmatpush1.bf16.msra.mxu1 %v9552_v37  ;;  %v9524_v37 = vld [vmem:[#allocation8 + $0x18c] ss:$16 sps:$4 sm:$0xff]  }
 0x371   :  { %6780 = vmatprep.subr.bf16.mxu1 %v9557_v12  ;;  %v9527_v12 = vld [vmem:[#allocation8 + $0x16c] ss:$16 sps:$4 sm:$0xff]  }
 0x372   :  { %6738 = vmatpush1.bf16.msra.mxu0 %v9459_v40  ;;  %v9510_v40 = vld [vmem:[#allocation8 + $0x8] ss:$16 sps:$4 sm:$0xff]  }
 0x373   :  { %6739 = vmatprep.subr.bf16.mxu0 %v9464_v28  ;;  %v9513_v28 = vld [vmem:[#allocation8 + $0x1e8] ss:$16 sps:$4 sm:$0xff]  }
 0x374   :  { %6781 = vmatpush1.bf16.msra.mxu1 %v9555_v38  ;;  %v9530_v38 = vld [vmem:[#allocation8 + $0x14c] ss:$16 sps:$4 sm:$0xff]  }
 0x375   :  { %6782 = vmatprep.subr.bf16.mxu1 %v9560_v52  ;;  %v9533_v52 = vld [vmem:[#allocation8 + $0x12c] ss:$16 sps:$4 sm:$0xff]  }
 0x376   :  { %6740 = vmatpush1.bf16.msra.mxu0 %v9462_v14  ;;  %v9516_v14 = vld [vmem:[#allocation8 + $0x1c8] ss:$16 sps:$4 sm:$0xff]  }
 0x377   :  { %6741 = vmatprep.subr.bf16.mxu0 %v9467_v11  ;;  %v9519_v11 = vld [vmem:[#allocation8 + $0x1a8] ss:$16 sps:$4 sm:$0xff]  }
 0x378   :  { %6783 = vmatpush1.bf16.msra.mxu1 %v9558_v21  ;;  %v9536_v21 = vld [vmem:[#allocation8 + $0x10c] ss:$16 sps:$4 sm:$0xff]  }
 0x379   :  { %6784 = vmatprep.subr.bf16.mxu1 %v9563_v46  ;;  %v5441_v46 = vpop.f32.mrf.mxu0 }
 0x37a   :  { %6742 = vmatpush2.bf16.msra.mxu0 %v9465_v10  ;;  %v9522_v10 = vld [vmem:[#allocation8 + $0x188] ss:$16 sps:$4 sm:$0xff]  }
 0x37b   :  { %6743 = vmatprep.subr.bf16.mxu0 %v9470_v16  ;;  %v9525_v16 = vld [vmem:[#allocation8 + $0x168] ss:$16 sps:$4 sm:$0xff]  }
 0x37c   :  { %6785 = vmatpush2.bf16.msra.mxu1 %v9561_v1  ;;  %v5443_v1 = vpop.f32.mrf.mxu0 }
 0x37d   :  { %6786 = vmatprep.subr.bf16.mxu1 %v9566_v29 }
 0x37e   :  { %6744 = vmatpush2.bf16.msra.mxu0 %v9468_v17  ;;  %v9528_v17 = vld [vmem:[#allocation8 + $0x148] ss:$16 sps:$4 sm:$0xff]   ;;  %v5445_v29 = vpop.f32.mrf.mxu0 }
 0x37f   :  { %6745 = vmatprep.subr.bf16.mxu0 %v9473_v54  ;;  %v9531_v54 = vld [vmem:[#allocation8 + $0x128] ss:$16 sps:$4 sm:$0xff]  }
 0x380   :  { %6787 = vmatpush2.bf16.msra.mxu1 %v9564_v33  ;;  %v5447_v33 = vpop.f32.mrf.mxu0 }
 0x381   :  { %6788 = vmatprep.subr.bf16.mxu1 %v9569_v2 }
 0x382   :  { %6746 = vmatpush2.bf16.msra.mxu0 %v9471_v44  ;;  %v9534_v44 = vld [vmem:[#allocation8 + $0x108] ss:$16 sps:$4 sm:$0xff]   ;;  %v5527_v2 = vpop.f32.mrf.mxu0 }
 0x383   :  { %6747 = vmatprep.subr.bf16.mxu0 %v9476_v31  ;;  %v5484_v31 = vpop.f32.mrf.mxu1 }
 0x384   :  { %6789 = vmatpush2.bf16.msra.mxu1 %v9567_v19  ;;  %v5529_v19 = vpop.f32.mrf.mxu0 }
 0x385   :  { %6790 = vmatprep.subr.bf16.mxu1 %v9572_v55 }
 0x386   :  { %6748 = vmatpush2.bf16.msra.mxu0 %v9474_v45  ;;  %v5486_v45 = vpop.f32.mrf.mxu1  ;;  %v5531_v55 = vpop.f32.mrf.mxu0 }
 0x387   :  { %6749 = vmatprep.subr.bf16.mxu0 %v9479_v53 }
 0x388   :  { %6791 = vmatpush2.bf16.msra.mxu1 %v9570_v9  ;;  %v5488_v53 = vpop.f32.mrf.mxu1  ;;  %v5533_v9 = vpop.f32.mrf.mxu0 }
 0x389   :  { %6792 = vmatprep.subr.bf16.mxu1 %v9575_v48 }
 0x38a   :  { %6750 = vmatpush2.bf16.msra.mxu0 %v9477_v35  ;;  %v5490_v35 = vpop.f32.mrf.mxu1  ;;  %v5613_v48 = vpop.f32.mrf.mxu0 }
 0x38b   :  { %6751 = vmatprep.subr.bf16.mxu0 %v9482_v30 }
 0x38c   :  { %6793 = vmatpush2.bf16.msra.mxu1 %v9573_v22  ;;  %v5570_v30 = vpop.f32.mrf.mxu1  ;;  %v5615_v22 = vpop.f32.mrf.mxu0 }
 0x38d   :  { %6794 = vmatprep.subr.bf16.mxu1 %v9578_v41 }
 0x38e   :  { %6752 = vmatpush2.bf16.msra.mxu0 %v9480_v36  ;;  %v5572_v36 = vpop.f32.mrf.mxu1 }
 0x38f   :  { %6753 = vmatprep.subr.bf16.mxu0 %v9485_v8 }
 0x390   :  { %6795 = vmatpush2.bf16.msra.mxu1 %v9576_v24  ;;  %v5574_v8 = vpop.f32.mrf.mxu1 }
 0x391   :  { %6796 = vmatprep.subr.bf16.mxu1 %v9581_v13 }
 0x392   :  { %6754 = vmatpush2.bf16.msra.mxu0 %v9483_v6  ;;  %v5576_v6 = vpop.f32.mrf.mxu1 }
 0x393   :  { %6755 = vmatprep.subr.bf16.mxu0 %v9488_v49 }
 0x394   :  { %6797 = vmatpush2.bf16.msra.mxu1 %v9579_v4  ;;  %v5656_v49 = vpop.f32.mrf.mxu1 }
 0x395   :  { %6798 = vmatprep.subr.bf16.mxu1 %v9584_v57 }
 0x396   :  { %6756 = vmatpush2.bf16.msra.mxu0 %v9486_v62  ;;  %v5658_v62 = vpop.f32.mrf.mxu1 }
 0x397   :  { %6811 = vmatprep.subr.bf16.mxu0 %v9491_v23  ;;  %v925_v23 = vsub.s32 3, %v9999_v63 }
 0x398   :  { %6799 = vmatpush2.bf16.msra.mxu1 %v9582_v58 }
 0x399   :  { %6758 = vmatmul.mubr.bf16.vlgmr.msra.gmra.mxu0 %v10158_v51  ;;  %6854 = vmatprep.subr.bf16.mxu1 %v9587_v39 }
 0x39a   :  { %6812 = vmatpush1.bf16.msra.mxu0 %v9489_v32  ;;  %6843 = vmatprep.mubr.bf16.mxu0 %v10196_v7  ;;  %v9503_v7 = vld [vmem:[#allocation8 + $0x6c] ss:$16 sps:$4 sm:$0xff]   ;;  %v5617_v32 = vpop.f32.mrf.mxu0 }
 0x39b   :  { %6813 = vmatprep.subr.bf16.mxu0 %v9494_v3  ;;  %v5660_v3 = vpop.f32.mrf.mxu1 }
 0x39d   :  { %v5662_v24 = vpop.f32.mrf.mxu1 }
 0x39e   :  { %6814 = vmatpush1.bf16.msra.mxu0 %v9492_v0  ;;  %v926_v0 = vrot.slane %v10169_v42, %v925_v23 }
 0x39f   :  { %6815 = vmatprep.subr.bf16.mxu0 %v9497_v26  ;;  %v5619_v26 = vpop.f32.mrf.mxu0  ;;  %v5742_v13 = vpop.f32.mrf.mxu1 }
 0x3a2   :  { %6816 = vmatpush1.bf16.msra.mxu0 %v9495_v43  ;;  %v5699_v43 = vpop.f32.mrf.mxu0 }
 0x3a3   :  { %6817 = vmatprep.subr.bf16.mxu0 %v9500_v18  ;;  %v5444_v18 = vadd.f32 %v5443_v1, %v926_v0 }
 0x3a4   :  { %v5701_v57 = vpop.f32.mrf.mxu0 }
 0x3a5   :  { %v5487_v58 = vadd.f32 %v5486_v45, %v5444_v18 }
 0x3a6   :  { %6818 = vmatpush1.bf16.msra.mxu0 %v9498_v27 }
 0x3a7   :  { %6819 = vmatprep.subr.bf16.mxu0 %v9503_v7  ;;  %v5744_v7 = vpop.f32.mrf.mxu1 }
 0x3aa   :  { %6820 = vmatpush1.bf16.msra.mxu0 %v9501_v60  ;;  %v5448_v60 = vadd.f32 %v5447_v33, %v926_v0 }
 0x3ab   :  { %6821 = vmatprep.subr.bf16.mxu0 %v9506_v56 }
 0x3ae   :  { %6822 = vmatpush1.bf16.msra.mxu0 %v9504_v25  ;;  %v5530_v25 = vadd.f32 %v5529_v19, %v5487_v58 }
 0x3af   :  { %6823 = vmatprep.subr.bf16.mxu0 %v9509_v47 }
 0x3b2   :  { %6824 = vmatpush1.bf16.msra.mxu0 %v9507_v50  ;;  %v5703_v50 = vpop.f32.mrf.mxu0 }
 0x3b3   :  { %6825 = vmatprep.subr.bf16.mxu0 %v9512_v61  ;;  %v5746_v61 = vpop.f32.mrf.mxu1 }
 0x3b6   :  { %6826 = vmatpush1.bf16.msra.mxu0 %v9510_v40  ;;  %v5491_v40 = vadd.f32 %v5490_v35, %v5448_v60 }
 0x3b7   :  { %6827 = vmatprep.subr.bf16.mxu0 %v9515_v34 }
 0x3ba   :  { %6828 = vmatpush2.bf16.msra.mxu0 %v9513_v28  ;;  %v5534_v28 = vadd.f32 %v5533_v9, %v5491_v40 }
 0x3bb   :  { %6829 = vmatprep.subr.bf16.mxu0 %v9518_v59 }
 0x3be   :  { %6830 = vmatpush2.bf16.msra.mxu0 %v9516_v14  ;;  %v5705_v14 = vpop.f32.mrf.mxu0 }
 0x3bf   :  { %6831 = vmatprep.subr.bf16.mxu0 %v9521_v15  ;;  %v5748_v15 = vpop.f32.mrf.mxu1 }
 0x3c2   :  { %6832 = vmatpush2.bf16.msra.mxu0 %v9519_v11 }
 0x3c3   :  { %6833 = vmatprep.subr.bf16.mxu0 %v9524_v37 }
 0x3c6   :  { %6834 = vmatpush2.bf16.msra.mxu0 %v9522_v10 }
 0x3c7   :  { %6835 = vmatprep.subr.bf16.mxu0 %v9527_v12 }
 0x3ca   :  { %6836 = vmatpush2.bf16.msra.mxu0 %v9525_v16 }
 0x3cb   :  { %6837 = vmatprep.subr.bf16.mxu0 %v9530_v38  ;;  %v5577_v38 = vadd.f32 %v5576_v6, %v5534_v28 }
 0x3ce   :  { %6838 = vmatpush2.bf16.msra.mxu0 %v9528_v17 }
 0x3cf   :  { %6839 = vmatprep.subr.bf16.mxu0 %v9533_v52 }
 0x3d2   :  { %6840 = vmatpush2.bf16.msra.mxu0 %v9531_v54  ;;  %v5620_v54 = vadd.f32 %v5619_v26, %v5577_v38  ;;  %v9639_v38 = vld [vmem:[#allocation11 + $0x60] sm:$0xff]  }
 0x3d3   :  { %6841 = vmatprep.subr.bf16.mxu0 %v9536_v21 }
 0x3d6   :  { %6842 = vmatpush2.bf16.msra.mxu0 %v9534_v44 }
 0x3d9   :  { %6844 = vmatmul.mubr.bf16.vlgmr.msra.gmra.mxu0 %v10158_v51  ;;  %v921_v51 = vsub.s32 2, %v9999_v63  ;;  %v5785_v12 = vpop.f32.mrf.mxu0 }
 0x3da   :  { %v5828_v16 = vpop.f32.mrf.mxu1 }
 0x3db   :  { %v922_v41 = vrot.slane %v10169_v42, %v921_v51  ;;  %v5573_v42 = vadd.f32 %v5572_v36, %v5530_v25  ;;  %v5787_v44 = vpop.f32.mrf.mxu0  ;;  %v9634_v25 = vld [vmem:[#allocation11 + $0x38] sm:$0xff]  }
 0x3dd   :  { %v5442_v4 = vadd.f32 %v5441_v46, %v922_v41  ;;  %v5446_v27 = vadd.f32 %v5445_v29, %v922_v41  ;;  %v5616_v37 = vadd.f32 %v5615_v22, %v5573_v42  ;;  %v5830_v46 = vpop.f32.mrf.mxu1  ;;  %v5663_v29 = vadd.f32 %v5662_v24, %v5620_v54  ;;  %v5789_v33 = vpop.f32.mrf.mxu0  ;;  %v9636_v42 = vld [vmem:[#allocation11 + $0x30] sm:$0xff]   ;;  %v9640_v54 = vld [vmem:[#allocation11 + $0x20] sm:$0xff]  }
 0x3df   :  { %v5485_v39 = vadd.f32 %v5484_v31, %v5442_v4  ;;  %v5489_v56 = vadd.f32 %v5488_v53, %v5446_v27  ;;  %v5659_v52 = vadd.f32 %v5658_v62, %v5616_v37  ;;  %v5832_v35 = vpop.f32.mrf.mxu1  ;;  %v5791_v9 = vpop.f32.mrf.mxu0  ;;  %v9585_v37 = vld [vmem:[#allocation8 + $0x2e8] ss:$16 sps:$4 sm:$0xff]  }
 0x3e1   :  { %v5528_v47 = vadd.f32 %v5527_v2, %v5485_v39  ;;  %v5532_v34 = vadd.f32 %v5531_v55, %v5489_v56  ;;  %v5702_v1 = vadd.f32 %v5701_v57, %v5659_v52  ;;  %v5834_v6 = vpop.f32.mrf.mxu1  ;;  %v9633_v56 = vld [vmem:[#allocation11 + $0x78] sm:$0xff]  }
 0x3e2   :  { %8229 = vmatprep.subr.bf16.mxu0 %v9633_v56  ;;  %v9593_v52 = vld [vmem:[#allocation8 + $0x2ac] ss:$16 sps:$4 sm:$0xff]   ;;  %v9652_v56 = vld [vmem:[#allocation11 + $0xb0] sm:$0xff]  }
 0x3e3   :  { %v5571_v59 = vadd.f32 %v5570_v30, %v5528_v47  ;;  %v5575_v11 = vadd.f32 %v5574_v8, %v5532_v34  ;;  %v5745_v2 = vadd.f32 %v5744_v7, %v5702_v1  ;;  %v5706_v30 = vadd.f32 %v5705_v14, %v5663_v29  ;;  %v9635_v47 = vld [vmem:[#allocation11 + $0x70] sm:$0xff]   ;;  %8230 = vmatpush3.bf16.msra.mxu0 %v9634_v25  ;;  %v9637_v14 = vld [vmem:[#allocation11 + $0x68] sm:$0xff]  }
 0x3e4   :  { %8231 = vmatprep.subr.bf16.mxu0 %v9635_v47  ;;  %v9594_v1 = vld [vmem:[#allocation8 + $0x288] ss:$16 sps:$4 sm:$0xff]   ;;  %v9653_v25 = vld [vmem:[#allocation11 + $0xe8] sm:$0xff]  }
 0x3e5   :  { %v5614_v10 = vadd.f32 %v5613_v48, %v5571_v59  ;;  %v5618_v17 = vadd.f32 %v5617_v32, %v5575_v11  ;;  %v5788_v55 = vadd.f32 %v5787_v44, %v5745_v2  ;;  %v5749_v48 = vadd.f32 %v5748_v15, %v5706_v30  ;;  %v9591_v44 = vld [vmem:[#allocation8 + $0x2a8] ss:$16 sps:$4 sm:$0xff]   ;;  %v9608_v30 = vld [vmem:[#allocation8 + $0x20c] ss:$16 sps:$4 sm:$0xff]  }
 0x3e6   :  { %v9597_v29 = vld [vmem:[#allocation8 + $0x268] ss:$16 sps:$4 sm:$0xff]   ;;  %v9654_v47 = vld [vmem:[#allocation11 + $0xa8] sm:$0xff]  }
 0x3e7   :  { %v5657_v21 = vadd.f32 %v5656_v49, %v5614_v10  ;;  %v5661_v31 = vadd.f32 %v5660_v3, %v5618_v17  ;;  %v5831_v32 = vadd.f32 %v5830_v46, %v5788_v55  ;;  %v5792_v3 = vadd.f32 %v5791_v9, %v5749_v48  ;;  %8232 = vmatpush3.bf16.msra.mxu0 %v9636_v42  ;;  %v9588_v17 = vld [vmem:[#allocation8 + $0x2c8] ss:$16 sps:$4 sm:$0xff]   ;;  %v9596_v46 = vld [vmem:[#allocation8 + $0x28c] ss:$16 sps:$4 sm:$0xff]  }
 0x3e8   :  { %8233 = vmatprep.subr.bf16.mxu0 %v9637_v14  ;;  %v9603_v2 = vld [vmem:[#allocation8 + $0x228] ss:$16 sps:$4 sm:$0xff]   ;;  %v9662_v14 = vld [vmem:[#allocation11 + $0x88] sm:$0xff]  }
 0x3e9   :  { %v5700_v45 = vadd.f32 %v5699_v43, %v5657_v21  ;;  %v5704_v53 = vadd.f32 %v5703_v50, %v5661_v31  ;;  %v9641_v21 = vld [vmem:[#allocation11 + $0x58] sm:$0xff]   ;;  %v9609_v55 = vld [vmem:[#allocation8 + $0x3e8] ss:$16 sps:$4 sm:$0xff]  }
 0x3ea   :  { %v9642_v31 = vld [vmem:[#allocation11 + $0x18] sm:$0xff]   ;;  %v9612_v9 = vld [vmem:[#allocation8 + $0x3c8] ss:$16 sps:$4 sm:$0xff]  }
 0x3eb   :  { %v5743_v19 = vadd.f32 %v5742_v13, %v5700_v45  ;;  %v5747_v36 = vadd.f32 %v5746_v61, %v5704_v53  ;;  %v5835_v13 = vadd.f32 %v5834_v6, %v5792_v3  ;;  %v9599_v45 = vld [vmem:[#allocation8 + $0x26c] ss:$16 sps:$4 sm:$0xff]   ;;  %v9615_v48 = vld [vmem:[#allocation8 + $0x3a8] ss:$16 sps:$4 sm:$0xff]  }
 0x3ec   :  { %v9602_v53 = vld [vmem:[#allocation8 + $0x24c] ss:$16 sps:$4 sm:$0xff]   ;;  %v9659_v42 = vld [vmem:[#allocation11 + $0xd0] sm:$0xff]  }
 0x3ed   :  { %v5786_v8 = vadd.f32 %v5785_v12, %v5743_v19  ;;  %v5790_v22 = vadd.f32 %v5789_v33, %v5747_v36  ;;  %v9590_v12 = vld [vmem:[#allocation8 + $0x2cc] ss:$16 sps:$4 sm:$0xff]   ;;  %v9600_v33 = vld [vmem:[#allocation8 + $0x248] ss:$16 sps:$4 sm:$0xff]  }
 0x3ee   :  { %v9606_v19 = vld [vmem:[#allocation8 + $0x208] ss:$16 sps:$4 sm:$0xff]   ;;  %v9611_v36 = vld [vmem:[#allocation8 + $0x3ec] ss:$16 sps:$4 sm:$0xff]  }
 0x3ef   :  { %v5829_v0 = vadd.f32 %v5828_v16, %v5786_v8  ;;  %v5833_v24 = vadd.f32 %v5832_v35, %v5790_v22  ;;  %v9638_v16 = vld [vmem:[#allocation11 + $0x28] sm:$0xff]  }
 0x3f0   :  { %8234 = vmatpush3.bf16.msra.mxu0 %v9638_v16  ;;  %v9605_v35 = vld [vmem:[#allocation8 + $0x22c] ss:$16 sps:$4 sm:$0xff]  }
 0x3f1   :  { %8235 = vmatprep.subr.bf16.mxu0 %v9639_v38  ;;  %v9614_v8 = vld [vmem:[#allocation8 + $0x3cc] ss:$16 sps:$4 sm:$0xff]  }
 0x3f2   :  { %v9617_v6 = vld [vmem:[#allocation8 + $0x3ac] ss:$16 sps:$4 sm:$0xff]  }
 0x3f3   :  { %v9620_v22 = vld [vmem:[#allocation8 + $0x38c] ss:$16 sps:$4 sm:$0xff]  }
 0x3f4   :  { %8236 = vmatpush3.bf16.msra.mxu0 %v9640_v54  ;;  %v9626_v3 = vld [vmem:[#allocation8 + $0x34c] ss:$16 sps:$4 sm:$0xff]  }
 0x3f5   :  { %8237 = vmatprep.subr.bf16.mxu0 %v9641_v21 }
 0x3f8   :  { %8238 = vmatpush3.bf16.msra.mxu0 %v9642_v31 }
 0x419   :  { %v5871_v49 = vpop.f32.mrf.mxu0 }
 0x41a   :  { %v5914_v62 = vpop.f32.mrf.mxu1  ;;  %v5872_v18 = vadd.f32 %v5871_v49, %v5829_v0  ;;  %v9618_v49 = vld [vmem:[#allocation8 + $0x388] ss:$16 sps:$4 sm:$0xff]  }
 0x41b   :  { %v5873_v41 = vpop.f32.mrf.mxu0  ;;  %v9624_v0 = vld [vmem:[#allocation8 + $0x348] ss:$16 sps:$4 sm:$0xff]  }
 0x41c   :  { %v5916_v26 = vpop.f32.mrf.mxu1  ;;  %v5874_v43 = vadd.f32 %v5873_v41, %v5831_v32  ;;  %v5915_v50 = vadd.f32 %v5914_v62, %v5872_v18  ;;  %v9623_v62 = vld [vmem:[#allocation8 + $0x36c] ss:$16 sps:$4 sm:$0xff]   ;;  %v9621_v32 = vld [vmem:[#allocation8 + $0x368] ss:$16 sps:$4 sm:$0xff]  }
 0x41d   :  { %v5875_v4 = vpop.f32.mrf.mxu0  ;;  %v9629_v41 = vld [vmem:[#allocation8 + $0x32c] ss:$16 sps:$4 sm:$0xff]   ;;  %v9643_v18 = vld [vmem:[#allocation11 + $0x50] sm:$0xff]  }
 0x41e   :  { %v5918_v27 = vpop.f32.mrf.mxu1  ;;  %v5876_v57 = vadd.f32 %v5875_v4, %v5833_v24  ;;  %v5917_v58 = vadd.f32 %v5916_v26, %v5874_v43  ;;  %v5925_v15 = vmax.f32 %v5915_v50, 0.0  ;;  %v9627_v26 = vld [vmem:[#allocation8 + $0x328] ss:$16 sps:$4 sm:$0xff]   ;;  %v9632_v24 = vld [vmem:[#allocation8 + $0x30c] ss:$16 sps:$4 sm:$0xff]   ;;  %8239 = vmatprep.subr.bf16.mxu0 %v9643_v18 }
 0x41f   :  { %v5877_v7 = vpop.f32.mrf.mxu0  ;;  %v9630_v43 = vld [vmem:[#allocation8 + $0x308] ss:$16 sps:$4 sm:$0xff]  }
 0x420   :  { %v5919_v60 = vadd.f32 %v5918_v27, %v5876_v57  ;;  %v5878_v39 = vadd.f32 %v5877_v7, %v5835_v13  ;;  %v5920_v61 = vpop.f32.mrf.mxu1  ;;  %v5926_v28 = vmax.f32 %v5917_v58, 0.0  ;;  %v9644_v4 = vld [vmem:[#allocation11 + $0x10] sm:$0xff]   ;;  %v9645_v27 = vld [vmem:[#allocation11 + $0x48] sm:$0xff]   ;;  %v9647_v57 = vld [vmem:[#allocation11 + $0x40] sm:$0xff]  }
 0x421   :  { %8240 = vmatpush3.bf16.msra.mxu0 %v9644_v4  ;;  %v9646_v13 = vld [vmem:[#allocation11 + $0x8] sm:$0xff]   ;;  %v9648_v7 = vld [vmem:[#allocation11] sm:$0xff]   ;;  %v9649_v58 = vld [vmem:[#allocation11 + $0xf8] sm:$0xff]  }
 0x422   :  { %v5921_v40 = vadd.f32 %v5920_v61, %v5878_v39  ;;  %v5929_v34 = vmax.f32 %v5919_v60, 0.0  ;;  %8241 = vmatprep.subr.bf16.mxu0 %v9645_v27  ;;  %v9650_v60 = vld [vmem:[#allocation11 + $0xb8] sm:$0xff]   ;;  %v9651_v39 = vld [vmem:[#allocation11 + $0xf0] sm:$0xff]   ;;  %v9655_v50 = vld [vmem:[#allocation11 + $0xe0] sm:$0xff]  }
 0x423   :  { %v9656_v61 = vld [vmem:[#allocation11 + $0xa0] sm:$0xff]  }
 0x424   :  { %v5930_v59 = vmax.f32 %v5921_v40, 0.0  ;;  %v10212_v10 = vpack.c.bf16 %v5929_v34, %v5925_v15  ;;  %v9657_v40 = vld [vmem:[#allocation11 + $0xd8] sm:$0xff]   ;;  %v9663_v15 = vld [vmem:[#allocation11 + $0xc0] sm:$0xff]  }
 0x425   :  { %8242 = vmatpush3.bf16.msra.mxu0 %v9646_v13  ;;  %v9658_v34 = vld [vmem:[#allocation11 + $0x98] sm:$0xff]  }
 0x426   :  { %v5934_v11 = vpack.c.bf16 %v5930_v59, %v5926_v28  ;;  %8243 = vmatprep.subr.bf16.mxu0 %v9647_v57  ;;  %v9660_v28 = vld [vmem:[#allocation11 + $0x90] sm:$0xff]   ;;  %v9661_v59 = vld [vmem:[#allocation11 + $0xc8] sm:$0xff]  }
 0x428   :  { %6800 = vmatprep.mubr.bf16.mxu1 %v5934_v11 }
 0x429   :  { %6801 = vmatmul.mubr.bf16.vlgmr.msra.gmra.mxu1 %v10212_v10  ;;  %8244 = vmatpush3.bf16.msra.mxu0 %v9648_v7 }
 0x42a   :  { %6855 = vmatpush1.bf16.msra.mxu1 %v9585_v37  ;;  %6886 = vmatprep.mubr.bf16.mxu1 %v5934_v11  ;;  %v9664_v11 = vld [vmem:[#allocation11 + $0x80] sm:$0xff]  }
 0x42b   :  { %6856 = vmatprep.subr.bf16.mxu1 %v9590_v12  ;;  %v6063_v12 = vld [vmem:[#allocation10] sm:$0xf] }
 0x42c   :  { %v6072_v38 = vrot.slane %v6063_v12, %v917_v20 }
 0x42e   :  { %6857 = vmatpush1.bf16.msra.mxu1 %v9588_v17  ;;  %v6068_v17 = vrot.slane %v6063_v12, %v913_v5 }
 0x42f   :  { %6858 = vmatprep.subr.bf16.mxu1 %v9593_v52 }
 0x432   :  { %6859 = vmatpush1.bf16.msra.mxu1 %v9591_v44 }
 0x433   :  { %6860 = vmatprep.subr.bf16.mxu1 %v9596_v46 }
 0x436   :  { %6861 = vmatpush1.bf16.msra.mxu1 %v9594_v1 }
 0x437   :  { %6862 = vmatprep.subr.bf16.mxu1 %v9599_v45 }
 0x43a   :  { %6863 = vmatpush1.bf16.msra.mxu1 %v9597_v29 }
 0x43b   :  { %6864 = vmatprep.subr.bf16.mxu1 %v9602_v53 }
 0x43e   :  { %6865 = vmatpush1.bf16.msra.mxu1 %v9600_v33 }
 0x43f   :  { %6866 = vmatprep.subr.bf16.mxu1 %v9605_v35 }
 0x442   :  { %6867 = vmatpush1.bf16.msra.mxu1 %v9603_v2 }
 0x443   :  { %6868 = vmatprep.subr.bf16.mxu1 %v9608_v30 }
 0x446   :  { %6869 = vmatpush1.bf16.msra.mxu1 %v9606_v19 }
 0x447   :  { %6870 = vmatprep.subr.bf16.mxu1 %v9611_v36 }
 0x44a   :  { %6871 = vmatpush2.bf16.msra.mxu1 %v9609_v55 }
 0x44b   :  { %6872 = vmatprep.subr.bf16.mxu1 %v9614_v8 }
 0x44e   :  { %6873 = vmatpush2.bf16.msra.mxu1 %v9612_v9 }
 0x44f   :  { %6874 = vmatprep.subr.bf16.mxu1 %v9617_v6 }
 0x452   :  { %6875 = vmatpush2.bf16.msra.mxu1 %v9615_v48  ;;  %v6080_v48 = vrot.slane %v6063_v12, %v925_v23 }
 0x453   :  { %6876 = vmatprep.subr.bf16.mxu1 %v9620_v22  ;;  %v6076_v22 = vrot.slane %v6063_v12, %v921_v51 }
 0x456   :  { %6877 = vmatpush2.bf16.msra.mxu1 %v9618_v49 }
 0x457   :  { %6878 = vmatprep.subr.bf16.mxu1 %v9623_v62 }
 0x459   :  { %v6759_v37 = vpop.f32.mrf.mxu0 }
 0x45a   :  { %6879 = vmatpush2.bf16.msra.mxu1 %v9621_v32  ;;  %v6760_v31 = vadd.f32 %v6759_v37, %v6068_v17 }
 0x45b   :  { %6880 = vmatprep.subr.bf16.mxu1 %v9626_v3 }
 0x45e   :  { %6881 = vmatpush2.bf16.msra.mxu1 %v9624_v0 }
 0x45f   :  { %6882 = vmatprep.subr.bf16.mxu1 %v9629_v41 }
 0x462   :  { %6883 = vmatpush2.bf16.msra.mxu1 %v9627_v26 }
 0x463   :  { %6884 = vmatprep.subr.bf16.mxu1 %v9632_v24 }
 0x466   :  { %6885 = vmatpush2.bf16.msra.mxu1 %v9630_v43 }
 0x467   :  { %8251 = vmatprep.subr.bf16.mxu1 %v9649_v58 }
 0x469   :  { %6887 = vmatmul.mubr.bf16.vlgmr.msra.gmra.mxu1 %v10212_v10  ;;  %v6761_v10 = vpop.f32.mrf.mxu0 }
 0x46a   :  { %8252 = vmatpush3.bf16.msra.mxu1 %v9650_v60  ;;  %v6762_v44 = vadd.f32 %v6761_v10, %v6072_v38 }
 0x46b   :  { %8253 = vmatprep.subr.bf16.mxu1 %v9651_v39  ;;  %v6763_v16 = vpop.f32.mrf.mxu0 }
 0x46c   :  { %v6764_v46 = vadd.f32 %v6763_v16, %v6068_v17 }
 0x46d   :  { %v6765_v54 = vpop.f32.mrf.mxu0 }
 0x46e   :  { %8254 = vmatpush3.bf16.msra.mxu1 %v9652_v56  ;;  %v6766_v45 = vadd.f32 %v6765_v54, %v6072_v38 }
 0x46f   :  { %8255 = vmatprep.subr.bf16.mxu1 %v9653_v25 }
 0x472   :  { %8256 = vmatpush3.bf16.msra.mxu1 %v9654_v47  ;;  %v8196_v47 = vld [vmem:[#allocation13] ss:$0 sm:$0xff] }
 0x473   :  { %8257 = vmatprep.subr.bf16.mxu1 %v9655_v50 }
 0x476   :  { %8258 = vmatpush3.bf16.msra.mxu1 %v9656_v61 }
 0x477   :  { %8259 = vmatprep.subr.bf16.mxu1 %v9657_v40 }
 0x47a   :  { %8260 = vmatpush3.bf16.msra.mxu1 %v9658_v34 }
 0x47b   :  { %8261 = vmatprep.subr.bf16.mxu1 %v9659_v42 }
 0x47e   :  { %8262 = vmatpush3.bf16.msra.mxu1 %v9660_v28 }
 0x47f   :  { %8263 = vmatprep.subr.bf16.mxu1 %v9661_v59 }
 0x482   :  { %8264 = vmatpush3.bf16.msra.mxu1 %v9662_v14 }
 0x483   :  { %8265 = vmatprep.subr.bf16.mxu1 %v9663_v15 }
 0x486   :  { %8266 = vmatpush3.bf16.msra.mxu1 %v9664_v11 }
 0x499   :  { %v6845_v5 = vpop.f32.mrf.mxu0 }
 0x49a   :  { %v6846_v41 = vadd.f32 %v6845_v5, %v6076_v22 }
 0x49b   :  { %v6847_v9 = vpop.f32.mrf.mxu0 }
 0x49c   :  { %v6848_v3 = vadd.f32 %v6847_v9, %v6080_v48 }
 0x49d   :  { %v6849_v6 = vpop.f32.mrf.mxu0 }
 0x49e   :  { %v6850_v0 = vadd.f32 %v6849_v6, %v6076_v22 }
 0x49f   :  { %v6851_v62 = vpop.f32.mrf.mxu0 }
 0x4a0   :  { %v6852_v24 = vadd.f32 %v6851_v62, %v6080_v48 }
 0x4e9   :  { %v6802_v52 = vpop.f32.mrf.mxu1 }
 0x4ea   :  { %v6803_v33 = vadd.f32 %v6802_v52, %v6760_v31 }
 0x4eb   :  { %v6804_v21 = vpop.f32.mrf.mxu1 }
 0x4ec   :  { %v6805_v29 = vadd.f32 %v6804_v21, %v6762_v44  ;;  %v6897_v20 = vmax.f32 %v6803_v33, 0.0 }
 0x4ed   :  { %v6806_v1 = vpop.f32.mrf.mxu1 }
 0x4ee   :  { %v6807_v53 = vadd.f32 %v6806_v1, %v6764_v46  ;;  %v6898_v19 = vmax.f32 %v6805_v29, 0.0 }
 0x4ef   :  { %v6808_v35 = vpop.f32.mrf.mxu1 }
 0x4f0   :  { %v6809_v2 = vadd.f32 %v6808_v35, %v6766_v45  ;;  %v6901_v30 = vmax.f32 %v6807_v53, 0.0 }
 0x4f2   :  { %v6902_v36 = vmax.f32 %v6809_v2, 0.0  ;;  %v6905_v8 = vpack.c.bf16 %v6901_v30, %v6897_v20 }
 0x4f4   :  { %v6906_v55 = vpack.c.bf16 %v6902_v36, %v6898_v19 }
 0x4f6   :  { %7204 = vmatprep.mubr.bf16.mxu0 %v6906_v55 }
 0x4f7   :  { %7205 = vmatmul.mubr.bf16.vlgmr.msra.gmra.mxu0 %v6905_v8 }
 0x529   :  { %v6888_v49 = vpop.f32.mrf.mxu1 }
 0x52a   :  { %v6889_v4 = vadd.f32 %v6888_v49, %v6846_v41 }
 0x52b   :  { %v6890_v32 = vpop.f32.mrf.mxu1 }
 0x52c   :  { %v6891_v43 = vadd.f32 %v6890_v32, %v6848_v3  ;;  %v6899_v23 = vmax.f32 %v6889_v4, 0.0 }
 0x52d   :  { %v6892_v26 = vpop.f32.mrf.mxu1 }
 0x52e   :  { %v6893_v18 = vadd.f32 %v6892_v26, %v6850_v0  ;;  %v6900_v7 = vmax.f32 %v6891_v43, 0.0 }
 0x52f   :  { %v6894_v27 = vpop.f32.mrf.mxu1 }
 0x530   :  { %v6895_v13 = vadd.f32 %v6894_v27, %v6852_v24  ;;  %v6903_v57 = vmax.f32 %v6893_v18, 0.0 }
 0x532   :  { %v6904_v58 = vmax.f32 %v6895_v13, 0.0  ;;  %v6907_v63 = vpack.c.bf16 %v6903_v57, %v6899_v23 }
 0x534   :  { %v6908_v60 = vpack.c.bf16 %v6904_v58, %v6900_v7 }
 0x536   :  { %7245 = vmatprep.mubr.bf16.mxu1 %v6908_v60 }
 0x537   :  { %7246 = vmatmul.mubr.bf16.vlgmr.msra.gmra.mxu1 %v6907_v63 }
 0x5b7   :  { %v8245_v51 = vpop.f32.mrf.mxu0 }
 0x5b9   :  { %v8246_v39 = vpop.f32.mrf.mxu0 }
 0x5ba   :  { %v8247_v25 = vadd.f32 %v8246_v39, %v8245_v51 }
 0x5bb   :  { %v8248_v56 = vpop.f32.mrf.mxu0 }
 0x5bc   :  { %v7207_v34 = vadd.f32 %v8247_v25, %v8196_v47 }
 0x5bd   :  { %v8249_v50 = vpop.f32.mrf.mxu0 }
 0x5be   :  { %v8250_v42 = vadd.f32 %v8249_v50, %v8248_v56 }
 0x5c0   :  { %v7210_v11 = vadd.f32 %v8250_v42, %v8196_v47 }
 0x5f7   :  { %v8267_v61 = vpop.f32.mrf.mxu1 }
 0x5f9   :  { %v8268_v40 = vpop.f32.mrf.mxu1 }
 0x5fa   :  { %v8269_v28 = vadd.f32 %v8268_v40, %v8267_v61 }
 0x5fb   :  { %v8270_v59 = vpop.f32.mrf.mxu1 }
 0x5fc   :  { %v7248_v14 = vadd.f32 %v8269_v28, %v7207_v34 }
 0x5fd   :  { %v8271_v15 = vpop.f32.mrf.mxu1 }
 0x5fe   :  { %7254 = vst [vmem:[#allocation14] sm:$0xff] %v7248_v14  ;;  %v8272_v37 = vadd.f32 %v8271_v15, %v8270_v59 }
 0x600   :  { %v7251_v10 = vadd.f32 %v8272_v37, %v7210_v11 }
 0x602   :  { %7255 = vst [vmem:[#allocation14 + $0x8] sm:$0xff] %v7251_v10 }
 0x603   :  { %9817 = shalt.err (!%p9814_p11)
}
 0x604   :  { %s9850_s1 = smov 128   ;;  %s9851_s16 = smov 8  }
 0x605   :  { %7267 = dma.vmem_to_hbm [thread:$0]  %s7262_s6, 256, %s10234_s7, [#allocation4], %s9850_s1, %s9850_s1, %s9851_s16  }
 0x606   :  { %9834 = dma.done.wait [#allocation4], 256  }
 0x607   :  { %9835 = vsyncadd [#allocation4], 4294967040 }
 0x608   :  { %7271 = vsyncpa [#allocation3], 1 }
 0x609   :  { %7272 = vsyncpa [#allocation6], 1 }
 0x60a   :  { %7273 = vsyncpa [#allocation9], 1 }
 0x60b   :  { %7274 = vsyncpa [#allocation12], 1 }
 0x60c   :  { %7275 = vsyncpa [#allocation4], 1 }

</bundles_post_ra>
